<compile_context>
chip_gen: v6e
topology: v6e:2x2x1
jax: 0.10.0
libtpu: 0.0.40
codegen_flags: <defaults>
</compile_context>

<pallas_src>
import functools

import jax
import jax.numpy as jnp
from jax.experimental import pallas as pl
from jax.experimental.pallas import tpu as pltpu

_LN_EPS = 1e-5
_NEG_INF = -1e30
_K_FUSE_MAX = 2048        # contractions larger than this go through the K-tiled path
_PROJ_TK = 512            # K tile for the K-tiled accumulator matmul


def _cdiv(a, b):
    return -(-a // b)


def _round_up(v, m):
    return _cdiv(v, m) * m


def _balanced_tile(dim, cap, align):
    """Largest tile <= ~cap that splits `dim` into equal-ish blocks (avoids
    padding a dim up to the cap, per perf review)."""
    nblk = max(1, _cdiv(dim, cap))
    return _round_up(_cdiv(dim, nblk), align)


def _tpu_config():
    """Per-generation VMEM budget and tile caps."""
    try:
        vmem = pltpu.get_tpu_info().vmem_capacity_bytes
    except Exception:                          # conservative (v7x-safe) fallback
        vmem = 64 * 1024 * 1024
    if vmem >= 100 * 1024 * 1024:              # v5e / v6e: 128 MiB physical VMEM
        return dict(vmem_limit=96 * 1024 * 1024, tm_max=512, tn_max=1024,
                    tile_max=1024)
    return dict(vmem_limit=40 * 1024 * 1024, tm_max=256, tn_max=512,
                tile_max=512)                  # v7x: 64 MiB physical VMEM


_CFG = _tpu_config()


# ------------------- fused (LN ->) matmul (-> GELU / +residual) -------------

def _fused_linear_kernel(*refs, has_ln, has_res, activation):
    it = iter(refs)
    x_ref = next(it)
    w_ref = next(it)
    b_ref = next(it)
    g_ref = next(it) if has_ln else None
    beta_ref = next(it) if has_ln else None
    r_ref = next(it) if has_res else None
    o_ref = next(it)

    x = x_ref[...].astype(jnp.float32)
    if has_ln:                                     # LN prologue (f32 stats)
        mu = jnp.mean(x, axis=-1, keepdims=True)
        xc = x - mu
        var = jnp.mean(xc * xc, axis=-1, keepdims=True)
        x = xc * jax.lax.rsqrt(var + _LN_EPS)
        x = x * g_ref[...] + beta_ref[...]
    # bf16 MXU inputs (weights are pre-cast to bf16), f32 accumulation.
    y = jnp.dot(x.astype(jnp.bfloat16), w_ref[...].astype(jnp.bfloat16),
                preferred_element_type=jnp.float32)
    y = y + b_ref[...]
    if activation == "gelu":
        # PyTorch nn.GELU() defaults to erf; tanh approximation kept for robust
        # Mosaic lowering (difference is O(1e-3)).
        y = jax.nn.gelu(y, approximate=True)
    if has_res:
        y = y + r_ref[...].astype(jnp.float32)
    o_ref[...] = y.astype(o_ref.dtype)


def _full_n_fits(tm, K, N, has_ln, has_res, cfg):
    # double-buffered inputs + output block, conservative f32/bf16 accounting
    need = 2 * (tm * K * 4 + K * N * 2 + N * 4) + 2 * tm * N * 4
    if has_ln:
        need += 4 * K * 4
    if has_res:
        need += 2 * tm * N * 4
    return need <= cfg["vmem_limit"] * 6 // 10


def fused_linear(x, w, b, *, ln=None, residual=None, activation=None,
                 out_dtype=jnp.float32):
    """act(LN(x) @ w + b) (+ residual), tiled over rows (and out-cols only when
    the full-N block would not fit the per-generation VMEM budget).

    x: (M, K) f32/bf16, w: (K, N) bf16 (prepared), b: (1, N) f32 (prepared)."""
    cfg = _CFG
    M, K = x.shape
    N = w.shape[1]
    tm = _balanced_tile(M, cfg["tm_max"], 8)
    M_pad = _round_up(M, tm)

    if N <= cfg["tn_max"] or _full_n_fits(tm, K, N, ln is not None,
                                          residual is not None, cfg):
        tn, N_pad = N, N
        wp, bp = w, b
    else:
        # Rare: very wide outputs.  Column tiling needs a (per-call, bf16) pad.
        tn = _balanced_tile(N, cfg["tn_max"], 128)
        N_pad = _round_up(N, tn)
        wp = jnp.pad(w, ((0, 0), (0, N_pad - N)))
        bp = jnp.pad(b, ((0, 0), (0, N_pad - N)))

    # Give both v7x TensorCores a block when the grid would otherwise be (1, 1).
    if M_pad // tm == 1 and N_pad // tn == 1 and M >= 64:
        tm = _round_up(_cdiv(M, 2), 8)
        M_pad = _round_up(M, tm)

    xp = jnp.pad(x, ((0, M_pad - M), (0, 0))) if M_pad != M else x

    inputs = [xp, wp, bp]
    in_specs = [
        pl.BlockSpec((tm, K), lambda i, j: (i, 0)),
        pl.BlockSpec((K, tn), lambda i, j: (0, j)),
        pl.BlockSpec((1, tn), lambda i, j: (0, j)),
    ]
    if ln is not None:
        g, beta = ln
        inputs += [g, beta]
        in_specs += [pl.BlockSpec((1, K), lambda i, j: (0, 0)),
                     pl.BlockSpec((1, K), lambda i, j: (0, 0))]
    if residual is not None:
        r = residual
        if M_pad != M or N_pad != N:
            r = jnp.pad(r, ((0, M_pad - M), (0, N_pad - N)))
        inputs.append(r)
        in_specs.append(pl.BlockSpec((tm, tn), lambda i, j: (i, j)))

    kern = functools.partial(_fused_linear_kernel, has_ln=ln is not None,
                             has_res=residual is not None, activation=activation)
    out = pl.pallas_call(
        kern,
        grid=(M_pad // tm, N_pad // tn),
        in_specs=in_specs,
        out_specs=pl.BlockSpec((tm, tn), lambda i, j: (i, j)),
        out_shape=jax.ShapeDtypeStruct((M_pad, N_pad), out_dtype),
        compiler_params=pltpu.CompilerParams(
            dimension_semantics=("parallel", "parallel"),
            vmem_limit_bytes=cfg["vmem_limit"]),
        cost_estimate=pl.CostEstimate(
            flops=2 * M_pad * K * N_pad,
            transcendentals=M_pad * N_pad if activation == "gelu" else 0,
            bytes_accessed=4 * M_pad * K + 2 * K * N_pad + 4 * M_pad * N_pad),
    )(*inputs)
    if M_pad != M or N_pad != N:
        out = out[:M, :N]
    return out


# ----------------------- K-tiled matmul (large-K projection) ----------------

def _matmul_bias_kernel(x_ref, w_ref, b_ref, o_ref, acc_ref):
    @pl.when(pl.program_id(2) == 0)
    def _():
        acc_ref[...] = jnp.zeros(acc_ref.shape, acc_ref.dtype)

    acc_ref[...] += jnp.dot(x_ref[...].astype(jnp.bfloat16),
                            w_ref[...].astype(jnp.bfloat16),
                            preferred_element_type=jnp.float32)

    @pl.when(pl.program_id(2) == pl.num_programs(2) - 1)
    def _():
        o_ref[...] = (acc_ref[...] + b_ref[...]).astype(o_ref.dtype)


def matmul_bias_ktiled(x, w, b, *, tk=_PROJ_TK, out_dtype=jnp.float32):
    """x @ w + b with the contraction dimension tiled (f32 VMEM accumulator).
    w: (K_pad, N) bf16 pre-padded in K to a multiple of tk, b: (1, N)."""
    cfg = _CFG
    M, K = x.shape
    K_pad, N = w.shape
    assert K_pad % tk == 0 and K_pad >= K
    tm = _balanced_tile(M, cfg["tm_max"], 8)
    M_pad = _round_up(M, tm)
    if N <= cfg["tn_max"]:
        tn, N_pad = N, N
        wp, bp = w, b
    else:
        tn = _balanced_tile(N, cfg["tn_max"], 128)
        N_pad = _round_up(N, tn)
        wp = jnp.pad(w, ((0, 0), (0, N_pad - N)))
        bp = jnp.pad(b, ((0, 0), (0, N_pad - N)))

    xp = jnp.pad(x, ((0, M_pad - M), (0, K_pad - K)))

    out = pl.pallas_call(
        _matmul_bias_kernel,
        grid=(M_pad // tm, N_pad // tn, K_pad // tk),
        in_specs=[pl.BlockSpec((tm, tk), lambda i, j, k: (i, k)),
                  pl.BlockSpec((tk, tn), lambda i, j, k: (k, j)),
                  pl.BlockSpec((1, tn), lambda i, j, k: (0, j))],
        out_specs=pl.BlockSpec((tm, tn), lambda i, j, k: (i, j)),
        out_shape=jax.ShapeDtypeStruct((M_pad, N_pad), out_dtype),
        scratch_shapes=[pltpu.VMEM((tm, tn), jnp.float32)],
        compiler_params=pltpu.CompilerParams(
            dimension_semantics=("parallel", "parallel", "arbitrary"),
            vmem_limit_bytes=cfg["vmem_limit"]),
        cost_estimate=pl.CostEstimate(
            flops=2 * M_pad * K_pad * N_pad,
            transcendentals=0,
            bytes_accessed=4 * M_pad * K_pad + 2 * K_pad * N_pad + 4 * M_pad * N_pad),
    )(xp, wp, bp)
    if M_pad != M or N_pad != N:
        out = out[:M, :N]
    return out


# ------------------------- fused pre-norm MLP block --------------------------

def _fused_mlp_kernel(x_ref, g_ref, beta_ref, w1_ref, b1_ref, w2_ref, b2_ref, o_ref):
    x = x_ref[...].astype(jnp.float32)
    mu = jnp.mean(x, axis=-1, keepdims=True)
    xc = x - mu
    var = jnp.mean(xc * xc, axis=-1, keepdims=True)
    xn = xc * jax.lax.rsqrt(var + _LN_EPS) * g_ref[...] + beta_ref[...]
    h = jnp.dot(xn.astype(jnp.bfloat16), w1_ref[...],
                preferred_element_type=jnp.float32) + b1_ref[...]
    h = jax.nn.gelu(h, approximate=True)
    y = jnp.dot(h.astype(jnp.bfloat16), w2_ref[...],
                preferred_element_type=jnp.float32) + b2_ref[...]
    o_ref[...] = (y + x).astype(o_ref.dtype)       # residual = pre-LN input


def fused_mlp(x3, ff1, ff2, ln_g, ln_b):
    """x + ff2(GELU(ff1(LN(x)))), one kernel, residual never leaves VMEM."""
    cfg = _CFG
    B, N, D = x3.shape
    Hf = ff1["w"].shape[1]
    # Both weights (double-buffered, bf16) must fit comfortably in VMEM.
    if 2 * 2 * (D * Hf + Hf * D) > cfg["vmem_limit"] // 2:
        # TODO(synk): K/N-tiled fused MLP for very large mlp_dim; fall back to
        # two fused linears (bf16 hidden) instead.
        x2 = x3.reshape(B * N, D)
        h = fused_linear(x2, ff1["w"], ff1["b"], ln=(ln_g, ln_b),
                         activation="gelu", out_dtype=jnp.bfloat16)
        y = fused_linear(h, ff2["w"], ff2["b"], residual=x2)
        return y.reshape(B, N, D)

    x = x3.reshape(B * N, D)
    M = B * N
    tm = _balanced_tile(M, cfg["tm_max"], 8)
    M_pad = _round_up(M, tm)
    if M_pad // tm == 1 and M >= 64:               # both v7x TensorCores
        tm = _round_up(_cdiv(M, 2), 8)
        M_pad = _round_up(M, tm)
    xp = jnp.pad(x, ((0, M_pad - M), (0, 0))) if M_pad != M else x

    out = pl.pallas_call(
        _fused_mlp_kernel,
        grid=(M_pad // tm,),
        in_specs=[pl.BlockSpec((tm, D), lambda i: (i, 0)),
                  pl.BlockSpec((1, D), lambda i: (0, 0)),
                  pl.BlockSpec((1, D), lambda i: (0, 0)),
                  pl.BlockSpec((D, Hf), lambda i: (0, 0)),
                  pl.BlockSpec((1, Hf), lambda i: (0, 0)),
                  pl.BlockSpec((Hf, D), lambda i: (0, 0)),
                  pl.BlockSpec((1, D), lambda i: (0, 0))],
        out_specs=pl.BlockSpec((tm, D), lambda i: (i, 0)),
        out_shape=jax.ShapeDtypeStruct((M_pad, D), jnp.float32),
        compiler_params=pltpu.CompilerParams(
            dimension_semantics=("parallel",),
            vmem_limit_bytes=cfg["vmem_limit"]),
        cost_estimate=pl.CostEstimate(
            flops=4 * M_pad * D * Hf,
            transcendentals=M_pad * Hf,
            bytes_accessed=8 * M_pad * D + 4 * D * Hf),
    )(xp, ln_g, ln_b, ff1["w"], ff1["b"], ff2["w"], ff2["b"])
    if M_pad != M:
        out = out[:M]
    return out.reshape(B, N, D)


# ------------------ flash attention + fused output projection ----------------

def _flash_attn_kernel(qkv_q_ref, qkv_kv_ref, wo_ref, bo_ref, res_ref, o_ref,
                       m_sc, l_sc, acc_sc, *,
                       scale, heads, dim_head, kv_tile, n_valid, needs_mask):
    ki = pl.program_id(2)
    HD = heads * dim_head

    @pl.when(ki == 0)
    def _():
        m_sc[...] = jnp.full(m_sc.shape, _NEG_INF, m_sc.dtype)
        l_sc[...] = jnp.zeros(l_sc.shape, l_sc.dtype)
        acc_sc[...] = jnp.zeros(acc_sc.shape, acc_sc.dtype)

    qkv_q = qkv_q_ref[...]                         # (tq, 3*HD) bf16
    qkv_kv = qkv_kv_ref[...]                       # (tkv, 3*HD) bf16

    if needs_mask:
        kv_pos = ki * kv_tile + jax.lax.broadcasted_iota(jnp.int32, (1, kv_tile), 1)
        valid = kv_pos < n_valid                   # (1, tkv)

    # Static per-head loop over lane slices of the fused qkv tile.  Batching
    # heads would not widen the dim_head contraction on the MXU, and it would
    # add (tq, H*dh) -> (H, tq, dh) relayouts inside the kv loop.
    for h in range(heads):
        q_h = qkv_q[:, h * dim_head:(h + 1) * dim_head].astype(jnp.bfloat16)
        k_h = qkv_kv[:, HD + h * dim_head:HD + (h + 1) * dim_head].astype(jnp.bfloat16)
        v_h = qkv_kv[:, 2 * HD + h * dim_head:2 * HD + (h + 1) * dim_head].astype(jnp.bfloat16)

        s = jax.lax.dot_general(q_h, k_h, (((1,), (1,)), ((), ())),
                                preferred_element_type=jnp.float32) * scale
        if needs_mask:
            s = jnp.where(valid, s, _NEG_INF)
        m_prev = m_sc[h]                           # (tq, 1)
        m_new = jnp.maximum(m_prev, jnp.max(s, axis=-1, keepdims=True))
        alpha = jnp.exp(m_prev - m_new)
        p = jnp.exp(s - m_new)
        l_sc[h] = alpha * l_sc[h] + jnp.sum(p, axis=-1, keepdims=True)
        acc_sc[h] = alpha * acc_sc[h] + jax.lax.dot_general(
            p.astype(jnp.bfloat16), v_h, (((1,), (0,)), ((), ())),
            preferred_element_type=jnp.float32)
        m_sc[h] = m_new

    @pl.when(ki == pl.num_programs(2) - 1)
    def _():
        # Fused output projection + bias + residual:
        #   concat_h(o_h) @ Wo == sum_h o_h @ Wo[h*dh:(h+1)*dh, :]
        # -> no per-head lane concat, one lane-dense (tq, D) store.
        wo = wo_ref[...]                           # (HD, D) bf16
        y = bo_ref[...] + res_ref[...].astype(jnp.float32)
        for h in range(heads):
            o_h = acc_sc[h] * pl.reciprocal(l_sc[h], approx=True)   # (tq, dh) f32
            y = y + jnp.dot(o_h.astype(jnp.bfloat16),
                            wo[h * dim_head:(h + 1) * dim_head, :],
                            preferred_element_type=jnp.float32)
        o_ref[...] = y.astype(o_ref.dtype)


def flash_attention_outproj(qkv, wo, bo, residual, *, heads, dim_head, scale):
    """residual + (softmax(Q K^T / sqrt(dh)) V) @ Wo + bo.

    qkv: (B, N, 3*heads*dim_head) bf16 (q | k | v along the last dim),
    wo: (heads*dim_head, D) bf16, bo: (1, D), residual: (B, N, D) f32."""
    cfg = _CFG
    B, N, THD = qkv.shape
    HD = heads * dim_head
    D = wo.shape[1]

    tile = _balanced_tile(N, cfg["tile_max"], 8)
    N_pad = _round_up(N, tile)
    needs_mask = N_pad != N
    if needs_mask:
        qkv = jnp.pad(qkv, ((0, 0), (0, N_pad - N), (0, 0)))
        residual = jnp.pad(residual, ((0, 0), (0, N_pad - N), (0, 0)))
    n_q = N_pad // tile
    n_kv = N_pad // tile

    kern = functools.partial(_flash_attn_kernel, scale=scale, heads=heads,
                             dim_head=dim_head, kv_tile=tile, n_valid=N,
                             needs_mask=needs_mask)
    out = pl.pallas_call(
        kern,
        grid=(B, n_q, n_kv),
        in_specs=[pl.BlockSpec((None, tile, THD), lambda b, qi, ki: (b, qi, 0)),
                  pl.BlockSpec((None, tile, THD), lambda b, qi, ki: (b, ki, 0)),
                  pl.BlockSpec((HD, D), lambda b, qi, ki: (0, 0)),
                  pl.BlockSpec((1, D), lambda b, qi, ki: (0, 0)),
                  pl.BlockSpec((None, tile, D), lambda b, qi, ki: (b, qi, 0))],
        out_specs=pl.BlockSpec((None, tile, D), lambda b, qi, ki: (b, qi, 0)),
        out_shape=jax.ShapeDtypeStruct((B, N_pad, D), jnp.float32),
        scratch_shapes=[pltpu.VMEM((heads, tile, 1), jnp.float32),
                        pltpu.VMEM((heads, tile, 1), jnp.float32),
                        pltpu.VMEM((heads, tile, dim_head), jnp.float32)],
        compiler_params=pltpu.CompilerParams(
            dimension_semantics=("parallel", "parallel", "arbitrary"),
            vmem_limit_bytes=cfg["vmem_limit"]),
        cost_estimate=pl.CostEstimate(
            flops=4 * B * heads * N_pad * N_pad * dim_head + 2 * B * N_pad * HD * D,
            transcendentals=B * heads * N_pad * N_pad,
            bytes_accessed=2 * 2 * B * N_pad * THD + 8 * B * N_pad * D),
    )(qkv, qkv, wo, bo, residual)
    return out[:, :N] if needs_mask else out


# --------------------------------- JAX glue ----------------------------------

def unfold_nchw(x, k, s, p):
    """PyTorch nn.Unfold(kernel_size=k, stride=s, padding=p) followed by the
    'b c n -> b n c' rearrange.  Feature ordering is (c, ki, kj), as in torch."""
    B, C, H, W = x.shape
    xp = jnp.pad(x, ((0, 0), (0, 0), (p, p), (p, p)))
    Hp, Wp = H + 2 * p, W + 2 * p
    Hout = (Hp - k) // s + 1
    Wout = (Wp - k) // s + 1
    cols = []
    for ki in range(k):
        for kj in range(k):
            cols.append(xp[:, :, ki:ki + s * Hout:s, kj:kj + s * Wout:s])
    pt = jnp.stack(cols, axis=0).reshape(k, k, B, C, Hout, Wout)
    pt = jnp.transpose(pt, (2, 4, 5, 3, 0, 1))       # B, Hout, Wout, C, k, k
    return pt.reshape(B, Hout * Wout, C * k * k)     # (B, N, C*k*k)


def reshape_image(x):
    """einops 'b (h w) c -> b c h w' with h = int(sqrt(n))."""
    B, n, c = x.shape
    h = int(n ** 0.5)
    return jnp.transpose(x, (0, 2, 1)).reshape(B, c, h, h)


def apply_transformer(x, tp, heads, dim_head):
    """Pre-norm transformer: x + MHSA(LN(x)); x + MLP(LN(x)).  3 kernels/layer."""
    B, N, D = x.shape
    HD = heads * dim_head
    scale = dim_head ** -0.5
    for lyr in tp["layers"]:
        # LN fused into the qkv GEMM; qkv kept fused + bf16 in HBM.
        qkv = fused_linear(x.reshape(B * N, D), lyr["qkv"]["w"], lyr["qkv"]["b"],
                           ln=(lyr["ln1_g"], lyr["ln1_b"]),
                           out_dtype=jnp.bfloat16)                  # (B*N, 3*HD)
        # Flash attention with fused out-projection + bias + residual.
        x = flash_attention_outproj(qkv.reshape(B, N, 3 * HD),
                                    lyr["out"]["w"], lyr["out"]["b"], x,
                                    heads=heads, dim_head=dim_head, scale=scale)
        # LN + ff1 + GELU + ff2 + residual in one kernel.
        x = fused_mlp(x, lyr["ff1"], lyr["ff2"], lyr["ln2_g"], lyr["ln2_b"])
    return x


def t2t_vit_forward(params, x, *, t2t_layers, heads, dim_head, pool="cls"):
    assert x.ndim == 4
    B = x.shape[0]
    hid_dim = params["cls_token"].shape[-1]

    # --------- patch_embed: T2T stages ---------
    cur = x
    for i, (size, stride) in enumerate(t2t_layers):
        if i > 0:
            cur = reshape_image(cur)                         # Identity at i == 0
        cur = unfold_nchw(cur, size, stride, stride // 2)    # Unfold + 'b c n -> b n c'
        if i != len(t2t_layers) - 1:
            dim = cur.shape[2]
            cur = apply_transformer(cur, params["t2t_transformers"][i],
                                    heads=1, dim_head=dim)
    Bn, Nt, Dc = cur.shape
    proj_w, proj_b = params["proj"]["w"], params["proj"]["b"]
    if proj_w.shape[0] != Dc or Dc > _K_FUSE_MAX:   # pre-padded K -> K-tiled path
        cur2 = matmul_bias_ktiled(cur.reshape(Bn * Nt, Dc), proj_w, proj_b)
    else:
        cur2 = fused_linear(cur.reshape(Bn * Nt, Dc), proj_w, proj_b)
    cur = cur2.reshape(Bn, Nt, hid_dim)

    # --------- cls token (appended at the END, as in the reference) ---------
    cls = jnp.broadcast_to(params["cls_token"], (B, 1, hid_dim)).astype(cur.dtype)
    xseq = jnp.concatenate([cur, cls], axis=1)
    L = xseq.shape[1]
    xseq = xseq + params["pos_embed"][:, :L]     # memory-bound glue, left to XLA
    # patch_drop: inference identity.

    # --------- main transformer ---------
    xseq = apply_transformer(xseq, params["transformer"], heads=heads,
                             dim_head=dim_head)

    # --------- pool + mlp_head (LN fused into the head linear) ---------
    pooled = xseq.mean(axis=1) if pool == "mean" else xseq[:, 0]
    out = fused_linear(pooled, params["head"]["w"], params["head"]["b"],
                       ln=(params["head_ln_g"], params["head_ln_b"]))
    return out


# ----------------------------- parameter init / prep ------------------------

def init_params(key, in_channels, out_channels, hid_dim, mlp_dim, dim_head,
                depth, heads, pos_len, t2t_layers):
    keys = iter(jax.random.split(key, 128))

    def nxt():
        return next(keys)

    def lin(din, dout):
        return {"w": jax.random.normal(nxt(), (din, dout), jnp.float32) * 0.02,
                "b": jnp.zeros((dout,), jnp.float32)}

    def transformer(dim, dh, mlp, depth_, heads_):
        layers = []
        for _ in range(depth_):
            layers.append({
                "ln1_g": jnp.ones((dim,), jnp.float32),
                "ln1_b": jnp.zeros((dim,), jnp.float32),
                "qkv": lin(dim, 3 * heads_ * dh),     # qkv bias kept at zero
                "out": lin(heads_ * dh, dim),
                "ln2_g": jnp.ones((dim,), jnp.float32),
                "ln2_b": jnp.zeros((dim,), jnp.float32),
                "ff1": lin(dim, mlp),
                "ff2": lin(mlp, dim),
            })
        return {"layers": layers}

    params = {}
    c = in_channels
    t2t_tr = []
    for i, (size, stride) in enumerate(t2t_layers):
        c *= size * size
        t2t_tr.append(transformer(c, c, c, 1, 1) if i != len(t2t_layers) - 1 else None)
    params["t2t_transformers"] = t2t_tr
    params["proj"] = lin(c, hid_dim)
    params["cls_token"] = jax.random.normal(nxt(), (1, 1, hid_dim), jnp.float32)
    params["pos_embed"] = jax.random.normal(nxt(), (1, pos_len + 1, hid_dim), jnp.float32)
    params["transformer"] = transformer(hid_dim, dim_head, mlp_dim, depth, heads)
    params["head_ln_g"] = jnp.ones((hid_dim,), jnp.float32)
    params["head_ln_b"] = jnp.zeros((hid_dim,), jnp.float32)
    params["head"] = lin(hid_dim, out_channels)
    return params


def prepare_params(params):
    """One-time (outside jit) weight prep: cast matmul weights to bf16, reshape
    biases / LN params to (1, N) rows, pre-pad the large T2T projection's K dim
    to the K tile.  Removes all per-forward weight pad/cast copies."""

    def prep_lin(p):
        return {"w": p["w"].astype(jnp.bfloat16),
                "b": p["b"].reshape(1, -1).astype(jnp.float32)}

    def prep_tr(tp):
        if tp is None:
            return None
        layers = []
        for l in tp["layers"]:
            layers.append({
                "ln1_g": l["ln1_g"].reshape(1, -1), "ln1_b": l["ln1_b"].reshape(1, -1),
                "qkv": prep_lin(l["qkv"]), "out": prep_lin(l["out"]),
                "ln2_g": l["ln2_g"].reshape(1, -1), "ln2_b": l["ln2_b"].reshape(1, -1),
                "ff1": prep_lin(l["ff1"]), "ff2": prep_lin(l["ff2"]),
            })
        return {"layers": layers}

    pp = {}
    pp["t2t_transformers"] = [prep_tr(t) for t in params["t2t_transformers"]]
    proj = prep_lin(params["proj"])
    K = proj["w"].shape[0]
    if K > _K_FUSE_MAX:                 # will use the K-tiled path -> pre-pad K
        proj["w"] = jnp.pad(proj["w"], ((0, _round_up(K, _PROJ_TK) - K), (0, 0)))
    pp["proj"] = proj
    pp["cls_token"] = params["cls_token"]
    pp["pos_embed"] = params["pos_embed"]
    pp["transformer"] = prep_tr(params["transformer"])
    pp["head_ln_g"] = params["head_ln_g"].reshape(1, -1)
    pp["head_ln_b"] = params["head_ln_b"].reshape(1, -1)
    pp["head"] = prep_lin(params["head"])
    return pp


# ----------------------------- main ----------------------------------------

if __name__ == "__main__":
    # Small config: in_channels=1 keeps the T2T-expanded dims (49 / 441 / 3969) modest.
    B, C, H, W = 2, 1, 16, 16
    hid_dim, mlp_dim, dim_head, depth, heads = 32, 64, 16, 1, 2
    out_channels = 10
    pos_len = 8
    t2t_layers = ((7, 4), (3, 2), (3, 2))

    key = jax.random.PRNGKey(0)
    kp, kx = jax.random.split(key)
    raw_params = init_params(kp, C, out_channels, hid_dim, mlp_dim, dim_head,
                             depth, heads, pos_len, t2t_layers)
    params = prepare_params(raw_params)          # one-time bf16 cast / pad / reshape
    x = jax.random.normal(kx, (B, C, H, W), jnp.float32)

    fwd = jax.jit(functools.partial(t2t_vit_forward, t2t_layers=t2t_layers,
                                    heads=heads, dim_head=dim_head, pool="cls"))
    out = fwd(params, x)
    out = jax.block_until_ready(out)
    assert out.shape == (B, out_channels), out.shape
    assert bool(jnp.all(jnp.isfinite(out)))
    print("KERNEL_OK")
</pallas_src>

<mosaic_0001>
module attributes {stable_mosaic.version = 11 : i64} {
  func.func @_fused_linear_kernel(%arg0: i32, %arg1: i32, %arg2: memref<32x49xf32, #tpu.memory_space<vmem>>, %arg3: memref<49x147xbf16, #tpu.memory_space<vmem>>, %arg4: memref<1x147xf32, #tpu.memory_space<vmem>>, %arg5: memref<1x49xf32, #tpu.memory_space<vmem>>, %arg6: memref<1x49xf32, #tpu.memory_space<vmem>>, %arg7: memref<32x147xbf16, #tpu.memory_space<vmem>>) attributes {dimension_semantics = [#tpu.dimension_semantics<parallel>, #tpu.dimension_semantics<parallel>], iteration_bounds = array<i64: 1, 1>, scalar_prefetch = 0 : i64, scratch_operands = 0 : i64, tpu.core_type = #tpu.core_type<tc>, window_params = [{transform_indices = @transform_0, window_bounds = array<i64: 32, 49>}, {transform_indices = @transform_1, window_bounds = array<i64: 49, 147>}, {transform_indices = @transform_2, window_bounds = array<i64: 1, 147>}, {pipeline_mode = #tpu.pipeline_mode<synchronous>, transform_indices = @transform_3, window_bounds = array<i64: 1, 49>}, {pipeline_mode = #tpu.pipeline_mode<synchronous>, transform_indices = @transform_4, window_bounds = array<i64: 1, 49>}, {transform_indices = @transform_5, window_bounds = array<i64: 32, 147>}]} {
    %c0 = arith.constant 0 : index
    %c0_0 = arith.constant 0 : index
    %0 = vector.load %arg2[%c0, %c0_0] : memref<32x49xf32, #tpu.memory_space<vmem>>, vector<32x49xf32>
    %cst = arith.constant dense<0.000000e+00> : vector<32xf32>
    %1 = vector.multi_reduction <add>, %0, %cst [1] : vector<32x49xf32> to vector<32xf32>
    %2 = vector.shape_cast %1 : vector<32xf32> to vector<32x1xf32>
    %cst_1 = arith.constant 4.900000e+01 : f32
    %3 = vector.broadcast %cst_1 : f32 to vector<32x1xf32>
    %4 = arith.divf %2, %3 : vector<32x1xf32>
    %5 = vector.broadcast %4 : vector<32x1xf32> to vector<32x49xf32>
    %6 = arith.subf %0, %5 : vector<32x49xf32>
    %7 = arith.mulf %6, %6 : vector<32x49xf32>
    %cst_2 = arith.constant dense<0.000000e+00> : vector<32xf32>
    %8 = vector.multi_reduction <add>, %7, %cst_2 [1] : vector<32x49xf32> to vector<32xf32>
    %9 = vector.shape_cast %8 : vector<32xf32> to vector<32x1xf32>
    %cst_3 = arith.constant 4.900000e+01 : f32
    %10 = vector.broadcast %cst_3 : f32 to vector<32x1xf32>
    %11 = arith.divf %9, %10 : vector<32x1xf32>
    %cst_4 = arith.constant 9.99999974E-6 : f32
    %12 = vector.broadcast %cst_4 : f32 to vector<32x1xf32>
    %13 = arith.addf %11, %12 : vector<32x1xf32>
    %14 = math.rsqrt %13 : vector<32x1xf32>
    %15 = vector.broadcast %14 : vector<32x1xf32> to vector<32x49xf32>
    %16 = arith.mulf %6, %15 : vector<32x49xf32>
    %c0_5 = arith.constant 0 : index
    %c0_6 = arith.constant 0 : index
    %17 = vector.load %arg5[%c0_5, %c0_6] : memref<1x49xf32, #tpu.memory_space<vmem>>, vector<1x49xf32>
    %18 = vector.broadcast %17 : vector<1x49xf32> to vector<32x49xf32>
    %19 = arith.mulf %16, %18 : vector<32x49xf32>
    %c0_7 = arith.constant 0 : index
    %c0_8 = arith.constant 0 : index
    %20 = vector.load %arg6[%c0_7, %c0_8] : memref<1x49xf32, #tpu.memory_space<vmem>>, vector<1x49xf32>
    %21 = vector.broadcast %20 : vector<1x49xf32> to vector<32x49xf32>
    %22 = arith.addf %19, %21 : vector<32x49xf32>
    %23 = arith.truncf %22 : vector<32x49xf32> to vector<32x49xbf16>
    %c0_9 = arith.constant 0 : index
    %c0_10 = arith.constant 0 : index
    %24 = vector.load %arg3[%c0_9, %c0_10] : memref<49x147xbf16, #tpu.memory_space<vmem>>, vector<49x147xbf16>
    %cst_11 = arith.constant dense<0.000000e+00> : vector<32x147xf32>
    %25 = tpu.matmul %23, %24, %cst_11 {dimension_numbers = #tpu.dot_dimension_numbers<[1], [0], [0], [1], [0, 0, 1, 1], [], []>} : vector<32x49xbf16>, vector<49x147xbf16>, vector<32x147xf32> -> vector<32x147xf32>
    %c0_12 = arith.constant 0 : index
    %c0_13 = arith.constant 0 : index
    %26 = vector.load %arg4[%c0_12, %c0_13] : memref<1x147xf32, #tpu.memory_space<vmem>>, vector<1x147xf32>
    %27 = vector.broadcast %26 : vector<1x147xf32> to vector<32x147xf32>
    %28 = arith.addf %25, %27 : vector<32x147xf32>
    %29 = arith.truncf %28 : vector<32x147xf32> to vector<32x147xbf16>
    %c0_14 = arith.constant 0 : index
    %c0_15 = arith.constant 0 : index
    %30 = vector.load %arg7[%c0_14, %c0_15] : memref<32x147xbf16, #tpu.memory_space<vmem>>, vector<32x147xbf16>
    tpu.vector_store %arg7[%c0_14, %c0_15], %29 {strides = array<i32>} : memref<32x147xbf16, #tpu.memory_space<vmem>>, vector<32x147xbf16>,
    return
  }
  func.func @transform_0(%arg0: i32, %arg1: i32) -> (i32, i32) {
    %c0_i32 = arith.constant 0 : i32
    %c0_i32_0 = arith.constant 0 : i32
    return %arg0, %c0_i32 : i32, i32
  }
  func.func @transform_1(%arg0: i32, %arg1: i32) -> (i32, i32) {
    %c0_i32 = arith.constant 0 : i32
    %c0_i32_0 = arith.constant 0 : i32
    return %c0_i32, %arg1 : i32, i32
  }
  func.func @transform_2(%arg0: i32, %arg1: i32) -> (i32, i32) {
    %c0_i32 = arith.constant 0 : i32
    %c0_i32_0 = arith.constant 0 : i32
    return %c0_i32, %arg1 : i32, i32
  }
  func.func @transform_3(%arg0: i32, %arg1: i32) -> (i32, i32) {
    %c0_i32 = arith.constant 0 : i32
    %c0_i32_0 = arith.constant 0 : i32
    %c0_i32_1 = arith.constant 0 : i32
    return %c0_i32, %c0_i32_0 : i32, i32
  }
  func.func @transform_4(%arg0: i32, %arg1: i32) -> (i32, i32) {
    %c0_i32 = arith.constant 0 : i32
    %c0_i32_0 = arith.constant 0 : i32
    %c0_i32_1 = arith.constant 0 : i32
    return %c0_i32, %c0_i32_0 : i32, i32
  }
  func.func @transform_5(%arg0: i32, %arg1: i32) -> (i32, i32) {
    %c0_i32 = arith.constant 0 : i32
    return %arg0, %arg1 : i32, i32
  }
}

module attributes {stable_mosaic.version = 11 : i64} {
  func.func @_flash_attn_kernel(%arg0: i32, %arg1: i32, %arg2: i32, %arg3: memref<1x16x147xbf16, #tpu.memory_space<vmem>>, %arg4: memref<1x16x147xbf16, #tpu.memory_space<vmem>>, %arg5: memref<49x49xbf16, #tpu.memory_space<vmem>>, %arg6: memref<1x49xf32, #tpu.memory_space<vmem>>, %arg7: memref<1x16x49xf32, #tpu.memory_space<vmem>>, %arg8: memref<1x16x49xf32, #tpu.memory_space<vmem>>, %arg9: memref<1x16x1xf32, #tpu.memory_space<vmem>>, %arg10: memref<1x16x1xf32, #tpu.memory_space<vmem>>, %arg11: memref<1x16x49xf32, #tpu.memory_space<vmem>>) attributes {dimension_semantics = [#tpu.dimension_semantics<parallel>, #tpu.dimension_semantics<parallel>, #tpu.dimension_semantics<arbitrary>], iteration_bounds = array<i64: 2, 1, 1>, scalar_prefetch = 0 : i64, scratch_operands = 3 : i64, tpu.core_type = #tpu.core_type<tc>, window_params = [{transform_indices = @transform_0, window_bounds = array<i64: 1, 16, 147>}, {transform_indices = @transform_1, window_bounds = array<i64: 1, 16, 147>}, {pipeline_mode = #tpu.pipeline_mode<synchronous>, transform_indices = @transform_2, window_bounds = array<i64: 49, 49>}, {pipeline_mode = #tpu.pipeline_mode<synchronous>, transform_indices = @transform_3, window_bounds = array<i64: 1, 49>}, {transform_indices = @transform_4, window_bounds = array<i64: 1, 16, 49>}, {transform_indices = @transform_5, window_bounds = array<i64: 1, 16, 49>}]} {
    %c0_i32 = arith.constant 0 : i32
    %0 = arith.cmpi eq, %arg2, %c0_i32 : i32
    %1 = arith.extui %0 : i1 to i32
    %c0_i32_0 = arith.constant 0 : i32
    %2 = arith.cmpi ne, %1, %c0_i32_0 : i32
    scf.if %2 {
      %cst_30 = arith.constant -1.000000e+30 : f32
      %48 = vector.broadcast %cst_30 : f32 to vector<1x16x1xf32>
      %c0_31 = arith.constant 0 : index
      %c0_32 = arith.constant 0 : index
      %c0_33 = arith.constant 0 : index
      %49 = vector.load %arg9[%c0_31, %c0_32, %c0_33] : memref<1x16x1xf32, #tpu.memory_space<vmem>>, vector<1x16x1xf32>
      tpu.vector_store %arg9[%c0_31, %c0_32, %c0_33], %48 {strides = array<i32>} : memref<1x16x1xf32, #tpu.memory_space<vmem>>, vector<1x16x1xf32>,
      %cst_34 = arith.constant 0.000000e+00 : f32
      %50 = vector.broadcast %cst_34 : f32 to vector<1x16x1xf32>
      %c0_35 = arith.constant 0 : index
      %c0_36 = arith.constant 0 : index
      %c0_37 = arith.constant 0 : index
      %51 = vector.load %arg10[%c0_35, %c0_36, %c0_37] : memref<1x16x1xf32, #tpu.memory_space<vmem>>, vector<1x16x1xf32>
      tpu.vector_store %arg10[%c0_35, %c0_36, %c0_37], %50 {strides = array<i32>} : memref<1x16x1xf32, #tpu.memory_space<vmem>>, vector<1x16x1xf32>,
      %cst_38 = arith.constant 0.000000e+00 : f32
      %52 = vector.broadcast %cst_38 : f32 to vector<1x16x49xf32>
      %c0_39 = arith.constant 0 : index
      %c0_40 = arith.constant 0 : index
      %c0_41 = arith.constant 0 : index
      %53 = vector.load %arg11[%c0_39, %c0_40, %c0_41] : memref<1x16x49xf32, #tpu.memory_space<vmem>>, vector<1x16x49xf32>
      tpu.vector_store %arg11[%c0_39, %c0_40, %c0_41], %52 {strides = array<i32>} : memref<1x16x49xf32, #tpu.memory_space<vmem>>, vector<1x16x49xf32>,
    } else {
    }
    %c0 = arith.constant 0 : index
    %c0_1 = arith.constant 0 : index
    %c0_2 = arith.constant 0 : index
    %3 = vector.load %arg3[%c0, %c0_1, %c0_2] : memref<1x16x147xbf16, #tpu.memory_space<vmem>>, vector<1x16x147xbf16>
    %4 = vector.shape_cast %3 : vector<1x16x147xbf16> to vector<16x147xbf16>
    %c0_3 = arith.constant 0 : index
    %c0_4 = arith.constant 0 : index
    %c0_5 = arith.constant 0 : index
    %5 = vector.load %arg4[%c0_3, %c0_4, %c0_5] : memref<1x16x147xbf16, #tpu.memory_space<vmem>>, vector<1x16x147xbf16>
    %6 = vector.shape_cast %5 : vector<1x16x147xbf16> to vector<16x147xbf16>
    %7 = vector.extract_strided_slice %4 {offsets = [0, 0], sizes = [16, 49], strides = [1, 1]} : vector<16x147xbf16> to vector<16x49xbf16>
    %8 = vector.extract_strided_slice %6 {offsets = [0, 49], sizes = [16, 49], strides = [1, 1]} : vector<16x147xbf16> to vector<16x49xbf16>
    %9 = vector.extract_strided_slice %6 {offsets = [0, 98], sizes = [16, 49], strides = [1, 1]} : vector<16x147xbf16> to vector<16x49xbf16>
    %cst = arith.constant dense<0.000000e+00> : vector<16x16xf32>
    %10 = tpu.matmul %7, %8, %cst {dimension_numbers = #tpu.dot_dimension_numbers<[1], [1], [0], [0], [0, 0, 1, 0], [], []>} : vector<16x49xbf16>, vector<16x49xbf16>, vector<16x16xf32> -> vector<16x16xf32>
    %cst_6 = arith.constant 0.142857149 : f32
    %11 = vector.broadcast %cst_6 : f32 to vector<16x16xf32>
    %12 = arith.mulf %10, %11 : vector<16x16xf32>
    %c0_7 = arith.constant 0 : index
    %c0_8 = arith.constant 0 : index
    %c0_9 = arith.constant 0 : index
    %13 = vector.load %arg9[%c0_7, %c0_8, %c0_9] : memref<1x16x1xf32, #tpu.memory_space<vmem>>, vector<1x16x1xf32>
    %14 = vector.shape_cast %13 : vector<1x16x1xf32> to vector<16x1xf32>
    %cst_10 = arith.constant dense<0xFF800000> : vector<16xf32>
    %15 = vector.multi_reduction <maximumf>, %12, %cst_10 [1] : vector<16x16xf32> to vector<16xf32>
    %16 = vector.shape_cast %15 : vector<16xf32> to vector<16x1xf32>
    %17 = arith.maximumf %14, %16 : vector<16x1xf32>
    %18 = arith.subf %14, %17 : vector<16x1xf32>
    %19 = math.exp %18 : vector<16x1xf32>
    %20 = vector.broadcast %17 : vector<16x1xf32> to vector<16x16xf32>
    %21 = arith.subf %12, %20 : vector<16x16xf32>
    %22 = math.exp %21 : vector<16x16xf32>
    %c0_11 = arith.constant 0 : index
    %c0_12 = arith.constant 0 : index
    %c0_13 = arith.constant 0 : index
    %23 = vector.load %arg10[%c0_11, %c0_12, %c0_13] : memref<1x16x1xf32, #tpu.memory_space<vmem>>, vector<1x16x1xf32>
    %24 = vector.shape_cast %23 : vector<1x16x1xf32> to vector<16x1xf32>
    %25 = arith.mulf %19, %24 : vector<16x1xf32>
    %cst_14 = arith.constant dense<0.000000e+00> : vector<16xf32>
    %26 = vector.multi_reduction <add>, %22, %cst_14 [1] : vector<16x16xf32> to vector<16xf32>
    %27 = vector.shape_cast %26 : vector<16xf32> to vector<16x1xf32>
    %28 = arith.addf %25, %27 : vector<16x1xf32>
    %c0_15 = arith.constant 0 : index
    %c0_16 = arith.constant 0 : index
    %c0_17 = arith.constant 0 : index
    %29 = vector.load %arg10[%c0_15, %c0_16, %c0_17] : memref<1x16x1xf32, #tpu.memory_space<vmem>>, vector<1x16x1xf32>
    %30 = vector.shape_cast %29 : vector<1x16x1xf32> to vector<16x1xf32>
    %31 = vector.shape_cast %28 : vector<16x1xf32> to vector<1x16x1xf32>
    tpu.vector_store %arg10[%c0_15, %c0_16, %c0_17], %31 {strides = array<i32>} : memref<1x16x1xf32, #tpu.memory_space<vmem>>, vector<1x16x1xf32>,
    %c0_18 = arith.constant 0 : index
    %c0_19 = arith.constant 0 : index
    %c0_20 = arith.constant 0 : index
    %32 = vector.load %arg11[%c0_18, %c0_19, %c0_20] : memref<1x16x49xf32, #tpu.memory_space<vmem>>, vector<1x16x49xf32>
    %33 = vector.shape_cast %32 : vector<1x16x49xf32> to vector<16x49xf32>
    %34 = vector.broadcast %19 : vector<16x1xf32> to vector<16x49xf32>
    %35 = arith.mulf %34, %33 : vector<16x49xf32>
    %36 = arith.truncf %22 : vector<16x16xf32> to vector<16x16xbf16>
    %cst_21 = arith.constant dense<0.000000e+00> : vector<16x49xf32>
    %37 = tpu.matmul %36, %9, %cst_21 {dimension_numbers = #tpu.dot_dimension_numbers<[1], [0], [0], [1], [0, 0, 1, 1], [], []>} : vector<16x16xbf16>, vector<16x49xbf16>, vector<16x49xf32> -> vector<16x49xf32>
    %38 = arith.addf %35, %37 : vector<16x49xf32>
    %c0_22 = arith.constant 0 : index
    %c0_23 = arith.constant 0 : index
    %c0_24 = arith.constant 0 : index
    %39 = vector.load %arg11[%c0_22, %c0_23, %c0_24] : memref<1x16x49xf32, #tpu.memory_space<vmem>>, vector<1x16x49xf32>
    %40 = vector.shape_cast %39 : vector<1x16x49xf32> to vector<16x49xf32>
    %41 = vector.shape_cast %38 : vector<16x49xf32> to vector<1x16x49xf32>
    tpu.vector_store %arg11[%c0_22, %c0_23, %c0_24], %41 {strides = array<i32>} : memref<1x16x49xf32, #tpu.memory_space<vmem>>, vector<1x16x49xf32>,
    %c0_25 = arith.constant 0 : index
    %c0_26 = arith.constant 0 : index
    %c0_27 = arith.constant 0 : index
    %42 = vector.load %arg9[%c0_25, %c0_26, %c0_27] : memref<1x16x1xf32, #tpu.memory_space<vmem>>, vector<1x16x1xf32>
    %43 = vector.shape_cast %42 : vector<1x16x1xf32> to vector<16x1xf32>
    %44 = vector.shape_cast %17 : vector<16x1xf32> to vector<1x16x1xf32>
    tpu.vector_store %arg9[%c0_25, %c0_26, %c0_27], %44 {strides = array<i32>} : memref<1x16x1xf32, #tpu.memory_space<vmem>>, vector<1x16x1xf32>,
    %c0_i32_28 = arith.constant 0 : i32
    %45 = arith.cmpi eq, %arg2, %c0_i32_28 : i32
    %46 = arith.extui %45 : i1 to i32
    %c0_i32_29 = arith.constant 0 : i32
    %47 = arith.cmpi ne, %46, %c0_i32_29 : i32
    scf.if %47 {
      %c0_30 = arith.constant 0 : index
      %c0_31 = arith.constant 0 : index
      %48 = vector.load %arg5[%c0_30, %c0_31] : memref<49x49xbf16, #tpu.memory_space<vmem>>, vector<49x49xbf16>
      %c0_32 = arith.constant 0 : index
      %c0_33 = arith.constant 0 : index
      %49 = vector.load %arg6[%c0_32, %c0_33] : memref<1x49xf32, #tpu.memory_space<vmem>>, vector<1x49xf32>
      %c0_34 = arith.constant 0 : index
      %c0_35 = arith.constant 0 : index
      %c0_36 = arith.constant 0 : index
      %50 = vector.load %arg7[%c0_34, %c0_35, %c0_36] : memref<1x16x49xf32, #tpu.memory_space<vmem>>, vector<1x16x49xf32>
      %51 = vector.shape_cast %50 : vector<1x16x49xf32> to vector<16x49xf32>
      %52 = vector.broadcast %49 : vector<1x49xf32> to vector<16x49xf32>
      %53 = arith.addf %52, %51 : vector<16x49xf32>
      %c0_37 = arith.constant 0 : index
      %c0_38 = arith.constant 0 : index
      %c0_39 = arith.constant 0 : index
      %54 = vector.load %arg11[%c0_37, %c0_38, %c0_39] : memref<1x16x49xf32, #tpu.memory_space<vmem>>, vector<1x16x49xf32>
      %55 = vector.shape_cast %54 : vector<1x16x49xf32> to vector<16x49xf32>
      %c0_40 = arith.constant 0 : index
      %c0_41 = arith.constant 0 : index
      %c0_42 = arith.constant 0 : index
      %56 = vector.load %arg10[%c0_40, %c0_41, %c0_42] : memref<1x16x1xf32, #tpu.memory_space<vmem>>, vector<1x16x1xf32>
      %57 = vector.shape_cast %56 : vector<1x16x1xf32> to vector<16x1xf32>
      %58 = tpu.reciprocal %57 {approx = true} : vector<16x1xf32> -> vector<16x1xf32>
      %59 = vector.broadcast %58 : vector<16x1xf32> to vector<16x49xf32>
      %60 = arith.mulf %55, %59 : vector<16x49xf32>
      %61 = arith.truncf %60 : vector<16x49xf32> to vector<16x49xbf16>
      %cst_43 = arith.constant dense<0.000000e+00> : vector<16x49xf32>
      %62 = tpu.matmul %61, %48, %cst_43 {dimension_numbers = #tpu.dot_dimension_numbers<[1], [0], [0], [1], [0, 0, 1, 1], [], []>} : vector<16x49xbf16>, vector<49x49xbf16>, vector<16x49xf32> -> vector<16x49xf32>
      %63 = arith.addf %53, %62 : vector<16x49xf32>
      %c0_44 = arith.constant 0 : index
      %c0_45 = arith.constant 0 : index
      %c0_46 = arith.constant 0 : index
      %64 = vector.load %arg8[%c0_44, %c0_45, %c0_46] : memref<1x16x49xf32, #tpu.memory_space<vmem>>, vector<1x16x49xf32>
      %65 = vector.shape_cast %64 : vector<1x16x49xf32> to vector<16x49xf32>
      %66 = vector.shape_cast %63 : vector<16x49xf32> to vector<1x16x49xf32>
      tpu.vector_store %arg8[%c0_44, %c0_45, %c0_46], %66 {strides = array<i32>} : memref<1x16x49xf32, #tpu.memory_space<vmem>>, vector<1x16x49xf32>,
    } else {
    }
    return
  }
  func.func @transform_0(%arg0: i32, %arg1: i32, %arg2: i32) -> (i32, i32, i32) {
    %c0_i32 = arith.constant 0 : i32
    %c0_i32_0 = arith.constant 0 : i32
    return %arg0, %arg1, %c0_i32 : i32, i32, i32
  }
  func.func @transform_1(%arg0: i32, %arg1: i32, %arg2: i32) -> (i32, i32, i32) {
    %c0_i32 = arith.constant 0 : i32
    %c0_i32_0 = arith.constant 0 : i32
    return %arg0, %arg2, %c0_i32 : i32, i32, i32
  }
  func.func @transform_2(%arg0: i32, %arg1: i32, %arg2: i32) -> (i32, i32) {
    %c0_i32 = arith.constant 0 : i32
    %c0_i32_0 = arith.constant 0 : i32
    %c0_i32_1 = arith.constant 0 : i32
    return %c0_i32, %c0_i32_0 : i32, i32
  }
  func.func @transform_3(%arg0: i32, %arg1: i32, %arg2: i32) -> (i32, i32) {
    %c0_i32 = arith.constant 0 : i32
    %c0_i32_0 = arith.constant 0 : i32
    %c0_i32_1 = arith.constant 0 : i32
    return %c0_i32, %c0_i32_0 : i32, i32
  }
  func.func @transform_4(%arg0: i32, %arg1: i32, %arg2: i32) -> (i32, i32, i32) {
    %c0_i32 = arith.constant 0 : i32
    %c0_i32_0 = arith.constant 0 : i32
    return %arg0, %arg1, %c0_i32 : i32, i32, i32
  }
  func.func @transform_5(%arg0: i32, %arg1: i32, %arg2: i32) -> (i32, i32, i32) {
    %c0_i32 = arith.constant 0 : i32
    %c0_i32_0 = arith.constant 0 : i32
    return %arg0, %arg1, %c0_i32 : i32, i32, i32
  }
}

module attributes {stable_mosaic.version = 11 : i64} {
  func.func @_fused_mlp_kernel(%arg0: i32, %arg1: memref<32x49xf32, #tpu.memory_space<vmem>>, %arg2: memref<1x49xf32, #tpu.memory_space<vmem>>, %arg3: memref<1x49xf32, #tpu.memory_space<vmem>>, %arg4: memref<49x49xbf16, #tpu.memory_space<vmem>>, %arg5: memref<1x49xf32, #tpu.memory_space<vmem>>, %arg6: memref<49x49xbf16, #tpu.memory_space<vmem>>, %arg7: memref<1x49xf32, #tpu.memory_space<vmem>>, %arg8: memref<32x49xf32, #tpu.memory_space<vmem>>) attributes {dimension_semantics = [#tpu.dimension_semantics<parallel>], iteration_bounds = array<i64: 1>, scalar_prefetch = 0 : i64, scratch_operands = 0 : i64, tpu.core_type = #tpu.core_type<tc>, window_params = [{transform_indices = @transform_0, window_bounds = array<i64: 32, 49>}, {pipeline_mode = #tpu.pipeline_mode<synchronous>, transform_indices = @transform_1, window_bounds = array<i64: 1, 49>}, {pipeline_mode = #tpu.pipeline_mode<synchronous>, transform_indices = @transform_2, window_bounds = array<i64: 1, 49>}, {pipeline_mode = #tpu.pipeline_mode<synchronous>, transform_indices = @transform_3, window_bounds = array<i64: 49, 49>}, {pipeline_mode = #tpu.pipeline_mode<synchronous>, transform_indices = @transform_4, window_bounds = array<i64: 1, 49>}, {pipeline_mode = #tpu.pipeline_mode<synchronous>, transform_indices = @transform_5, window_bounds = array<i64: 49, 49>}, {pipeline_mode = #tpu.pipeline_mode<synchronous>, transform_indices = @transform_6, window_bounds = array<i64: 1, 49>}, {transform_indices = @transform_7, window_bounds = array<i64: 32, 49>}]} {
    %c0 = arith.constant 0 : index
    %c0_0 = arith.constant 0 : index
    %0 = vector.load %arg1[%c0, %c0_0] : memref<32x49xf32, #tpu.memory_space<vmem>>, vector<32x49xf32>
    %cst = arith.constant dense<0.000000e+00> : vector<32xf32>
    %1 = vector.multi_reduction <add>, %0, %cst [1] : vector<32x49xf32> to vector<32xf32>
    %2 = vector.shape_cast %1 : vector<32xf32> to vector<32x1xf32>
    %cst_1 = arith.constant 4.900000e+01 : f32
    %3 = vector.broadcast %cst_1 : f32 to vector<32x1xf32>
    %4 = arith.divf %2, %3 : vector<32x1xf32>
    %5 = vector.broadcast %4 : vector<32x1xf32> to vector<32x49xf32>
    %6 = arith.subf %0, %5 : vector<32x49xf32>
    %7 = arith.mulf %6, %6 : vector<32x49xf32>
    %cst_2 = arith.constant dense<0.000000e+00> : vector<32xf32>
    %8 = vector.multi_reduction <add>, %7, %cst_2 [1] : vector<32x49xf32> to vector<32xf32>
    %9 = vector.shape_cast %8 : vector<32xf32> to vector<32x1xf32>
    %cst_3 = arith.constant 4.900000e+01 : f32
    %10 = vector.broadcast %cst_3 : f32 to vector<32x1xf32>
    %11 = arith.divf %9, %10 : vector<32x1xf32>
    %cst_4 = arith.constant 9.99999974E-6 : f32
    %12 = vector.broadcast %cst_4 : f32 to vector<32x1xf32>
    %13 = arith.addf %11, %12 : vector<32x1xf32>
    %14 = math.rsqrt %13 : vector<32x1xf32>
    %15 = vector.broadcast %14 : vector<32x1xf32> to vector<32x49xf32>
    %16 = arith.mulf %6, %15 : vector<32x49xf32>
    %c0_5 = arith.constant 0 : index
    %c0_6 = arith.constant 0 : index
    %17 = vector.load %arg2[%c0_5, %c0_6] : memref<1x49xf32, #tpu.memory_space<vmem>>, vector<1x49xf32>
    %18 = vector.broadcast %17 : vector<1x49xf32> to vector<32x49xf32>
    %19 = arith.mulf %16, %18 : vector<32x49xf32>
    %c0_7 = arith.constant 0 : index
    %c0_8 = arith.constant 0 : index
    %20 = vector.load %arg3[%c0_7, %c0_8] : memref<1x49xf32, #tpu.memory_space<vmem>>, vector<1x49xf32>
    %21 = vector.broadcast %20 : vector<1x49xf32> to vector<32x49xf32>
    %22 = arith.addf %19, %21 : vector<32x49xf32>
    %23 = arith.truncf %22 : vector<32x49xf32> to vector<32x49xbf16>
    %c0_9 = arith.constant 0 : index
    %c0_10 = arith.constant 0 : index
    %24 = vector.load %arg4[%c0_9, %c0_10] : memref<49x49xbf16, #tpu.memory_space<vmem>>, vector<49x49xbf16>
    %cst_11 = arith.constant dense<0.000000e+00> : vector<32x49xf32>
    %25 = tpu.matmul %23, %24, %cst_11 {dimension_numbers = #tpu.dot_dimension_numbers<[1], [0], [0], [1], [0, 0, 1, 1], [], []>} : vector<32x49xbf16>, vector<49x49xbf16>, vector<32x49xf32> -> vector<32x49xf32>
    %c0_12 = arith.constant 0 : index
    %c0_13 = arith.constant 0 : index
    %26 = vector.load %arg5[%c0_12, %c0_13] : memref<1x49xf32, #tpu.memory_space<vmem>>, vector<1x49xf32>
    %27 = vector.broadcast %26 : vector<1x49xf32> to vector<32x49xf32>
    %28 = arith.addf %25, %27 : vector<32x49xf32>
    %29 = arith.mulf %28, %28 : vector<32x49xf32>
    %30 = arith.mulf %28, %29 : vector<32x49xf32>
    %cst_14 = arith.constant 4.471500e-02 : f32
    %31 = vector.broadcast %cst_14 : f32 to vector<32x49xf32>
    %32 = arith.mulf %31, %30 : vector<32x49xf32>
    %33 = arith.addf %28, %32 : vector<32x49xf32>
    %cst_15 = arith.constant 0.797884583 : f32
    %34 = vector.broadcast %cst_15 : f32 to vector<32x49xf32>
    %35 = arith.mulf %34, %33 : vector<32x49xf32>
    %36 = math.tanh %35 : vector<32x49xf32>
    %cst_16 = arith.constant 1.000000e+00 : f32
    %37 = vector.broadcast %cst_16 : f32 to vector<32x49xf32>
    %38 = arith.addf %37, %36 : vector<32x49xf32>
    %cst_17 = arith.constant 5.000000e-01 : f32
    %39 = vector.broadcast %cst_17 : f32 to vector<32x49xf32>
    %40 = arith.mulf %39, %38 : vector<32x49xf32>
    %41 = arith.mulf %28, %40 : vector<32x49xf32>
    %42 = arith.truncf %41 : vector<32x49xf32> to vector<32x49xbf16>
    %c0_18 = arith.constant 0 : index
    %c0_19 = arith.constant 0 : index
    %43 = vector.load %arg6[%c0_18, %c0_19] : memref<49x49xbf16, #tpu.memory_space<vmem>>, vector<49x49xbf16>
    %cst_20 = arith.constant dense<0.000000e+00> : vector<32x49xf32>
    %44 = tpu.matmul %42, %43, %cst_20 {dimension_numbers = #tpu.dot_dimension_numbers<[1], [0], [0], [1], [0, 0, 1, 1], [], []>} : vector<32x49xbf16>, vector<49x49xbf16>, vector<32x49xf32> -> vector<32x49xf32>
    %c0_21 = arith.constant 0 : index
    %c0_22 = arith.constant 0 : index
    %45 = vector.load %arg7[%c0_21, %c0_22] : memref<1x49xf32, #tpu.memory_space<vmem>>, vector<1x49xf32>
    %46 = vector.broadcast %45 : vector<1x49xf32> to vector<32x49xf32>
    %47 = arith.addf %44, %46 : vector<32x49xf32>
    %48 = arith.addf %47, %0 : vector<32x49xf32>
    %c0_23 = arith.constant 0 : index
    %c0_24 = arith.constant 0 : index
    %49 = vector.load %arg8[%c0_23, %c0_24] : memref<32x49xf32, #tpu.memory_space<vmem>>, vector<32x49xf32>
    tpu.vector_store %arg8[%c0_23, %c0_24], %48 {strides = array<i32>} : memref<32x49xf32, #tpu.memory_space<vmem>>, vector<32x49xf32>,
    return
  }
  func.func @transform_0(%arg0: i32) -> (i32, i32) {
    %c0_i32 = arith.constant 0 : i32
    %c0_i32_0 = arith.constant 0 : i32
    return %arg0, %c0_i32 : i32, i32
  }
  func.func @transform_1(%arg0: i32) -> (i32, i32) {
    %c0_i32 = arith.constant 0 : i32
    %c0_i32_0 = arith.constant 0 : i32
    %c0_i32_1 = arith.constant 0 : i32
    return %c0_i32, %c0_i32_0 : i32, i32
  }
  func.func @transform_2(%arg0: i32) -> (i32, i32) {
    %c0_i32 = arith.constant 0 : i32
    %c0_i32_0 = arith.constant 0 : i32
    %c0_i32_1 = arith.constant 0 : i32
    return %c0_i32, %c0_i32_0 : i32, i32
  }
  func.func @transform_3(%arg0: i32) -> (i32, i32) {
    %c0_i32 = arith.constant 0 : i32
    %c0_i32_0 = arith.constant 0 : i32
    %c0_i32_1 = arith.constant 0 : i32
    return %c0_i32, %c0_i32_0 : i32, i32
  }
  func.func @transform_4(%arg0: i32) -> (i32, i32) {
    %c0_i32 = arith.constant 0 : i32
    %c0_i32_0 = arith.constant 0 : i32
    %c0_i32_1 = arith.constant 0 : i32
    return %c0_i32, %c0_i32_0 : i32, i32
  }
  func.func @transform_5(%arg0: i32) -> (i32, i32) {
    %c0_i32 = arith.constant 0 : i32
    %c0_i32_0 = arith.constant 0 : i32
    %c0_i32_1 = arith.constant 0 : i32
    return %c0_i32, %c0_i32_0 : i32, i32
  }
  func.func @transform_6(%arg0: i32) -> (i32, i32) {
    %c0_i32 = arith.constant 0 : i32
    %c0_i32_0 = arith.constant 0 : i32
    %c0_i32_1 = arith.constant 0 : i32
    return %c0_i32, %c0_i32_0 : i32, i32
  }
  func.func @transform_7(%arg0: i32) -> (i32, i32) {
    %c0_i32 = arith.constant 0 : i32
    %c0_i32_0 = arith.constant 0 : i32
    return %arg0, %c0_i32 : i32, i32
  }
}

module attributes {stable_mosaic.version = 11 : i64} {
  func.func @_fused_linear_kernel(%arg0: i32, %arg1: i32, %arg2: memref<8x441xf32, #tpu.memory_space<vmem>>, %arg3: memref<441x1323xbf16, #tpu.memory_space<vmem>>, %arg4: memref<1x1323xf32, #tpu.memory_space<vmem>>, %arg5: memref<1x441xf32, #tpu.memory_space<vmem>>, %arg6: memref<1x441xf32, #tpu.memory_space<vmem>>, %arg7: memref<8x1323xbf16, #tpu.memory_space<vmem>>) attributes {dimension_semantics = [#tpu.dimension_semantics<parallel>, #tpu.dimension_semantics<parallel>], iteration_bounds = array<i64: 1, 1>, scalar_prefetch = 0 : i64, scratch_operands = 0 : i64, tpu.core_type = #tpu.core_type<tc>, window_params = [{transform_indices = @transform_0, window_bounds = array<i64: 8, 441>}, {transform_indices = @transform_1, window_bounds = array<i64: 441, 1323>}, {transform_indices = @transform_2, window_bounds = array<i64: 1, 1323>}, {pipeline_mode = #tpu.pipeline_mode<synchronous>, transform_indices = @transform_3, window_bounds = array<i64: 1, 441>}, {pipeline_mode = #tpu.pipeline_mode<synchronous>, transform_indices = @transform_4, window_bounds = array<i64: 1, 441>}, {transform_indices = @transform_5, window_bounds = array<i64: 8, 1323>}]} {
    %c0 = arith.constant 0 : index
    %c0_0 = arith.constant 0 : index
    %0 = vector.load %arg2[%c0, %c0_0] : memref<8x441xf32, #tpu.memory_space<vmem>>, vector<8x441xf32>
    %cst = arith.constant dense<0.000000e+00> : vector<8xf32>
    %1 = vector.multi_reduction <add>, %0, %cst [1] : vector<8x441xf32> to vector<8xf32>
    %2 = vector.shape_cast %1 : vector<8xf32> to vector<8x1xf32>
    %cst_1 = arith.constant 4.410000e+02 : f32
    %3 = vector.broadcast %cst_1 : f32 to vector<8x1xf32>
    %4 = arith.divf %2, %3 : vector<8x1xf32>
    %5 = vector.broadcast %4 : vector<8x1xf32> to vector<8x441xf32>
    %6 = arith.subf %0, %5 : vector<8x441xf32>
    %7 = arith.mulf %6, %6 : vector<8x441xf32>
    %cst_2 = arith.constant dense<0.000000e+00> : vector<8xf32>
    %8 = vector.multi_reduction <add>, %7, %cst_2 [1] : vector<8x441xf32> to vector<8xf32>
    %9 = vector.shape_cast %8 : vector<8xf32> to vector<8x1xf32>
    %cst_3 = arith.constant 4.410000e+02 : f32
    %10 = vector.broadcast %cst_3 : f32 to vector<8x1xf32>
    %11 = arith.divf %9, %10 : vector<8x1xf32>
    %cst_4 = arith.constant 9.99999974E-6 : f32
    %12 = vector.broadcast %cst_4 : f32 to vector<8x1xf32>
    %13 = arith.addf %11, %12 : vector<8x1xf32>
    %14 = math.rsqrt %13 : vector<8x1xf32>
    %15 = vector.broadcast %14 : vector<8x1xf32> to vector<8x441xf32>
    %16 = arith.mulf %6, %15 : vector<8x441xf32>
    %c0_5 = arith.constant 0 : index
    %c0_6 = arith.constant 0 : index
    %17 = vector.load %arg5[%c0_5, %c0_6] : memref<1x441xf32, #tpu.memory_space<vmem>>, vector<1x441xf32>
    %18 = vector.broadcast %17 : vector<1x441xf32> to vector<8x441xf32>
    %19 = arith.mulf %16, %18 : vector<8x441xf32>
    %c0_7 = arith.constant 0 : index
    %c0_8 = arith.constant 0 : index
    %20 = vector.load %arg6[%c0_7, %c0_8] : memref<1x441xf32, #tpu.memory_space<vmem>>, vector<1x441xf32>
    %21 = vector.broadcast %20 : vector<1x441xf32> to vector<8x441xf32>
    %22 = arith.addf %19, %21 : vector<8x441xf32>
    %23 = arith.truncf %22 : vector<8x441xf32> to vector<8x441xbf16>
    %c0_9 = arith.constant 0 : index
    %c0_10 = arith.constant 0 : index
    %24 = vector.load %arg3[%c0_9, %c0_10] : memref<441x1323xbf16, #tpu.memory_space<vmem>>, vector<441x1323xbf16>
    %cst_11 = arith.constant dense<0.000000e+00> : vector<8x1323xf32>
    %25 = tpu.matmul %23, %24, %cst_11 {dimension_numbers = #tpu.dot_dimension_numbers<[1], [0], [0], [1], [0, 0, 1, 1], [], []>} : vector<8x441xbf16>, vector<441x1323xbf16>, vector<8x1323xf32> -> vector<8x1323xf32>
    %c0_12 = arith.constant 0 : index
    %c0_13 = arith.constant 0 : index
    %26 = vector.load %arg4[%c0_12, %c0_13] : memref<1x1323xf32, #tpu.memory_space<vmem>>, vector<1x1323xf32>
    %27 = vector.broadcast %26 : vector<1x1323xf32> to vector<8x1323xf32>
    %28 = arith.addf %25, %27 : vector<8x1323xf32>
    %29 = arith.truncf %28 : vector<8x1323xf32> to vector<8x1323xbf16>
    %c0_14 = arith.constant 0 : index
    %c0_15 = arith.constant 0 : index
    %30 = vector.load %arg7[%c0_14, %c0_15] : memref<8x1323xbf16, #tpu.memory_space<vmem>>, vector<8x1323xbf16>
    tpu.vector_store %arg7[%c0_14, %c0_15], %29 {strides = array<i32>} : memref<8x1323xbf16, #tpu.memory_space<vmem>>, vector<8x1323xbf16>,
    return
  }
  func.func @transform_0(%arg0: i32, %arg1: i32) -> (i32, i32) {
    %c0_i32 = arith.constant 0 : i32
    %c0_i32_0 = arith.constant 0 : i32
    return %arg0, %c0_i32 : i32, i32
  }
  func.func @transform_1(%arg0: i32, %arg1: i32) -> (i32, i32) {
    %c0_i32 = arith.constant 0 : i32
    %c0_i32_0 = arith.constant 0 : i32
    return %c0_i32, %arg1 : i32, i32
  }
  func.func @transform_2(%arg0: i32, %arg1: i32) -> (i32, i32) {
    %c0_i32 = arith.constant 0 : i32
    %c0_i32_0 = arith.constant 0 : i32
    return %c0_i32, %arg1 : i32, i32
  }
  func.func @transform_3(%arg0: i32, %arg1: i32) -> (i32, i32) {
    %c0_i32 = arith.constant 0 : i32
    %c0_i32_0 = arith.constant 0 : i32
    %c0_i32_1 = arith.constant 0 : i32
    return %c0_i32, %c0_i32_0 : i32, i32
  }
  func.func @transform_4(%arg0: i32, %arg1: i32) -> (i32, i32) {
    %c0_i32 = arith.constant 0 : i32
    %c0_i32_0 = arith.constant 0 : i32
    %c0_i32_1 = arith.constant 0 : i32
    return %c0_i32, %c0_i32_0 : i32, i32
  }
  func.func @transform_5(%arg0: i32, %arg1: i32) -> (i32, i32) {
    %c0_i32 = arith.constant 0 : i32
    return %arg0, %arg1 : i32, i32
  }
}

module attributes {stable_mosaic.version = 11 : i64} {
  func.func @_flash_attn_kernel(%arg0: i32, %arg1: i32, %arg2: i32, %arg3: memref<1x8x1323xbf16, #tpu.memory_space<vmem>>, %arg4: memref<1x8x1323xbf16, #tpu.memory_space<vmem>>, %arg5: memref<441x441xbf16, #tpu.memory_space<vmem>>, %arg6: memref<1x441xf32, #tpu.memory_space<vmem>>, %arg7: memref<1x8x441xf32, #tpu.memory_space<vmem>>, %arg8: memref<1x8x441xf32, #tpu.memory_space<vmem>>, %arg9: memref<1x8x1xf32, #tpu.memory_space<vmem>>, %arg10: memref<1x8x1xf32, #tpu.memory_space<vmem>>, %arg11: memref<1x8x441xf32, #tpu.memory_space<vmem>>) attributes {dimension_semantics = [#tpu.dimension_semantics<parallel>, #tpu.dimension_semantics<parallel>, #tpu.dimension_semantics<arbitrary>], iteration_bounds = array<i64: 2, 1, 1>, scalar_prefetch = 0 : i64, scratch_operands = 3 : i64, tpu.core_type = #tpu.core_type<tc>, window_params = [{transform_indices = @transform_0, window_bounds = array<i64: 1, 8, 1323>}, {transform_indices = @transform_1, window_bounds = array<i64: 1, 8, 1323>}, {pipeline_mode = #tpu.pipeline_mode<synchronous>, transform_indices = @transform_2, window_bounds = array<i64: 441, 441>}, {pipeline_mode = #tpu.pipeline_mode<synchronous>, transform_indices = @transform_3, window_bounds = array<i64: 1, 441>}, {transform_indices = @transform_4, window_bounds = array<i64: 1, 8, 441>}, {transform_indices = @transform_5, window_bounds = array<i64: 1, 8, 441>}]} {
    %c0_i32 = arith.constant 0 : i32
    %0 = arith.cmpi eq, %arg2, %c0_i32 : i32
    %1 = arith.extui %0 : i1 to i32
    %c0_i32_0 = arith.constant 0 : i32
    %2 = arith.cmpi ne, %1, %c0_i32_0 : i32
    scf.if %2 {
      %cst_31 = arith.constant -1.000000e+30 : f32
      %58 = vector.broadcast %cst_31 : f32 to vector<1x8x1xf32>
      %c0_32 = arith.constant 0 : index
      %c0_33 = arith.constant 0 : index
      %c0_34 = arith.constant 0 : index
      %59 = vector.load %arg9[%c0_32, %c0_33, %c0_34] : memref<1x8x1xf32, #tpu.memory_space<vmem>>, vector<1x8x1xf32>
      tpu.vector_store %arg9[%c0_32, %c0_33, %c0_34], %58 {strides = array<i32>} : memref<1x8x1xf32, #tpu.memory_space<vmem>>, vector<1x8x1xf32>,
      %cst_35 = arith.constant 0.000000e+00 : f32
      %60 = vector.broadcast %cst_35 : f32 to vector<1x8x1xf32>
      %c0_36 = arith.constant 0 : index
      %c0_37 = arith.constant 0 : index
      %c0_38 = arith.constant 0 : index
      %61 = vector.load %arg10[%c0_36, %c0_37, %c0_38] : memref<1x8x1xf32, #tpu.memory_space<vmem>>, vector<1x8x1xf32>
      tpu.vector_store %arg10[%c0_36, %c0_37, %c0_38], %60 {strides = array<i32>} : memref<1x8x1xf32, #tpu.memory_space<vmem>>, vector<1x8x1xf32>,
      %cst_39 = arith.constant 0.000000e+00 : f32
      %62 = vector.broadcast %cst_39 : f32 to vector<1x8x441xf32>
      %c0_40 = arith.constant 0 : index
      %c0_41 = arith.constant 0 : index
      %c0_42 = arith.constant 0 : index
      %63 = vector.load %arg11[%c0_40, %c0_41, %c0_42] : memref<1x8x441xf32, #tpu.memory_space<vmem>>, vector<1x8x441xf32>
      tpu.vector_store %arg11[%c0_40, %c0_41, %c0_42], %62 {strides = array<i32>} : memref<1x8x441xf32, #tpu.memory_space<vmem>>, vector<1x8x441xf32>,
    } else {
    }
    %c0 = arith.constant 0 : index
    %c0_1 = arith.constant 0 : index
    %c0_2 = arith.constant 0 : index
    %3 = vector.load %arg3[%c0, %c0_1, %c0_2] : memref<1x8x1323xbf16, #tpu.memory_space<vmem>>, vector<1x8x1323xbf16>
    %4 = vector.shape_cast %3 : vector<1x8x1323xbf16> to vector<8x1323xbf16>
    %c0_3 = arith.constant 0 : index
    %c0_4 = arith.constant 0 : index
    %c0_5 = arith.constant 0 : index
    %5 = vector.load %arg4[%c0_3, %c0_4, %c0_5] : memref<1x8x1323xbf16, #tpu.memory_space<vmem>>, vector<1x8x1323xbf16>
    %6 = vector.shape_cast %5 : vector<1x8x1323xbf16> to vector<8x1323xbf16>
    %c8_i32 = arith.constant 8 : i32
    %7 = arith.muli %arg2, %c8_i32 : i32
    %8 = tpu.iota {dimensions = array<i32: 1>} : vector<1x8xi32>
    %9 = vector.broadcast %7 : i32 to vector<1x8xi32>
    %10 = arith.addi %9, %8 : vector<1x8xi32>
    %c4_i32 = arith.constant 4 : i32
    %11 = vector.broadcast %c4_i32 : i32 to vector<1x8xi32>
    %12 = arith.cmpi slt, %10, %11 : vector<1x8xi32>
    %13 = vector.extract_strided_slice %4 {offsets = [0, 0], sizes = [8, 441], strides = [1, 1]} : vector<8x1323xbf16> to vector<8x441xbf16>
    %14 = vector.extract_strided_slice %6 {offsets = [0, 441], sizes = [8, 441], strides = [1, 1]} : vector<8x1323xbf16> to vector<8x441xbf16>
    %15 = vector.extract_strided_slice %6 {offsets = [0, 882], sizes = [8, 441], strides = [1, 1]} : vector<8x1323xbf16> to vector<8x441xbf16>
    %cst = arith.constant dense<0.000000e+00> : vector<8x8xf32>
    %16 = tpu.matmul %13, %14, %cst {dimension_numbers = #tpu.dot_dimension_numbers<[1], [1], [0], [0], [0, 0, 1, 0], [], []>} : vector<8x441xbf16>, vector<8x441xbf16>, vector<8x8xf32> -> vector<8x8xf32>
    %cst_6 = arith.constant 0.0476190485 : f32
    %17 = vector.broadcast %cst_6 : f32 to vector<8x8xf32>
    %18 = arith.mulf %16, %17 : vector<8x8xf32>
    %cst_7 = arith.constant -1.000000e+30 : f32
    %19 = vector.shape_cast %12 : vector<1x8xi1> to vector<1x8xi1>
    %20 = vector.broadcast %19 : vector<1x8xi1> to vector<8x8xi1>
    %21 = vector.broadcast %cst_7 : f32 to vector<8x8xf32>
    %22 = arith.select %20, %18, %21 : vector<8x8xi1>, vector<8x8xf32>
    %c0_8 = arith.constant 0 : index
    %c0_9 = arith.constant 0 : index
    %c0_10 = arith.constant 0 : index
    %23 = vector.load %arg9[%c0_8, %c0_9, %c0_10] : memref<1x8x1xf32, #tpu.memory_space<vmem>>, vector<1x8x1xf32>
    %24 = vector.shape_cast %23 : vector<1x8x1xf32> to vector<8x1xf32>
    %cst_11 = arith.constant dense<0xFF800000> : vector<8xf32>
    %25 = vector.multi_reduction <maximumf>, %22, %cst_11 [1] : vector<8x8xf32> to vector<8xf32>
    %26 = vector.shape_cast %25 : vector<8xf32> to vector<8x1xf32>
    %27 = arith.maximumf %24, %26 : vector<8x1xf32>
    %28 = arith.subf %24, %27 : vector<8x1xf32>
    %29 = math.exp %28 : vector<8x1xf32>
    %30 = vector.broadcast %27 : vector<8x1xf32> to vector<8x8xf32>
    %31 = arith.subf %22, %30 : vector<8x8xf32>
    %32 = math.exp %31 : vector<8x8xf32>
    %c0_12 = arith.constant 0 : index
    %c0_13 = arith.constant 0 : index
    %c0_14 = arith.constant 0 : index
    %33 = vector.load %arg10[%c0_12, %c0_13, %c0_14] : memref<1x8x1xf32, #tpu.memory_space<vmem>>, vector<1x8x1xf32>
    %34 = vector.shape_cast %33 : vector<1x8x1xf32> to vector<8x1xf32>
    %35 = arith.mulf %29, %34 : vector<8x1xf32>
    %cst_15 = arith.constant dense<0.000000e+00> : vector<8xf32>
    %36 = vector.multi_reduction <add>, %32, %cst_15 [1] : vector<8x8xf32> to vector<8xf32>
    %37 = vector.shape_cast %36 : vector<8xf32> to vector<8x1xf32>
    %38 = arith.addf %35, %37 : vector<8x1xf32>
    %c0_16 = arith.constant 0 : index
    %c0_17 = arith.constant 0 : index
    %c0_18 = arith.constant 0 : index
    %39 = vector.load %arg10[%c0_16, %c0_17, %c0_18] : memref<1x8x1xf32, #tpu.memory_space<vmem>>, vector<1x8x1xf32>
    %40 = vector.shape_cast %39 : vector<1x8x1xf32> to vector<8x1xf32>
    %41 = vector.shape_cast %38 : vector<8x1xf32> to vector<1x8x1xf32>
    tpu.vector_store %arg10[%c0_16, %c0_17, %c0_18], %41 {strides = array<i32>} : memref<1x8x1xf32, #tpu.memory_space<vmem>>, vector<1x8x1xf32>,
    %c0_19 = arith.constant 0 : index
    %c0_20 = arith.constant 0 : index
    %c0_21 = arith.constant 0 : index
    %42 = vector.load %arg11[%c0_19, %c0_20, %c0_21] : memref<1x8x441xf32, #tpu.memory_space<vmem>>, vector<1x8x441xf32>
    %43 = vector.shape_cast %42 : vector<1x8x441xf32> to vector<8x441xf32>
    %44 = vector.broadcast %29 : vector<8x1xf32> to vector<8x441xf32>
    %45 = arith.mulf %44, %43 : vector<8x441xf32>
    %46 = arith.truncf %32 : vector<8x8xf32> to vector<8x8xbf16>
    %cst_22 = arith.constant dense<0.000000e+00> : vector<8x441xf32>
    %47 = tpu.matmul %46, %15, %cst_22 {dimension_numbers = #tpu.dot_dimension_numbers<[1], [0], [0], [1], [0, 0, 1, 1], [], []>} : vector<8x8xbf16>, vector<8x441xbf16>, vector<8x441xf32> -> vector<8x441xf32>
    %48 = arith.addf %45, %47 : vector<8x441xf32>
    %c0_23 = arith.constant 0 : index
    %c0_24 = arith.constant 0 : index
    %c0_25 = arith.constant 0 : index
    %49 = vector.load %arg11[%c0_23, %c0_24, %c0_25] : memref<1x8x441xf32, #tpu.memory_space<vmem>>, vector<1x8x441xf32>
    %50 = vector.shape_cast %49 : vector<1x8x441xf32> to vector<8x441xf32>
    %51 = vector.shape_cast %48 : vector<8x441xf32> to vector<1x8x441xf32>
    tpu.vector_store %arg11[%c0_23, %c0_24, %c0_25], %51 {strides = array<i32>} : memref<1x8x441xf32, #tpu.memory_space<vmem>>, vector<1x8x441xf32>,
    %c0_26 = arith.constant 0 : index
    %c0_27 = arith.constant 0 : index
    %c0_28 = arith.constant 0 : index
    %52 = vector.load %arg9[%c0_26, %c0_27, %c0_28] : memref<1x8x1xf32, #tpu.memory_space<vmem>>, vector<1x8x1xf32>
    %53 = vector.shape_cast %52 : vector<1x8x1xf32> to vector<8x1xf32>
    %54 = vector.shape_cast %27 : vector<8x1xf32> to vector<1x8x1xf32>
    tpu.vector_store %arg9[%c0_26, %c0_27, %c0_28], %54 {strides = array<i32>} : memref<1x8x1xf32, #tpu.memory_space<vmem>>, vector<1x8x1xf32>,
    %c0_i32_29 = arith.constant 0 : i32
    %55 = arith.cmpi eq, %arg2, %c0_i32_29 : i32
    %56 = arith.extui %55 : i1 to i32
    %c0_i32_30 = arith.constant 0 : i32
    %57 = arith.cmpi ne, %56, %c0_i32_30 : i32
    scf.if %57 {
      %c0_31 = arith.constant 0 : index
      %c0_32 = arith.constant 0 : index
      %58 = vector.load %arg5[%c0_31, %c0_32] : memref<441x441xbf16, #tpu.memory_space<vmem>>, vector<441x441xbf16>
      %c0_33 = arith.constant 0 : index
      %c0_34 = arith.constant 0 : index
      %59 = vector.load %arg6[%c0_33, %c0_34] : memref<1x441xf32, #tpu.memory_space<vmem>>, vector<1x441xf32>
      %c0_35 = arith.constant 0 : index
      %c0_36 = arith.constant 0 : index
      %c0_37 = arith.constant 0 : index
      %60 = vector.load %arg7[%c0_35, %c0_36, %c0_37] : memref<1x8x441xf32, #tpu.memory_space<vmem>>, vector<1x8x441xf32>
      %61 = vector.shape_cast %60 : vector<1x8x441xf32> to vector<8x441xf32>
      %62 = vector.broadcast %59 : vector<1x441xf32> to vector<8x441xf32>
      %63 = arith.addf %62, %61 : vector<8x441xf32>
      %c0_38 = arith.constant 0 : index
      %c0_39 = arith.constant 0 : index
      %c0_40 = arith.constant 0 : index
      %64 = vector.load %arg11[%c0_38, %c0_39, %c0_40] : memref<1x8x441xf32, #tpu.memory_space<vmem>>, vector<1x8x441xf32>
      %65 = vector.shape_cast %64 : vector<1x8x441xf32> to vector<8x441xf32>
      %c0_41 = arith.constant 0 : index
      %c0_42 = arith.constant 0 : index
      %c0_43 = arith.constant 0 : index
      %66 = vector.load %arg10[%c0_41, %c0_42, %c0_43] : memref<1x8x1xf32, #tpu.memory_space<vmem>>, vector<1x8x1xf32>
      %67 = vector.shape_cast %66 : vector<1x8x1xf32> to vector<8x1xf32>
      %68 = tpu.reciprocal %67 {approx = true} : vector<8x1xf32> -> vector<8x1xf32>
      %69 = vector.broadcast %68 : vector<8x1xf32> to vector<8x441xf32>
      %70 = arith.mulf %65, %69 : vector<8x441xf32>
      %71 = arith.truncf %70 : vector<8x441xf32> to vector<8x441xbf16>
      %cst_44 = arith.constant dense<0.000000e+00> : vector<8x441xf32>
      %72 = tpu.matmul %71, %58, %cst_44 {dimension_numbers = #tpu.dot_dimension_numbers<[1], [0], [0], [1], [0, 0, 1, 1], [], []>} : vector<8x441xbf16>, vector<441x441xbf16>, vector<8x441xf32> -> vector<8x441xf32>
      %73 = arith.addf %63, %72 : vector<8x441xf32>
      %c0_45 = arith.constant 0 : index
      %c0_46 = arith.constant 0 : index
      %c0_47 = arith.constant 0 : index
      %74 = vector.load %arg8[%c0_45, %c0_46, %c0_47] : memref<1x8x441xf32, #tpu.memory_space<vmem>>, vector<1x8x441xf32>
      %75 = vector.shape_cast %74 : vector<1x8x441xf32> to vector<8x441xf32>
      %76 = vector.shape_cast %73 : vector<8x441xf32> to vector<1x8x441xf32>
      tpu.vector_store %arg8[%c0_45, %c0_46, %c0_47], %76 {strides = array<i32>} : memref<1x8x441xf32, #tpu.memory_space<vmem>>, vector<1x8x441xf32>,
    } else {
    }
    return
  }
  func.func @transform_0(%arg0: i32, %arg1: i32, %arg2: i32) -> (i32, i32, i32) {
    %c0_i32 = arith.constant 0 : i32
    %c0_i32_0 = arith.constant 0 : i32
    return %arg0, %arg1, %c0_i32 : i32, i32, i32
  }
  func.func @transform_1(%arg0: i32, %arg1: i32, %arg2: i32) -> (i32, i32, i32) {
    %c0_i32 = arith.constant 0 : i32
    %c0_i32_0 = arith.constant 0 : i32
    return %arg0, %arg2, %c0_i32 : i32, i32, i32
  }
  func.func @transform_2(%arg0: i32, %arg1: i32, %arg2: i32) -> (i32, i32) {
    %c0_i32 = arith.constant 0 : i32
    %c0_i32_0 = arith.constant 0 : i32
    %c0_i32_1 = arith.constant 0 : i32
    return %c0_i32, %c0_i32_0 : i32, i32
  }
  func.func @transform_3(%arg0: i32, %arg1: i32, %arg2: i32) -> (i32, i32) {
    %c0_i32 = arith.constant 0 : i32
    %c0_i32_0 = arith.constant 0 : i32
    %c0_i32_1 = arith.constant 0 : i32
    return %c0_i32, %c0_i32_0 : i32, i32
  }
  func.func @transform_4(%arg0: i32, %arg1: i32, %arg2: i32) -> (i32, i32, i32) {
    %c0_i32 = arith.constant 0 : i32
    %c0_i32_0 = arith.constant 0 : i32
    return %arg0, %arg1, %c0_i32 : i32, i32, i32
  }
  func.func @transform_5(%arg0: i32, %arg1: i32, %arg2: i32) -> (i32, i32, i32) {
    %c0_i32 = arith.constant 0 : i32
    %c0_i32_0 = arith.constant 0 : i32
    return %arg0, %arg1, %c0_i32 : i32, i32, i32
  }
}

module attributes {stable_mosaic.version = 11 : i64} {
  func.func @_fused_mlp_kernel(%arg0: i32, %arg1: memref<8x441xf32, #tpu.memory_space<vmem>>, %arg2: memref<1x441xf32, #tpu.memory_space<vmem>>, %arg3: memref<1x441xf32, #tpu.memory_space<vmem>>, %arg4: memref<441x441xbf16, #tpu.memory_space<vmem>>, %arg5: memref<1x441xf32, #tpu.memory_space<vmem>>, %arg6: memref<441x441xbf16, #tpu.memory_space<vmem>>, %arg7: memref<1x441xf32, #tpu.memory_space<vmem>>, %arg8: memref<8x441xf32, #tpu.memory_space<vmem>>) attributes {dimension_semantics = [#tpu.dimension_semantics<parallel>], iteration_bounds = array<i64: 1>, scalar_prefetch = 0 : i64, scratch_operands = 0 : i64, tpu.core_type = #tpu.core_type<tc>, window_params = [{transform_indices = @transform_0, window_bounds = array<i64: 8, 441>}, {pipeline_mode = #tpu.pipeline_mode<synchronous>, transform_indices = @transform_1, window_bounds = array<i64: 1, 441>}, {pipeline_mode = #tpu.pipeline_mode<synchronous>, transform_indices = @transform_2, window_bounds = array<i64: 1, 441>}, {pipeline_mode = #tpu.pipeline_mode<synchronous>, transform_indices = @transform_3, window_bounds = array<i64: 441, 441>}, {pipeline_mode = #tpu.pipeline_mode<synchronous>, transform_indices = @transform_4, window_bounds = array<i64: 1, 441>}, {pipeline_mode = #tpu.pipeline_mode<synchronous>, transform_indices = @transform_5, window_bounds = array<i64: 441, 441>}, {pipeline_mode = #tpu.pipeline_mode<synchronous>, transform_indices = @transform_6, window_bounds = array<i64: 1, 441>}, {transform_indices = @transform_7, window_bounds = array<i64: 8, 441>}]} {
    %c0 = arith.constant 0 : index
    %c0_0 = arith.constant 0 : index
    %0 = vector.load %arg1[%c0, %c0_0] : memref<8x441xf32, #tpu.memory_space<vmem>>, vector<8x441xf32>
    %cst = arith.constant dense<0.000000e+00> : vector<8xf32>
    %1 = vector.multi_reduction <add>, %0, %cst [1] : vector<8x441xf32> to vector<8xf32>
    %2 = vector.shape_cast %1 : vector<8xf32> to vector<8x1xf32>
    %cst_1 = arith.constant 4.410000e+02 : f32
    %3 = vector.broadcast %cst_1 : f32 to vector<8x1xf32>
    %4 = arith.divf %2, %3 : vector<8x1xf32>
    %5 = vector.broadcast %4 : vector<8x1xf32> to vector<8x441xf32>
    %6 = arith.subf %0, %5 : vector<8x441xf32>
    %7 = arith.mulf %6, %6 : vector<8x441xf32>
    %cst_2 = arith.constant dense<0.000000e+00> : vector<8xf32>
    %8 = vector.multi_reduction <add>, %7, %cst_2 [1] : vector<8x441xf32> to vector<8xf32>
    %9 = vector.shape_cast %8 : vector<8xf32> to vector<8x1xf32>
    %cst_3 = arith.constant 4.410000e+02 : f32
    %10 = vector.broadcast %cst_3 : f32 to vector<8x1xf32>
    %11 = arith.divf %9, %10 : vector<8x1xf32>
    %cst_4 = arith.constant 9.99999974E-6 : f32
    %12 = vector.broadcast %cst_4 : f32 to vector<8x1xf32>
    %13 = arith.addf %11, %12 : vector<8x1xf32>
    %14 = math.rsqrt %13 : vector<8x1xf32>
    %15 = vector.broadcast %14 : vector<8x1xf32> to vector<8x441xf32>
    %16 = arith.mulf %6, %15 : vector<8x441xf32>
    %c0_5 = arith.constant 0 : index
    %c0_6 = arith.constant 0 : index
    %17 = vector.load %arg2[%c0_5, %c0_6] : memref<1x441xf32, #tpu.memory_space<vmem>>, vector<1x441xf32>
    %18 = vector.broadcast %17 : vector<1x441xf32> to vector<8x441xf32>
    %19 = arith.mulf %16, %18 : vector<8x441xf32>
    %c0_7 = arith.constant 0 : index
    %c0_8 = arith.constant 0 : index
    %20 = vector.load %arg3[%c0_7, %c0_8] : memref<1x441xf32, #tpu.memory_space<vmem>>, vector<1x441xf32>
    %21 = vector.broadcast %20 : vector<1x441xf32> to vector<8x441xf32>
    %22 = arith.addf %19, %21 : vector<8x441xf32>
    %23 = arith.truncf %22 : vector<8x441xf32> to vector<8x441xbf16>
    %c0_9 = arith.constant 0 : index
    %c0_10 = arith.constant 0 : index
    %24 = vector.load %arg4[%c0_9, %c0_10] : memref<441x441xbf16, #tpu.memory_space<vmem>>, vector<441x441xbf16>
    %cst_11 = arith.constant dense<0.000000e+00> : vector<8x441xf32>
    %25 = tpu.matmul %23, %24, %cst_11 {dimension_numbers = #tpu.dot_dimension_numbers<[1], [0], [0], [1], [0, 0, 1, 1], [], []>} : vector<8x441xbf16>, vector<441x441xbf16>, vector<8x441xf32> -> vector<8x441xf32>
    %c0_12 = arith.constant 0 : index
    %c0_13 = arith.constant 0 : index
    %26 = vector.load %arg5[%c0_12, %c0_13] : memref<1x441xf32, #tpu.memory_space<vmem>>, vector<1x441xf32>
    %27 = vector.broadcast %26 : vector<1x441xf32> to vector<8x441xf32>
    %28 = arith.addf %25, %27 : vector<8x441xf32>
    %29 = arith.mulf %28, %28 : vector<8x441xf32>
    %30 = arith.mulf %28, %29 : vector<8x441xf32>
    %cst_14 = arith.constant 4.471500e-02 : f32
    %31 = vector.broadcast %cst_14 : f32 to vector<8x441xf32>
    %32 = arith.mulf %31, %30 : vector<8x441xf32>
    %33 = arith.addf %28, %32 : vector<8x441xf32>
    %cst_15 = arith.constant 0.797884583 : f32
    %34 = vector.broadcast %cst_15 : f32 to vector<8x441xf32>
    %35 = arith.mulf %34, %33 : vector<8x441xf32>
    %36 = math.tanh %35 : vector<8x441xf32>
    %cst_16 = arith.constant 1.000000e+00 : f32
    %37 = vector.broadcast %cst_16 : f32 to vector<8x441xf32>
    %38 = arith.addf %37, %36 : vector<8x441xf32>
    %cst_17 = arith.constant 5.000000e-01 : f32
    %39 = vector.broadcast %cst_17 : f32 to vector<8x441xf32>
    %40 = arith.mulf %39, %38 : vector<8x441xf32>
    %41 = arith.mulf %28, %40 : vector<8x441xf32>
    %42 = arith.truncf %41 : vector<8x441xf32> to vector<8x441xbf16>
    %c0_18 = arith.constant 0 : index
    %c0_19 = arith.constant 0 : index
    %43 = vector.load %arg6[%c0_18, %c0_19] : memref<441x441xbf16, #tpu.memory_space<vmem>>, vector<441x441xbf16>
    %cst_20 = arith.constant dense<0.000000e+00> : vector<8x441xf32>
    %44 = tpu.matmul %42, %43, %cst_20 {dimension_numbers = #tpu.dot_dimension_numbers<[1], [0], [0], [1], [0, 0, 1, 1], [], []>} : vector<8x441xbf16>, vector<441x441xbf16>, vector<8x441xf32> -> vector<8x441xf32>
    %c0_21 = arith.constant 0 : index
    %c0_22 = arith.constant 0 : index
    %45 = vector.load %arg7[%c0_21, %c0_22] : memref<1x441xf32, #tpu.memory_space<vmem>>, vector<1x441xf32>
    %46 = vector.broadcast %45 : vector<1x441xf32> to vector<8x441xf32>
    %47 = arith.addf %44, %46 : vector<8x441xf32>
    %48 = arith.addf %47, %0 : vector<8x441xf32>
    %c0_23 = arith.constant 0 : index
    %c0_24 = arith.constant 0 : index
    %49 = vector.load %arg8[%c0_23, %c0_24] : memref<8x441xf32, #tpu.memory_space<vmem>>, vector<8x441xf32>
    tpu.vector_store %arg8[%c0_23, %c0_24], %48 {strides = array<i32>} : memref<8x441xf32, #tpu.memory_space<vmem>>, vector<8x441xf32>,
    return
  }
  func.func @transform_0(%arg0: i32) -> (i32, i32) {
    %c0_i32 = arith.constant 0 : i32
    %c0_i32_0 = arith.constant 0 : i32
    return %arg0, %c0_i32 : i32, i32
  }
  func.func @transform_1(%arg0: i32) -> (i32, i32) {
    %c0_i32 = arith.constant 0 : i32
    %c0_i32_0 = arith.constant 0 : i32
    %c0_i32_1 = arith.constant 0 : i32
    return %c0_i32, %c0_i32_0 : i32, i32
  }
  func.func @transform_2(%arg0: i32) -> (i32, i32) {
    %c0_i32 = arith.constant 0 : i32
    %c0_i32_0 = arith.constant 0 : i32
    %c0_i32_1 = arith.constant 0 : i32
    return %c0_i32, %c0_i32_0 : i32, i32
  }
  func.func @transform_3(%arg0: i32) -> (i32, i32) {
    %c0_i32 = arith.constant 0 : i32
    %c0_i32_0 = arith.constant 0 : i32
    %c0_i32_1 = arith.constant 0 : i32
    return %c0_i32, %c0_i32_0 : i32, i32
  }
  func.func @transform_4(%arg0: i32) -> (i32, i32) {
    %c0_i32 = arith.constant 0 : i32
    %c0_i32_0 = arith.constant 0 : i32
    %c0_i32_1 = arith.constant 0 : i32
    return %c0_i32, %c0_i32_0 : i32, i32
  }
  func.func @transform_5(%arg0: i32) -> (i32, i32) {
    %c0_i32 = arith.constant 0 : i32
    %c0_i32_0 = arith.constant 0 : i32
    %c0_i32_1 = arith.constant 0 : i32
    return %c0_i32, %c0_i32_0 : i32, i32
  }
  func.func @transform_6(%arg0: i32) -> (i32, i32) {
    %c0_i32 = arith.constant 0 : i32
    %c0_i32_0 = arith.constant 0 : i32
    %c0_i32_1 = arith.constant 0 : i32
    return %c0_i32, %c0_i32_0 : i32, i32
  }
  func.func @transform_7(%arg0: i32) -> (i32, i32) {
    %c0_i32 = arith.constant 0 : i32
    %c0_i32_0 = arith.constant 0 : i32
    return %arg0, %c0_i32 : i32, i32
  }
}

module attributes {stable_mosaic.version = 11 : i64} {
  func.func @_matmul_bias_kernel(%arg0: i32, %arg1: i32, %arg2: i32, %arg3: memref<8x512xf32, #tpu.memory_space<vmem>>, %arg4: memref<512x32xbf16, #tpu.memory_space<vmem>>, %arg5: memref<1x32xf32, #tpu.memory_space<vmem>>, %arg6: memref<8x32xf32, #tpu.memory_space<vmem>>, %arg7: memref<8x32xf32, #tpu.memory_space<vmem>>) attributes {dimension_semantics = [#tpu.dimension_semantics<parallel>, #tpu.dimension_semantics<parallel>, #tpu.dimension_semantics<arbitrary>], iteration_bounds = array<i64: 1, 1, 8>, scalar_prefetch = 0 : i64, scratch_operands = 1 : i64, tpu.core_type = #tpu.core_type<tc>, window_params = [{transform_indices = @transform_0, window_bounds = array<i64: 8, 512>}, {transform_indices = @transform_1, window_bounds = array<i64: 512, 32>}, {transform_indices = @transform_2, window_bounds = array<i64: 1, 32>}, {transform_indices = @transform_3, window_bounds = array<i64: 8, 32>}]} {
    %c0_i32 = arith.constant 0 : i32
    %0 = arith.cmpi eq, %arg2, %c0_i32 : i32
    %1 = arith.extui %0 : i1 to i32
    %c0_i32_0 = arith.constant 0 : i32
    %2 = arith.cmpi ne, %1, %c0_i32_0 : i32
    scf.if %2 {
      %cst_9 = arith.constant 0.000000e+00 : f32
      %13 = vector.broadcast %cst_9 : f32 to vector<8x32xf32>
      %c0_10 = arith.constant 0 : index
      %c0_11 = arith.constant 0 : index
      %14 = vector.load %arg7[%c0_10, %c0_11] : memref<8x32xf32, #tpu.memory_space<vmem>>, vector<8x32xf32>
      tpu.vector_store %arg7[%c0_10, %c0_11], %13 {strides = array<i32>} : memref<8x32xf32, #tpu.memory_space<vmem>>, vector<8x32xf32>,
    } else {
    }
    %c0 = arith.constant 0 : index
    %c0_1 = arith.constant 0 : index
    %3 = vector.load %arg7[%c0, %c0_1] : memref<8x32xf32, #tpu.memory_space<vmem>>, vector<8x32xf32>
    %c0_2 = arith.constant 0 : index
    %c0_3 = arith.constant 0 : index
    %4 = vector.load %arg3[%c0_2, %c0_3] : memref<8x512xf32, #tpu.memory_space<vmem>>, vector<8x512xf32>
    %5 = arith.truncf %4 : vector<8x512xf32> to vector<8x512xbf16>
    %c0_4 = arith.constant 0 : index
    %c0_5 = arith.constant 0 : index
    %6 = vector.load %arg4[%c0_4, %c0_5] : memref<512x32xbf16, #tpu.memory_space<vmem>>, vector<512x32xbf16>
    %cst = arith.constant dense<0.000000e+00> : vector<8x32xf32>
    %7 = tpu.matmul %5, %6, %cst {dimension_numbers = #tpu.dot_dimension_numbers<[1], [0], [0], [1], [0, 0, 1, 1], [], []>} : vector<8x512xbf16>, vector<512x32xbf16>, vector<8x32xf32> -> vector<8x32xf32>
    %8 = arith.addf %3, %7 : vector<8x32xf32>
    %c0_6 = arith.constant 0 : index
    %c0_7 = arith.constant 0 : index
    %9 = vector.load %arg7[%c0_6, %c0_7] : memref<8x32xf32, #tpu.memory_space<vmem>>, vector<8x32xf32>
    tpu.vector_store %arg7[%c0_6, %c0_7], %8 {strides = array<i32>} : memref<8x32xf32, #tpu.memory_space<vmem>>, vector<8x32xf32>,
    %c7_i32 = arith.constant 7 : i32
    %10 = arith.cmpi eq, %arg2, %c7_i32 : i32
    %11 = arith.extui %10 : i1 to i32
    %c0_i32_8 = arith.constant 0 : i32
    %12 = arith.cmpi ne, %11, %c0_i32_8 : i32
    scf.if %12 {
      %c0_9 = arith.constant 0 : index
      %c0_10 = arith.constant 0 : index
      %13 = vector.load %arg7[%c0_9, %c0_10] : memref<8x32xf32, #tpu.memory_space<vmem>>, vector<8x32xf32>
      %c0_11 = arith.constant 0 : index
      %c0_12 = arith.constant 0 : index
      %14 = vector.load %arg5[%c0_11, %c0_12] : memref<1x32xf32, #tpu.memory_space<vmem>>, vector<1x32xf32>
      %15 = vector.broadcast %14 : vector<1x32xf32> to vector<8x32xf32>
      %16 = arith.addf %13, %15 : vector<8x32xf32>
      %c0_13 = arith.constant 0 : index
      %c0_14 = arith.constant 0 : index
      %17 = vector.load %arg6[%c0_13, %c0_14] : memref<8x32xf32, #tpu.memory_space<vmem>>, vector<8x32xf32>
      tpu.vector_store %arg6[%c0_13, %c0_14], %16 {strides = array<i32>} : memref<8x32xf32, #tpu.memory_space<vmem>>, vector<8x32xf32>,
    } else {
    }
    return
  }
  func.func @transform_0(%arg0: i32, %arg1: i32, %arg2: i32) -> (i32, i32) {
    %c0_i32 = arith.constant 0 : i32
    return %arg0, %arg2 : i32, i32
  }
  func.func @transform_1(%arg0: i32, %arg1: i32, %arg2: i32) -> (i32, i32) {
    %c0_i32 = arith.constant 0 : i32
    return %arg2, %arg1 : i32, i32
  }
  func.func @transform_2(%arg0: i32, %arg1: i32, %arg2: i32) -> (i32, i32) {
    %c0_i32 = arith.constant 0 : i32
    %c0_i32_0 = arith.constant 0 : i32
    return %c0_i32, %arg1 : i32, i32
  }
  func.func @transform_3(%arg0: i32, %arg1: i32, %arg2: i32) -> (i32, i32) {
    %c0_i32 = arith.constant 0 : i32
    return %arg0, %arg1 : i32, i32
  }
}

module attributes {stable_mosaic.version = 11 : i64} {
  func.func @_fused_linear_kernel(%arg0: i32, %arg1: i32, %arg2: memref<8x32xf32, #tpu.memory_space<vmem>>, %arg3: memref<32x96xbf16, #tpu.memory_space<vmem>>, %arg4: memref<1x96xf32, #tpu.memory_space<vmem>>, %arg5: memref<1x32xf32, #tpu.memory_space<vmem>>, %arg6: memref<1x32xf32, #tpu.memory_space<vmem>>, %arg7: memref<8x96xbf16, #tpu.memory_space<vmem>>) attributes {dimension_semantics = [#tpu.dimension_semantics<parallel>, #tpu.dimension_semantics<parallel>], iteration_bounds = array<i64: 1, 1>, scalar_prefetch = 0 : i64, scratch_operands = 0 : i64, tpu.core_type = #tpu.core_type<tc>, window_params = [{transform_indices = @transform_0, window_bounds = array<i64: 8, 32>}, {transform_indices = @transform_1, window_bounds = array<i64: 32, 96>}, {transform_indices = @transform_2, window_bounds = array<i64: 1, 96>}, {pipeline_mode = #tpu.pipeline_mode<synchronous>, transform_indices = @transform_3, window_bounds = array<i64: 1, 32>}, {pipeline_mode = #tpu.pipeline_mode<synchronous>, transform_indices = @transform_4, window_bounds = array<i64: 1, 32>}, {transform_indices = @transform_5, window_bounds = array<i64: 8, 96>}]} {
    %c0 = arith.constant 0 : index
    %c0_0 = arith.constant 0 : index
    %0 = vector.load %arg2[%c0, %c0_0] : memref<8x32xf32, #tpu.memory_space<vmem>>, vector<8x32xf32>
    %cst = arith.constant dense<0.000000e+00> : vector<8xf32>
    %1 = vector.multi_reduction <add>, %0, %cst [1] : vector<8x32xf32> to vector<8xf32>
    %2 = vector.shape_cast %1 : vector<8xf32> to vector<8x1xf32>
    %cst_1 = arith.constant 3.200000e+01 : f32
    %3 = vector.broadcast %cst_1 : f32 to vector<8x1xf32>
    %4 = arith.divf %2, %3 : vector<8x1xf32>
    %5 = vector.broadcast %4 : vector<8x1xf32> to vector<8x32xf32>
    %6 = arith.subf %0, %5 : vector<8x32xf32>
    %7 = arith.mulf %6, %6 : vector<8x32xf32>
    %cst_2 = arith.constant dense<0.000000e+00> : vector<8xf32>
    %8 = vector.multi_reduction <add>, %7, %cst_2 [1] : vector<8x32xf32> to vector<8xf32>
    %9 = vector.shape_cast %8 : vector<8xf32> to vector<8x1xf32>
    %cst_3 = arith.constant 3.200000e+01 : f32
    %10 = vector.broadcast %cst_3 : f32 to vector<8x1xf32>
    %11 = arith.divf %9, %10 : vector<8x1xf32>
    %cst_4 = arith.constant 9.99999974E-6 : f32
    %12 = vector.broadcast %cst_4 : f32 to vector<8x1xf32>
    %13 = arith.addf %11, %12 : vector<8x1xf32>
    %14 = math.rsqrt %13 : vector<8x1xf32>
    %15 = vector.broadcast %14 : vector<8x1xf32> to vector<8x32xf32>
    %16 = arith.mulf %6, %15 : vector<8x32xf32>
    %c0_5 = arith.constant 0 : index
    %c0_6 = arith.constant 0 : index
    %17 = vector.load %arg5[%c0_5, %c0_6] : memref<1x32xf32, #tpu.memory_space<vmem>>, vector<1x32xf32>
    %18 = vector.broadcast %17 : vector<1x32xf32> to vector<8x32xf32>
    %19 = arith.mulf %16, %18 : vector<8x32xf32>
    %c0_7 = arith.constant 0 : index
    %c0_8 = arith.constant 0 : index
    %20 = vector.load %arg6[%c0_7, %c0_8] : memref<1x32xf32, #tpu.memory_space<vmem>>, vector<1x32xf32>
    %21 = vector.broadcast %20 : vector<1x32xf32> to vector<8x32xf32>
    %22 = arith.addf %19, %21 : vector<8x32xf32>
    %23 = arith.truncf %22 : vector<8x32xf32> to vector<8x32xbf16>
    %c0_9 = arith.constant 0 : index
    %c0_10 = arith.constant 0 : index
    %24 = vector.load %arg3[%c0_9, %c0_10] : memref<32x96xbf16, #tpu.memory_space<vmem>>, vector<32x96xbf16>
    %cst_11 = arith.constant dense<0.000000e+00> : vector<8x96xf32>
    %25 = tpu.matmul %23, %24, %cst_11 {dimension_numbers = #tpu.dot_dimension_numbers<[1], [0], [0], [1], [0, 0, 1, 1], [], []>} : vector<8x32xbf16>, vector<32x96xbf16>, vector<8x96xf32> -> vector<8x96xf32>
    %c0_12 = arith.constant 0 : index
    %c0_13 = arith.constant 0 : index
    %26 = vector.load %arg4[%c0_12, %c0_13] : memref<1x96xf32, #tpu.memory_space<vmem>>, vector<1x96xf32>
    %27 = vector.broadcast %26 : vector<1x96xf32> to vector<8x96xf32>
    %28 = arith.addf %25, %27 : vector<8x96xf32>
    %29 = arith.truncf %28 : vector<8x96xf32> to vector<8x96xbf16>
    %c0_14 = arith.constant 0 : index
    %c0_15 = arith.constant 0 : index
    %30 = vector.load %arg7[%c0_14, %c0_15] : memref<8x96xbf16, #tpu.memory_space<vmem>>, vector<8x96xbf16>
    tpu.vector_store %arg7[%c0_14, %c0_15], %29 {strides = array<i32>} : memref<8x96xbf16, #tpu.memory_space<vmem>>, vector<8x96xbf16>,
    return
  }
  func.func @transform_0(%arg0: i32, %arg1: i32) -> (i32, i32) {
    %c0_i32 = arith.constant 0 : i32
    %c0_i32_0 = arith.constant 0 : i32
    return %arg0, %c0_i32 : i32, i32
  }
  func.func @transform_1(%arg0: i32, %arg1: i32) -> (i32, i32) {
    %c0_i32 = arith.constant 0 : i32
    %c0_i32_0 = arith.constant 0 : i32
    return %c0_i32, %arg1 : i32, i32
  }
  func.func @transform_2(%arg0: i32, %arg1: i32) -> (i32, i32) {
    %c0_i32 = arith.constant 0 : i32
    %c0_i32_0 = arith.constant 0 : i32
    return %c0_i32, %arg1 : i32, i32
  }
  func.func @transform_3(%arg0: i32, %arg1: i32) -> (i32, i32) {
    %c0_i32 = arith.constant 0 : i32
    %c0_i32_0 = arith.constant 0 : i32
    %c0_i32_1 = arith.constant 0 : i32
    return %c0_i32, %c0_i32_0 : i32, i32
  }
  func.func @transform_4(%arg0: i32, %arg1: i32) -> (i32, i32) {
    %c0_i32 = arith.constant 0 : i32
    %c0_i32_0 = arith.constant 0 : i32
    %c0_i32_1 = arith.constant 0 : i32
    return %c0_i32, %c0_i32_0 : i32, i32
  }
  func.func @transform_5(%arg0: i32, %arg1: i32) -> (i32, i32) {
    %c0_i32 = arith.constant 0 : i32
    return %arg0, %arg1 : i32, i32
  }
}

module attributes {stable_mosaic.version = 11 : i64} {
  func.func @_flash_attn_kernel(%arg0: i32, %arg1: i32, %arg2: i32, %arg3: memref<1x8x96xbf16, #tpu.memory_space<vmem>>, %arg4: memref<1x8x96xbf16, #tpu.memory_space<vmem>>, %arg5: memref<32x32xbf16, #tpu.memory_space<vmem>>, %arg6: memref<1x32xf32, #tpu.memory_space<vmem>>, %arg7: memref<1x8x32xf32, #tpu.memory_space<vmem>>, %arg8: memref<1x8x32xf32, #tpu.memory_space<vmem>>, %arg9: memref<2x8x1xf32, #tpu.memory_space<vmem>>, %arg10: memref<2x8x1xf32, #tpu.memory_space<vmem>>, %arg11: memref<2x8x16xf32, #tpu.memory_space<vmem>>) attributes {dimension_semantics = [#tpu.dimension_semantics<parallel>, #tpu.dimension_semantics<parallel>, #tpu.dimension_semantics<arbitrary>], iteration_bounds = array<i64: 2, 1, 1>, scalar_prefetch = 0 : i64, scratch_operands = 3 : i64, tpu.core_type = #tpu.core_type<tc>, window_params = [{transform_indices = @transform_0, window_bounds = array<i64: 1, 8, 96>}, {transform_indices = @transform_1, window_bounds = array<i64: 1, 8, 96>}, {pipeline_mode = #tpu.pipeline_mode<synchronous>, transform_indices = @transform_2, window_bounds = array<i64: 32, 32>}, {pipeline_mode = #tpu.pipeline_mode<synchronous>, transform_indices = @transform_3, window_bounds = array<i64: 1, 32>}, {transform_indices = @transform_4, window_bounds = array<i64: 1, 8, 32>}, {transform_indices = @transform_5, window_bounds = array<i64: 1, 8, 32>}]} {
    %c0_i32 = arith.constant 0 : i32
    %0 = arith.cmpi eq, %arg2, %c0_i32 : i32
    %1 = arith.extui %0 : i1 to i32
    %c0_i32_0 = arith.constant 0 : i32
    %2 = arith.cmpi ne, %1, %c0_i32_0 : i32
    scf.if %2 {
      %cst_54 = arith.constant -1.000000e+30 : f32
      %100 = vector.broadcast %cst_54 : f32 to vector<2x8x1xf32>
      %c0_55 = arith.constant 0 : index
      %c0_56 = arith.constant 0 : index
      %c0_57 = arith.constant 0 : index
      %101 = vector.load %arg9[%c0_55, %c0_56, %c0_57] : memref<2x8x1xf32, #tpu.memory_space<vmem>>, vector<2x8x1xf32>
      tpu.vector_store %arg9[%c0_55, %c0_56, %c0_57], %100 {strides = array<i32>} : memref<2x8x1xf32, #tpu.memory_space<vmem>>, vector<2x8x1xf32>,
      %cst_58 = arith.constant 0.000000e+00 : f32
      %102 = vector.broadcast %cst_58 : f32 to vector<2x8x1xf32>
      %c0_59 = arith.constant 0 : index
      %c0_60 = arith.constant 0 : index
      %c0_61 = arith.constant 0 : index
      %103 = vector.load %arg10[%c0_59, %c0_60, %c0_61] : memref<2x8x1xf32, #tpu.memory_space<vmem>>, vector<2x8x1xf32>
      tpu.vector_store %arg10[%c0_59, %c0_60, %c0_61], %102 {strides = array<i32>} : memref<2x8x1xf32, #tpu.memory_space<vmem>>, vector<2x8x1xf32>,
      %cst_62 = arith.constant 0.000000e+00 : f32
      %104 = vector.broadcast %cst_62 : f32 to vector<2x8x16xf32>
      %c0_63 = arith.constant 0 : index
      %c0_64 = arith.constant 0 : index
      %c0_65 = arith.constant 0 : index
      %105 = vector.load %arg11[%c0_63, %c0_64, %c0_65] : memref<2x8x16xf32, #tpu.memory_space<vmem>>, vector<2x8x16xf32>
      tpu.vector_store %arg11[%c0_63, %c0_64, %c0_65], %104 {strides = array<i32>} : memref<2x8x16xf32, #tpu.memory_space<vmem>>, vector<2x8x16xf32>,
    } else {
    }
    %c0 = arith.constant 0 : index
    %c0_1 = arith.constant 0 : index
    %c0_2 = arith.constant 0 : index
    %3 = vector.load %arg3[%c0, %c0_1, %c0_2] : memref<1x8x96xbf16, #tpu.memory_space<vmem>>, vector<1x8x96xbf16>
    %4 = vector.shape_cast %3 : vector<1x8x96xbf16> to vector<8x96xbf16>
    %c0_3 = arith.constant 0 : index
    %c0_4 = arith.constant 0 : index
    %c0_5 = arith.constant 0 : index
    %5 = vector.load %arg4[%c0_3, %c0_4, %c0_5] : memref<1x8x96xbf16, #tpu.memory_space<vmem>>, vector<1x8x96xbf16>
    %6 = vector.shape_cast %5 : vector<1x8x96xbf16> to vector<8x96xbf16>
    %c8_i32 = arith.constant 8 : i32
    %7 = arith.muli %arg2, %c8_i32 : i32
    %8 = tpu.iota {dimensions = array<i32: 1>} : vector<1x8xi32>
    %9 = vector.broadcast %7 : i32 to vector<1x8xi32>
    %10 = arith.addi %9, %8 : vector<1x8xi32>
    %c2_i32 = arith.constant 2 : i32
    %11 = vector.broadcast %c2_i32 : i32 to vector<1x8xi32>
    %12 = arith.cmpi slt, %10, %11 : vector<1x8xi32>
    %13 = vector.extract_strided_slice %4 {offsets = [0, 0], sizes = [8, 16], strides = [1, 1]} : vector<8x96xbf16> to vector<8x16xbf16>
    %14 = vector.extract_strided_slice %6 {offsets = [0, 32], sizes = [8, 16], strides = [1, 1]} : vector<8x96xbf16> to vector<8x16xbf16>
    %15 = vector.extract_strided_slice %6 {offsets = [0, 64], sizes = [8, 16], strides = [1, 1]} : vector<8x96xbf16> to vector<8x16xbf16>
    %cst = arith.constant dense<0.000000e+00> : vector<8x8xf32>
    %16 = tpu.matmul %13, %14, %cst {dimension_numbers = #tpu.dot_dimension_numbers<[1], [1], [0], [0], [0, 0, 1, 0], [], []>} : vector<8x16xbf16>, vector<8x16xbf16>, vector<8x8xf32> -> vector<8x8xf32>
    %cst_6 = arith.constant 2.500000e-01 : f32
    %17 = vector.broadcast %cst_6 : f32 to vector<8x8xf32>
    %18 = arith.mulf %16, %17 : vector<8x8xf32>
    %cst_7 = arith.constant -1.000000e+30 : f32
    %19 = vector.shape_cast %12 : vector<1x8xi1> to vector<1x8xi1>
    %20 = vector.broadcast %19 : vector<1x8xi1> to vector<8x8xi1>
    %21 = vector.broadcast %cst_7 : f32 to vector<8x8xf32>
    %22 = arith.select %20, %18, %21 : vector<8x8xi1>, vector<8x8xf32>
    %c0_8 = arith.constant 0 : index
    %c0_9 = arith.constant 0 : index
    %c0_10 = arith.constant 0 : index
    %23 = vector.load %arg9[%c0_8, %c0_9, %c0_10] : memref<2x8x1xf32, #tpu.memory_space<vmem>>, vector<1x8x1xf32>
    %24 = vector.shape_cast %23 : vector<1x8x1xf32> to vector<8x1xf32>
    %cst_11 = arith.constant dense<0xFF800000> : vector<8xf32>
    %25 = vector.multi_reduction <maximumf>, %22, %cst_11 [1] : vector<8x8xf32> to vector<8xf32>
    %26 = vector.shape_cast %25 : vector<8xf32> to vector<8x1xf32>
    %27 = arith.maximumf %24, %26 : vector<8x1xf32>
    %28 = arith.subf %24, %27 : vector<8x1xf32>
    %29 = math.exp %28 : vector<8x1xf32>
    %30 = vector.broadcast %27 : vector<8x1xf32> to vector<8x8xf32>
    %31 = arith.subf %22, %30 : vector<8x8xf32>
    %32 = math.exp %31 : vector<8x8xf32>
    %c0_12 = arith.constant 0 : index
    %c0_13 = arith.constant 0 : index
    %c0_14 = arith.constant 0 : index
    %33 = vector.load %arg10[%c0_12, %c0_13, %c0_14] : memref<2x8x1xf32, #tpu.memory_space<vmem>>, vector<1x8x1xf32>
    %34 = vector.shape_cast %33 : vector<1x8x1xf32> to vector<8x1xf32>
    %35 = arith.mulf %29, %34 : vector<8x1xf32>
    %cst_15 = arith.constant dense<0.000000e+00> : vector<8xf32>
    %36 = vector.multi_reduction <add>, %32, %cst_15 [1] : vector<8x8xf32> to vector<8xf32>
    %37 = vector.shape_cast %36 : vector<8xf32> to vector<8x1xf32>
    %38 = arith.addf %35, %37 : vector<8x1xf32>
    %c0_16 = arith.constant 0 : index
    %c0_17 = arith.constant 0 : index
    %c0_18 = arith.constant 0 : index
    %39 = vector.load %arg10[%c0_16, %c0_17, %c0_18] : memref<2x8x1xf32, #tpu.memory_space<vmem>>, vector<1x8x1xf32>
    %40 = vector.shape_cast %39 : vector<1x8x1xf32> to vector<8x1xf32>
    %41 = vector.shape_cast %38 : vector<8x1xf32> to vector<1x8x1xf32>
    tpu.vector_store %arg10[%c0_16, %c0_17, %c0_18], %41 {strides = array<i32>} : memref<2x8x1xf32, #tpu.memory_space<vmem>>, vector<1x8x1xf32>,
    %c0_19 = arith.constant 0 : index
    %c0_20 = arith.constant 0 : index
    %c0_21 = arith.constant 0 : index
    %42 = vector.load %arg11[%c0_19, %c0_20, %c0_21] : memref<2x8x16xf32, #tpu.memory_space<vmem>>, vector<1x8x16xf32>
    %43 = vector.shape_cast %42 : vector<1x8x16xf32> to vector<8x16xf32>
    %44 = vector.broadcast %29 : vector<8x1xf32> to vector<8x16xf32>
    %45 = arith.mulf %44, %43 : vector<8x16xf32>
    %46 = arith.truncf %32 : vector<8x8xf32> to vector<8x8xbf16>
    %cst_22 = arith.constant dense<0.000000e+00> : vector<8x16xf32>
    %47 = tpu.matmul %46, %15, %cst_22 {dimension_numbers = #tpu.dot_dimension_numbers<[1], [0], [0], [1], [0, 0, 1, 1], [], []>} : vector<8x8xbf16>, vector<8x16xbf16>, vector<8x16xf32> -> vector<8x16xf32>
    %48 = arith.addf %45, %47 : vector<8x16xf32>
    %c0_23 = arith.constant 0 : index
    %c0_24 = arith.constant 0 : index
    %c0_25 = arith.constant 0 : index
    %49 = vector.load %arg11[%c0_23, %c0_24, %c0_25] : memref<2x8x16xf32, #tpu.memory_space<vmem>>, vector<1x8x16xf32>
    %50 = vector.shape_cast %49 : vector<1x8x16xf32> to vector<8x16xf32>
    %51 = vector.shape_cast %48 : vector<8x16xf32> to vector<1x8x16xf32>
    tpu.vector_store %arg11[%c0_23, %c0_24, %c0_25], %51 {strides = array<i32>} : memref<2x8x16xf32, #tpu.memory_space<vmem>>, vector<1x8x16xf32>,
    %c0_26 = arith.constant 0 : index
    %c0_27 = arith.constant 0 : index
    %c0_28 = arith.constant 0 : index
    %52 = vector.load %arg9[%c0_26, %c0_27, %c0_28] : memref<2x8x1xf32, #tpu.memory_space<vmem>>, vector<1x8x1xf32>
    %53 = vector.shape_cast %52 : vector<1x8x1xf32> to vector<8x1xf32>
    %54 = vector.shape_cast %27 : vector<8x1xf32> to vector<1x8x1xf32>
    tpu.vector_store %arg9[%c0_26, %c0_27, %c0_28], %54 {strides = array<i32>} : memref<2x8x1xf32, #tpu.memory_space<vmem>>, vector<1x8x1xf32>,
    %55 = vector.extract_strided_slice %4 {offsets = [0, 16], sizes = [8, 16], strides = [1, 1]} : vector<8x96xbf16> to vector<8x16xbf16>
    %56 = vector.extract_strided_slice %6 {offsets = [0, 48], sizes = [8, 16], strides = [1, 1]} : vector<8x96xbf16> to vector<8x16xbf16>
    %57 = vector.extract_strided_slice %6 {offsets = [0, 80], sizes = [8, 16], strides = [1, 1]} : vector<8x96xbf16> to vector<8x16xbf16>
    %cst_29 = arith.constant dense<0.000000e+00> : vector<8x8xf32>
    %58 = tpu.matmul %55, %56, %cst_29 {dimension_numbers = #tpu.dot_dimension_numbers<[1], [1], [0], [0], [0, 0, 1, 0], [], []>} : vector<8x16xbf16>, vector<8x16xbf16>, vector<8x8xf32> -> vector<8x8xf32>
    %cst_30 = arith.constant 2.500000e-01 : f32
    %59 = vector.broadcast %cst_30 : f32 to vector<8x8xf32>
    %60 = arith.mulf %58, %59 : vector<8x8xf32>
    %cst_31 = arith.constant -1.000000e+30 : f32
    %61 = vector.shape_cast %12 : vector<1x8xi1> to vector<1x8xi1>
    %62 = vector.broadcast %61 : vector<1x8xi1> to vector<8x8xi1>
    %63 = vector.broadcast %cst_31 : f32 to vector<8x8xf32>
    %64 = arith.select %62, %60, %63 : vector<8x8xi1>, vector<8x8xf32>
    %c1 = arith.constant 1 : index
    %c0_32 = arith.constant 0 : index
    %c0_33 = arith.constant 0 : index
    %65 = vector.load %arg9[%c1, %c0_32, %c0_33] : memref<2x8x1xf32, #tpu.memory_space<vmem>>, vector<1x8x1xf32>
    %66 = vector.shape_cast %65 : vector<1x8x1xf32> to vector<8x1xf32>
    %cst_34 = arith.constant dense<0xFF800000> : vector<8xf32>
    %67 = vector.multi_reduction <maximumf>, %64, %cst_34 [1] : vector<8x8xf32> to vector<8xf32>
    %68 = vector.shape_cast %67 : vector<8xf32> to vector<8x1xf32>
    %69 = arith.maximumf %66, %68 : vector<8x1xf32>
    %70 = arith.subf %66, %69 : vector<8x1xf32>
    %71 = math.exp %70 : vector<8x1xf32>
    %72 = vector.broadcast %69 : vector<8x1xf32> to vector<8x8xf32>
    %73 = arith.subf %64, %72 : vector<8x8xf32>
    %74 = math.exp %73 : vector<8x8xf32>
    %c1_35 = arith.constant 1 : index
    %c0_36 = arith.constant 0 : index
    %c0_37 = arith.constant 0 : index
    %75 = vector.load %arg10[%c1_35, %c0_36, %c0_37] : memref<2x8x1xf32, #tpu.memory_space<vmem>>, vector<1x8x1xf32>
    %76 = vector.shape_cast %75 : vector<1x8x1xf32> to vector<8x1xf32>
    %77 = arith.mulf %71, %76 : vector<8x1xf32>
    %cst_38 = arith.constant dense<0.000000e+00> : vector<8xf32>
    %78 = vector.multi_reduction <add>, %74, %cst_38 [1] : vector<8x8xf32> to vector<8xf32>
    %79 = vector.shape_cast %78 : vector<8xf32> to vector<8x1xf32>
    %80 = arith.addf %77, %79 : vector<8x1xf32>
    %c1_39 = arith.constant 1 : index
    %c0_40 = arith.constant 0 : index
    %c0_41 = arith.constant 0 : index
    %81 = vector.load %arg10[%c1_39, %c0_40, %c0_41] : memref<2x8x1xf32, #tpu.memory_space<vmem>>, vector<1x8x1xf32>
    %82 = vector.shape_cast %81 : vector<1x8x1xf32> to vector<8x1xf32>
    %83 = vector.shape_cast %80 : vector<8x1xf32> to vector<1x8x1xf32>
    tpu.vector_store %arg10[%c1_39, %c0_40, %c0_41], %83 {strides = array<i32>} : memref<2x8x1xf32, #tpu.memory_space<vmem>>, vector<1x8x1xf32>,
    %c1_42 = arith.constant 1 : index
    %c0_43 = arith.constant 0 : index
    %c0_44 = arith.constant 0 : index
    %84 = vector.load %arg11[%c1_42, %c0_43, %c0_44] : memref<2x8x16xf32, #tpu.memory_space<vmem>>, vector<1x8x16xf32>
    %85 = vector.shape_cast %84 : vector<1x8x16xf32> to vector<8x16xf32>
    %86 = vector.broadcast %71 : vector<8x1xf32> to vector<8x16xf32>
    %87 = arith.mulf %86, %85 : vector<8x16xf32>
    %88 = arith.truncf %74 : vector<8x8xf32> to vector<8x8xbf16>
    %cst_45 = arith.constant dense<0.000000e+00> : vector<8x16xf32>
    %89 = tpu.matmul %88, %57, %cst_45 {dimension_numbers = #tpu.dot_dimension_numbers<[1], [0], [0], [1], [0, 0, 1, 1], [], []>} : vector<8x8xbf16>, vector<8x16xbf16>, vector<8x16xf32> -> vector<8x16xf32>
    %90 = arith.addf %87, %89 : vector<8x16xf32>
    %c1_46 = arith.constant 1 : index
    %c0_47 = arith.constant 0 : index
    %c0_48 = arith.constant 0 : index
    %91 = vector.load %arg11[%c1_46, %c0_47, %c0_48] : memref<2x8x16xf32, #tpu.memory_space<vmem>>, vector<1x8x16xf32>
    %92 = vector.shape_cast %91 : vector<1x8x16xf32> to vector<8x16xf32>
    %93 = vector.shape_cast %90 : vector<8x16xf32> to vector<1x8x16xf32>
    tpu.vector_store %arg11[%c1_46, %c0_47, %c0_48], %93 {strides = array<i32>} : memref<2x8x16xf32, #tpu.memory_space<vmem>>, vector<1x8x16xf32>,
    %c1_49 = arith.constant 1 : index
    %c0_50 = arith.constant 0 : index
    %c0_51 = arith.constant 0 : index
    %94 = vector.load %arg9[%c1_49, %c0_50, %c0_51] : memref<2x8x1xf32, #tpu.memory_space<vmem>>, vector<1x8x1xf32>
    %95 = vector.shape_cast %94 : vector<1x8x1xf32> to vector<8x1xf32>
    %96 = vector.shape_cast %69 : vector<8x1xf32> to vector<1x8x1xf32>
    tpu.vector_store %arg9[%c1_49, %c0_50, %c0_51], %96 {strides = array<i32>} : memref<2x8x1xf32, #tpu.memory_space<vmem>>, vector<1x8x1xf32>,
    %c0_i32_52 = arith.constant 0 : i32
    %97 = arith.cmpi eq, %arg2, %c0_i32_52 : i32
    %98 = arith.extui %97 : i1 to i32
    %c0_i32_53 = arith.constant 0 : i32
    %99 = arith.cmpi ne, %98, %c0_i32_53 : i32
    scf.if %99 {
      %c0_54 = arith.constant 0 : index
      %c0_55 = arith.constant 0 : index
      %100 = vector.load %arg5[%c0_54, %c0_55] : memref<32x32xbf16, #tpu.memory_space<vmem>>, vector<32x32xbf16>
      %c0_56 = arith.constant 0 : index
      %c0_57 = arith.constant 0 : index
      %101 = vector.load %arg6[%c0_56, %c0_57] : memref<1x32xf32, #tpu.memory_space<vmem>>, vector<1x32xf32>
      %c0_58 = arith.constant 0 : index
      %c0_59 = arith.constant 0 : index
      %c0_60 = arith.constant 0 : index
      %102 = vector.load %arg7[%c0_58, %c0_59, %c0_60] : memref<1x8x32xf32, #tpu.memory_space<vmem>>, vector<1x8x32xf32>
      %103 = vector.shape_cast %102 : vector<1x8x32xf32> to vector<8x32xf32>
      %104 = vector.broadcast %101 : vector<1x32xf32> to vector<8x32xf32>
      %105 = arith.addf %104, %103 : vector<8x32xf32>
      %c0_61 = arith.constant 0 : index
      %c0_62 = arith.constant 0 : index
      %c0_63 = arith.constant 0 : index
      %106 = vector.load %arg11[%c0_61, %c0_62, %c0_63] : memref<2x8x16xf32, #tpu.memory_space<vmem>>, vector<1x8x16xf32>
      %107 = vector.shape_cast %106 : vector<1x8x16xf32> to vector<8x16xf32>
      %c0_64 = arith.constant 0 : index
      %c0_65 = arith.constant 0 : index
      %c0_66 = arith.constant 0 : index
      %108 = vector.load %arg10[%c0_64, %c0_65, %c0_66] : memref<2x8x1xf32, #tpu.memory_space<vmem>>, vector<1x8x1xf32>
      %109 = vector.shape_cast %108 : vector<1x8x1xf32> to vector<8x1xf32>
      %110 = tpu.reciprocal %109 {approx = true} : vector<8x1xf32> -> vector<8x1xf32>
      %111 = vector.broadcast %110 : vector<8x1xf32> to vector<8x16xf32>
      %112 = arith.mulf %107, %111 : vector<8x16xf32>
      %113 = arith.truncf %112 : vector<8x16xf32> to vector<8x16xbf16>
      %114 = vector.extract_strided_slice %100 {offsets = [0, 0], sizes = [16, 32], strides = [1, 1]} : vector<32x32xbf16> to vector<16x32xbf16>
      %cst_67 = arith.constant dense<0.000000e+00> : vector<8x32xf32>
      %115 = tpu.matmul %113, %114, %cst_67 {dimension_numbers = #tpu.dot_dimension_numbers<[1], [0], [0], [1], [0, 0, 1, 1], [], []>} : vector<8x16xbf16>, vector<16x32xbf16>, vector<8x32xf32> -> vector<8x32xf32>
      %116 = arith.addf %105, %115 : vector<8x32xf32>
      %c1_68 = arith.constant 1 : index
      %c0_69 = arith.constant 0 : index
      %c0_70 = arith.constant 0 : index
      %117 = vector.load %arg11[%c1_68, %c0_69, %c0_70] : memref<2x8x16xf32, #tpu.memory_space<vmem>>, vector<1x8x16xf32>
      %118 = vector.shape_cast %117 : vector<1x8x16xf32> to vector<8x16xf32>
      %c1_71 = arith.constant 1 : index
      %c0_72 = arith.constant 0 : index
      %c0_73 = arith.constant 0 : index
      %119 = vector.load %arg10[%c1_71, %c0_72, %c0_73] : memref<2x8x1xf32, #tpu.memory_space<vmem>>, vector<1x8x1xf32>
      %120 = vector.shape_cast %119 : vector<1x8x1xf32> to vector<8x1xf32>
      %121 = tpu.reciprocal %120 {approx = true} : vector<8x1xf32> -> vector<8x1xf32>
      %122 = vector.broadcast %121 : vector<8x1xf32> to vector<8x16xf32>
      %123 = arith.mulf %118, %122 : vector<8x16xf32>
      %124 = arith.truncf %123 : vector<8x16xf32> to vector<8x16xbf16>
      %125 = vector.extract_strided_slice %100 {offsets = [16, 0], sizes = [16, 32], strides = [1, 1]} : vector<32x32xbf16> to vector<16x32xbf16>
      %cst_74 = arith.constant dense<0.000000e+00> : vector<8x32xf32>
      %126 = tpu.matmul %124, %125, %cst_74 {dimension_numbers = #tpu.dot_dimension_numbers<[1], [0], [0], [1], [0, 0, 1, 1], [], []>} : vector<8x16xbf16>, vector<16x32xbf16>, vector<8x32xf32> -> vector<8x32xf32>
      %127 = arith.addf %116, %126 : vector<8x32xf32>
      %c0_75 = arith.constant 0 : index
      %c0_76 = arith.constant 0 : index
      %c0_77 = arith.constant 0 : index
      %128 = vector.load %arg8[%c0_75, %c0_76, %c0_77] : memref<1x8x32xf32, #tpu.memory_space<vmem>>, vector<1x8x32xf32>
      %129 = vector.shape_cast %128 : vector<1x8x32xf32> to vector<8x32xf32>
      %130 = vector.shape_cast %127 : vector<8x32xf32> to vector<1x8x32xf32>
      tpu.vector_store %arg8[%c0_75, %c0_76, %c0_77], %130 {strides = array<i32>} : memref<1x8x32xf32, #tpu.memory_space<vmem>>, vector<1x8x32xf32>,
    } else {
    }
    return
  }
  func.func @transform_0(%arg0: i32, %arg1: i32, %arg2: i32) -> (i32, i32, i32) {
    %c0_i32 = arith.constant 0 : i32
    %c0_i32_0 = arith.constant 0 : i32
    return %arg0, %arg1, %c0_i32 : i32, i32, i32
  }
  func.func @transform_1(%arg0: i32, %arg1: i32, %arg2: i32) -> (i32, i32, i32) {
    %c0_i32 = arith.constant 0 : i32
    %c0_i32_0 = arith.constant 0 : i32
    return %arg0, %arg2, %c0_i32 : i32, i32, i32
  }
  func.func @transform_2(%arg0: i32, %arg1: i32, %arg2: i32) -> (i32, i32) {
    %c0_i32 = arith.constant 0 : i32
    %c0_i32_0 = arith.constant 0 : i32
    %c0_i32_1 = arith.constant 0 : i32
    return %c0_i32, %c0_i32_0 : i32, i32
  }
  func.func @transform_3(%arg0: i32, %arg1: i32, %arg2: i32) -> (i32, i32) {
    %c0_i32 = arith.constant 0 : i32
    %c0_i32_0 = arith.constant 0 : i32
    %c0_i32_1 = arith.constant 0 : i32
    return %c0_i32, %c0_i32_0 : i32, i32
  }
  func.func @transform_4(%arg0: i32, %arg1: i32, %arg2: i32) -> (i32, i32, i32) {
    %c0_i32 = arith.constant 0 : i32
    %c0_i32_0 = arith.constant 0 : i32
    return %arg0, %arg1, %c0_i32 : i32, i32, i32
  }
  func.func @transform_5(%arg0: i32, %arg1: i32, %arg2: i32) -> (i32, i32, i32) {
    %c0_i32 = arith.constant 0 : i32
    %c0_i32_0 = arith.constant 0 : i32
    return %arg0, %arg1, %c0_i32 : i32, i32, i32
  }
}

module attributes {stable_mosaic.version = 11 : i64} {
  func.func @_fused_mlp_kernel(%arg0: i32, %arg1: memref<8x32xf32, #tpu.memory_space<vmem>>, %arg2: memref<1x32xf32, #tpu.memory_space<vmem>>, %arg3: memref<1x32xf32, #tpu.memory_space<vmem>>, %arg4: memref<32x64xbf16, #tpu.memory_space<vmem>>, %arg5: memref<1x64xf32, #tpu.memory_space<vmem>>, %arg6: memref<64x32xbf16, #tpu.memory_space<vmem>>, %arg7: memref<1x32xf32, #tpu.memory_space<vmem>>, %arg8: memref<8x32xf32, #tpu.memory_space<vmem>>) attributes {dimension_semantics = [#tpu.dimension_semantics<parallel>], iteration_bounds = array<i64: 1>, scalar_prefetch = 0 : i64, scratch_operands = 0 : i64, tpu.core_type = #tpu.core_type<tc>, window_params = [{transform_indices = @transform_0, window_bounds = array<i64: 8, 32>}, {pipeline_mode = #tpu.pipeline_mode<synchronous>, transform_indices = @transform_1, window_bounds = array<i64: 1, 32>}, {pipeline_mode = #tpu.pipeline_mode<synchronous>, transform_indices = @transform_2, window_bounds = array<i64: 1, 32>}, {pipeline_mode = #tpu.pipeline_mode<synchronous>, transform_indices = @transform_3, window_bounds = array<i64: 32, 64>}, {pipeline_mode = #tpu.pipeline_mode<synchronous>, transform_indices = @transform_4, window_bounds = array<i64: 1, 64>}, {pipeline_mode = #tpu.pipeline_mode<synchronous>, transform_indices = @transform_5, window_bounds = array<i64: 64, 32>}, {pipeline_mode = #tpu.pipeline_mode<synchronous>, transform_indices = @transform_6, window_bounds = array<i64: 1, 32>}, {transform_indices = @transform_7, window_bounds = array<i64: 8, 32>}]} {
    %c0 = arith.constant 0 : index
    %c0_0 = arith.constant 0 : index
    %0 = vector.load %arg1[%c0, %c0_0] : memref<8x32xf32, #tpu.memory_space<vmem>>, vector<8x32xf32>
    %cst = arith.constant dense<0.000000e+00> : vector<8xf32>
    %1 = vector.multi_reduction <add>, %0, %cst [1] : vector<8x32xf32> to vector<8xf32>
    %2 = vector.shape_cast %1 : vector<8xf32> to vector<8x1xf32>
    %cst_1 = arith.constant 3.200000e+01 : f32
    %3 = vector.broadcast %cst_1 : f32 to vector<8x1xf32>
    %4 = arith.divf %2, %3 : vector<8x1xf32>
    %5 = vector.broadcast %4 : vector<8x1xf32> to vector<8x32xf32>
    %6 = arith.subf %0, %5 : vector<8x32xf32>
    %7 = arith.mulf %6, %6 : vector<8x32xf32>
    %cst_2 = arith.constant dense<0.000000e+00> : vector<8xf32>
    %8 = vector.multi_reduction <add>, %7, %cst_2 [1] : vector<8x32xf32> to vector<8xf32>
    %9 = vector.shape_cast %8 : vector<8xf32> to vector<8x1xf32>
    %cst_3 = arith.constant 3.200000e+01 : f32
    %10 = vector.broadcast %cst_3 : f32 to vector<8x1xf32>
    %11 = arith.divf %9, %10 : vector<8x1xf32>
    %cst_4 = arith.constant 9.99999974E-6 : f32
    %12 = vector.broadcast %cst_4 : f32 to vector<8x1xf32>
    %13 = arith.addf %11, %12 : vector<8x1xf32>
    %14 = math.rsqrt %13 : vector<8x1xf32>
    %15 = vector.broadcast %14 : vector<8x1xf32> to vector<8x32xf32>
    %16 = arith.mulf %6, %15 : vector<8x32xf32>
    %c0_5 = arith.constant 0 : index
    %c0_6 = arith.constant 0 : index
    %17 = vector.load %arg2[%c0_5, %c0_6] : memref<1x32xf32, #tpu.memory_space<vmem>>, vector<1x32xf32>
    %18 = vector.broadcast %17 : vector<1x32xf32> to vector<8x32xf32>
    %19 = arith.mulf %16, %18 : vector<8x32xf32>
    %c0_7 = arith.constant 0 : index
    %c0_8 = arith.constant 0 : index
    %20 = vector.load %arg3[%c0_7, %c0_8] : memref<1x32xf32, #tpu.memory_space<vmem>>, vector<1x32xf32>
    %21 = vector.broadcast %20 : vector<1x32xf32> to vector<8x32xf32>
    %22 = arith.addf %19, %21 : vector<8x32xf32>
    %23 = arith.truncf %22 : vector<8x32xf32> to vector<8x32xbf16>
    %c0_9 = arith.constant 0 : index
    %c0_10 = arith.constant 0 : index
    %24 = vector.load %arg4[%c0_9, %c0_10] : memref<32x64xbf16, #tpu.memory_space<vmem>>, vector<32x64xbf16>
    %cst_11 = arith.constant dense<0.000000e+00> : vector<8x64xf32>
    %25 = tpu.matmul %23, %24, %cst_11 {dimension_numbers = #tpu.dot_dimension_numbers<[1], [0], [0], [1], [0, 0, 1, 1], [], []>} : vector<8x32xbf16>, vector<32x64xbf16>, vector<8x64xf32> -> vector<8x64xf32>
    %c0_12 = arith.constant 0 : index
    %c0_13 = arith.constant 0 : index
    %26 = vector.load %arg5[%c0_12, %c0_13] : memref<1x64xf32, #tpu.memory_space<vmem>>, vector<1x64xf32>
    %27 = vector.broadcast %26 : vector<1x64xf32> to vector<8x64xf32>
    %28 = arith.addf %25, %27 : vector<8x64xf32>
    %29 = arith.mulf %28, %28 : vector<8x64xf32>
    %30 = arith.mulf %28, %29 : vector<8x64xf32>
    %cst_14 = arith.constant 4.471500e-02 : f32
    %31 = vector.broadcast %cst_14 : f32 to vector<8x64xf32>
    %32 = arith.mulf %31, %30 : vector<8x64xf32>
    %33 = arith.addf %28, %32 : vector<8x64xf32>
    %cst_15 = arith.constant 0.797884583 : f32
    %34 = vector.broadcast %cst_15 : f32 to vector<8x64xf32>
    %35 = arith.mulf %34, %33 : vector<8x64xf32>
    %36 = math.tanh %35 : vector<8x64xf32>
    %cst_16 = arith.constant 1.000000e+00 : f32
    %37 = vector.broadcast %cst_16 : f32 to vector<8x64xf32>
    %38 = arith.addf %37, %36 : vector<8x64xf32>
    %cst_17 = arith.constant 5.000000e-01 : f32
    %39 = vector.broadcast %cst_17 : f32 to vector<8x64xf32>
    %40 = arith.mulf %39, %38 : vector<8x64xf32>
    %41 = arith.mulf %28, %40 : vector<8x64xf32>
    %42 = arith.truncf %41 : vector<8x64xf32> to vector<8x64xbf16>
    %c0_18 = arith.constant 0 : index
    %c0_19 = arith.constant 0 : index
    %43 = vector.load %arg6[%c0_18, %c0_19] : memref<64x32xbf16, #tpu.memory_space<vmem>>, vector<64x32xbf16>
    %cst_20 = arith.constant dense<0.000000e+00> : vector<8x32xf32>
    %44 = tpu.matmul %42, %43, %cst_20 {dimension_numbers = #tpu.dot_dimension_numbers<[1], [0], [0], [1], [0, 0, 1, 1], [], []>} : vector<8x64xbf16>, vector<64x32xbf16>, vector<8x32xf32> -> vector<8x32xf32>
    %c0_21 = arith.constant 0 : index
    %c0_22 = arith.constant 0 : index
    %45 = vector.load %arg7[%c0_21, %c0_22] : memref<1x32xf32, #tpu.memory_space<vmem>>, vector<1x32xf32>
    %46 = vector.broadcast %45 : vector<1x32xf32> to vector<8x32xf32>
    %47 = arith.addf %44, %46 : vector<8x32xf32>
    %48 = arith.addf %47, %0 : vector<8x32xf32>
    %c0_23 = arith.constant 0 : index
    %c0_24 = arith.constant 0 : index
    %49 = vector.load %arg8[%c0_23, %c0_24] : memref<8x32xf32, #tpu.memory_space<vmem>>, vector<8x32xf32>
    tpu.vector_store %arg8[%c0_23, %c0_24], %48 {strides = array<i32>} : memref<8x32xf32, #tpu.memory_space<vmem>>, vector<8x32xf32>,
    return
  }
  func.func @transform_0(%arg0: i32) -> (i32, i32) {
    %c0_i32 = arith.constant 0 : i32
    %c0_i32_0 = arith.constant 0 : i32
    return %arg0, %c0_i32 : i32, i32
  }
  func.func @transform_1(%arg0: i32) -> (i32, i32) {
    %c0_i32 = arith.constant 0 : i32
    %c0_i32_0 = arith.constant 0 : i32
    %c0_i32_1 = arith.constant 0 : i32
    return %c0_i32, %c0_i32_0 : i32, i32
  }
  func.func @transform_2(%arg0: i32) -> (i32, i32) {
    %c0_i32 = arith.constant 0 : i32
    %c0_i32_0 = arith.constant 0 : i32
    %c0_i32_1 = arith.constant 0 : i32
    return %c0_i32, %c0_i32_0 : i32, i32
  }
  func.func @transform_3(%arg0: i32) -> (i32, i32) {
    %c0_i32 = arith.constant 0 : i32
    %c0_i32_0 = arith.constant 0 : i32
    %c0_i32_1 = arith.constant 0 : i32
    return %c0_i32, %c0_i32_0 : i32, i32
  }
  func.func @transform_4(%arg0: i32) -> (i32, i32) {
    %c0_i32 = arith.constant 0 : i32
    %c0_i32_0 = arith.constant 0 : i32
    %c0_i32_1 = arith.constant 0 : i32
    return %c0_i32, %c0_i32_0 : i32, i32
  }
  func.func @transform_5(%arg0: i32) -> (i32, i32) {
    %c0_i32 = arith.constant 0 : i32
    %c0_i32_0 = arith.constant 0 : i32
    %c0_i32_1 = arith.constant 0 : i32
    return %c0_i32, %c0_i32_0 : i32, i32
  }
  func.func @transform_6(%arg0: i32) -> (i32, i32) {
    %c0_i32 = arith.constant 0 : i32
    %c0_i32_0 = arith.constant 0 : i32
    %c0_i32_1 = arith.constant 0 : i32
    return %c0_i32, %c0_i32_0 : i32, i32
  }
  func.func @transform_7(%arg0: i32) -> (i32, i32) {
    %c0_i32 = arith.constant 0 : i32
    %c0_i32_0 = arith.constant 0 : i32
    return %arg0, %c0_i32 : i32, i32
  }
}

module attributes {stable_mosaic.version = 11 : i64} {
  func.func @_fused_linear_kernel(%arg0: i32, %arg1: i32, %arg2: memref<8x32xf32, #tpu.memory_space<vmem>>, %arg3: memref<32x10xbf16, #tpu.memory_space<vmem>>, %arg4: memref<1x10xf32, #tpu.memory_space<vmem>>, %arg5: memref<1x32xf32, #tpu.memory_space<vmem>>, %arg6: memref<1x32xf32, #tpu.memory_space<vmem>>, %arg7: memref<8x10xf32, #tpu.memory_space<vmem>>) attributes {dimension_semantics = [#tpu.dimension_semantics<parallel>, #tpu.dimension_semantics<parallel>], iteration_bounds = array<i64: 1, 1>, scalar_prefetch = 0 : i64, scratch_operands = 0 : i64, tpu.core_type = #tpu.core_type<tc>, window_params = [{transform_indices = @transform_0, window_bounds = array<i64: 8, 32>}, {transform_indices = @transform_1, window_bounds = array<i64: 32, 10>}, {transform_indices = @transform_2, window_bounds = array<i64: 1, 10>}, {pipeline_mode = #tpu.pipeline_mode<synchronous>, transform_indices = @transform_3, window_bounds = array<i64: 1, 32>}, {pipeline_mode = #tpu.pipeline_mode<synchronous>, transform_indices = @transform_4, window_bounds = array<i64: 1, 32>}, {transform_indices = @transform_5, window_bounds = array<i64: 8, 10>}]} {
    %c0 = arith.constant 0 : index
    %c0_0 = arith.constant 0 : index
    %0 = vector.load %arg2[%c0, %c0_0] : memref<8x32xf32, #tpu.memory_space<vmem>>, vector<8x32xf32>
    %cst = arith.constant dense<0.000000e+00> : vector<8xf32>
    %1 = vector.multi_reduction <add>, %0, %cst [1] : vector<8x32xf32> to vector<8xf32>
    %2 = vector.shape_cast %1 : vector<8xf32> to vector<8x1xf32>
    %cst_1 = arith.constant 3.200000e+01 : f32
    %3 = vector.broadcast %cst_1 : f32 to vector<8x1xf32>
    %4 = arith.divf %2, %3 : vector<8x1xf32>
    %5 = vector.broadcast %4 : vector<8x1xf32> to vector<8x32xf32>
    %6 = arith.subf %0, %5 : vector<8x32xf32>
    %7 = arith.mulf %6, %6 : vector<8x32xf32>
    %cst_2 = arith.constant dense<0.000000e+00> : vector<8xf32>
    %8 = vector.multi_reduction <add>, %7, %cst_2 [1] : vector<8x32xf32> to vector<8xf32>
    %9 = vector.shape_cast %8 : vector<8xf32> to vector<8x1xf32>
    %cst_3 = arith.constant 3.200000e+01 : f32
    %10 = vector.broadcast %cst_3 : f32 to vector<8x1xf32>
    %11 = arith.divf %9, %10 : vector<8x1xf32>
    %cst_4 = arith.constant 9.99999974E-6 : f32
    %12 = vector.broadcast %cst_4 : f32 to vector<8x1xf32>
    %13 = arith.addf %11, %12 : vector<8x1xf32>
    %14 = math.rsqrt %13 : vector<8x1xf32>
    %15 = vector.broadcast %14 : vector<8x1xf32> to vector<8x32xf32>
    %16 = arith.mulf %6, %15 : vector<8x32xf32>
    %c0_5 = arith.constant 0 : index
    %c0_6 = arith.constant 0 : index
    %17 = vector.load %arg5[%c0_5, %c0_6] : memref<1x32xf32, #tpu.memory_space<vmem>>, vector<1x32xf32>
    %18 = vector.broadcast %17 : vector<1x32xf32> to vector<8x32xf32>
    %19 = arith.mulf %16, %18 : vector<8x32xf32>
    %c0_7 = arith.constant 0 : index
    %c0_8 = arith.constant 0 : index
    %20 = vector.load %arg6[%c0_7, %c0_8] : memref<1x32xf32, #tpu.memory_space<vmem>>, vector<1x32xf32>
    %21 = vector.broadcast %20 : vector<1x32xf32> to vector<8x32xf32>
    %22 = arith.addf %19, %21 : vector<8x32xf32>
    %23 = arith.truncf %22 : vector<8x32xf32> to vector<8x32xbf16>
    %c0_9 = arith.constant 0 : index
    %c0_10 = arith.constant 0 : index
    %24 = vector.load %arg3[%c0_9, %c0_10] : memref<32x10xbf16, #tpu.memory_space<vmem>>, vector<32x10xbf16>
    %cst_11 = arith.constant dense<0.000000e+00> : vector<8x10xf32>
    %25 = tpu.matmul %23, %24, %cst_11 {dimension_numbers = #tpu.dot_dimension_numbers<[1], [0], [0], [1], [0, 0, 1, 1], [], []>} : vector<8x32xbf16>, vector<32x10xbf16>, vector<8x10xf32> -> vector<8x10xf32>
    %c0_12 = arith.constant 0 : index
    %c0_13 = arith.constant 0 : index
    %26 = vector.load %arg4[%c0_12, %c0_13] : memref<1x10xf32, #tpu.memory_space<vmem>>, vector<1x10xf32>
    %27 = vector.broadcast %26 : vector<1x10xf32> to vector<8x10xf32>
    %28 = arith.addf %25, %27 : vector<8x10xf32>
    %c0_14 = arith.constant 0 : index
    %c0_15 = arith.constant 0 : index
    %29 = vector.load %arg7[%c0_14, %c0_15] : memref<8x10xf32, #tpu.memory_space<vmem>>, vector<8x10xf32>
    tpu.vector_store %arg7[%c0_14, %c0_15], %28 {strides = array<i32>} : memref<8x10xf32, #tpu.memory_space<vmem>>, vector<8x10xf32>,
    return
  }
  func.func @transform_0(%arg0: i32, %arg1: i32) -> (i32, i32) {
    %c0_i32 = arith.constant 0 : i32
    %c0_i32_0 = arith.constant 0 : i32
    return %arg0, %c0_i32 : i32, i32
  }
  func.func @transform_1(%arg0: i32, %arg1: i32) -> (i32, i32) {
    %c0_i32 = arith.constant 0 : i32
    %c0_i32_0 = arith.constant 0 : i32
    return %c0_i32, %arg1 : i32, i32
  }
  func.func @transform_2(%arg0: i32, %arg1: i32) -> (i32, i32) {
    %c0_i32 = arith.constant 0 : i32
    %c0_i32_0 = arith.constant 0 : i32
    return %c0_i32, %arg1 : i32, i32
  }
  func.func @transform_3(%arg0: i32, %arg1: i32) -> (i32, i32) {
    %c0_i32 = arith.constant 0 : i32
    %c0_i32_0 = arith.constant 0 : i32
    %c0_i32_1 = arith.constant 0 : i32
    return %c0_i32, %c0_i32_0 : i32, i32
  }
  func.func @transform_4(%arg0: i32, %arg1: i32) -> (i32, i32) {
    %c0_i32 = arith.constant 0 : i32
    %c0_i32_0 = arith.constant 0 : i32
    %c0_i32_1 = arith.constant 0 : i32
    return %c0_i32, %c0_i32_0 : i32, i32
  }
  func.func @transform_5(%arg0: i32, %arg1: i32) -> (i32, i32) {
    %c0_i32 = arith.constant 0 : i32
    return %arg0, %arg1 : i32, i32
  }
}

</mosaic_0001>

<bundles_post_ra>
// kernel: t2t_vit_forward.13
= control target key start
LH: loop header
LB: loop body
LE: loop exit
PB: predicated region body
PF: predicated region fallthrough
CT: control target
= control target key end

     0   :  { %vm31_vm0 = vcmask 400384   ;;  %vm150_vm1 = vcmask 1040384   ;;  %v425_v29 = vmov 0   ;;  %s562_s0 = inlined_call_operand.vmem [shape: f32[32,49], index: 0, kind: input, shape index: {}]   ;;  %s563_s3 = inlined_call_operand.vmem [shape: bf16[49,49], index: 3, kind: input, shape index: {}]   ;;  %s564_s1 = inlined_call_operand.vmem [shape: f32[1,49], index: 1, kind: input, shape index: {}]   ;;  %s565_s2 = inlined_call_operand.vmem [shape: f32[1,49], index: 2, kind: input, shape index: {}]   ;;  %s566_s5 = inlined_call_operand.vmem [shape: bf16[49,49], index: 5, kind: input, shape index: {}]   ;;  %s567_s4 = inlined_call_operand.vmem [shape: f32[1,49], index: 4, kind: input, shape index: {}]   ;;  %s568_s6 = inlined_call_operand.vmem [shape: f32[1,49], index: 6, kind: input, shape index: {}]   ;;  %s569_s7 = inlined_call_operand.vmem [shape: f32[32,49], index: 7, kind: output, shape index: {}]  }
   0x1   :  { %v469_v0 = vld [vmem:[%s562_s0] sm:$0xff]  ;;  %v474_v1 = vld [vmem:[%s562_s0 + $0x10] sm:$0xff]  ;;  %v479_v2 = vld [vmem:[%s562_s0 + $0x8] sm:$0xff]  ;;  %v152_v30 = vsel %vm150_vm1, 65535, %v425_v29 }
   0x2   :  { %v32_v3 = vsel %vm31_vm0, %v469_v0, 0.0  ;;  %v38_v4 = vsel %vm31_vm0, %v474_v1, 0.0  ;;  %v488_v5 = vld [vmem:[%s562_s0 + $0x18] sm:$0xff]  ;;  %v35_v6 = vsel %vm31_vm0, %v479_v2, 0.0  ;;  %v402_v32 = vld [vmem:[%s563_s3 + $0x10] sm:$0xff]   ;;  %v403_v33 = vld [vmem:[%s563_s3 + $0x8] sm:$0xff]  }
   0x3   :  { %33 = vadd.xlane.f32.xlu0 %v32_v3  ;;  %39 = vadd.xlane.f32.xlu1 %v38_v4  ;;  %v41_v7 = vsel %vm31_vm0, %v488_v5, 0.0  ;;  %v401_v28 = vld [vmem:[%s563_s3 + $0x18] ss:$0 sps:$4 sm:$0x11]   ;;  %v404_v34 = vld [vmem:[%s563_s3] sm:$0xff]  }
   0x4   :  { %v154_v31 = vand.u32 %v401_v28, %v152_v30  ;;  %v348_v49 = vld [vmem:[%s564_s1] ss:$0 sm:$0xff] }
   0x5   :  { %v349_v54 = vld [vmem:[%s565_s2] ss:$0 sm:$0xff] }
   0x6   :  { %376 = vmatprep.subr.bf16.mxu0 %v154_v31 }
   0x7   :  { %36 = vadd.xlane.f32.xlu0 %v35_v6  ;;  %42 = vadd.xlane.f32.xlu1 %v41_v7  ;;  %v405_v7 = vld [vmem:[%s566_s5 + $0x18] ss:$0 sps:$4 sm:$0x11]  }
   0x8   :  { %377 = vmatpush3.bf16.msra.mxu0 %v154_v31 }
   0x9   :  { %378 = vmatprep.subr.bf16.mxu0 %v402_v32 }
   0xc   :  { %379 = vmatpush3.bf16.msra.mxu0 %v402_v32 }
   0xd   :  { %380 = vmatprep.subr.bf16.mxu0 %v403_v33 }
  0x10   :  { %381 = vmatpush3.bf16.msra.mxu0 %v403_v33 }
  0x11   :  { %382 = vmatprep.subr.bf16.mxu0 %v404_v34 }
  0x14   :  { %383 = vmatpush3.bf16.msra.mxu0 %v404_v34 }
  0x8c   :  { %v34_v8 = vpop.xlane.xlu0 %33  ;;  %v40_v9 = vpop.xlane.xlu1 %39 }
  0x8d   :  { %v45_v10 = vmul.f32 0.020408163, %v34_v8  ;;  %v47_v11 = vmul.f32 0.020408163, %v40_v9  ;;  %v285_v8 = vand.u32 %v405_v7, %v152_v30  ;;  %v406_v9 = vld [vmem:[%s566_s5 + $0x10] sm:$0xff]  }
  0x8f   :  { %v49_v12 = vsub.f32 %v469_v0, %v45_v10  ;;  %v51_v13 = vsub.f32 %v474_v1, %v47_v11  ;;  %388 = vmatprep.subr.bf16.mxu1 %v285_v8  ;;  %v407_v10 = vld [vmem:[%s566_s5 + $0x8] sm:$0xff]   ;;  %v408_v11 = vld [vmem:[%s566_s5] sm:$0xff]  }
  0x90   :  { %v37_v14 = vpop.xlane.xlu0 %36  ;;  %v43_v15 = vpop.xlane.xlu1 %42  ;;  %389 = vmatpush3.bf16.msra.mxu1 %v285_v8 }
  0x91   :  { %v46_v16 = vmul.f32 0.020408163, %v37_v14  ;;  %v48_v17 = vmul.f32 0.020408163, %v43_v15  ;;  %v53_v18 = vmul.f32 %v49_v12, %v49_v12  ;;  %v55_v19 = vmul.f32 %v51_v13, %v51_v13  ;;  %390 = vmatprep.subr.bf16.mxu1 %v406_v9 }
  0x93   :  { %v50_v20 = vsub.f32 %v479_v2, %v46_v16  ;;  %v52_v21 = vsub.f32 %v488_v5, %v48_v17  ;;  %v57_v22 = vsel %vm31_vm0, %v53_v18, 0.0  ;;  %v63_v23 = vsel %vm31_vm0, %v55_v19, 0.0 }
  0x94   :  { %58 = vadd.xlane.f32.xlu0 %v57_v22  ;;  %391 = vmatpush3.bf16.msra.mxu1 %v406_v9 }
  0x95   :  { %v54_v24 = vmul.f32 %v50_v20, %v50_v20  ;;  %v56_v25 = vmul.f32 %v52_v21, %v52_v21  ;;  %392 = vmatprep.subr.bf16.mxu1 %v407_v10 }
  0x97   :  { %v60_v26 = vsel %vm31_vm0, %v54_v24, 0.0  ;;  %v66_v27 = vsel %vm31_vm0, %v56_v25, 0.0 }
  0x98   :  { %64 = vadd.xlane.f32.xlu0 %v63_v23  ;;  %61 = vadd.xlane.f32.xlu1 %v60_v26 }
  0x99   :  { %393 = vmatpush3.bf16.msra.mxu1 %v407_v10 }
  0x9a   :  { %394 = vmatprep.subr.bf16.mxu1 %v408_v11 }
  0x9c   :  { %67 = vadd.xlane.f32.xlu1 %v66_v27 }
  0x9d   :  { %395 = vmatpush3.bf16.msra.mxu1 %v408_v11 }
 0x11d   :  { %v59_v35 = vpop.xlane.xlu0 %58 }
 0x11e   :  { %v69_v36 = vmul.f32 0.020408163, %v59_v35 }
 0x120   :  { %v73_v37 = vadd.f32 1e-05, %v69_v36 }
 0x121   :  { %v62_v38 = vpop.xlane.xlu1 %61  ;;  %v65_v39 = vpop.xlane.xlu0 %64 }
 0x122   :  { %409 = vrsqrt.f32 %v73_v37  ;;  %v70_v40 = vmul.f32 0.020408163, %v62_v38  ;;  %v71_v41 = vmul.f32 0.020408163, %v65_v39 }
 0x124   :  { %v74_v42 = vadd.f32 1e-05, %v70_v40  ;;  %v75_v43 = vadd.f32 1e-05, %v71_v41 }
 0x125   :  { %v68_v44 = vpop.xlane.xlu1 %67 }
 0x126   :  { %411 = vrsqrt.f32 %v74_v42  ;;  %v72_v45 = vmul.f32 0.020408163, %v68_v44 }
 0x127   :  { %413 = vrsqrt.f32 %v75_v43 }
 0x128   :  { %v76_v46 = vadd.f32 1e-05, %v72_v45 }
 0x12a   :  { %415 = vrsqrt.f32 %v76_v46 }
 0x12f   :  { %v410_v47 = vpop.eup %409 }
 0x130   :  { %v81_v48 = vmul.f32 %v410_v47, %v49_v12  ;;  %v350_v12 = vld [vmem:[%s567_s4] ss:$0 sm:$0xff] }
 0x132   :  { %v92_v53 = vmul.f32 %v348_v49, %v81_v48 }
 0x133   :  { %v412_v50 = vpop.eup %411 }
 0x134   :  { %v414_v51 = vpop.eup %413  ;;  %v82_v52 = vmul.f32 %v412_v50, %v50_v20  ;;  %v103_v58 = vadd.f32 %v349_v54, %v92_v53 }
 0x135   :  { %v83_v55 = vmul.f32 %v414_v51, %v51_v13 }
 0x136   :  { %v93_v56 = vmul.f32 %v348_v49, %v82_v52 }
 0x137   :  { %v416_v57 = vpop.eup %415  ;;  %v94_v61 = vmul.f32 %v348_v49, %v83_v55 }
 0x138   :  { %v104_v59 = vadd.f32 %v349_v54, %v93_v56  ;;  %v84_v60 = vmul.f32 %v416_v57, %v52_v21 }
 0x139   :  { %v105_v3 = vadd.f32 %v349_v54, %v94_v61 }
 0x13a   :  { %v107_v62 = vpack.c.bf16 %v104_v59, %v103_v58  ;;  %v95_v63 = vmul.f32 %v348_v49, %v84_v60  ;;  %v357_v59 = vld [vmem:[%s568_s6] ss:$0 sm:$0xff] }
 0x13c   :  { %384 = vmatprep.mubr.msk.bf16.mxu0 %vm31_vm0, %v107_v62  ;;  %v106_v4 = vadd.f32 %v349_v54, %v95_v63 }
 0x13e   :  { %v108_v6 = vpack.c.bf16 %v106_v4, %v105_v3 }
 0x140   :  { %385 = vmatmul.mubr.msk.bf16.vlgmr.msra.gmra.mxu0 %vm31_vm0, %v108_v6 }
 0x200   :  { %v386_v13 = vpop.f32.mrf.mxu0 }
 0x201   :  { %v199_v14 = vadd.f32 %v386_v13, %v350_v12 }
 0x202   :  { %v190_v15 = vpop.f32.mrf.mxu0 }
 0x203   :  { %v207_v16 = vmul.f32 %v199_v14, %v199_v14  ;;  %v191_v17 = vadd.f32 %v350_v12, %v190_v15 }
 0x204   :  { %v387_v18 = vpop.f32.mrf.mxu0 }
 0x205   :  { %v211_v19 = vmul.f32 %v207_v16, %v199_v14  ;;  %v205_v20 = vmul.f32 %v191_v17, %v191_v17  ;;  %v202_v21 = vadd.f32 %v387_v18, %v350_v12 }
 0x206   :  { %v193_v22 = vpop.f32.mrf.mxu0 }
 0x207   :  { %v215_v23 = vmul.f32 0.044715, %v211_v19  ;;  %v209_v24 = vmul.f32 %v205_v20, %v191_v17  ;;  %v208_v25 = vmul.f32 %v202_v21, %v202_v21  ;;  %v194_v26 = vadd.f32 %v350_v12, %v193_v22 }
 0x209   :  { %v219_v27 = vadd.f32 %v215_v23, %v199_v14  ;;  %v213_v28 = vmul.f32 0.044715, %v209_v24  ;;  %v212_v29 = vmul.f32 %v208_v25, %v202_v21  ;;  %v206_v30 = vmul.f32 %v194_v26, %v194_v26 }
 0x20b   :  { %v223_v31 = vmul.f32 0.7978846, %v219_v27  ;;  %v217_v32 = vadd.f32 %v213_v28, %v191_v17  ;;  %v216_v33 = vmul.f32 0.044715, %v212_v29  ;;  %v210_v34 = vmul.f32 %v206_v30, %v194_v26 }
 0x20d   :  { %v221_v35 = vmul.f32 0.7978846, %v217_v32  ;;  %v220_v36 = vadd.f32 %v216_v33, %v202_v21  ;;  %v214_v37 = vmul.f32 0.044715, %v210_v34  ;;  %417 = vtanh.f32 %v223_v31 }
 0x20f   :  { %v224_v38 = vmul.f32 0.7978846, %v220_v36  ;;  %v218_v39 = vadd.f32 %v214_v37, %v194_v26  ;;  %419 = vtanh.f32 %v221_v35 }
 0x211   :  { %421 = vtanh.f32 %v224_v38  ;;  %v222_v40 = vmul.f32 0.7978846, %v218_v39 }
 0x213   :  { %423 = vtanh.f32 %v222_v40 }
 0x21a   :  { %v418_v41 = vpop.eup %417 }
 0x21b   :  { %v231_v45 = vadd.f32 1.0, %v418_v41 }
 0x21c   :  { %v420_v42 = vpop.eup %419 }
 0x21d   :  { %v229_v43 = vadd.f32 1.0, %v420_v42  ;;  %v235_v51 = vmul.f32 0.5, %v231_v45 }
 0x21e   :  { %v422_v44 = vpop.eup %421 }
 0x21f   :  { %v232_v46 = vadd.f32 1.0, %v422_v44  ;;  %v233_v50 = vmul.f32 0.5, %v229_v43  ;;  %v239_v56 = vmul.f32 %v235_v51, %v199_v14 }
 0x220   :  { %v424_v47 = vpop.eup %423 }
 0x221   :  { %v236_v48 = vmul.f32 0.5, %v232_v46  ;;  %v230_v49 = vadd.f32 1.0, %v424_v47  ;;  %v237_v54 = vmul.f32 %v233_v50, %v191_v17 }
 0x223   :  { %v234_v52 = vmul.f32 0.5, %v230_v49  ;;  %v240_v53 = vmul.f32 %v236_v48, %v202_v21 }
 0x225   :  { %v238_v55 = vmul.f32 %v234_v52, %v194_v26  ;;  %v242_v58 = vpack.c.bf16 %v240_v53, %v239_v56 }
 0x227   :  { %v241_v57 = vpack.c.bf16 %v238_v55, %v237_v54 }
 0x229   :  { %396 = vmatprep.mubr.msk.bf16.mxu1 %vm31_vm0, %v241_v57 }
 0x22a   :  { %397 = vmatmul.mubr.msk.bf16.vlgmr.msra.gmra.mxu1 %vm31_vm0, %v242_v58 }
 0x2ea   :  { %v398_v60 = vpop.f32.mrf.mxu1 }
 0x2eb   :  { %v330_v61 = vadd.f32 %v398_v60, %v357_v59 }
 0x2ec   :  { %v321_v62 = vpop.f32.mrf.mxu1 }
 0x2ed   :  { %v338_v63 = vadd.f32 %v330_v61, %v474_v1  ;;  %v322_v3 = vadd.f32 %v357_v59, %v321_v62 }
 0x2ee   :  { %v399_v4 = vpop.f32.mrf.mxu1 }
 0x2ef   :  { %342 = vst.msk [vmem:[%s569_s7 + $0x10] sm:$0xff] %vm31_vm0, %v338_v63  ;;  %v336_v6 = vadd.f32 %v322_v3, %v469_v0  ;;  %v333_v7 = vadd.f32 %v399_v4, %v357_v59 }
 0x2f0   :  { %v324_v8 = vpop.f32.mrf.mxu1 }
 0x2f1   :  { %340 = vst.msk [vmem:[%s569_s7] sm:$0xff] %vm31_vm0, %v336_v6  ;;  %v339_v9 = vadd.f32 %v333_v7, %v488_v5  ;;  %v325_v10 = vadd.f32 %v357_v59, %v324_v8 }
 0x2f3   :  { %343 = vst.msk [vmem:[%s569_s7 + $0x18] sm:$0xff] %vm31_vm0, %v339_v9  ;;  %v337_v1 = vadd.f32 %v325_v10, %v479_v2 }
 0x2f5   :  { %341 = vst.msk [vmem:[%s569_s7 + $0x8] sm:$0xff] %vm31_vm0, %v337_v1 }

// kernel: t2t_vit_forward.12
= control target key start
LH: loop header
LB: loop body
LE: loop exit
PB: predicated region body
PF: predicated region fallthrough
CT: control target
= control target key end

     0   :  { %s973_s18 = smov 0   ;;  %s975_s19 = smov 0   ;;  %s1075_s0 = inlined_call_operand.vmem [shape: bf16[2,16,147], index: 0, kind: input, shape index: {}, may-alias: {0,1}]   ;;  %s1076_s1 = inlined_call_operand.vmem [shape: bf16[2,16,147], index: 1, kind: input, shape index: {}, may-alias: {0,1}]   ;;  %s1077_s2 = inlined_call_operand.vmem [shape: bf16[49,49], index: 2, kind: input, shape index: {}]   ;;  %s1078_s3 = inlined_call_operand.vmem [shape: f32[1,49], index: 3, kind: input, shape index: {}]   ;;  %s1079_s4 = inlined_call_operand.vmem [shape: f32[2,16,49], index: 4, kind: input, shape index: {}]   ;;  %s1080_s5 = inlined_call_operand.vmem [shape: f32[2,16,49], index: 5, kind: output, shape index: {}]  }
   0x1   :  { %s977_s20 = smov 0  }
   0x2 LB: > { %s34_s21 = sadd.s32 1, %s931_s19  ;;  %p802_p0 = scmp.ge.s32.totalorder %s935_s20, 1  ;;  %s935_s20 = sphi %s977_s20, %s15_s20   ;;  %s931_s19 = sphi %s975_s19, %s1082_s19   ;;  %s927_s18 = sphi %s973_s18, %s1081_s18  }
   0x3   : > { %p36_p1 = scmp.ge.s32.totalorder %s34_s21, 2  ;;  %p251_p2 = scmp.lt.s32.totalorder %s935_s20, 3 }
   0x5   : > { %s1084_s21 = smov (%p36_p1, %s34_s21), 0  ;;  %p252_p3 = pnand %p802_p0, %p251_p2 }
   0x6   : > { %p308_p4 = scmp.lt.s32.totalorder (!%p252_p3), %s927_s18, 1  ;;  %s939_s29 = smov (!%p252_p3), 79  }
   0x7   : > { %255 = sbr.rel (%p252_p3) target bundleno = 1112 (0x458), region = 40  ;;  %s942_s30 = smov (!%p252_p3), 30  }
   0xc   : > { %vm359_vm0 = vcmask 400384   ;;  %v937_v0 = vmov 0.0   ;;  %vm938_vm1 = vmmov 0   ;;  %s1086_s18 = smov (!%p308_p4, %s927_s18), 1  ;;  %vm354_vm2 = vcmask 7168   ;;  %v898_v45 = vld [vmem:[%s1077_s2 + $0x10] sm:$0xff]  }
   0xd   : > { %837 = vmatprep.subr.bf16.mxu0 %v937_v0  ;;  %360 = vst.msk [vmem:[#allocation4] sm:$0xff] %vm359_vm0, %v937_v0  ;;  %361 = vst.msk [vmem:[#allocation4 + $0x8] sm:$0xff] %vm359_vm0, %v937_v0  ;;  %839 = vmatprep.mubr.msk.bf16.mxu0 %vm938_vm1, %v937_v0  ;;  %s1001_s22 = sshll.u32 %s1086_s18, 4  ;;  %v940_v5 = vmov -1e+30   ;;  %vm430_vm3 = vcmask 130048  }
   0xe   : > { %849 = vmatprep.subr.bf16.mxu1 %v937_v0  ;;  %857 = vmatprep.mubr.msk.bf16.mxu1 %vm938_vm1, %v937_v0  ;;  %s1007_s25 = scalar_lea.vmem %s1076_s1, %s1001_s22  ;;  %s316_s28 = scalar_lea.vmem %s1075_s0, %s1001_s22  ;;  %355 = vst.msk [vmem:[#allocation2] sm:$0xff] %vm354_vm2, %v940_v5  ;;  %356 = vst.msk [vmem:[#allocation2 + $0x8] sm:$0xff] %vm354_vm2, %v940_v5  ;;  %v941_v14 = vmov 0   ;;  %vm498_vm4 = vcmask 244736   ;;  %vm615_vm5 = vcmask 1040384   ;;  %v899_v56 = vld [vmem:[%s1077_s2 + $0x8] sm:$0xff]  }
   0xf   : > { %v893_v1 = vld [vmem:[%s1007_s25] ss:$8 sps:$4 sm:$0xff]   ;;  %357 = vst.msk [vmem:[#allocation3] sm:$0xff] %vm354_vm2, %v937_v0  ;;  %358 = vst.msk [vmem:[#allocation3 + $0x8] sm:$0xff] %vm354_vm2, %v937_v0  ;;  %891 = vset.pattern.permute.xlu1 %v941_v14  ;;  %892 = vset.pattern.permute.xlu0 %v941_v14  ;;  %v895_v23 = vld [vmem:[%s1007_s25 + $0x4] ss:$8 sps:$4 sm:$0xff]   ;;  %s337_s16 = scalar_lea.vmem %s1079_s4, %s1001_s22  ;;  %s347_s25 = scalar_lea.vmem %s1080_s5, %s1001_s22 }
  0x10   : > { %376 = vrot.lane.b32.xlu0 %v893_v1, %s939_s29  ;;  %v896_v4 = vld [vmem:[%s316_s28] ss:$8 sps:$4 sm:$0xff]   ;;  %v897_v42 = vld [vmem:[%s1077_s2 + $0x18] ss:$0 sps:$4 sm:$0x11]   ;;  %v617_v43 = vsel %vm615_vm5, 65535, %v941_v14 }
  0x11   : > { %v619_v44 = vand.u32 %v897_v42, %v617_v43  ;;  %v900_v58 = vld [vmem:[%s1077_s2] sm:$0xff]  }
  0x13   : > { %850 = vmatpush3.bf16.msra.mxu1 %v619_v44 }
  0x14   : > { %851 = vmatprep.subr.bf16.mxu1 %v937_v0  ;;  %v476_v60 = vld [vmem:[#allocation4] sm:$0xff]  ;;  %v477_v63 = vld [vmem:[#allocation4 + $0x8] sm:$0xff] }
  0x15   : > { %v428_v15 = vld [vmem:[#allocation2] sm:$0xff]  ;;  %v429_v18 = vld [vmem:[#allocation2 + $0x8] sm:$0xff] }
  0x16   : > { %v461_v46 = vld [vmem:[#allocation3] sm:$0xff]  ;;  %v462_v49 = vld [vmem:[#allocation3 + $0x8] sm:$0xff] }
  0x17   : > { %852 = vmatpush3.bf16.msra.mxu1 %v898_v45 }
  0x18   : > { %853 = vmatprep.subr.bf16.mxu1 %v937_v0 }
  0x1b   : > { %854 = vmatpush3.bf16.msra.mxu1 %v899_v56 }
  0x1c   : > { %855 = vmatprep.subr.bf16.mxu1 %v937_v0 }
  0x1f   : > { %856 = vmatpush3.bf16.msra.mxu1 %v900_v58 }
  0x82   : > { %v377_v2 = vpop.permute.xlu0 %376 }
  0x83   : > { %v383_v3 = vsel %vm359_vm0, %v377_v2, 0 }
  0x84   : > { %838 = vmatpush3.bf16.xpose.msra.mxu0 %v383_v3 }
  0x85   : > { %843 = vmatprep.subr.bf16.mxu0 %v937_v0 }
  0x8b   : > { %840 = vmatmul.mubr.msk.bf16.vlgmr.msra.gmra.mxu0 %vm359_vm0, %v896_v4 }
  0x8c   : > { %845 = vmatprep.mubr.msk.bf16.mxu0 %vm938_vm1, %v937_v0 }
 0x14b   : > { %v419_v6 = vpop.f32.mrf.mxu0 }
 0x14c   : > { %v426_v7 = vmul.f32 0.14285715, %v419_v6 }
 0x14d   : > { %v841_v8 = vpop.f32.mrf.mxu0 }
 0x14e   : > { %v431_v9 = vsel %vm430_vm3, %v426_v7, -inf }
 0x14f   : > { %432 = vmax.xlane.f32.xlu0 %v431_v9  ;;  %v422_v10 = vpop.f32.mrf.mxu0 }
 0x150   : > { %v427_v11 = vmul.f32 0.14285715, %v422_v10 }
 0x151   : > { %v842_v12 = vpop.f32.mrf.mxu0 }
 0x152   : > { %v434_v13 = vsel %vm430_vm3, %v427_v11, -inf }
 0x153   : > { %435 = vmax.xlane.f32.xlu1 %v434_v13 }
 0x1d8   : > { %v433_v16 = vpop.xlane.xlu0 %432 }
 0x1d9   : > { %v437_v17 = vmax.f32 %v428_v15, %v433_v16  ;;  %v562_v16 = vld [vmem:[%s337_s16] sm:$0xff] }
 0x1db   : > { %v439_v19 = vsub.f32 %v428_v15, %v437_v17  ;;  %549 = vst.msk [vmem:[#allocation2] sm:$0xff] %vm354_vm2, %v437_v17  ;;  %447 = vperm.xlu1 %891, %v437_v17   ;;  %v816_v15 = vld [vmem:[%s1078_s3] ss:$0 sm:$0xff] }
 0x1dc   : > { %v436_v20 = vpop.xlane.xlu1 %435  ;;  %v570_v17 = vadd.f32 %v816_v15, %v562_v16 }
 0x1dd   : > { %v438_v21 = vmax.f32 %v429_v18, %v436_v20  ;;  %v441_v39 = vmul.f32 1.442695, %v439_v19 }
 0x1df   : > { %v440_v22 = vsub.f32 %v429_v18, %v438_v21  ;;  %550 = vst.msk [vmem:[#allocation2 + $0x8] sm:$0xff] %vm354_vm2, %v438_v21  ;;  %452 = vperm.xlu1 %891, %v438_v21   ;;  %v563_v18 = vld [vmem:[%s337_s16 + $0x8] sm:$0xff] }
 0x1e0   : > { %v571_v21 = vadd.f32 %v816_v15, %v563_v18 }
 0x1e1   : > { %v443_v34 = vmul.f32 1.442695, %v440_v22 }
 0x1e3   : > { %494 = vrot.lane.b32.xlu1 %v893_v1, %s942_s30 }
 0x1e7   : > { %496 = vrot.lane.b32.xlu1 %v895_v23, %s942_s30 }
 0x256   : > { %v448_v24 = vpop.permute.xlu1 %447 }
 0x257   : > { %v455_v25 = vsub.f32 %v426_v7, %v448_v24 }
 0x259   : > { %v457_v26 = vmul.f32 1.442695, %v455_v25 }
 0x25a   : > { %v453_v27 = vpop.permute.xlu1 %452 }
 0x25b   : > { %901 = vpow2.f32 %v457_v26  ;;  %v456_v28 = vsub.f32 %v427_v11, %v453_v27 }
 0x25d   : > { %v459_v29 = vmul.f32 1.442695, %v456_v28 }
 0x25e   : > { %v495_v30 = vpop.permute.xlu1 %494 }
 0x25f   : > { %903 = vpow2.f32 %v459_v29 }
 0x260   : > { %905 = vpow2.f32 %v443_v34 }
 0x261   : > { %907 = vpow2.f32 %v441_v39 }
 0x262   : > { %v497_v31 = vpop.permute.xlu1 %496 }
 0x263   : > { %v499_v32 = vsel %vm498_vm4, %v495_v30, %v497_v31 }
 0x264   : > { %844 = vmatpush3.bf16.msra.mxu0 %v499_v32 }
 0x268   : > { %v902_v33 = vpop.eup %901 }
 0x269   : > { %v465_v35 = vsel %vm430_vm3, %v902_v33, 0.0 }
 0x26a   : > { %466 = vadd.xlane.f32.xlu1 %v465_v35 }
 0x26c   : > { %v904_v36 = vpop.eup %903 }
 0x26d   : > { %v468_v37 = vsel %vm430_vm3, %v904_v36, 0.0  ;;  %v490_v38 = vpack.c.bf16 %v904_v36, %v902_v33  ;;  %v906_v40 = vpop.eup %905 }
 0x26e   : > { %469 = vadd.xlane.f32.xlu0 %v468_v37  ;;  %v908_v41 = vpop.eup %907  ;;  %v464_v51 = vmul.f32 %v906_v40, %v462_v49 }
 0x26f   : > { %846 = vmatmul.mubr.msk.bf16.vlgmr.msra.gmra.mxu0 %vm430_vm3, %v490_v38  ;;  %v463_v47 = vmul.f32 %v908_v41, %v461_v46 }
 0x27b   : > { %485 = vperm.xlu1 %891, %v906_v40  }
 0x284   : > { %480 = vperm.xlu0 %892, %v908_v41  }
 0x2f3   : > { %v467_v48 = vpop.xlane.xlu1 %466 }
 0x2f4   : > { %v471_v50 = vadd.f32 %v467_v48, %v463_v47 }
 0x2f6   : > { %474 = vst.msk [vmem:[#allocation3] sm:$0xff] %vm354_vm2, %v471_v50 }
 0x2f7   : > { %v470_v52 = vpop.xlane.xlu0 %469  ;;  %v486_v1 = vpop.permute.xlu1 %485 }
 0x2f8   : > { %v472_v53 = vadd.f32 %v470_v52, %v464_v51  ;;  %v489_v5 = vmul.f32 %v486_v1, %v477_v63 }
 0x2fa   : > { %475 = vst.msk [vmem:[#allocation3 + $0x8] sm:$0xff] %vm354_vm2, %v472_v53 }
 0x2fd   : > { %v574_v54 = vld [vmem:[#allocation3] sm:$0xff] }
 0x2fe   : > { %909 = vrcp.f32 %v574_v54 }
 0x2ff   : > { %v481_v61 = vpop.permute.xlu0 %480 }
 0x300   : > { %v488_v62 = vmul.f32 %v481_v61, %v476_v60 }
 0x301   : > { %v575_v55 = vld [vmem:[#allocation3 + $0x8] sm:$0xff] }
 0x302   : > { %911 = vrcp.f32 %v575_v55 }
 0x30b   : > { %v910_v57 = vpop.eup %909 }
 0x30c   : > { %580 = vperm.xlu0 %892, %v910_v57  }
 0x30f   : > { %v912_v59 = vpop.eup %911 }
 0x310   : > { %585 = vperm.xlu1 %891, %v912_v59  }
 0x32f   : > { %v538_v2 = vpop.f32.mrf.mxu0 }
 0x330   : > { %v545_v3 = vadd.f32 %v538_v2, %v488_v62 }
 0x331   : > { %v847_v4 = vpop.f32.mrf.mxu0 }
 0x332   : > { %547 = vst.msk [vmem:[#allocation4] sm:$0xff] %vm359_vm0, %v545_v3 }
 0x333   : > { %v541_v0 = vpop.f32.mrf.mxu0 }
 0x334   : > { %v546_v6 = vadd.f32 %v541_v0, %v489_v5 }
 0x335   : > { %v848_v7 = vpop.f32.mrf.mxu0 }
 0x336   : > { %548 = vst.msk [vmem:[#allocation4 + $0x8] sm:$0xff] %vm359_vm0, %v546_v6 }
 0x339   : > { %v572_v9 = vld [vmem:[#allocation4] sm:$0xff] }
 0x33d   : > { %v573_v11 = vld [vmem:[#allocation4 + $0x8] sm:$0xff] }
 0x387   : > { %v581_v8 = vpop.permute.xlu0 %580 }
 0x388   : > { %v588_v12 = vmul.f32 %v581_v8, %v572_v9 }
 0x38b   : > { %v586_v10 = vpop.permute.xlu1 %585 }
 0x38c   : > { %v589_v13 = vmul.f32 %v586_v10, %v573_v11 }
 0x38e   : > { %v590_v14 = vpack.c.bf16 %v589_v13, %v588_v12 }
 0x390   : > { %858 = vmatmul.mubr.msk.bf16.vlgmr.msra.gmra.mxu1 %vm359_vm0, %v590_v14 }
 0x450   : > { %v655_v19 = vpop.f32.mrf.mxu1 }
 0x451   : > { %v662_v20 = vadd.f32 %v655_v19, %v570_v17 }
 0x452   : > { %v859_v22 = vpop.f32.mrf.mxu1 }
 0x453   : > { %664 = vst.msk [vmem:[%s347_s25] sm:$0xff] %vm359_vm0, %v662_v20 }
 0x454   : > { %v658_v23 = vpop.f32.mrf.mxu1 }
 0x455   : > { %v663_v24 = vadd.f32 %v658_v23, %v571_v21 }
 0x456   : > { %v860_v25 = vpop.f32.mrf.mxu1 }
 0x457   : > { %665 = vst.msk [vmem:[%s347_s25 + $0x8] sm:$0xff] %vm359_vm0, %v663_v24 }
 0x458 PF: > { %s15_s20 = sadd.s32 1, %s935_s20   ;;  %s1081_s18 = smov %s931_s19 }
 0x459   : > { %p12_p5 = scmp.ge.s32.totalorder %s15_s20, 4   ;;  %s1082_s19 = smov %s1084_s21 }
 0x45b   :  { %14 = sbr.rel (!%p12_p5) target bundleno = 2 (0x2), region = 84 }

// kernel: t2t_vit_forward.11
= control target key start
LH: loop header
LB: loop body
LE: loop exit
PB: predicated region body
PF: predicated region fallthrough
CT: control target
= control target key end

     0   :  { %vm25_vm0 = vcmask 400384   ;;  %vm163_vm1 = vcmask 1040384   ;;  %v308_v30 = vmov 0   ;;  %vm249_vm2 = vcmask 1043456   ;;  %s435_s0 = inlined_call_operand.vmem [shape: f32[32,49], index: 0, kind: input, shape index: {}]   ;;  %s436_s1 = inlined_call_operand.vmem [shape: bf16[49,147], index: 1, kind: input, shape index: {}]   ;;  %s437_s3 = inlined_call_operand.vmem [shape: f32[1,49], index: 3, kind: input, shape index: {}]   ;;  %s438_s4 = inlined_call_operand.vmem [shape: f32[1,49], index: 4, kind: input, shape index: {}]   ;;  %s439_s2 = inlined_call_operand.vmem [shape: f32[1,147], index: 2, kind: input, shape index: {}]   ;;  %s440_s5 = inlined_call_operand.vmem [shape: bf16[32,147], index: 5, kind: output, shape index: {}]  }
   0x1   :  { %v21_v0 = vld [vmem:[%s435_s0] sm:$0xff]  ;;  %v23_v1 = vld [vmem:[%s435_s0 + $0x10] sm:$0xff]  ;;  %v22_v2 = vld [vmem:[%s435_s0 + $0x8] sm:$0xff]  ;;  %v165_v31 = vsel %vm163_vm1, 65535, %v308_v30  ;;  %204 = vmatprep.mubr.bf16.mxu0 %v308_v30  ;;  %214 = vmatprep.mubr.bf16.mxu1 %v308_v30  ;;  %vm250_vm3 = vcmask 154628  }
   0x2   :  { %v26_v3 = vsel %vm25_vm0, %v21_v0, 0.0  ;;  %v32_v4 = vsel %vm25_vm0, %v23_v1, 0.0  ;;  %v24_v5 = vld [vmem:[%s435_s0 + $0x18] sm:$0xff]  ;;  %v29_v6 = vsel %vm25_vm0, %v22_v2, 0.0  ;;  %v109_v28 = vld [vmem:[%s436_s1 + $0x30] sm:$0x11]  ;;  %vm411_vm4 = vmor %vm250_vm3, %vm249_vm2 }
   0x3   :  { %27 = vadd.xlane.f32.xlu0 %v26_v3  ;;  %33 = vadd.xlane.f32.xlu1 %v32_v4  ;;  %v35_v7 = vsel %vm25_vm0, %v24_v5, 0.0  ;;  %v269_v29 = vcombine.high %v109_v28, %v109_v28  ;;  %v268_v32 = vcombine.low %v109_v28, %v109_v28  ;;  %v291_v34 = vld [vmem:[%s436_s1 + $0x24] ss:$8 sps:$4 sm:$0xff]   ;;  %v293_v36 = vld [vmem:[%s436_s1 + $0x20] ss:$8 sps:$4 sm:$0xff]  }
   0x4   :  { %v294_v37 = vld [vmem:[%s436_s1 + $0x14] ss:$8 sps:$4 sm:$0xff]   ;;  %v296_v38 = vld [vmem:[%s436_s1 + $0x10] ss:$8 sps:$4 sm:$0xff]   ;;  %v297_v39 = vld [vmem:[%s436_s1 + $0x4] ss:$8 sps:$4 sm:$0xff]  }
   0x5   :  { %v170_v33 = vand.u32 %v269_v29, %v165_v31  ;;  %v167_v35 = vand.u32 %v268_v32, %v165_v31  ;;  %v299_v40 = vld [vmem:[%s436_s1] ss:$8 sps:$4 sm:$0xff]  }
   0x6   :  { %v260_v55 = vld [vmem:[%s437_s3] ss:$0 sm:$0xff] }
   0x7   :  { %30 = vadd.xlane.f32.xlu0 %v29_v6  ;;  %36 = vadd.xlane.f32.xlu1 %v35_v7  ;;  %v261_v60 = vld [vmem:[%s438_s4] ss:$0 sm:$0xff] }
   0x8   :  { %180 = vmatprep.subr.bf16.mxu0 %v170_v33  ;;  %280 = vmatprep.subr.bf16.mxu1 %v170_v33 }
   0x9   :  { %181 = vmatpush1.bf16.msra.mxu0 %v167_v35  ;;  %284 = vmatpush1.bf16.msra.mxu1 %v167_v35 }
   0xa   :  { %182 = vmatprep.subr.bf16.mxu0 %v291_v34  ;;  %281 = vmatprep.subr.bf16.mxu1 %v291_v34 }
   0xd   :  { %183 = vmatpush1.bf16.msra.mxu0 %v293_v36  ;;  %285 = vmatpush1.bf16.msra.mxu1 %v293_v36 }
   0xe   :  { %184 = vmatprep.subr.bf16.mxu0 %v294_v37  ;;  %282 = vmatprep.subr.bf16.mxu1 %v294_v37 }
  0x11   :  { %185 = vmatpush1.bf16.msra.mxu0 %v296_v38  ;;  %286 = vmatpush1.bf16.msra.mxu1 %v296_v38 }
  0x12   :  { %186 = vmatprep.subr.bf16.mxu0 %v297_v39  ;;  %283 = vmatprep.subr.bf16.mxu1 %v297_v39 }
  0x15   :  { %187 = vmatpush1.bf16.msra.mxu0 %v299_v40  ;;  %287 = vmatpush1.bf16.msra.mxu1 %v299_v40 }
  0x8c   :  { %v28_v8 = vpop.xlane.xlu0 %27  ;;  %v34_v9 = vpop.xlane.xlu1 %33 }
  0x8d   :  { %v39_v10 = vmul.f32 0.020408163, %v28_v8  ;;  %v41_v11 = vmul.f32 0.020408163, %v34_v9  ;;  %v112_v9 = vlaneseq }
  0x8f   :  { %v355_v12 = vsub.f32 %v21_v0, %v39_v10  ;;  %v357_v13 = vsub.f32 %v23_v1, %v41_v11  ;;  %v113_v10 = vshrl.u32 %v112_v9, 7 }
  0x90   :  { %v31_v14 = vpop.xlane.xlu0 %30  ;;  %v37_v15 = vpop.xlane.xlu1 %36 }
  0x91   :  { %v40_v16 = vmul.f32 0.020408163, %v31_v14  ;;  %v42_v17 = vmul.f32 0.020408163, %v37_v15  ;;  %v47_v18 = vmul.f32 %v355_v12, %v355_v12  ;;  %v49_v19 = vmul.f32 %v357_v13, %v357_v13 }
  0x92   :  { %v114_v11 = vsub.s32 0, %v113_v10 }
  0x93   :  { %v363_v20 = vsub.f32 %v22_v2, %v40_v16  ;;  %v365_v21 = vsub.f32 %v24_v5, %v42_v17  ;;  %v51_v22 = vsel %vm25_vm0, %v47_v18, 0.0  ;;  %v57_v23 = vsel %vm25_vm0, %v49_v19, 0.0 }
  0x94   :  { %52 = vadd.xlane.f32.xlu0 %v51_v22 }
  0x95   :  { %v48_v24 = vmul.f32 %v363_v20, %v363_v20  ;;  %v50_v25 = vmul.f32 %v365_v21, %v365_v21 }
  0x97   :  { %v54_v26 = vsel %vm25_vm0, %v48_v24, 0.0  ;;  %v60_v27 = vsel %vm25_vm0, %v50_v25, 0.0 }
  0x98   :  { %58 = vadd.xlane.f32.xlu0 %v57_v23  ;;  %55 = vadd.xlane.f32.xlu1 %v54_v26 }
  0x9c   :  { %61 = vadd.xlane.f32.xlu1 %v60_v27 }
 0x11d   :  { %v53_v41 = vpop.xlane.xlu0 %52 }
 0x11e   :  { %v63_v42 = vmul.f32 0.020408163, %v53_v41 }
 0x120   :  { %v67_v43 = vadd.f32 1e-05, %v63_v42 }
 0x121   :  { %v56_v44 = vpop.xlane.xlu1 %55  ;;  %v59_v45 = vpop.xlane.xlu0 %58 }
 0x122   :  { %300 = vrsqrt.f32 %v67_v43  ;;  %v64_v46 = vmul.f32 0.020408163, %v56_v44  ;;  %v65_v47 = vmul.f32 0.020408163, %v59_v45 }
 0x124   :  { %v68_v48 = vadd.f32 1e-05, %v64_v46  ;;  %v69_v49 = vadd.f32 1e-05, %v65_v47 }
 0x125   :  { %v62_v50 = vpop.xlane.xlu1 %61 }
 0x126   :  { %302 = vrsqrt.f32 %v68_v48  ;;  %v66_v51 = vmul.f32 0.020408163, %v62_v50 }
 0x127   :  { %304 = vrsqrt.f32 %v69_v49 }
 0x128   :  { %v70_v52 = vadd.f32 1e-05, %v66_v51 }
 0x12a   :  { %306 = vrsqrt.f32 %v70_v52 }
 0x12f   :  { %v301_v53 = vpop.eup %300 }
 0x130   :  { %v75_v54 = vmul.f32 %v301_v53, %v355_v12  ;;  %v118_v12 = vsub.s32 1, %v113_v10 }
 0x132   :  { %v86_v59 = vmul.f32 %v260_v55, %v75_v54 }
 0x133   :  { %v303_v56 = vpop.eup %302 }
 0x134   :  { %v305_v57 = vpop.eup %304  ;;  %v76_v58 = vmul.f32 %v303_v56, %v363_v20  ;;  %v97_v0 = vadd.f32 %v261_v60, %v86_v59 }
 0x135   :  { %v77_v61 = vmul.f32 %v305_v57, %v357_v13  ;;  %v110_v13 = vld [vmem:[%s439_s2] sm:$0x3] }
 0x136   :  { %v87_v62 = vmul.f32 %v260_v55, %v76_v58  ;;  %v115_v14 = vrot.slane %v110_v13, %v114_v11  ;;  %v119_v15 = vrot.slane %v110_v13, %v118_v12 }
 0x137   :  { %v307_v63 = vpop.eup %306  ;;  %v88_v3 = vmul.f32 %v260_v55, %v77_v61 }
 0x138   :  { %v98_v1 = vadd.f32 %v261_v60, %v87_v62  ;;  %v78_v2 = vmul.f32 %v307_v63, %v365_v21 }
 0x139   :  { %v99_v6 = vadd.f32 %v261_v60, %v88_v3 }
 0x13a   :  { %v101_v4 = vpack.c.bf16 %v98_v1, %v97_v0  ;;  %v89_v5 = vmul.f32 %v260_v55, %v78_v2 }
 0x13c   :  { %270 = vmatmul.mubr.msk.bf16.vlgmr.msra.gmra.mxu0 %vm25_vm0, %v101_v4  ;;  %v100_v7 = vadd.f32 %v261_v60, %v89_v5 }
 0x13e   :  { %v102_v8 = vpack.c.bf16 %v100_v7, %v99_v6 }
 0x140   :  { %271 = vmatmul.mubr.msk.bf16.vlgmr.msra.gmra.mxu1 %vm25_vm0, %v102_v8 }
 0x1fc   :  { %v206_v16 = vpop.f32.mrf.mxu0 }
 0x1fd   :  { %v207_v18 = vadd.f32 %v206_v16, %v115_v14 }
 0x1fe   :  { %v208_v17 = vpop.f32.mrf.mxu0 }
 0x1ff   :  { %v209_v19 = vadd.f32 %v208_v17, %v119_v15 }
 0x200   :  { %v210_v21 = vpop.f32.mrf.mxu0  ;;  %v216_v22 = vpop.f32.mrf.mxu1 }
 0x201   :  { %v276_v23 = vpack.c.bf16 %v209_v19, %v207_v18  ;;  %v211_v26 = vadd.f32 %v210_v21, %v115_v14  ;;  %v217_v27 = vadd.f32 %v216_v22, %v115_v14 }
 0x202   :  { %v212_v24 = vpop.f32.mrf.mxu0  ;;  %v218_v25 = vpop.f32.mrf.mxu1 }
 0x203   :  { %252 = vst.msk [vmem:[%s440_s5] sm:$0xff] %vm411_vm4, %v276_v23  ;;  %v213_v28 = vadd.f32 %v212_v24, %v119_v15  ;;  %v219_v29 = vadd.f32 %v218_v25, %v119_v15 }
 0x204   :  { %v220_v30 = vpop.f32.mrf.mxu1 }
 0x205   :  { %v277_v31 = vpack.c.bf16 %v213_v28, %v211_v26  ;;  %v278_v32 = vpack.c.bf16 %v219_v29, %v217_v27  ;;  %v221_v34 = vadd.f32 %v220_v30, %v115_v14 }
 0x206   :  { %v222_v33 = vpop.f32.mrf.mxu1 }
 0x207   :  { %253 = vst.msk [vmem:[%s440_s5 + $0x8] sm:$0xff] %vm411_vm4, %v277_v31  ;;  %254 = vst.msk [vmem:[%s440_s5 + $0x10] sm:$0xff] %vm411_vm4, %v278_v32  ;;  %v223_v35 = vadd.f32 %v222_v33, %v119_v15 }
 0x209   :  { %v279_v36 = vpack.c.bf16 %v223_v35, %v221_v34 }
 0x20b   :  { %255 = vst.msk [vmem:[%s440_s5 + $0x18] sm:$0xff] %vm411_vm4, %v279_v36 }

// kernel: t2t_vit_forward.14
= control target key start
LH: loop header
LB: loop body
LE: loop exit
PB: predicated region body
PF: predicated region fallthrough
CT: control target
= control target key end

     0   :  { %vm27_vm0 = vcmask 465920   ;;  %vm2066_vm1 = vcmask 1043456   ;;  %vm2067_vm2 = vcmask 1044480   ;;  %vm2643_vm3 = vcmask 347136   ;;  %s4591_s0 = inlined_call_operand.vmem [shape: f32[8,441], index: 0, kind: input, shape index: {}]   ;;  %s4592_s1 = inlined_call_operand.vmem [shape: bf16[441,1323], index: 1, kind: input, shape index: {}]   ;;  %s4593_s3 = inlined_call_operand.vmem [shape: f32[1,441], index: 3, kind: input, shape index: {}]   ;;  %s4594_s4 = inlined_call_operand.vmem [shape: f32[1,441], index: 4, kind: input, shape index: {}]   ;;  %s4595_s2 = inlined_call_operand.vmem [shape: f32[1,1323], index: 2, kind: input, shape index: {}]   ;;  %s4596_s5 = inlined_call_operand.vmem [shape: bf16[8,1323], index: 5, kind: output, shape index: {}]  }
   0x1   :  { %v3484_v0 = vld [vmem:[%s4591_s0] sm:$0xff]  ;;  %v3489_v1 = vld [vmem:[%s4591_s0 + $0x8] sm:$0xff]  ;;  %v3494_v2 = vld [vmem:[%s4591_s0 + $0x10] sm:$0xff] }
   0x2   :  { %v3499_v3 = vld [vmem:[%s4591_s0 + $0x18] sm:$0xff]  ;;  %v25_v4 = vadd.f32 %v3489_v1, %v3484_v0  ;;  %v3001_v9 = vld [vmem:[%s4592_s1 + $0x268] ss:$44 sps:$4 sm:$0xff]   ;;  %v3008_v16 = vld [vmem:[%s4592_s1 + $0x164] ss:$44 sps:$4 sm:$0xff]  }
   0x3   :  { %v28_v5 = vsel %vm27_vm0, %v3499_v3, 0.0  ;;  %v2999_v8 = vld [vmem:[%s4592_s1 + $0x26c] ss:$44 sps:$4 sm:$0xff]   ;;  %v3002_v10 = vld [vmem:[%s4592_s1 + $0x214] ss:$44 sps:$4 sm:$0xff]  }
   0x4   :  { %v26_v6 = vadd.f32 %v25_v4, %v3494_v2  ;;  %2103 = vmatprep.subr.bf16.mxu0 %v2999_v8  ;;  %v3004_v11 = vld [vmem:[%s4592_s1 + $0x210] ss:$44 sps:$4 sm:$0xff]   ;;  %v3007_v13 = vld [vmem:[%s4592_s1 + $0x1b8] ss:$44 sps:$4 sm:$0xff]   ;;  %v3016_v15 = vld [vmem:[%s4592_s1 + $0x7e8] ss:$44 sps:$4 sm:$0xff]  }
   0x5   :  { %2104 = vmatpush1.bf16.msra.mxu0 %v3001_v9  ;;  %v3005_v12 = vld [vmem:[%s4592_s1 + $0x1bc] ss:$44 sps:$4 sm:$0xff]   ;;  %v3013_v14 = vld [vmem:[%s4592_s1 + $0x7ec] ss:$44 sps:$4 sm:$0xff]   ;;  %v3019_v17 = vld [vmem:[%s4592_s1 + $0x794] ss:$44 sps:$4 sm:$0xff]  }
   0x6   :  { %v29_v7 = vadd.f32 %v28_v5, %v26_v6  ;;  %2105 = vmatprep.subr.bf16.mxu0 %v3002_v10  ;;  %2144 = vmatprep.subr.bf16.mxu1 %v3013_v14  ;;  %v3022_v18 = vld [vmem:[%s4592_s1 + $0x790] ss:$44 sps:$4 sm:$0xff]   ;;  %v3010_v19 = vld [vmem:[%s4592_s1 + $0x160] ss:$44 sps:$4 sm:$0xff]   ;;  %v3028_v22 = vld [vmem:[%s4592_s1 + $0x738] ss:$44 sps:$4 sm:$0xff]  }
   0x7   :  { %2145 = vmatpush1.bf16.msra.mxu1 %v3016_v15  ;;  %v3011_v20 = vld [vmem:[%s4592_s1 + $0x10c] ss:$44 sps:$4 sm:$0xff]   ;;  %v3025_v21 = vld [vmem:[%s4592_s1 + $0x73c] ss:$44 sps:$4 sm:$0xff]   ;;  %v3031_v24 = vld [vmem:[%s4592_s1 + $0x6e4] ss:$44 sps:$4 sm:$0xff]  }
   0x8   :  { %30 = vadd.xlane.f32.xlu0 %v29_v7  ;;  %2146 = vmatprep.subr.bf16.mxu1 %v3019_v17  ;;  %v3015_v23 = vld [vmem:[%s4592_s1 + $0x108] ss:$44 sps:$4 sm:$0xff]   ;;  %v3021_v26 = vld [vmem:[%s4592_s1 + $0xb0] ss:$44 sps:$4 sm:$0xff]   ;;  %v3034_v27 = vld [vmem:[%s4592_s1 + $0x6e0] ss:$44 sps:$4 sm:$0xff]  }
   0x9   :  { %2106 = vmatpush1.bf16.msra.mxu0 %v3004_v11  ;;  %v3017_v25 = vld [vmem:[%s4592_s1 + $0xb4] ss:$44 sps:$4 sm:$0xff]   ;;  %v3037_v28 = vld [vmem:[%s4592_s1 + $0x68c] ss:$44 sps:$4 sm:$0xff]   ;;  %v3023_v29 = vld [vmem:[%s4592_s1 + $0x5c] ss:$44 sps:$4 sm:$0xff]  }
   0xa   :  { %2107 = vmatprep.subr.bf16.mxu0 %v3005_v12  ;;  %v3040_v30 = vld [vmem:[%s4592_s1 + $0x688] ss:$44 sps:$4 sm:$0xff]   ;;  %v3027_v31 = vld [vmem:[%s4592_s1 + $0x58] ss:$44 sps:$4 sm:$0xff]   ;;  %v3046_v34 = vld [vmem:[%s4592_s1 + $0x630] ss:$44 sps:$4 sm:$0xff]  }
   0xb   :  { %2147 = vmatpush1.bf16.msra.mxu1 %v3022_v18  ;;  %v3043_v32 = vld [vmem:[%s4592_s1 + $0x634] ss:$44 sps:$4 sm:$0xff]   ;;  %v3029_v33 = vld [vmem:[%s4592_s1 + $0x4] ss:$44 sps:$4 sm:$0xff]   ;;  %v3035_v36 = vld [vmem:[%s4592_s1 + $0x52c] ss:$44 sps:$4 sm:$0xff]  }
   0xc   :  { %2148 = vmatprep.subr.bf16.mxu1 %v3025_v21  ;;  %v3033_v35 = vld [vmem:[%s4592_s1] ss:$44 sps:$4 sm:$0xff]   ;;  %v3039_v37 = vld [vmem:[%s4592_s1 + $0x528] ss:$44 sps:$4 sm:$0xff]   ;;  %v3045_v39 = vld [vmem:[%s4592_s1 + $0x4d0] ss:$44 sps:$4 sm:$0xff]  }
   0xd   :  { %2108 = vmatpush1.bf16.msra.mxu0 %v3007_v13  ;;  %v3041_v38 = vld [vmem:[%s4592_s1 + $0x4d4] ss:$44 sps:$4 sm:$0xff]   ;;  %v3047_v54 = vld [vmem:[%s4592_s1 + $0x47c] ss:$44 sps:$4 sm:$0xff]   ;;  %v3051_v56 = vld [vmem:[%s4592_s1 + $0x478] ss:$44 sps:$4 sm:$0xff]  }
   0xe   :  { %2109 = vmatprep.subr.bf16.mxu0 %v3008_v16  ;;  %v3049_v55 = vld [vmem:[%s4592_s1 + $0x5dc] ss:$44 sps:$4 sm:$0xff]   ;;  %v3052_v57 = vld [vmem:[%s4592_s1 + $0x5d8] ss:$44 sps:$4 sm:$0xff]   ;;  %v3057_v60 = vld [vmem:[%s4592_s1 + $0x420] ss:$44 sps:$4 sm:$0xff]  }
   0xf   :  { %2149 = vmatpush1.bf16.msra.mxu1 %v3028_v22  ;;  %v3053_v58 = vld [vmem:[%s4592_s1 + $0x424] ss:$44 sps:$4 sm:$0xff]   ;;  %v3058_v61 = vld [vmem:[%s4592_s1 + $0x580] ss:$44 sps:$4 sm:$0xff]   ;;  %v3071_v11 = vld [vmem:[%s4592_s1 + $0x31c] ss:$44 sps:$4 sm:$0xff]  }
  0x10   :  { %2150 = vmatprep.subr.bf16.mxu1 %v3031_v24  ;;  %v3055_v59 = vld [vmem:[%s4592_s1 + $0x584] ss:$44 sps:$4 sm:$0xff]   ;;  %v3059_v62 = vld [vmem:[%s4592_s1 + $0x3cc] ss:$44 sps:$4 sm:$0xff]   ;;  %v3065_v5 = vld [vmem:[%s4592_s1 + $0x374] ss:$44 sps:$4 sm:$0xff]   ;;  %v57_v24 = vlaneseq }
  0x11   :  { %2110 = vmatpush1.bf16.msra.mxu0 %v3010_v19  ;;  %v3061_v63 = vld [vmem:[%s4592_s1 + $0x94c] ss:$44 sps:$4 sm:$0x1f]   ;;  %v3067_v8 = vld [vmem:[%s4592_s1 + $0x8f4] ss:$44 sps:$4 sm:$0xff]  }
  0x12   :  { %2111 = vmatprep.subr.bf16.mxu0 %v3011_v20  ;;  %v3069_v9 = vld [vmem:[%s4592_s1 + $0x370] ss:$44 sps:$4 sm:$0xff]   ;;  %v3075_v13 = vld [vmem:[%s4592_s1 + $0x318] ss:$44 sps:$4 sm:$0xff]   ;;  %v3081_v17 = vld [vmem:[%s4592_s1 + $0x2c0] ss:$44 sps:$4 sm:$0xff]  }
  0x13   :  { %2151 = vmatpush1.bf16.msra.mxu1 %v3034_v27  ;;  %v3070_v10 = vld [vmem:[%s4592_s1 + $0x8f0] ss:$44 sps:$4 sm:$0xff]   ;;  %v3076_v14 = vld [vmem:[%s4592_s1 + $0x898] ss:$44 sps:$4 sm:$0xff]   ;;  %v3082_v18 = vld [vmem:[%s4592_s1 + $0x840] ss:$44 sps:$4 sm:$0xff]  }
  0x14   :  { %2152 = vmatprep.subr.bf16.mxu1 %v3037_v28  ;;  %v3073_v12 = vld [vmem:[%s4592_s1 + $0x89c] ss:$44 sps:$4 sm:$0xff]   ;;  %v3077_v15 = vld [vmem:[%s4592_s1 + $0x2c4] ss:$44 sps:$4 sm:$0xff]   ;;  %v3085_v19 = vld [vmem:[%s4592_s1 + $0x274] ss:$44 sps:$4 sm:$0xff]  }
  0x15   :  { %2112 = vmatpush1.bf16.msra.mxu0 %v3015_v23  ;;  %v3079_v16 = vld [vmem:[%s4592_s1 + $0x844] ss:$44 sps:$4 sm:$0xff]   ;;  %v3088_v20 = vld [vmem:[%s4592_s1 + $0x7f4] ss:$44 sps:$4 sm:$0xff]  }
  0x16   :  { %2113 = vmatprep.subr.bf16.mxu0 %v3017_v25  ;;  %v3705_v25 = vshrl.u32 %v57_v24, 7  ;;  %v3128_v24 = vld [vmem:[%s4592_s1 + $0x588] ss:$44 sps:$4 sm:$0xff]  }
  0x17   :  { %2153 = vmatpush1.bf16.msra.mxu1 %v3040_v30  ;;  %v55_v30 = vld [vmem:[%s4593_s3] sm:$0xf] }
  0x18   :  { %2154 = vmatprep.subr.bf16.mxu1 %v3043_v32  ;;  %v3711_v27 = vsub.s32 3, %v3705_v25  ;;  %v3714_v28 = vsub.s32 0, %v3705_v25 }
  0x19   :  { %2114 = vmatpush1.bf16.msra.mxu0 %v3021_v26  ;;  %v3708_v26 = vsub.s32 1, %v3705_v25 }
  0x1a   :  { %2115 = vmatprep.subr.bf16.mxu0 %v3023_v29  ;;  %v3717_v29 = vsub.s32 2, %v3705_v25 }
  0x1b   :  { %2155 = vmatpush1.bf16.msra.mxu1 %v3046_v34  ;;  %v64_v32 = vrot.slane %v55_v30, %v3708_v26  ;;  %v60_v34 = vrot.slane %v55_v30, %v3714_v28 }
  0x1c   :  { %2156 = vmatprep.subr.bf16.mxu1 %v3049_v55 }
  0x1d   :  { %2116 = vmatpush1.bf16.msra.mxu0 %v3027_v31  ;;  %v81_v31 = vld [vmem:[%s4594_s4] sm:$0xf] }
  0x1e   :  { %2117 = vmatprep.subr.bf16.mxu0 %v3029_v33  ;;  %v72_v33 = vrot.slane %v55_v30, %v3711_v27 }
  0x1f   :  { %2157 = vmatpush1.bf16.msra.mxu1 %v3052_v57 }
  0x20   :  { %2158 = vmatprep.subr.bf16.mxu1 %v3055_v59  ;;  %v3091_v59 = vld [vmem:[%s4592_s1 + $0x21c] ss:$44 sps:$4 sm:$0xff]  }
  0x21   :  { %2118 = vmatpush1.bf16.msra.mxu0 %v3033_v35  ;;  %v68_v35 = vrot.slane %v55_v30, %v3717_v29  ;;  %v3134_v30 = vld [vmem:[%s4592_s1 + $0x950] ss:$44 sps:$4 sm:$0x1f]  }
  0x22   :  { %2119 = vmatprep.subr.bf16.mxu0 %v3035_v36 }
  0x23   :  { %2159 = vmatpush1.bf16.msra.mxu1 %v3058_v61  ;;  %v3089_v61 = vld [vmem:[%s4592_s1 + $0x218] ss:$44 sps:$4 sm:$0xff]  }
  0x25   :  { %2120 = vmatpush2.bf16.msra.mxu0 %v3039_v37  ;;  %v90_v37 = vrot.slane %v81_v31, %v3708_v26 }
  0x26   :  { %2121 = vmatprep.subr.bf16.mxu0 %v3041_v38  ;;  %v98_v38 = vrot.slane %v81_v31, %v3711_v27 }
  0x29   :  { %2122 = vmatpush2.bf16.msra.mxu0 %v3045_v39  ;;  %v86_v39 = vrot.slane %v81_v31, %v3714_v28 }
  0x2a   :  { %2123 = vmatprep.subr.bf16.mxu0 %v3047_v54 }
  0x2d   :  { %2124 = vmatpush2.bf16.msra.mxu0 %v3051_v56 }
  0x2e   :  { %2125 = vmatprep.subr.bf16.mxu0 %v3053_v58 }
  0x31   :  { %2126 = vmatpush2.bf16.msra.mxu0 %v3057_v60  ;;  %v3094_v60 = vld [vmem:[%s4592_s1 + $0x79c] ss:$44 sps:$4 sm:$0xff]  }
  0x32   :  { %2127 = vmatprep.subr.bf16.mxu0 %v3059_v62  ;;  %v3092_v62 = vld [vmem:[%s4592_s1 + $0x798] ss:$44 sps:$4 sm:$0xff]  }
  0x91   :  { %v31_v40 = vpop.xlane.xlu0 %30 }
  0x92   :  { %v33_v41 = vmul.f32 0.0022675737, %v31_v40  ;;  %v94_v40 = vrot.slane %v81_v31, %v3717_v29  ;;  %v3133_v31 = vld [vmem:[%s4592_s1 + $0x534] ss:$44 sps:$4 sm:$0xff]  }
  0x94   :  { %v3603_v42 = vsub.f32 %v3484_v0, %v33_v41  ;;  %v3606_v43 = vsub.f32 %v3489_v1, %v33_v41  ;;  %v3609_v44 = vsub.f32 %v3494_v2, %v33_v41  ;;  %v3612_v45 = vsub.f32 %v3499_v3, %v33_v41  ;;  %v3063_v2 = vld [vmem:[%s4592_s1 + $0x3c8] ss:$44 sps:$4 sm:$0xff]  }
  0x95   :  { %v3449_v0 = vmov 65535   ;;  %v3064_v3 = vld [vmem:[%s4592_s1 + $0x948] ss:$44 sps:$4 sm:$0x1f]   ;;  %2128 = vmatpush2.bf16.msra.mxu0 %v3063_v2  ;;  %v3098_v2 = vld [vmem:[%s4592_s1 + $0x740] ss:$44 sps:$4 sm:$0xff]  }
  0x96   :  { %v38_v46 = vmul.f32 %v3603_v42, %v3603_v42  ;;  %v39_v47 = vmul.f32 %v3606_v43, %v3606_v43  ;;  %v41_v48 = vmul.f32 %v3612_v45, %v3612_v45  ;;  %v40_v49 = vmul.f32 %v3609_v44, %v3609_v44  ;;  %2129 = vmatprep.subr.bf16.mxu0 %v3065_v5  ;;  %v3106_v5 = vld [vmem:[%s4592_s1 + $0x6ec] ss:$44 sps:$4 sm:$0xff]  }
  0x97   :  { %v2068_v1 = vsel %vm2066_vm1, 4294967295, %v3449_v0  ;;  %v3100_v0 = vld [vmem:[%s4592_s1 + $0x744] ss:$44 sps:$4 sm:$0xff]  }
  0x98   :  { %v42_v50 = vadd.f32 %v39_v47, %v38_v46  ;;  %v44_v52 = vsel %vm27_vm0, %v41_v48, 0.0  ;;  %v3659_v4 = vsel %vm2067_vm2, %v2068_v1, 0  ;;  %v3095_v1 = vld [vmem:[%s4592_s1 + $0x1c0] ss:$44 sps:$4 sm:$0xff]  }
  0x99   :  { %v2074_v6 = vand.u32 %v3061_v63, %v3659_v4  ;;  %v2071_v7 = vand.u32 %v3064_v3, %v3659_v4  ;;  %2130 = vmatpush2.bf16.msra.mxu0 %v3069_v9  ;;  %v3097_v63 = vld [vmem:[%s4592_s1 + $0x1c4] ss:$44 sps:$4 sm:$0xff]   ;;  %v3103_v3 = vld [vmem:[%s4592_s1 + $0x16c] ss:$44 sps:$4 sm:$0xff]   ;;  %v3112_v9 = vld [vmem:[%s4592_s1 + $0x694] ss:$44 sps:$4 sm:$0xff]  }
  0x9a   :  { %v43_v51 = vadd.f32 %v42_v50, %v40_v49  ;;  %2131 = vmatprep.subr.bf16.mxu0 %v3071_v11  ;;  %v3110_v11 = vld [vmem:[%s4592_s1 + $0x690] ss:$44 sps:$4 sm:$0xff]  }
  0x9b   :  { %2168 = vmatprep.subr.bf16.mxu1 %v2074_v6  ;;  %v3101_v6 = vld [vmem:[%s4592_s1 + $0x168] ss:$44 sps:$4 sm:$0xff]  }
  0x9c   :  { %v45_v53 = vadd.f32 %v44_v52, %v43_v51  ;;  %2169 = vmatpush2.bf16.msra.mxu1 %v2071_v7  ;;  %v3104_v7 = vld [vmem:[%s4592_s1 + $0x6e8] ss:$44 sps:$4 sm:$0xff]  }
  0x9d   :  { %2170 = vmatprep.subr.bf16.mxu1 %v3067_v8  ;;  %2132 = vmatpush2.bf16.msra.mxu0 %v3075_v13  ;;  %v3109_v8 = vld [vmem:[%s4592_s1 + $0x114] ss:$44 sps:$4 sm:$0xff]   ;;  %v3118_v13 = vld [vmem:[%s4592_s1 + $0x63c] ss:$44 sps:$4 sm:$0xff]  }
  0x9e   :  { %46 = vadd.xlane.f32.xlu0 %v45_v53  ;;  %2133 = vmatprep.subr.bf16.mxu0 %v3077_v15  ;;  %v3116_v15 = vld [vmem:[%s4592_s1 + $0x638] ss:$44 sps:$4 sm:$0xff]  }
  0xa0   :  { %2171 = vmatpush2.bf16.msra.mxu1 %v3070_v10  ;;  %v3107_v10 = vld [vmem:[%s4592_s1 + $0x110] ss:$44 sps:$4 sm:$0xff]  }
  0xa1   :  { %2172 = vmatprep.subr.bf16.mxu1 %v3073_v12  ;;  %2134 = vmatpush2.bf16.msra.mxu0 %v3081_v17  ;;  %v3115_v12 = vld [vmem:[%s4592_s1 + $0xbc] ss:$44 sps:$4 sm:$0xff]   ;;  %v3124_v17 = vld [vmem:[%s4592_s1 + $0x5e4] ss:$44 sps:$4 sm:$0xff]  }
  0xa2   :  { %2226 = vmatprep.subr.bf16.mxu0 %v3088_v20  ;;  %v3127_v20 = vld [vmem:[%s4592_s1 + $0xc] ss:$44 sps:$4 sm:$0xff]  }
  0xa4   :  { %2173 = vmatpush2.bf16.msra.mxu1 %v3076_v14  ;;  %v3113_v14 = vld [vmem:[%s4592_s1 + $0xb8] ss:$44 sps:$4 sm:$0xff]  }
  0xa5   :  { %2174 = vmatprep.subr.bf16.mxu1 %v3079_v16  ;;  %v3121_v16 = vld [vmem:[%s4592_s1 + $0x64] ss:$44 sps:$4 sm:$0xff]  }
  0xa8   :  { %2175 = vmatpush2.bf16.msra.mxu1 %v3082_v18  ;;  %v3119_v18 = vld [vmem:[%s4592_s1 + $0x60] ss:$44 sps:$4 sm:$0xff]  }
  0xa9   :  { %2185 = vmatprep.subr.bf16.mxu1 %v3085_v19  ;;  %v3122_v19 = vld [vmem:[%s4592_s1 + $0x5e0] ss:$44 sps:$4 sm:$0xff]  }
 0x127   :  { %v47_v21 = vpop.xlane.xlu0 %46 }
 0x128   :  { %v48_v22 = vmul.f32 0.0022675737, %v47_v21  ;;  %v3130_v21 = vld [vmem:[%s4592_s1 + $0x58c] ss:$44 sps:$4 sm:$0xff]  }
 0x12a   :  { %v49_v23 = vadd.f32 1e-05, %v48_v22  ;;  %v3136_v22 = vld [vmem:[%s4592_s1 + $0x954] ss:$44 sps:$4 sm:$0x1f]  }
 0x12c   :  { %3447 = vrsqrt.f32 %v49_v23  ;;  %v3125_v23 = vld [vmem:[%s4592_s1 + $0x8] ss:$44 sps:$4 sm:$0xff]  }
 0x139   :  { %v3448_v36 = vpop.eup %3447 }
 0x13a   :  { %v52_v41 = vmul.f32 %v3448_v36, %v3606_v43  ;;  %v54_v46 = vmul.f32 %v3448_v36, %v3612_v45  ;;  %v51_v47 = vmul.f32 %v3448_v36, %v3603_v42  ;;  %v53_v48 = vmul.f32 %v3448_v36, %v3609_v44  ;;  %v3083_v43 = vld [vmem:[%s4592_s1 + $0x270] ss:$44 sps:$4 sm:$0xff]  }
 0x13b   :  { %v3086_v42 = vld [vmem:[%s4592_s1 + $0x7f0] ss:$44 sps:$4 sm:$0xff]  }
 0x13c   :  { %v78_v49 = vmul.f32 %v64_v32, %v52_v41  ;;  %v80_v50 = vmul.f32 %v72_v33, %v54_v46  ;;  %v77_v51 = vmul.f32 %v60_v34, %v51_v47  ;;  %v79_v52 = vmul.f32 %v68_v35, %v53_v48  ;;  %v3131_v33 = vld [vmem:[%s4592_s1 + $0x530] ss:$44 sps:$4 sm:$0xff]   ;;  %v3143_v41 = vld [vmem:[%s4592_s1 + $0x480] ss:$44 sps:$4 sm:$0xff]  }
 0x13d   :  { %v2080_v32 = vand.u32 %v3136_v22, %v3659_v4  ;;  %v2077_v34 = vand.u32 %v3134_v30, %v3659_v4  ;;  %v3139_v35 = vld [vmem:[%s4592_s1 + $0x4dc] ss:$44 sps:$4 sm:$0xff]   ;;  %v3146_v46 = vld [vmem:[%s4592_s1 + $0x8a0] ss:$44 sps:$4 sm:$0xff]   ;;  %v3203_v22 = vld [vmem:[%s4592_s1 + $0x538] ss:$44 sps:$4 sm:$0xff]  }
 0x13e   :  { %v104_v53 = vadd.f32 %v90_v37, %v78_v49  ;;  %v106_v54 = vadd.f32 %v98_v38, %v80_v50  ;;  %v103_v55 = vadd.f32 %v86_v39, %v77_v51  ;;  %v105_v56 = vadd.f32 %v94_v40, %v79_v52  ;;  %v3142_v36 = vld [vmem:[%s4592_s1 + $0x8fc] ss:$44 sps:$4 sm:$0xff]   ;;  %v3137_v37 = vld [vmem:[%s4592_s1 + $0x4d8] ss:$44 sps:$4 sm:$0xff]   ;;  %v3157_v51 = vld [vmem:[%s4592_s1 + $0x3d4] ss:$44 sps:$4 sm:$0xff]  }
 0x13f   :  { %v3140_v38 = vld [vmem:[%s4592_s1 + $0x8f8] ss:$44 sps:$4 sm:$0xff]   ;;  %v3149_v49 = vld [vmem:[%s4592_s1 + $0x428] ss:$44 sps:$4 sm:$0xff]  }
 0x140   :  { %v3737_v57 = vpack.c.bf16 %v104_v53, %v104_v53  ;;  %v3739_v58 = vpack.c.bf16 %v106_v54, %v106_v54  ;;  %v3747_v44 = vpack.c.bf16 %v103_v55, %v103_v55  ;;  %v3749_v45 = vpack.c.bf16 %v105_v56, %v105_v56  ;;  %v3145_v39 = vld [vmem:[%s4592_s1 + $0x484] ss:$44 sps:$4 sm:$0xff]   ;;  %v3151_v47 = vld [vmem:[%s4592_s1 + $0x42c] ss:$44 sps:$4 sm:$0xff]   ;;  %v3152_v50 = vld [vmem:[%s4592_s1 + $0x848] ss:$44 sps:$4 sm:$0xff]  }
 0x141   :  { %v3148_v40 = vld [vmem:[%s4592_s1 + $0x8a4] ss:$44 sps:$4 sm:$0xff]   ;;  %v3154_v48 = vld [vmem:[%s4592_s1 + $0x84c] ss:$44 sps:$4 sm:$0xff]   ;;  %v3160_v52 = vld [vmem:[%s4592_s1 + $0x27c] ss:$44 sps:$4 sm:$0xff]  }
 0x142   :  { %2135 = vmatprep.mubr.bf16.mxu0 %v3737_v57  ;;  %2957 = vmatprep.mubr.msk.bf16.mxu1 %vm27_vm0, %v3739_v58  ;;  %v3155_v53 = vld [vmem:[%s4592_s1 + $0x3d0] ss:$44 sps:$4 sm:$0xff]   ;;  %v3158_v54 = vld [vmem:[%s4592_s1 + $0x278] ss:$44 sps:$4 sm:$0xff]  }
 0x143   :  { %2136 = vmatmul.mubr.bf16.vlgmr.msra.gmra.mxu0 %v3747_v44  ;;  %2177 = vmatmul.mubr.bf16.vlgmr.msra.gmra.mxu1 %v3749_v45  ;;  %v3163_v55 = vld [vmem:[%s4592_s1 + $0x37c] ss:$44 sps:$4 sm:$0xff]   ;;  %v3166_v56 = vld [vmem:[%s4592_s1 + $0x224] ss:$44 sps:$4 sm:$0xff]  }
 0x144   :  { %2186 = vmatpush1.bf16.msra.mxu1 %v3083_v43  ;;  %2227 = vmatpush1.bf16.msra.mxu0 %v3086_v42  ;;  %v3161_v43 = vld [vmem:[%s4592_s1 + $0x378] ss:$44 sps:$4 sm:$0xff]   ;;  %v3164_v42 = vld [vmem:[%s4592_s1 + $0x220] ss:$44 sps:$4 sm:$0xff]  }
 0x145   :  { %2217 = vmatprep.mubr.bf16.mxu1 %v3737_v57  ;;  %2958 = vmatprep.mubr.msk.bf16.mxu0 %vm27_vm0, %v3739_v58  ;;  %v3214_v30 = vld [vmem:[%s4592_s1 + $0x644] ss:$44 sps:$4 sm:$0xff]  }
 0x146   :  { %2187 = vmatprep.subr.bf16.mxu1 %v3091_v59  ;;  %2228 = vmatprep.subr.bf16.mxu0 %v3094_v60  ;;  %v3169_v59 = vld [vmem:[%s4592_s1 + $0x324] ss:$44 sps:$4 sm:$0xff]   ;;  %v3172_v60 = vld [vmem:[%s4592_s1 + $0x1cc] ss:$44 sps:$4 sm:$0xff]  }
 0x148   :  { %2188 = vmatpush1.bf16.msra.mxu1 %v3089_v61  ;;  %2229 = vmatpush1.bf16.msra.mxu0 %v3092_v62  ;;  %v3167_v61 = vld [vmem:[%s4592_s1 + $0x320] ss:$44 sps:$4 sm:$0xff]   ;;  %v3170_v62 = vld [vmem:[%s4592_s1 + $0x1c8] ss:$44 sps:$4 sm:$0xff]  }
 0x149   :  { %2189 = vmatprep.subr.bf16.mxu1 %v3097_v63  ;;  %2230 = vmatprep.subr.bf16.mxu0 %v3100_v0  ;;  %v3175_v63 = vld [vmem:[%s4592_s1 + $0x2cc] ss:$44 sps:$4 sm:$0xff]   ;;  %v3178_v0 = vld [vmem:[%s4592_s1 + $0x174] ss:$44 sps:$4 sm:$0xff]  }
 0x14c   :  { %2190 = vmatpush1.bf16.msra.mxu1 %v3095_v1  ;;  %2231 = vmatpush1.bf16.msra.mxu0 %v3098_v2  ;;  %v3173_v1 = vld [vmem:[%s4592_s1 + $0x2c8] ss:$44 sps:$4 sm:$0xff]   ;;  %v3176_v2 = vld [vmem:[%s4592_s1 + $0x170] ss:$44 sps:$4 sm:$0xff]  }
 0x14d   :  { %2191 = vmatprep.subr.bf16.mxu1 %v3103_v3  ;;  %2232 = vmatprep.subr.bf16.mxu0 %v3106_v5  ;;  %v3181_v3 = vld [vmem:[%s4592_s1 + $0x11c] ss:$44 sps:$4 sm:$0xff]  }
 0x14e   :  { %v3184_v5 = vld [vmem:[%s4592_s1 + $0x7fc] ss:$44 sps:$4 sm:$0xff]  }
 0x150   :  { %2192 = vmatpush1.bf16.msra.mxu1 %v3101_v6  ;;  %2233 = vmatpush1.bf16.msra.mxu0 %v3104_v7  ;;  %v3179_v6 = vld [vmem:[%s4592_s1 + $0x118] ss:$44 sps:$4 sm:$0xff]  }
 0x151   :  { %2193 = vmatprep.subr.bf16.mxu1 %v3109_v8  ;;  %2234 = vmatprep.subr.bf16.mxu0 %v3112_v9  ;;  %v3182_v7 = vld [vmem:[%s4592_s1 + $0x7f8] ss:$44 sps:$4 sm:$0xff]  }
 0x152   :  { %v3187_v8 = vld [vmem:[%s4592_s1 + $0xc4] ss:$44 sps:$4 sm:$0xff]  }
 0x153   :  { %v3190_v9 = vld [vmem:[%s4592_s1 + $0x7a4] ss:$44 sps:$4 sm:$0xff]  }
 0x154   :  { %2194 = vmatpush1.bf16.msra.mxu1 %v3107_v10  ;;  %2235 = vmatpush1.bf16.msra.mxu0 %v3110_v11  ;;  %v3185_v10 = vld [vmem:[%s4592_s1 + $0xc0] ss:$44 sps:$4 sm:$0xff]  }
 0x155   :  { %2195 = vmatprep.subr.bf16.mxu1 %v3115_v12  ;;  %2236 = vmatprep.subr.bf16.mxu0 %v3118_v13  ;;  %v3188_v11 = vld [vmem:[%s4592_s1 + $0x7a0] ss:$44 sps:$4 sm:$0xff]  }
 0x156   :  { %v3193_v12 = vld [vmem:[%s4592_s1 + $0x6c] ss:$44 sps:$4 sm:$0xff]  }
 0x157   :  { %v3196_v13 = vld [vmem:[%s4592_s1 + $0x74c] ss:$44 sps:$4 sm:$0xff]  }
 0x158   :  { %2196 = vmatpush1.bf16.msra.mxu1 %v3113_v14  ;;  %2237 = vmatpush1.bf16.msra.mxu0 %v3116_v15  ;;  %v3191_v14 = vld [vmem:[%s4592_s1 + $0x68] ss:$44 sps:$4 sm:$0xff]  }
 0x159   :  { %2197 = vmatprep.subr.bf16.mxu1 %v3121_v16  ;;  %2238 = vmatprep.subr.bf16.mxu0 %v3124_v17  ;;  %v3194_v15 = vld [vmem:[%s4592_s1 + $0x748] ss:$44 sps:$4 sm:$0xff]  }
 0x15a   :  { %v3199_v16 = vld [vmem:[%s4592_s1 + $0x14] ss:$44 sps:$4 sm:$0xff]  }
 0x15b   :  { %v3202_v17 = vld [vmem:[%s4592_s1 + $0x6f4] ss:$44 sps:$4 sm:$0xff]  }
 0x15c   :  { %2198 = vmatpush1.bf16.msra.mxu1 %v3119_v18  ;;  %2239 = vmatpush1.bf16.msra.mxu0 %v3122_v19  ;;  %v3197_v18 = vld [vmem:[%s4592_s1 + $0x10] ss:$44 sps:$4 sm:$0xff]  }
 0x15d   :  { %2199 = vmatprep.subr.bf16.mxu1 %v3127_v20  ;;  %2240 = vmatprep.subr.bf16.mxu0 %v3130_v21  ;;  %v3200_v19 = vld [vmem:[%s4592_s1 + $0x6f0] ss:$44 sps:$4 sm:$0xff]  }
 0x15e   :  { %v3205_v20 = vld [vmem:[%s4592_s1 + $0x53c] ss:$44 sps:$4 sm:$0xff]  }
 0x15f   :  { %v3208_v21 = vld [vmem:[%s4592_s1 + $0x69c] ss:$44 sps:$4 sm:$0xff]  }
 0x160   :  { %2200 = vmatpush1.bf16.msra.mxu1 %v3125_v23  ;;  %2241 = vmatpush1.bf16.msra.mxu0 %v3128_v24  ;;  %v3206_v23 = vld [vmem:[%s4592_s1 + $0x698] ss:$44 sps:$4 sm:$0xff]  }
 0x161   :  { %2201 = vmatprep.subr.bf16.mxu1 %v3133_v31  ;;  %2250 = vmatprep.subr.bf16.mxu0 %v2080_v32  ;;  %v3211_v24 = vld [vmem:[%s4592_s1 + $0x4e4] ss:$44 sps:$4 sm:$0xff]   ;;  %v3209_v31 = vld [vmem:[%s4592_s1 + $0x4e0] ss:$44 sps:$4 sm:$0xff]  }
 0x162   :  { %v3212_v32 = vld [vmem:[%s4592_s1 + $0x640] ss:$44 sps:$4 sm:$0xff]  }
 0x164   :  { %2202 = vmatpush2.bf16.msra.mxu1 %v3131_v33  ;;  %2251 = vmatpush2.bf16.msra.mxu0 %v2077_v34  ;;  %v3217_v33 = vld [vmem:[%s4592_s1 + $0x48c] ss:$44 sps:$4 sm:$0xff]  }
 0x165   :  { %2203 = vmatprep.subr.bf16.mxu1 %v3139_v35  ;;  %2252 = vmatprep.subr.bf16.mxu0 %v3142_v36  ;;  %v3220_v34 = vld [vmem:[%s4592_s1 + $0x5ec] ss:$44 sps:$4 sm:$0xff]   ;;  %v3215_v35 = vld [vmem:[%s4592_s1 + $0x488] ss:$44 sps:$4 sm:$0xff]  }
 0x166   :  { %v3218_v36 = vld [vmem:[%s4592_s1 + $0x5e8] ss:$44 sps:$4 sm:$0xff]  }
 0x168   :  { %2204 = vmatpush2.bf16.msra.mxu1 %v3137_v37  ;;  %2253 = vmatpush2.bf16.msra.mxu0 %v3140_v38  ;;  %v3223_v37 = vld [vmem:[%s4592_s1 + $0x434] ss:$44 sps:$4 sm:$0xff]  }
 0x169   :  { %2205 = vmatprep.subr.bf16.mxu1 %v3145_v39  ;;  %2254 = vmatprep.subr.bf16.mxu0 %v3148_v40  ;;  %v3226_v38 = vld [vmem:[%s4592_s1 + $0x594] ss:$44 sps:$4 sm:$0xff]   ;;  %v3232_v39 = vld [vmem:[%s4592_s1 + $0x95c] ss:$44 sps:$4 sm:$0x1f]  }
 0x16a   :  { %v3221_v40 = vld [vmem:[%s4592_s1 + $0x430] ss:$44 sps:$4 sm:$0xff]  }
 0x16c   :  { %2206 = vmatpush2.bf16.msra.mxu1 %v3143_v41  ;;  %2255 = vmatpush2.bf16.msra.mxu0 %v3146_v46  ;;  %v3224_v41 = vld [vmem:[%s4592_s1 + $0x590] ss:$44 sps:$4 sm:$0xff]   ;;  %v3230_v46 = vld [vmem:[%s4592_s1 + $0x958] ss:$44 sps:$4 sm:$0x1f]  }
 0x16d   :  { %2207 = vmatprep.subr.bf16.mxu1 %v3151_v47  ;;  %2256 = vmatprep.subr.bf16.mxu0 %v3154_v48  ;;  %v3229_v47 = vld [vmem:[%s4592_s1 + $0x3dc] ss:$44 sps:$4 sm:$0xff]   ;;  %v2086_v48 = vand.u32 %v3232_v39, %v3659_v4  ;;  %v3302_v39 = vld [vmem:[%s4592_s1 + $0x960] ss:$44 sps:$4 sm:$0x1f]  }
 0x170   :  { %2208 = vmatpush2.bf16.msra.mxu1 %v3149_v49  ;;  %2257 = vmatpush2.bf16.msra.mxu0 %v3152_v50  ;;  %v3227_v49 = vld [vmem:[%s4592_s1 + $0x3d8] ss:$44 sps:$4 sm:$0xff]   ;;  %v2083_v50 = vand.u32 %v3230_v46, %v3659_v4  ;;  %v2089_v46 = vand.u32 %v3302_v39, %v3659_v4  ;;  %v3382_v39 = vld [vmem:[%s4592_s1 + $0x654] ss:$44 sps:$4 sm:$0xff]  }
 0x171   :  { %2209 = vmatprep.subr.bf16.mxu1 %v3157_v51  ;;  %2267 = vmatprep.subr.bf16.mxu0 %v3160_v52  ;;  %v3235_v51 = vld [vmem:[%s4592_s1 + $0x384] ss:$44 sps:$4 sm:$0xff]  }
 0x172   :  { %v3238_v52 = vld [vmem:[%s4592_s1 + $0x904] ss:$44 sps:$4 sm:$0xff]  }
 0x173   :  { %2259 = vmatmul.mubr.bf16.vlgmr.msra.gmra.mxu0 %v3749_v45 }
 0x174   :  { %2210 = vmatpush2.bf16.msra.mxu1 %v3155_v53  ;;  %2268 = vmatpush1.bf16.msra.mxu0 %v3158_v54  ;;  %v3233_v53 = vld [vmem:[%s4592_s1 + $0x380] ss:$44 sps:$4 sm:$0xff]  }
 0x175   :  { %2299 = vmatprep.mubr.bf16.mxu0 %v3737_v57  ;;  %2211 = vmatprep.subr.bf16.mxu1 %v3163_v55  ;;  %v3236_v54 = vld [vmem:[%s4592_s1 + $0x900] ss:$44 sps:$4 sm:$0xff]  }
 0x176   :  { %2269 = vmatprep.subr.bf16.mxu0 %v3166_v56  ;;  %v3241_v55 = vld [vmem:[%s4592_s1 + $0x32c] ss:$44 sps:$4 sm:$0xff]  }
 0x177   :  { %v3244_v56 = vld [vmem:[%s4592_s1 + $0x8ac] ss:$44 sps:$4 sm:$0xff]  }
 0x178   :  { %2212 = vmatpush2.bf16.msra.mxu1 %v3161_v43  ;;  %2270 = vmatpush1.bf16.msra.mxu0 %v3164_v42  ;;  %v3239_v43 = vld [vmem:[%s4592_s1 + $0x328] ss:$44 sps:$4 sm:$0xff]  }
 0x179   :  { %2213 = vmatprep.subr.bf16.mxu1 %v3169_v59  ;;  %2271 = vmatprep.subr.bf16.mxu0 %v3172_v60  ;;  %v3242_v42 = vld [vmem:[%s4592_s1 + $0x8a8] ss:$44 sps:$4 sm:$0xff]  }
 0x17a   :  { %v3247_v59 = vld [vmem:[%s4592_s1 + $0x2d4] ss:$44 sps:$4 sm:$0xff]  }
 0x17b   :  { %v3250_v60 = vld [vmem:[%s4592_s1 + $0x854] ss:$44 sps:$4 sm:$0xff]  }
 0x17c   :  { %2214 = vmatpush2.bf16.msra.mxu1 %v3167_v61  ;;  %2272 = vmatpush1.bf16.msra.mxu0 %v3170_v62  ;;  %v3245_v61 = vld [vmem:[%s4592_s1 + $0x2d0] ss:$44 sps:$4 sm:$0xff]  }
 0x17d   :  { %2215 = vmatprep.subr.bf16.mxu1 %v3175_v63  ;;  %2273 = vmatprep.subr.bf16.mxu0 %v3178_v0  ;;  %v3248_v62 = vld [vmem:[%s4592_s1 + $0x850] ss:$44 sps:$4 sm:$0xff]  }
 0x17e   :  { %v3253_v63 = vld [vmem:[%s4592_s1 + $0x284] ss:$44 sps:$4 sm:$0xff]  }
 0x17f   :  { %v3256_v0 = vld [vmem:[%s4592_s1 + $0x804] ss:$44 sps:$4 sm:$0xff]  }
 0x180   :  { %2216 = vmatpush2.bf16.msra.mxu1 %v3173_v1  ;;  %2274 = vmatpush1.bf16.msra.mxu0 %v3176_v2  ;;  %v3251_v1 = vld [vmem:[%s4592_s1 + $0x280] ss:$44 sps:$4 sm:$0xff]  }
 0x181   :  { %2275 = vmatprep.subr.bf16.mxu0 %v3181_v3  ;;  %2308 = vmatprep.subr.bf16.mxu1 %v3184_v5  ;;  %v3254_v2 = vld [vmem:[%s4592_s1 + $0x800] ss:$44 sps:$4 sm:$0xff]  }
 0x182   :  { %v3259_v3 = vld [vmem:[%s4592_s1 + $0x22c] ss:$44 sps:$4 sm:$0xff]  }
 0x183   :  { %2218 = vmatmul.mubr.bf16.vlgmr.msra.gmra.mxu1 %v3747_v44  ;;  %v3262_v5 = vld [vmem:[%s4592_s1 + $0x7ac] ss:$44 sps:$4 sm:$0xff]  }
 0x184   :  { %2276 = vmatpush1.bf16.msra.mxu0 %v3179_v6  ;;  %2309 = vmatpush1.bf16.msra.mxu1 %v3182_v7  ;;  %v3257_v6 = vld [vmem:[%s4592_s1 + $0x228] ss:$44 sps:$4 sm:$0xff]  }
 0x185   :  { %2959 = vmatprep.mubr.msk.bf16.mxu1 %vm27_vm0, %v3739_v58  ;;  %2277 = vmatprep.subr.bf16.mxu0 %v3187_v8  ;;  %v3260_v7 = vld [vmem:[%s4592_s1 + $0x7a8] ss:$44 sps:$4 sm:$0xff]  }
 0x186   :  { %2310 = vmatprep.subr.bf16.mxu1 %v3190_v9  ;;  %v3265_v8 = vld [vmem:[%s4592_s1 + $0x1d4] ss:$44 sps:$4 sm:$0xff]  }
 0x187   :  { %v3268_v9 = vld [vmem:[%s4592_s1 + $0x754] ss:$44 sps:$4 sm:$0xff]  }
 0x188   :  { %2278 = vmatpush1.bf16.msra.mxu0 %v3185_v10  ;;  %2311 = vmatpush1.bf16.msra.mxu1 %v3188_v11  ;;  %v3263_v10 = vld [vmem:[%s4592_s1 + $0x1d0] ss:$44 sps:$4 sm:$0xff]  }
 0x189   :  { %2279 = vmatprep.subr.bf16.mxu0 %v3193_v12  ;;  %2312 = vmatprep.subr.bf16.mxu1 %v3196_v13  ;;  %v3266_v11 = vld [vmem:[%s4592_s1 + $0x750] ss:$44 sps:$4 sm:$0xff]  }
 0x18a   :  { %v3271_v12 = vld [vmem:[%s4592_s1 + $0x17c] ss:$44 sps:$4 sm:$0xff]  }
 0x18b   :  { %v3274_v13 = vld [vmem:[%s4592_s1 + $0x6fc] ss:$44 sps:$4 sm:$0xff]  }
 0x18c   :  { %2280 = vmatpush1.bf16.msra.mxu0 %v3191_v14  ;;  %2313 = vmatpush1.bf16.msra.mxu1 %v3194_v15  ;;  %v3269_v14 = vld [vmem:[%s4592_s1 + $0x178] ss:$44 sps:$4 sm:$0xff]  }
 0x18d   :  { %2281 = vmatprep.subr.bf16.mxu0 %v3199_v16  ;;  %2314 = vmatprep.subr.bf16.mxu1 %v3202_v17  ;;  %v3272_v15 = vld [vmem:[%s4592_s1 + $0x6f8] ss:$44 sps:$4 sm:$0xff]  }
 0x18e   :  { %v3277_v16 = vld [vmem:[%s4592_s1 + $0x124] ss:$44 sps:$4 sm:$0xff]  }
 0x18f   :  { %v3280_v17 = vld [vmem:[%s4592_s1 + $0x6a4] ss:$44 sps:$4 sm:$0xff]  }
 0x190   :  { %2282 = vmatpush1.bf16.msra.mxu0 %v3197_v18  ;;  %2315 = vmatpush1.bf16.msra.mxu1 %v3200_v19  ;;  %v3275_v18 = vld [vmem:[%s4592_s1 + $0x120] ss:$44 sps:$4 sm:$0xff]  }
 0x191   :  { %2283 = vmatprep.subr.bf16.mxu0 %v3205_v20  ;;  %2316 = vmatprep.subr.bf16.mxu1 %v3208_v21  ;;  %v3278_v19 = vld [vmem:[%s4592_s1 + $0x6a0] ss:$44 sps:$4 sm:$0xff]  }
 0x192   :  { %v3283_v20 = vld [vmem:[%s4592_s1 + $0xcc] ss:$44 sps:$4 sm:$0xff]  }
 0x193   :  { %v3286_v21 = vld [vmem:[%s4592_s1 + $0x64c] ss:$44 sps:$4 sm:$0xff]  }
 0x194   :  { %2284 = vmatpush2.bf16.msra.mxu0 %v3203_v22  ;;  %2317 = vmatpush1.bf16.msra.mxu1 %v3206_v23  ;;  %v3281_v22 = vld [vmem:[%s4592_s1 + $0xc8] ss:$44 sps:$4 sm:$0xff]  }
 0x195   :  { %2285 = vmatprep.subr.bf16.mxu0 %v3211_v24  ;;  %2318 = vmatprep.subr.bf16.mxu1 %v3214_v30  ;;  %v3284_v23 = vld [vmem:[%s4592_s1 + $0x648] ss:$44 sps:$4 sm:$0xff]  }
 0x196   :  { %v3289_v24 = vld [vmem:[%s4592_s1 + $0x74] ss:$44 sps:$4 sm:$0xff]  }
 0x197   :  { %v3292_v30 = vld [vmem:[%s4592_s1 + $0x5f4] ss:$44 sps:$4 sm:$0xff]  }
 0x198   :  { %2286 = vmatpush2.bf16.msra.mxu0 %v3209_v31  ;;  %2319 = vmatpush1.bf16.msra.mxu1 %v3212_v32  ;;  %v3287_v31 = vld [vmem:[%s4592_s1 + $0x70] ss:$44 sps:$4 sm:$0xff]  }
 0x199   :  { %2287 = vmatprep.subr.bf16.mxu0 %v3217_v33  ;;  %2320 = vmatprep.subr.bf16.mxu1 %v3220_v34  ;;  %v3290_v32 = vld [vmem:[%s4592_s1 + $0x5f0] ss:$44 sps:$4 sm:$0xff]  }
 0x19a   :  { %v3295_v33 = vld [vmem:[%s4592_s1 + $0x1c] ss:$44 sps:$4 sm:$0xff]  }
 0x19b   :  { %v3298_v34 = vld [vmem:[%s4592_s1 + $0x59c] ss:$44 sps:$4 sm:$0xff]  }
 0x19c   :  { %2288 = vmatpush2.bf16.msra.mxu0 %v3215_v35  ;;  %2321 = vmatpush1.bf16.msra.mxu1 %v3218_v36  ;;  %v3304_v35 = vld [vmem:[%s4592_s1 + $0x964] ss:$44 sps:$4 sm:$0x1f]  }
 0x19d   :  { %2289 = vmatprep.subr.bf16.mxu0 %v3223_v37  ;;  %2322 = vmatprep.subr.bf16.mxu1 %v3226_v38  ;;  %v3293_v36 = vld [vmem:[%s4592_s1 + $0x18] ss:$44 sps:$4 sm:$0xff]  }
 0x19e   :  { %v3296_v37 = vld [vmem:[%s4592_s1 + $0x598] ss:$44 sps:$4 sm:$0xff]  }
 0x19f   :  { %v3301_v38 = vld [vmem:[%s4592_s1 + $0x544] ss:$44 sps:$4 sm:$0xff]  }
 0x1a0   :  { %2290 = vmatpush2.bf16.msra.mxu0 %v3221_v40  ;;  %2323 = vmatpush1.bf16.msra.mxu1 %v3224_v41  ;;  %v2092_v40 = vand.u32 %v3304_v35, %v3659_v4  ;;  %v3299_v41 = vld [vmem:[%s4592_s1 + $0x540] ss:$44 sps:$4 sm:$0xff]  }
 0x1a1   :  { %2291 = vmatprep.subr.bf16.mxu0 %v3229_v47  ;;  %2332 = vmatprep.subr.bf16.mxu1 %v2086_v48  ;;  %v3307_v47 = vld [vmem:[%s4592_s1 + $0x4ec] ss:$44 sps:$4 sm:$0xff]  }
 0x1a2   :  { %v3310_v48 = vld [vmem:[%s4592_s1 + $0x90c] ss:$44 sps:$4 sm:$0xff]  }
 0x1a3   :  { %v3373_v35 = vld [vmem:[%s4592_s1 + $0x54c] ss:$44 sps:$4 sm:$0xff]  }
 0x1a4   :  { %2292 = vmatpush2.bf16.msra.mxu0 %v3227_v49  ;;  %2333 = vmatpush2.bf16.msra.mxu1 %v2083_v50  ;;  %v3305_v49 = vld [vmem:[%s4592_s1 + $0x4e8] ss:$44 sps:$4 sm:$0xff]  }
 0x1a5   :  { %2293 = vmatprep.subr.bf16.mxu0 %v3235_v51  ;;  %2334 = vmatprep.subr.bf16.mxu1 %v3238_v52  ;;  %v3308_v50 = vld [vmem:[%s4592_s1 + $0x908] ss:$44 sps:$4 sm:$0xff]  }
 0x1a6   :  { %v3313_v51 = vld [vmem:[%s4592_s1 + $0x494] ss:$44 sps:$4 sm:$0xff]  }
 0x1a7   :  { %v3316_v52 = vld [vmem:[%s4592_s1 + $0x8b4] ss:$44 sps:$4 sm:$0xff]  }
 0x1a8   :  { %2294 = vmatpush2.bf16.msra.mxu0 %v3233_v53  ;;  %2335 = vmatpush2.bf16.msra.mxu1 %v3236_v54  ;;  %v3311_v53 = vld [vmem:[%s4592_s1 + $0x490] ss:$44 sps:$4 sm:$0xff]  }
 0x1a9   :  { %2295 = vmatprep.subr.bf16.mxu0 %v3241_v55  ;;  %2336 = vmatprep.subr.bf16.mxu1 %v3244_v56  ;;  %v3314_v54 = vld [vmem:[%s4592_s1 + $0x8b0] ss:$44 sps:$4 sm:$0xff]  }
 0x1aa   :  { %v3319_v55 = vld [vmem:[%s4592_s1 + $0x43c] ss:$44 sps:$4 sm:$0xff]  }
 0x1ab   :  { %v3322_v56 = vld [vmem:[%s4592_s1 + $0x85c] ss:$44 sps:$4 sm:$0xff]  }
 0x1ac   :  { %2296 = vmatpush2.bf16.msra.mxu0 %v3239_v43  ;;  %2337 = vmatpush2.bf16.msra.mxu1 %v3242_v42  ;;  %v3317_v43 = vld [vmem:[%s4592_s1 + $0x438] ss:$44 sps:$4 sm:$0xff]  }
 0x1ad   :  { %2297 = vmatprep.subr.bf16.mxu0 %v3247_v59  ;;  %2338 = vmatprep.subr.bf16.mxu1 %v3250_v60  ;;  %v3320_v42 = vld [vmem:[%s4592_s1 + $0x858] ss:$44 sps:$4 sm:$0xff]  }
 0x1ae   :  { %v3325_v59 = vld [vmem:[%s4592_s1 + $0x3e4] ss:$44 sps:$4 sm:$0xff]   ;;  %v3328_v60 = vld [vmem:[%s4592_s1 + $0x28c] ss:$44 sps:$4 sm:$0xff]  }
 0x1b0   :  { %2298 = vmatpush2.bf16.msra.mxu0 %v3245_v61  ;;  %2339 = vmatpush2.bf16.msra.mxu1 %v3248_v62  ;;  %v3323_v61 = vld [vmem:[%s4592_s1 + $0x3e0] ss:$44 sps:$4 sm:$0xff]   ;;  %v3326_v62 = vld [vmem:[%s4592_s1 + $0x288] ss:$44 sps:$4 sm:$0xff]  }
 0x1b1   :  { %2349 = vmatprep.subr.bf16.mxu1 %v3253_v63  ;;  %2390 = vmatprep.subr.bf16.mxu0 %v3256_v0  ;;  %v3331_v63 = vld [vmem:[%s4592_s1 + $0x38c] ss:$44 sps:$4 sm:$0xff]   ;;  %v3334_v0 = vld [vmem:[%s4592_s1 + $0x234] ss:$44 sps:$4 sm:$0xff]  }
 0x1b3   :  { %2300 = vmatmul.mubr.bf16.vlgmr.msra.gmra.mxu0 %v3747_v44  ;;  %2341 = vmatmul.mubr.bf16.vlgmr.msra.gmra.mxu1 %v3749_v45 }
 0x1b4   :  { %2350 = vmatpush1.bf16.msra.mxu1 %v3251_v1  ;;  %2381 = vmatprep.mubr.bf16.mxu1 %v3737_v57  ;;  %v3329_v1 = vld [vmem:[%s4592_s1 + $0x388] ss:$44 sps:$4 sm:$0xff]  }
 0x1b5   :  { %2391 = vmatpush1.bf16.msra.mxu0 %v3254_v2  ;;  %2960 = vmatprep.mubr.msk.bf16.mxu0 %vm27_vm0, %v3739_v58  ;;  %v3332_v2 = vld [vmem:[%s4592_s1 + $0x230] ss:$44 sps:$4 sm:$0xff]  }
 0x1b6   :  { %2351 = vmatprep.subr.bf16.mxu1 %v3259_v3  ;;  %2392 = vmatprep.subr.bf16.mxu0 %v3262_v5  ;;  %v3337_v3 = vld [vmem:[%s4592_s1 + $0x334] ss:$44 sps:$4 sm:$0xff]   ;;  %v3340_v5 = vld [vmem:[%s4592_s1 + $0x1dc] ss:$44 sps:$4 sm:$0xff]  }
 0x1b8   :  { %2352 = vmatpush1.bf16.msra.mxu1 %v3257_v6  ;;  %v3335_v6 = vld [vmem:[%s4592_s1 + $0x330] ss:$44 sps:$4 sm:$0xff]  }
 0x1b9   :  { %2393 = vmatpush1.bf16.msra.mxu0 %v3260_v7  ;;  %2353 = vmatprep.subr.bf16.mxu1 %v3265_v8  ;;  %v3338_v7 = vld [vmem:[%s4592_s1 + $0x1d8] ss:$44 sps:$4 sm:$0xff]   ;;  %v3343_v8 = vld [vmem:[%s4592_s1 + $0x2dc] ss:$44 sps:$4 sm:$0xff]  }
 0x1ba   :  { %2394 = vmatprep.subr.bf16.mxu0 %v3268_v9  ;;  %v3346_v9 = vld [vmem:[%s4592_s1 + $0x184] ss:$44 sps:$4 sm:$0xff]  }
 0x1bc   :  { %2354 = vmatpush1.bf16.msra.mxu1 %v3263_v10  ;;  %v3341_v10 = vld [vmem:[%s4592_s1 + $0x2d8] ss:$44 sps:$4 sm:$0xff]  }
 0x1bd   :  { %2395 = vmatpush1.bf16.msra.mxu0 %v3266_v11  ;;  %2355 = vmatprep.subr.bf16.mxu1 %v3271_v12  ;;  %v3344_v11 = vld [vmem:[%s4592_s1 + $0x180] ss:$44 sps:$4 sm:$0xff]  }
 0x1be   :  { %2396 = vmatprep.subr.bf16.mxu0 %v3274_v13  ;;  %v3352_v12 = vld [vmem:[%s4592_s1 + $0x80c] ss:$44 sps:$4 sm:$0xff]  }
 0x1bf   :  { %v3349_v13 = vld [vmem:[%s4592_s1 + $0x12c] ss:$44 sps:$4 sm:$0xff]  }
 0x1c0   :  { %2356 = vmatpush1.bf16.msra.mxu1 %v3269_v14  ;;  %v3350_v14 = vld [vmem:[%s4592_s1 + $0x808] ss:$44 sps:$4 sm:$0xff]  }
 0x1c1   :  { %2397 = vmatpush1.bf16.msra.mxu0 %v3272_v15  ;;  %2357 = vmatprep.subr.bf16.mxu1 %v3277_v16  ;;  %v3347_v15 = vld [vmem:[%s4592_s1 + $0x128] ss:$44 sps:$4 sm:$0xff]  }
 0x1c2   :  { %2398 = vmatprep.subr.bf16.mxu0 %v3280_v17  ;;  %v3358_v16 = vld [vmem:[%s4592_s1 + $0x7b4] ss:$44 sps:$4 sm:$0xff]  }
 0x1c3   :  { %v3355_v17 = vld [vmem:[%s4592_s1 + $0xd4] ss:$44 sps:$4 sm:$0xff]  }
 0x1c4   :  { %2358 = vmatpush1.bf16.msra.mxu1 %v3275_v18  ;;  %v3356_v18 = vld [vmem:[%s4592_s1 + $0x7b0] ss:$44 sps:$4 sm:$0xff]  }
 0x1c5   :  { %2399 = vmatpush1.bf16.msra.mxu0 %v3278_v19  ;;  %2359 = vmatprep.subr.bf16.mxu1 %v3283_v20  ;;  %v3353_v19 = vld [vmem:[%s4592_s1 + $0xd0] ss:$44 sps:$4 sm:$0xff]  }
 0x1c6   :  { %2400 = vmatprep.subr.bf16.mxu0 %v3286_v21  ;;  %v3364_v20 = vld [vmem:[%s4592_s1 + $0x75c] ss:$44 sps:$4 sm:$0xff]  }
 0x1c7   :  { %v3361_v21 = vld [vmem:[%s4592_s1 + $0x7c] ss:$44 sps:$4 sm:$0xff]  }
 0x1c8   :  { %2360 = vmatpush1.bf16.msra.mxu1 %v3281_v22  ;;  %v3362_v22 = vld [vmem:[%s4592_s1 + $0x758] ss:$44 sps:$4 sm:$0xff]  }
 0x1c9   :  { %2401 = vmatpush1.bf16.msra.mxu0 %v3284_v23  ;;  %2361 = vmatprep.subr.bf16.mxu1 %v3289_v24  ;;  %v3359_v23 = vld [vmem:[%s4592_s1 + $0x78] ss:$44 sps:$4 sm:$0xff]  }
 0x1ca   :  { %2402 = vmatprep.subr.bf16.mxu0 %v3292_v30  ;;  %v3370_v24 = vld [vmem:[%s4592_s1 + $0x704] ss:$44 sps:$4 sm:$0xff]  }
 0x1cb   :  { %v3367_v30 = vld [vmem:[%s4592_s1 + $0x24] ss:$44 sps:$4 sm:$0xff]  }
 0x1cc   :  { %2362 = vmatpush1.bf16.msra.mxu1 %v3287_v31  ;;  %v3368_v31 = vld [vmem:[%s4592_s1 + $0x700] ss:$44 sps:$4 sm:$0xff]  }
 0x1cd   :  { %2403 = vmatpush1.bf16.msra.mxu0 %v3290_v32  ;;  %2363 = vmatprep.subr.bf16.mxu1 %v3295_v33  ;;  %v3365_v32 = vld [vmem:[%s4592_s1 + $0x20] ss:$44 sps:$4 sm:$0xff]  }
 0x1ce   :  { %2404 = vmatprep.subr.bf16.mxu0 %v3298_v34  ;;  %v3376_v33 = vld [vmem:[%s4592_s1 + $0x6ac] ss:$44 sps:$4 sm:$0xff]   ;;  %v4350_v34 = vld [vmem:[%s4595_s2] sm:$0xff] }
 0x1d0   :  { %2364 = vmatpush1.bf16.msra.mxu1 %v3293_v36  ;;  %v3374_v36 = vld [vmem:[%s4592_s1 + $0x6a8] ss:$44 sps:$4 sm:$0xff]  }
 0x1d1   :  { %2405 = vmatpush1.bf16.msra.mxu0 %v3296_v37  ;;  %2365 = vmatprep.subr.bf16.mxu1 %v3301_v38  ;;  %v454_v37 = vrot.slane %v4350_v34, %v3714_v28  ;;  %v3371_v38 = vld [vmem:[%s4592_s1 + $0x548] ss:$44 sps:$4 sm:$0xff]  }
 0x1d2   :  { %2414 = vmatprep.subr.bf16.mxu0 %v2092_v40  ;;  %v458_v40 = vrot.slane %v4350_v34, %v3708_v26 }
 0x1d4   :  { %2366 = vmatpush2.bf16.msra.mxu1 %v3299_v41  ;;  %v3379_v41 = vld [vmem:[%s4592_s1 + $0x4f4] ss:$44 sps:$4 sm:$0xff]  }
 0x1d5   :  { %2415 = vmatpush2.bf16.msra.mxu0 %v2089_v46  ;;  %2367 = vmatprep.subr.bf16.mxu1 %v3307_v47 }
 0x1d6   :  { %2416 = vmatprep.subr.bf16.mxu0 %v3310_v48 }
 0x1d8   :  { %2368 = vmatpush2.bf16.msra.mxu1 %v3305_v49  ;;  %v3380_v49 = vld [vmem:[%s4592_s1 + $0x650] ss:$44 sps:$4 sm:$0xff]  }
 0x1d9   :  { %2417 = vmatpush2.bf16.msra.mxu0 %v3308_v50  ;;  %2369 = vmatprep.subr.bf16.mxu1 %v3313_v51 }
 0x1da   :  { %2418 = vmatprep.subr.bf16.mxu0 %v3316_v52  ;;  %v3377_v52 = vld [vmem:[%s4592_s1 + $0x4f0] ss:$44 sps:$4 sm:$0xff]  }
 0x1dc   :  { %2370 = vmatpush2.bf16.msra.mxu1 %v3311_v53  ;;  %v3388_v53 = vld [vmem:[%s4592_s1 + $0x5fc] ss:$44 sps:$4 sm:$0xff]  }
 0x1dd   :  { %2419 = vmatpush2.bf16.msra.mxu0 %v3314_v54  ;;  %2371 = vmatprep.subr.bf16.mxu1 %v3319_v55  ;;  %v3385_v55 = vld [vmem:[%s4592_s1 + $0x49c] ss:$44 sps:$4 sm:$0xff]  }
 0x1de   :  { %2420 = vmatprep.subr.bf16.mxu0 %v3322_v56 }
 0x1e0   :  { %2372 = vmatpush2.bf16.msra.mxu1 %v3317_v43 }
 0x1e1   :  { %2421 = vmatpush2.bf16.msra.mxu0 %v3320_v42  ;;  %2373 = vmatprep.subr.bf16.mxu1 %v3325_v59 }
 0x1e2   :  { %2431 = vmatprep.subr.bf16.mxu0 %v3328_v60  ;;  %v3383_v60 = vld [vmem:[%s4592_s1 + $0x498] ss:$44 sps:$4 sm:$0xff]  }
 0x1e4   :  { %2423 = vmatmul.mubr.bf16.vlgmr.msra.gmra.mxu0 %v3749_v45  ;;  %2374 = vmatpush2.bf16.msra.mxu1 %v3323_v61  ;;  %v3386_v61 = vld [vmem:[%s4592_s1 + $0x5f8] ss:$44 sps:$4 sm:$0xff]  }
 0x1e5   :  { %2432 = vmatpush1.bf16.msra.mxu0 %v3326_v62  ;;  %2463 = vmatprep.mubr.bf16.mxu0 %v3737_v57 }
 0x1e6   :  { %2375 = vmatprep.subr.bf16.mxu1 %v3331_v63  ;;  %2433 = vmatprep.subr.bf16.mxu0 %v3334_v0  ;;  %v3394_v0 = vld [vmem:[%s4592_s1 + $0x5a4] ss:$44 sps:$4 sm:$0xff]  }
 0x1e8   :  { %2376 = vmatpush2.bf16.msra.mxu1 %v3329_v1  ;;  %v3400_v1 = vld [vmem:[%s4592_s1 + $0x96c] ss:$44 sps:$4 sm:$0x1f]  }
 0x1e9   :  { %2434 = vmatpush1.bf16.msra.mxu0 %v3332_v2  ;;  %2377 = vmatprep.subr.bf16.mxu1 %v3337_v3  ;;  %v3391_v3 = vld [vmem:[%s4592_s1 + $0x444] ss:$44 sps:$4 sm:$0xff]  }
 0x1ea   :  { %2435 = vmatprep.subr.bf16.mxu0 %v3340_v5  ;;  %v3392_v5 = vld [vmem:[%s4592_s1 + $0x5a0] ss:$44 sps:$4 sm:$0xff]  }
 0x1ec   :  { %2378 = vmatpush2.bf16.msra.mxu1 %v3335_v6  ;;  %v3398_v6 = vld [vmem:[%s4592_s1 + $0x968] ss:$44 sps:$4 sm:$0x1f]  }
 0x1ed   :  { %2436 = vmatpush1.bf16.msra.mxu0 %v3338_v7  ;;  %2379 = vmatprep.subr.bf16.mxu1 %v3343_v8  ;;  %v3389_v7 = vld [vmem:[%s4592_s1 + $0x440] ss:$44 sps:$4 sm:$0xff]   ;;  %v2098_v8 = vand.u32 %v3400_v1, %v3659_v4 }
 0x1ee   :  { %2437 = vmatprep.subr.bf16.mxu0 %v3346_v9  ;;  %v3397_v9 = vld [vmem:[%s4592_s1 + $0x3ec] ss:$44 sps:$4 sm:$0xff]  }
 0x1f0   :  { %2380 = vmatpush2.bf16.msra.mxu1 %v3341_v10  ;;  %v2095_v10 = vand.u32 %v3398_v6, %v3659_v4 }
 0x1f1   :  { %2438 = vmatpush1.bf16.msra.mxu0 %v3344_v11  ;;  %2472 = vmatprep.subr.bf16.mxu1 %v3352_v12  ;;  %v3395_v11 = vld [vmem:[%s4592_s1 + $0x3e8] ss:$44 sps:$4 sm:$0xff]  }
 0x1f2   :  { %2439 = vmatprep.subr.bf16.mxu0 %v3349_v13  ;;  %v3406_v12 = vld [vmem:[%s4592_s1 + $0x914] ss:$44 sps:$4 sm:$0xff]  }
 0x1f3   :  { %2382 = vmatmul.mubr.bf16.vlgmr.msra.gmra.mxu1 %v3747_v44  ;;  %v3403_v13 = vld [vmem:[%s4592_s1 + $0x394] ss:$44 sps:$4 sm:$0xff]  }
 0x1f4   :  { %2473 = vmatpush1.bf16.msra.mxu1 %v3350_v14  ;;  %2961 = vmatprep.mubr.msk.bf16.mxu1 %vm27_vm0, %v3739_v58  ;;  %v3404_v14 = vld [vmem:[%s4592_s1 + $0x910] ss:$44 sps:$4 sm:$0xff]  }
 0x1f5   :  { %2440 = vmatpush1.bf16.msra.mxu0 %v3347_v15  ;;  %2474 = vmatprep.subr.bf16.mxu1 %v3358_v16  ;;  %v3401_v15 = vld [vmem:[%s4592_s1 + $0x390] ss:$44 sps:$4 sm:$0xff]  }
 0x1f6   :  { %2441 = vmatprep.subr.bf16.mxu0 %v3355_v17  ;;  %v3412_v16 = vld [vmem:[%s4592_s1 + $0x8bc] ss:$44 sps:$4 sm:$0xff]  }
 0x1f7   :  { %v3409_v17 = vld [vmem:[%s4592_s1 + $0x33c] ss:$44 sps:$4 sm:$0xff]  }
 0x1f8   :  { %2475 = vmatpush1.bf16.msra.mxu1 %v3356_v18  ;;  %v3410_v18 = vld [vmem:[%s4592_s1 + $0x8b8] ss:$44 sps:$4 sm:$0xff]  }
 0x1f9   :  { %2442 = vmatpush1.bf16.msra.mxu0 %v3353_v19  ;;  %2476 = vmatprep.subr.bf16.mxu1 %v3364_v20  ;;  %v3407_v19 = vld [vmem:[%s4592_s1 + $0x338] ss:$44 sps:$4 sm:$0xff]  }
 0x1fa   :  { %2443 = vmatprep.subr.bf16.mxu0 %v3361_v21  ;;  %v3418_v20 = vld [vmem:[%s4592_s1 + $0x864] ss:$44 sps:$4 sm:$0xff]  }
 0x1fb   :  { %v3415_v21 = vld [vmem:[%s4592_s1 + $0x2e4] ss:$44 sps:$4 sm:$0xff]  }
 0x1fc   :  { %2477 = vmatpush1.bf16.msra.mxu1 %v3362_v22  ;;  %v3416_v22 = vld [vmem:[%s4592_s1 + $0x860] ss:$44 sps:$4 sm:$0xff]  }
 0x1fd   :  { %2444 = vmatpush1.bf16.msra.mxu0 %v3359_v23  ;;  %2478 = vmatprep.subr.bf16.mxu1 %v3370_v24  ;;  %v3413_v23 = vld [vmem:[%s4592_s1 + $0x2e0] ss:$44 sps:$4 sm:$0xff]   ;;  %v3419_v24 = vld [vmem:[%s4592_s1 + $0x550] ss:$44 sps:$4 sm:$0xff]  }
 0x1fe   :  { %2445 = vmatprep.subr.bf16.mxu0 %v3367_v30  ;;  %v3420_v30 = vld [vmem:[%s4592_s1 + $0x290] ss:$44 sps:$4 sm:$0xff]  }
 0x200   :  { %2479 = vmatpush1.bf16.msra.mxu1 %v3368_v31  ;;  %v3421_v31 = vld [vmem:[%s4592_s1 + $0x810] ss:$44 sps:$4 sm:$0xff]  }
 0x201   :  { %2446 = vmatpush1.bf16.msra.mxu0 %v3365_v32  ;;  %2480 = vmatprep.subr.bf16.mxu1 %v3376_v33  ;;  %v3450_v32 = vmov 0   ;;  %v3422_v33 = vld [vmem:[%s4592_s1 + $0x4f8] ss:$44 sps:$4 sm:$0xff]  }
 0x202   :  { %2447 = vmatprep.subr.bf16.mxu0 %v3373_v35  ;;  %v3423_v35 = vld [vmem:[%s4592_s1 + $0x238] ss:$44 sps:$4 sm:$0xff]  }
 0x203   :  { %v2137_v46 = vpop.f32.mrf.mxu0  ;;  %v2178_v47 = vpop.f32.mrf.mxu1 }
 0x204   :  { %v2138_v48 = vadd.f32 %v2137_v46, %v454_v37  ;;  %2481 = vmatpush1.bf16.msra.mxu1 %v3374_v36  ;;  %v3424_v36 = vld [vmem:[%s4592_s1 + $0x7b8] ss:$44 sps:$4 sm:$0xff]   ;;  %v3425_v37 = vld [vmem:[%s4592_s1 + $0x4a0] ss:$44 sps:$4 sm:$0xff]   ;;  %v3432_v46 = vld [vmem:[%s4592_s1 + $0x130] ss:$44 sps:$4 sm:$0xff]  }
 0x205   :  { %2448 = vmatpush2.bf16.msra.mxu0 %v3371_v38  ;;  %v2139_v50 = vpop.f32.mrf.mxu0  ;;  %v2180_v51 = vpop.f32.mrf.mxu1  ;;  %2482 = vmatprep.subr.bf16.mxu1 %v3382_v39  ;;  %v3427_v38 = vld [vmem:[%s4592_s1 + $0x760] ss:$44 sps:$4 sm:$0xff]   ;;  %v3428_v39 = vld [vmem:[%s4592_s1 + $0x448] ss:$44 sps:$4 sm:$0xff]  }
 0x206   :  { %v2140_v54 = vadd.f32 %v2139_v50, %v458_v40  ;;  %2449 = vmatprep.subr.bf16.mxu0 %v3379_v41  ;;  %v2179_v42 = vadd.f32 %v2178_v47, %v2138_v48  ;;  %v3430_v40 = vld [vmem:[%s4592_s1 + $0x708] ss:$44 sps:$4 sm:$0xff]   ;;  %v3431_v41 = vld [vmem:[%s4592_s1 + $0x3f0] ss:$44 sps:$4 sm:$0xff]   ;;  %v3434_v48 = vld [vmem:[%s4592_s1 + $0x398] ss:$44 sps:$4 sm:$0xff]  }
 0x207   :  { %v2141_v56 = vpop.f32.mrf.mxu0  ;;  %v2182_v43 = vpop.f32.mrf.mxu1  ;;  %v3433_v47 = vld [vmem:[%s4592_s1 + $0x6b0] ss:$44 sps:$4 sm:$0xff]   ;;  %v3435_v50 = vld [vmem:[%s4592_s1 + $0xd8] ss:$44 sps:$4 sm:$0xff]  }
 0x208   :  { %v2181_v59 = vadd.f32 %v2180_v51, %v2140_v54  ;;  %2483 = vmatpush1.bf16.msra.mxu1 %v3380_v49  ;;  %v3439_v43 = vld [vmem:[%s4592_s1 + $0x600] ss:$44 sps:$4 sm:$0xff]  }
 0x209   :  { %2450 = vmatpush2.bf16.msra.mxu0 %v3377_v52  ;;  %v2142_v62 = vpop.f32.mrf.mxu0  ;;  %v2183_v63 = vpop.f32.mrf.mxu1  ;;  %2484 = vmatprep.subr.bf16.mxu1 %v3388_v53  ;;  %v3436_v52 = vld [vmem:[%s4592_s1 + $0x658] ss:$44 sps:$4 sm:$0xff]   ;;  %v3437_v53 = vld [vmem:[%s4592_s1 + $0x340] ss:$44 sps:$4 sm:$0xff]  }
 0x20a   :  { %v2969_v2 = vpack.c.bf16 %v2181_v59, %v2179_v42  ;;  %2451 = vmatprep.subr.bf16.mxu0 %v3385_v55  ;;  %v3438_v55 = vld [vmem:[%s4592_s1 + $0x80] ss:$44 sps:$4 sm:$0xff]   ;;  %v3440_v42 = vld [vmem:[%s4592_s1 + $0x2e8] ss:$44 sps:$4 sm:$0xff]   ;;  %v462_v62 = vrot.slane %v4350_v34, %v3717_v29 }
 0x20b   :  { %v3441_v59 = vld [vmem:[%s4592_s1 + $0x28] ss:$44 sps:$4 sm:$0xff]  }
 0x20c   :  { %2638 = vst [vmem:[%s4596_s5] sm:$0xff] %v2969_v2  ;;  %2485 = vmatpush1.bf16.msra.mxu1 %v3386_v61  ;;  %v3443_v61 = vld [vmem:[%s4592_s1 + $0x970] ss:$44 sps:$4 sm:$0x1f]  }
 0x20d   :  { %2452 = vmatpush2.bf16.msra.mxu0 %v3383_v60  ;;  %2486 = vmatprep.subr.bf16.mxu1 %v3394_v0  ;;  %v3442_v60 = vld [vmem:[%s4592_s1 + $0x5a8] ss:$44 sps:$4 sm:$0xff]   ;;  %v2101_v63 = vand.u32 %v3443_v61, %v3659_v4  ;;  %v466_v0 = vrot.slane %v4350_v34, %v3711_v27  ;;  %v3445_v27 = vld [vmem:[%s4592_s1 + $0x8c0] ss:$44 sps:$4 sm:$0xff]  }
 0x20e   :  { %2453 = vmatprep.subr.bf16.mxu0 %v3391_v3 }
 0x210   :  { %2487 = vmatpush1.bf16.msra.mxu1 %v3392_v5  ;;  %v3444_v5 = vld [vmem:[%s4592_s1 + $0x918] ss:$44 sps:$4 sm:$0xff]  }
 0x211   :  { %2454 = vmatpush2.bf16.msra.mxu0 %v3389_v7  ;;  %2496 = vmatprep.subr.bf16.mxu1 %v2098_v8 }
 0x212   :  { %2455 = vmatprep.subr.bf16.mxu0 %v3397_v9 }
 0x214   :  { %2497 = vmatpush2.bf16.msra.mxu1 %v2095_v10  ;;  %v3446_v10 = vld [vmem:[%s4592_s1 + $0x868] ss:$44 sps:$4 sm:$0xff]  }
 0x215   :  { %2456 = vmatpush2.bf16.msra.mxu0 %v3395_v11  ;;  %2498 = vmatprep.subr.bf16.mxu1 %v3406_v12  ;;  %v469_v11 = vsub.s32 4, %v3705_v25  ;;  %v473_v12 = vsub.s32 5, %v3705_v25 }
 0x216   :  { %2457 = vmatprep.subr.bf16.mxu0 %v3403_v13 }
 0x217   :  { %v470_v13 = vrot.slane %v4350_v34, %v469_v11 }
 0x218   :  { %2499 = vmatpush2.bf16.msra.mxu1 %v3404_v14  ;;  %v474_v14 = vrot.slane %v4350_v34, %v473_v12 }
 0x219   :  { %2458 = vmatpush2.bf16.msra.mxu0 %v3401_v15  ;;  %2500 = vmatprep.subr.bf16.mxu1 %v3412_v16 }
 0x21a   :  { %2459 = vmatprep.subr.bf16.mxu0 %v3409_v17 }
 0x21c   :  { %2501 = vmatpush2.bf16.msra.mxu1 %v3410_v18 }
 0x21d   :  { %2460 = vmatpush2.bf16.msra.mxu0 %v3407_v19  ;;  %2502 = vmatprep.subr.bf16.mxu1 %v3418_v20 }
 0x21e   :  { %2461 = vmatprep.subr.bf16.mxu0 %v3415_v21 }
 0x220   :  { %2503 = vmatpush2.bf16.msra.mxu1 %v3416_v22 }
 0x221   :  { %2462 = vmatpush2.bf16.msra.mxu0 %v3413_v23  ;;  %2975 = vmatprep.subr.bf16.mxu1 %v3419_v24 }
 0x222   :  { %2553 = vmatprep.subr.bf16.mxu0 %v3450_v32 }
 0x223   :  { %2505 = vmatmul.mubr.bf16.vlgmr.msra.gmra.mxu1 %v3749_v45 }
 0x224   :  { %2464 = vmatmul.mubr.bf16.vlgmr.msra.gmra.mxu0 %v3747_v44  ;;  %2976 = vmatpush3.bf16.msra.mxu1 %v3420_v30 }
 0x225   :  { %2545 = vmatprep.mubr.bf16.mxu1 %v3737_v57  ;;  %2554 = vmatpush1.bf16.msra.mxu0 %v3421_v31  ;;  %v3426_v57 = vld [vmem:[%s4592_s1 + $0x1e0] ss:$44 sps:$4 sm:$0xff]  }
 0x226   :  { %2962 = vmatprep.mubr.msk.bf16.mxu0 %vm27_vm0, %v3739_v58  ;;  %2977 = vmatprep.subr.bf16.mxu1 %v3422_v33  ;;  %v3429_v58 = vld [vmem:[%s4592_s1 + $0x188] ss:$44 sps:$4 sm:$0xff]  }
 0x227   :  { %2555 = vmatprep.subr.bf16.mxu0 %v3450_v32 }
 0x228   :  { %2978 = vmatpush3.bf16.msra.mxu1 %v3423_v35 }
 0x229   :  { %2556 = vmatpush1.bf16.msra.mxu0 %v3424_v36  ;;  %2979 = vmatprep.subr.bf16.mxu1 %v3425_v37  ;;  %v477_v37 = vsub.s32 6, %v3705_v25 }
 0x22a   :  { %2557 = vmatprep.subr.bf16.mxu0 %v3450_v32 }
 0x22c   :  { %2980 = vmatpush3.bf16.msra.mxu1 %v3426_v57  ;;  %v481_v57 = vsub.s32 7, %v3705_v25  ;;  %v448_v25 = vld [vmem:[%s4595_s2 + $0x8] sm:$0x7] }
 0x22d   :  { %2558 = vmatpush1.bf16.msra.mxu0 %v3427_v38  ;;  %2981 = vmatprep.subr.bf16.mxu1 %v3428_v39  ;;  %v478_v38 = vrot.slane %v4350_v34, %v477_v37 }
 0x22e   :  { %2559 = vmatprep.subr.bf16.mxu0 %v3450_v32  ;;  %v482_v39 = vrot.slane %v4350_v34, %v481_v57 }
 0x230   :  { %2982 = vmatpush3.bf16.msra.mxu1 %v3429_v58 }
 0x231   :  { %2560 = vmatpush1.bf16.msra.mxu0 %v3430_v40  ;;  %2983 = vmatprep.subr.bf16.mxu1 %v3431_v41 }
 0x232   :  { %2561 = vmatprep.subr.bf16.mxu0 %v3450_v32 }
 0x233   :  { %v2260_v49 = vpop.f32.mrf.mxu0 }
 0x234   :  { %2984 = vmatpush3.bf16.msra.mxu1 %v3432_v46 }
 0x235   :  { %2562 = vmatpush1.bf16.msra.mxu0 %v3433_v47  ;;  %v2262_v51 = vpop.f32.mrf.mxu0  ;;  %2985 = vmatprep.subr.bf16.mxu1 %v3434_v48 }
 0x236   :  { %2563 = vmatprep.subr.bf16.mxu0 %v3450_v32 }
 0x237   :  { %v2264_v54 = vpop.f32.mrf.mxu0 }
 0x238   :  { %2986 = vmatpush3.bf16.msra.mxu1 %v3435_v50 }
 0x239   :  { %2564 = vmatpush1.bf16.msra.mxu0 %v3436_v52  ;;  %v2265_v56 = vpop.f32.mrf.mxu0  ;;  %2987 = vmatprep.subr.bf16.mxu1 %v3437_v53  ;;  %v486_v52 = vrot.slane %v448_v25, %v3714_v28  ;;  %v490_v53 = vrot.slane %v448_v25, %v3708_v26 }
 0x23a   :  { %2565 = vmatprep.subr.bf16.mxu0 %v3450_v32 }
 0x23c   :  { %2988 = vmatpush3.bf16.msra.mxu1 %v3438_v55 }
 0x23d   :  { %2566 = vmatpush1.bf16.msra.mxu0 %v3439_v43  ;;  %2989 = vmatprep.subr.bf16.mxu1 %v3440_v42 }
 0x23e   :  { %2567 = vmatprep.subr.bf16.mxu0 %v3450_v32 }
 0x240   :  { %2990 = vmatpush3.bf16.msra.mxu1 %v3441_v59 }
 0x241   :  { %2568 = vmatpush1.bf16.msra.mxu0 %v3442_v60 }
 0x242   :  { %2577 = vmatprep.subr.bf16.mxu0 %v3450_v32 }
 0x243   :  { %v2219_v1 = vpop.f32.mrf.mxu1  ;;  %2546 = vmatmul.mubr.bf16.vlgmr.msra.gmra.mxu1 %v3747_v44 }
 0x244   :  { %v2220_v2 = vadd.f32 %v2219_v1, %v462_v62 }
 0x245   :  { %2578 = vmatpush2.bf16.msra.mxu0 %v2101_v63  ;;  %v2221_v3 = vpop.f32.mrf.mxu1 }
 0x246   :  { %v2222_v6 = vadd.f32 %v2221_v3, %v466_v0  ;;  %2579 = vmatprep.subr.bf16.mxu0 %v3450_v32  ;;  %v2261_v4 = vadd.f32 %v2260_v49, %v2220_v2 }
 0x247   :  { %v2223_v7 = vpop.f32.mrf.mxu1 }
 0x248   :  { %v2263_v8 = vadd.f32 %v2262_v51, %v2222_v6  ;;  %v494_v6 = vrot.slane %v448_v25, %v3717_v29 }
 0x249   :  { %2580 = vmatpush2.bf16.msra.mxu0 %v3444_v5  ;;  %v2224_v9 = vpop.f32.mrf.mxu1 }
 0x24a   :  { %v2970_v44 = vpack.c.bf16 %v2263_v8, %v2261_v4  ;;  %2581 = vmatprep.subr.bf16.mxu0 %v3450_v32 }
 0x24c   :  { %2639 = vst [vmem:[%s4596_s5 + $0x8] sm:$0xff] %v2970_v44 }
 0x24d   :  { %2582 = vmatpush2.bf16.msra.mxu0 %v3445_v27 }
 0x24e   :  { %2583 = vmatprep.subr.bf16.mxu0 %v3450_v32 }
 0x251   :  { %2584 = vmatpush2.bf16.msra.mxu0 %v3446_v10 }
 0x254   :  { %2586 = vmatmul.mubr.bf16.vlgmr.msra.gmra.mxu0 %v3749_v45 }
 0x273   :  { %v2301_v15 = vpop.f32.mrf.mxu0  ;;  %v2342_v16 = vpop.f32.mrf.mxu1 }
 0x274   :  { %v2302_v17 = vadd.f32 %v2301_v15, %v470_v13 }
 0x275   :  { %v2303_v18 = vpop.f32.mrf.mxu0  ;;  %v2344_v19 = vpop.f32.mrf.mxu1 }
 0x276   :  { %v2304_v20 = vadd.f32 %v2303_v18, %v474_v14  ;;  %v2343_v23 = vadd.f32 %v2342_v16, %v2302_v17 }
 0x277   :  { %v2305_v21 = vpop.f32.mrf.mxu0  ;;  %v2346_v22 = vpop.f32.mrf.mxu1 }
 0x278   :  { %v2345_v24 = vadd.f32 %v2344_v19, %v2304_v20 }
 0x279   :  { %v2306_v30 = vpop.f32.mrf.mxu0  ;;  %v2347_v45 = vpop.f32.mrf.mxu1 }
 0x27a   :  { %v2971_v31 = vpack.c.bf16 %v2345_v24, %v2343_v23 }
 0x27c   :  { %2640 = vst [vmem:[%s4596_s5 + $0x10] sm:$0xff] %v2971_v31 }
 0x2a4   :  { %v2424_v32 = vpop.f32.mrf.mxu0 }
 0x2a6   :  { %v2426_v33 = vpop.f32.mrf.mxu0 }
 0x2a8   :  { %v2428_v35 = vpop.f32.mrf.mxu0 }
 0x2aa   :  { %v2429_v36 = vpop.f32.mrf.mxu0 }
 0x2b3   :  { %v2383_v58 = vpop.f32.mrf.mxu1 }
 0x2b4   :  { %v2384_v40 = vadd.f32 %v2383_v58, %v478_v38 }
 0x2b5   :  { %v2385_v41 = vpop.f32.mrf.mxu1 }
 0x2b6   :  { %v2386_v46 = vadd.f32 %v2385_v41, %v482_v39  ;;  %v2425_v48 = vadd.f32 %v2424_v32, %v2384_v40 }
 0x2b7   :  { %v2387_v47 = vpop.f32.mrf.mxu1 }
 0x2b8   :  { %v2427_v49 = vadd.f32 %v2426_v33, %v2386_v46 }
 0x2b9   :  { %v2388_v50 = vpop.f32.mrf.mxu1 }
 0x2ba   :  { %v2972_v51 = vpack.c.bf16 %v2427_v49, %v2425_v48 }
 0x2bc   :  { %2641 = vst [vmem:[%s4596_s5 + $0x18] sm:$0xff] %v2972_v51 }
 0x2e3   :  { %v2506_v34 = vpop.f32.mrf.mxu1 }
 0x2e4   :  { %v2465_v54 = vpop.f32.mrf.mxu0 }
 0x2e5   :  { %v2466_v55 = vadd.f32 %v2465_v54, %v486_v52  ;;  %v2508_v56 = vpop.f32.mrf.mxu1 }
 0x2e6   :  { %v2467_v43 = vpop.f32.mrf.mxu0 }
 0x2e7   :  { %v2468_v42 = vadd.f32 %v2467_v43, %v490_v53  ;;  %v2510_v59 = vpop.f32.mrf.mxu1  ;;  %v2507_v61 = vadd.f32 %v2506_v34, %v2466_v55 }
 0x2e8   :  { %v2469_v60 = vpop.f32.mrf.mxu0 }
 0x2e9   :  { %v2509_v62 = vadd.f32 %v2508_v56, %v2468_v42  ;;  %v2511_v63 = vpop.f32.mrf.mxu1 }
 0x2ea   :  { %v2470_v0 = vpop.f32.mrf.mxu0 }
 0x2eb   :  { %v2973_v1 = vpack.c.bf16 %v2509_v62, %v2507_v61 }
 0x2ed   :  { %2642 = vst [vmem:[%s4596_s5 + $0x20] sm:$0xff] %v2973_v1 }
 0x303   :  { %v2991_v28 = vpop.f32.mrf.mxu1 }
 0x305   :  { %v2992_v2 = vpop.f32.mrf.mxu1 }
 0x306   :  { %v2993_v5 = vadd.f32 %v2992_v2, %v2991_v28 }
 0x307   :  { %v2994_v3 = vpop.f32.mrf.mxu1 }
 0x308   :  { %v2548_v7 = vadd.f32 %v2993_v5, %v494_v6 }
 0x309   :  { %v2995_v26 = vpop.f32.mrf.mxu1 }
 0x314   :  { %v2587_v4 = vpop.f32.mrf.mxu0 }
 0x315   :  { %v2588_v8 = vadd.f32 %v2587_v4, %v2548_v7 }
 0x316   :  { %v2589_v9 = vpop.f32.mrf.mxu0 }
 0x317   :  { %v2974_v27 = vpack.c.bf16 %v2588_v8, %v2588_v8 }
 0x318   :  { %v2590_v44 = vpop.f32.mrf.mxu0 }
 0x319   :  { %2644 = vst.msk [vmem:[%s4596_s5 + $0x28] sm:$0xf] %vm2643_vm3, %v2974_v27 }
 0x31a   :  { %v2591_v10 = vpop.f32.mrf.mxu0 }

// kernel: t2t_vit_forward.15
= control target key start
LH: loop header
LB: loop body
LE: loop exit
PB: predicated region body
PF: predicated region fallthrough
CT: control target
= control target key end

     0   :  { %s2135_s18 = smov 0   ;;  %s2137_s19 = smov 0   ;;  %s2590_s0 = inlined_call_operand.vmem [shape: bf16[2,8,1323], index: 0, kind: input, shape index: {}, may-alias: {0,1}]   ;;  %s2591_s1 = inlined_call_operand.vmem [shape: bf16[2,8,1323], index: 1, kind: input, shape index: {}, may-alias: {0,1}]   ;;  %s2592_s2 = inlined_call_operand.vmem [shape: bf16[441,441], index: 2, kind: input, shape index: {}]   ;;  %s2593_s3 = inlined_call_operand.vmem [shape: f32[1,441], index: 3, kind: input, shape index: {}]   ;;  %s2594_s4 = inlined_call_operand.vmem [shape: f32[2,8,441], index: 4, kind: input, shape index: {}]   ;;  %s2595_s5 = inlined_call_operand.vmem [shape: f32[2,8,441], index: 5, kind: output, shape index: {}]  }
   0x1   :  { %s2139_s20 = smov 0  }
   0x2 LB: > { %s34_s21 = sadd.s32 1, %s2093_s19  ;;  %p1714_p0 = scmp.ge.s32.totalorder %s2097_s20, 1  ;;  %s2097_s20 = sphi %s2139_s20, %s15_s20   ;;  %s2093_s19 = sphi %s2137_s19, %s2597_s19   ;;  %s2089_s18 = sphi %s2135_s18, %s2596_s18  }
   0x3   : > { %p36_p1 = scmp.ge.s32.totalorder %s34_s21, 2  ;;  %p246_p2 = scmp.lt.s32.totalorder %s2097_s20, 3 }
   0x5   : > { %s2599_s21 = smov (%p36_p1, %s34_s21), 0  ;;  %p247_p3 = pnand %p1714_p0, %p246_p2 }
   0x6   : > { %p300_p4 = scmp.lt.s32.totalorder (!%p247_p3), %s2089_s18, 1  ;;  %s2099_s29 = smov (!%p247_p3), 71  }
   0x7   : > { %250 = sbr.rel (%p247_p3) target bundleno = 1184 (0x4a0), region = 40  ;;  %s2103_s30 = smov (!%p247_p3), 14  }
   0xc   : > { %s2601_s18 = smov (!%p300_p4, %s2089_s18), 1  ;;  %vm347_vm0 = vcmask 465920   ;;  %vm394_vm1 = vcmask 580608   ;;  %vm341_vm2 = vcmask 7168   ;;  %v2100_v19 = vmov -1e+30  }
   0xd   : > { %s1857_s22 = smul.u32 44, %s2601_s18  ;;  %342 = vst.msk [vmem:[#allocation2] sm:$0xff] %vm341_vm2, %v2100_v19  ;;  %v357_v20 = vlaneseq  ;;  %vm493_vm4 = vcmask 64512   ;;  %v2101_v34 = vmov 0   ;;  %v2102_v35 = vmov 0.0   ;;  %s1855_s24 = sshll.u32 %s2601_s18, 5 }
   0xe   : > { %1888 = vset.pattern.permute.xlu1 %v2101_v34  ;;  %1889 = vset.pattern.permute.xlu0 %v2101_v34  ;;  %343 = vst.msk [vmem:[#allocation3] sm:$0xff] %vm341_vm2, %v2102_v35  ;;  %vm551_vm5 = vcmask 113664   ;;  %vm559_vm6 = vcmask 1043456   ;;  %v1921_v19 = vld [vmem:[%s2592_s2 + $0x44] ss:$16 sps:$4 sm:$0xff]   ;;  %vm1386_vm7 = vcmask 1044480   ;;  %s2572_s6 = scalar_lea.vmem %s2595_s5, %s1855_s24 }
   0xf   : > { %s2159_s25 = scalar_lea.vmem %s2591_s1, %s1857_s22  ;;  %s308_s28 = scalar_lea.vmem %s2590_s0, %s1857_s22  ;;  %v358_v21 = vand.u32 127, %v357_v20  ;;  %348 = vst.msk [vmem:[#allocation4 + $0x18] sm:$0xff] %vm347_vm0, %v2102_v35  ;;  %v1939_v35 = vld [vmem:[%s2592_s2 + $0x1e4] ss:$16 sps:$4 sm:$0xff]  }
  0x10   : > { %v352_v0 = vld [vmem:[%s2159_s25 + $0x10] sm:$0xff]  ;;  %v1892_v1 = vld [vmem:[%s2159_s25 + $0xc] ss:$0 sps:$4 sm:$0xff]   ;;  %v2167_v3 = vld [vmem:[%s2159_s25 + $0x18] sm:$0xff] }
  0x11   : > { %v1726_v2 = vcombine.low %v352_v0, %v352_v0  ;;  %v350_v4 = vld [vmem:[%s308_s28 + $0x8] sm:$0xff]  ;;  %v349_v5 = vld [vmem:[%s308_s28] sm:$0xff]  ;;  %386 = vrot.lane.b32.xlu1 %v1892_v1, %s2099_s29  ;;  %v2171_v6 = vcombine.low %v2167_v3, %v2167_v3  ;;  %v1727_v8 = vcombine.high %v352_v0, %v352_v0  ;;  %vm361_vm3 = vcmp.lt.s32.totalorder %v358_v21, 4 }
  0x12   : > { %v1724_v7 = vcombine.high %v350_v4, %v350_v4  ;;  %v1722_v9 = vcombine.high %v349_v5, %v349_v5  ;;  %v1723_v17 = vcombine.low %v350_v4, %v350_v4  ;;  %v1721_v18 = vcombine.low %v349_v5, %v349_v5  ;;  %v354_v38 = vld [vmem:[%s2159_s25 + $0x20] sm:$0xff]  ;;  %v1900_v44 = vld [vmem:[%s2159_s25 + $0x28] ss:$0 sps:$4 sm:$0xff]  }
  0x13   : > { %388 = vrot.lane.b32.xlu0 %v1726_v2, %s2099_s29  ;;  %v1732_v41 = vcombine.low %v354_v38, %v354_v38  ;;  %v1733_v43 = vcombine.high %v354_v38, %v354_v38  ;;  %v1731_v45 = vcombine.high %v2167_v3, %v2167_v3  ;;  %v1901_v0 = vld [vmem:[%s2592_s2 + $0xe0] ss:$16 sps:$4 sm:$0xff]   ;;  %v1903_v1 = vld [vmem:[%s2592_s2 + $0xe4] ss:$16 sps:$4 sm:$0xff]  }
  0x14   : > { %1730 = vmatprep.mubr.msk.bf16.mxu1 %vm347_vm0, %v1724_v7  ;;  %440 = vmatprep.mubr.bf16.mxu0 %v1722_v9  ;;  %v492_v36 = vld [vmem:[#allocation2] sm:$0xff] }
  0x15   : > { %392 = vrot.lane.b32.xlu1 %v2171_v6, %s2099_s29  ;;  %v1906_v2 = vld [vmem:[%s2592_s2 + $0xc4] ss:$16 sps:$4 sm:$0xff]   ;;  %v1904_v3 = vld [vmem:[%s2592_s2 + $0xc0] ss:$16 sps:$4 sm:$0xff]  }
  0x16   : > { %v1916_v4 = vld [vmem:[%s2592_s2 + $0x2e0] ss:$16 sps:$4 sm:$0xff]   ;;  %v1918_v5 = vld [vmem:[%s2592_s2 + $0x2e4] ss:$16 sps:$4 sm:$0xff]  }
  0x17   : > { %390 = vrot.lane.b32.xlu0 %v1727_v8, %s2099_s29  ;;  %v1924_v7 = vld [vmem:[%s2592_s2 + $0x2c4] ss:$16 sps:$4 sm:$0xff]   ;;  %v1922_v8 = vld [vmem:[%s2592_s2 + $0x2c0] ss:$16 sps:$4 sm:$0xff]   ;;  %s2565_s29 = scalar_lea.vmem %s2594_s4, %s1855_s24 }
  0x18   : > { %v1907_v9 = vld [vmem:[%s2592_s2 + $0xa0] ss:$16 sps:$4 sm:$0xff]  }
  0x19   : > { %v1940_v21 = vld [vmem:[%s2592_s2 + $0x260] ss:$16 sps:$4 sm:$0xff]  }
  0x1a   : > { %v1964_v38 = vld [vmem:[%s2592_s2 + $0x360] ss:$16 sps:$4 sm:$0x1f]  }
  0x83   : > { %v387_v10 = vpop.permute.xlu1 %386 }
  0x85   : > { %v389_v11 = vpop.permute.xlu0 %388 }
  0x86   : > { %v395_v16 = vsel %vm394_vm1, %v387_v10, %v389_v11  ;;  %v1930_v10 = vld [vmem:[%s2592_s2 + $0x2a4] ss:$16 sps:$4 sm:$0xff]  }
  0x87   : > { %v393_v12 = vpop.permute.xlu1 %392 }
  0x88   : > { %1729 = vmatprep.subr.msk.bf16.mxu1 %vm347_vm0, %v393_v12 }
  0x89   : > { %v391_v13 = vpop.permute.xlu0 %390 }
  0x8a   : > { %v396_v14 = vsel %vm394_vm1, %v389_v11, %v391_v13  ;;  %v397_v15 = vsel %vm394_vm1, %v391_v13, %v393_v12  ;;  %v1912_v11 = vld [vmem:[%s2592_s2 + $0x84] ss:$16 sps:$4 sm:$0xff]   ;;  %v1928_v12 = vld [vmem:[%s2592_s2 + $0x2a0] ss:$16 sps:$4 sm:$0xff]  }
  0x8b   : > { %422 = vmatprep.subr.bf16.mxu0 %v396_v14  ;;  %463 = vmatpush1.bf16.xpose.msra.mxu1 %v397_v15  ;;  %v1910_v13 = vld [vmem:[%s2592_s2 + $0x80] ss:$16 sps:$4 sm:$0xff]   ;;  %v1936_v14 = vld [vmem:[%s2592_s2 + $0x284] ss:$16 sps:$4 sm:$0xff]  }
  0x8c   : > { %423 = vmatpush1.bf16.xpose.msra.mxu0 %v395_v16  ;;  %v1915_v15 = vld [vmem:[%s2592_s2 + $0x64] ss:$16 sps:$4 sm:$0xff]   ;;  %v1934_v16 = vld [vmem:[%s2592_s2 + $0x280] ss:$16 sps:$4 sm:$0xff]  }
  0x92   : > { %481 = vmatmul.mubr.bf16.vlgmr.msra.gmra.mxu1 %v1723_v17  ;;  %v1913_v17 = vld [vmem:[%s2592_s2 + $0x60] ss:$16 sps:$4 sm:$0xff]  }
  0x93   : > { %441 = vmatmul.mubr.bf16.vlgmr.msra.gmra.mxu0 %v1721_v18  ;;  %645 = vmatprep.mubr.bf16.mxu1 %v2101_v34  ;;  %v1942_v18 = vld [vmem:[%s2592_s2 + $0x264] ss:$16 sps:$4 sm:$0xff]  }
  0x94   : > { %604 = vmatprep.mubr.bf16.mxu0 %v2101_v34  ;;  %v1966_v34 = vld [vmem:[%s2592_s2 + $0x364] ss:$16 sps:$4 sm:$0x1f]  }
 0x152   : > { %v482_v22 = vpop.f32.mrf.mxu1 }
 0x153   : > { %v442_v23 = vpop.f32.mrf.mxu0 }
 0x154   : > { %v483_v24 = vadd.f32 %v482_v22, %v442_v23  ;;  %v484_v25 = vpop.f32.mrf.mxu1  ;;  %v1919_v22 = vld [vmem:[%s2592_s2 + $0x40] ss:$16 sps:$4 sm:$0xff]   ;;  %v1948_v23 = vld [vmem:[%s2592_s2 + $0x244] ss:$16 sps:$4 sm:$0xff]  }
 0x155   : > { %v444_v26 = vpop.f32.mrf.mxu0  ;;  %v1946_v25 = vld [vmem:[%s2592_s2 + $0x240] ss:$16 sps:$4 sm:$0xff]  }
 0x156   : > { %v488_v27 = vmul.f32 0.04761905, %v483_v24  ;;  %v485_v28 = vpop.f32.mrf.mxu1  ;;  %v1927_v24 = vld [vmem:[%s2592_s2 + $0x24] ss:$16 sps:$4 sm:$0xff]   ;;  %v1925_v26 = vld [vmem:[%s2592_s2 + $0x20] ss:$16 sps:$4 sm:$0xff]  }
 0x157   : > { %v445_v29 = vpop.f32.mrf.mxu0  ;;  %v1933_v28 = vld [vmem:[%s2592_s2 + $0x4] ss:$16 sps:$4 sm:$0xff]  }
 0x158   : > { %v486_v30 = vpop.f32.mrf.mxu1  ;;  %v491_v31 = vsel %vm361_vm3, %v488_v27, -1e+30  ;;  %v1954_v27 = vld [vmem:[%s2592_s2 + $0x224] ss:$16 sps:$4 sm:$0xff]   ;;  %v2104_v29 = vmov 65535  }
 0x159   : > { %v446_v32 = vpop.f32.mrf.mxu0  ;;  %v494_v33 = vsel %vm493_vm4, %v491_v31, -inf  ;;  %v1387_v30 = vsel %vm559_vm6, 4294967295, %v2104_v29 }
 0x15a   : > { %495 = vmax.xlane.f32.xlu0 %v494_v33  ;;  %v1952_v32 = vld [vmem:[%s2592_s2 + $0x220] ss:$16 sps:$4 sm:$0xff]   ;;  %v1960_v33 = vld [vmem:[%s2592_s2 + $0x204] ss:$16 sps:$4 sm:$0xff]  }
 0x1e3   : > { %v496_v37 = vpop.xlane.xlu0 %495 }
 0x1e4   : > { %v497_v39 = vmax.f32 %v492_v36, %v496_v37  ;;  %v1958_v37 = vld [vmem:[%s2592_s2 + $0x200] ss:$16 sps:$4 sm:$0xff]  }
 0x1e6   : > { %v498_v40 = vsub.f32 %v492_v36, %v497_v39  ;;  %662 = vst.msk [vmem:[#allocation2] sm:$0xff] %vm341_vm2, %v497_v39  ;;  %503 = vperm.xlu1 %1888, %v497_v39   ;;  %v2301_v36 = vsel %vm1386_vm7, %v1387_v30, 0  ;;  %v1937_v39 = vld [vmem:[%s2592_s2 + $0x1e0] ss:$16 sps:$4 sm:$0xff]  }
 0x1e8   : > { %v499_v42 = vmul.f32 1.442695, %v498_v40  ;;  %v1393_v40 = vand.u32 %v1966_v34, %v2301_v36  ;;  %v1988_v34 = vld [vmem:[%s2592_s2 + $0x2e8] ss:$16 sps:$4 sm:$0xff]  }
 0x1ea   : > { %2069 = vpow2.f32 %v499_v42  ;;  %545 = vrot.lane.b32.xlu1 %v1732_v41, %s2103_s30  ;;  %v1945_v41 = vld [vmem:[%s2592_s2 + $0x1c4] ss:$16 sps:$4 sm:$0xff]   ;;  %v1390_v42 = vand.u32 %v1964_v38, %v2301_v36  ;;  %v1991_v38 = vld [vmem:[%s2592_s2 + $0xc8] ss:$16 sps:$4 sm:$0xff]  }
 0x1ee   : > { %547 = vrot.lane.b32.xlu1 %v1733_v43, %s2103_s30  ;;  %v1943_v43 = vld [vmem:[%s2592_s2 + $0x1c0] ss:$16 sps:$4 sm:$0xff]  }
 0x1f2   : > { %549 = vrot.lane.b32.xlu1 %v1900_v44, %s2103_s30  ;;  %v1972_v44 = vld [vmem:[%s2592_s2 + $0x344] ss:$16 sps:$4 sm:$0xff]  }
 0x1f6   : > { %541 = vrot.lane.b32.xlu1 %v2171_v6, %s2103_s30  ;;  %v1909_v6 = vld [vmem:[%s2592_s2 + $0xa4] ss:$16 sps:$4 sm:$0xff]  }
 0x1f7   : > { %v2187_v46 = vpop.eup %2069 }
 0x1f8   : > { %523 = vperm.xlu0 %1889, %v2187_v46  }
 0x1fa   : > { %543 = vrot.lane.b32.xlu1 %v1731_v45, %s2103_s30  ;;  %v1951_v45 = vld [vmem:[%s2592_s2 + $0x1a4] ss:$16 sps:$4 sm:$0xff]  }
 0x261   : > { %v504_v47 = vpop.permute.xlu1 %503 }
 0x262   : > { %v506_v48 = vsub.f32 %v491_v31, %v504_v47  ;;  %v1931_v31 = vld [vmem:[%s2592_s2] ss:$16 sps:$4 sm:$0xff]  }
 0x263   : > { %v1970_v47 = vld [vmem:[%s2592_s2 + $0x340] ss:$16 sps:$4 sm:$0xff]  }
 0x264   : > { %v507_v49 = vmul.f32 1.442695, %v506_v48  ;;  %v1949_v48 = vld [vmem:[%s2592_s2 + $0x1a0] ss:$16 sps:$4 sm:$0xff]  }
 0x265   : > { %v546_v50 = vpop.permute.xlu1 %545 }
 0x266   : > { %2071 = vpow2.f32 %v507_v49  ;;  %v1978_v49 = vld [vmem:[%s2592_s2 + $0x324] ss:$16 sps:$4 sm:$0xff]  }
 0x269   : > { %v548_v51 = vpop.permute.xlu1 %547 }
 0x26a   : > { %v554_v52 = vsel %vm551_vm5, %v546_v50, %v548_v51 }
 0x26b   : > { %v567_v53 = vsel %vm559_vm6, %v554_v52, 0  ;;  %v1955_v52 = vld [vmem:[%s2592_s2 + $0x180] ss:$16 sps:$4 sm:$0xff]  }
 0x26d   : > { %v550_v54 = vpop.permute.xlu1 %549 }
 0x26e   : > { %v555_v55 = vsel %vm551_vm5, %v548_v51, %v550_v54  ;;  %v1976_v51 = vld [vmem:[%s2592_s2 + $0x320] ss:$16 sps:$4 sm:$0xff]  }
 0x26f   : > { %1737 = vmatprep.subr.msk.bf16.mxu1 %vm559_vm6, %v555_v55  ;;  %v1961_v54 = vld [vmem:[%s2592_s2 + $0x160] ss:$16 sps:$4 sm:$0xff]   ;;  %v1969_v55 = vld [vmem:[%s2592_s2 + $0x144] ss:$16 sps:$4 sm:$0xff]  }
 0x270   : > { %628 = vmatpush1.bf16.msra.mxu1 %v567_v53  ;;  %v1963_v53 = vld [vmem:[%s2592_s2 + $0x164] ss:$16 sps:$4 sm:$0xff]  }
 0x271   : > { %v542_v56 = vpop.permute.xlu1 %541  ;;  %1442 = vmatprep.subr.bf16.mxu1 %v1918_v5 }
 0x273   : > { %v2072_v57 = vpop.eup %2071 }
 0x274   : > { %v511_v58 = vsel %vm493_vm4, %v2072_v57, 0.0  ;;  %v530_v59 = vpack.c.bf16 %v2072_v57, %v2072_v57  ;;  %v1975_v57 = vld [vmem:[%s2592_s2 + $0x124] ss:$16 sps:$4 sm:$0xff]  }
 0x275   : > { %512 = vadd.xlane.f32.xlu1 %v511_v58  ;;  %v544_v60 = vpop.permute.xlu1 %543  ;;  %v1973_v58 = vld [vmem:[%s2592_s2 + $0x120] ss:$16 sps:$4 sm:$0xff]  }
 0x276   : > { %v552_v61 = vsel %vm551_vm5, %v542_v56, %v544_v60  ;;  %v553_v62 = vsel %vm551_vm5, %v544_v60, %v546_v50  ;;  %1738 = vmatmul.mubr.msk.bf16.vlgmr.msra.gmra.mxu1 %vm493_vm4, %v530_v59  ;;  %v1957_v50 = vld [vmem:[%s2592_s2 + $0x184] ss:$16 sps:$4 sm:$0xff]   ;;  %v1967_v56 = vld [vmem:[%s2592_s2 + $0x140] ss:$16 sps:$4 sm:$0xff]  }
 0x277   : > { %v561_v63 = vsel %vm559_vm6, %v552_v61, 0  ;;  %1735 = vmatprep.subr.msk.bf16.mxu0 %vm559_vm6, %v553_v62  ;;  %1443 = vmatpush1.bf16.msra.mxu1 %v1916_v4  ;;  %v1990_v4 = vld [vmem:[%s2592_s2 + $0x2ec] ss:$16 sps:$4 sm:$0xff]  }
 0x278   : > { %587 = vmatpush1.bf16.msra.mxu0 %v561_v63  ;;  %1444 = vmatprep.subr.bf16.mxu1 %v1924_v7  ;;  %v520_v7 = vld [vmem:[#allocation4 + $0x18] sm:$0xff] }
 0x279   : > { %1401 = vmatprep.subr.bf16.mxu0 %v1903_v1  ;;  %v1984_v1 = vld [vmem:[%s2592_s2 + $0x304] ss:$16 sps:$4 sm:$0xff]  }
 0x27b   : > { %1736 = vmatmul.mubr.msk.bf16.vlgmr.msra.gmra.mxu0 %vm493_vm4, %v530_v59  ;;  %1445 = vmatpush1.bf16.msra.mxu1 %v1922_v8  ;;  %v509_v59 = vld [vmem:[#allocation3] sm:$0xff] }
 0x27c   : > { %1402 = vmatpush1.bf16.msra.mxu0 %v1901_v0  ;;  %1446 = vmatprep.subr.bf16.mxu1 %v1930_v10  ;;  %v510_v60 = vmul.f32 %v2187_v46, %v509_v59  ;;  %v1981_v0 = vld [vmem:[%s2592_s2 + $0x104] ss:$16 sps:$4 sm:$0xff]   ;;  %v1982_v46 = vld [vmem:[%s2592_s2 + $0x300] ss:$16 sps:$4 sm:$0xff]   ;;  %v2021_v59 = vld [vmem:[%s2592_s2 + $0x28] ss:$16 sps:$4 sm:$0xff]  }
 0x27d   : > { %1403 = vmatprep.subr.bf16.mxu0 %v1906_v2  ;;  %v1979_v2 = vld [vmem:[%s2592_s2 + $0x100] ss:$16 sps:$4 sm:$0xff]  }
 0x27f   : > { %1447 = vmatpush1.bf16.msra.mxu1 %v1928_v12 }
 0x280   : > { %1404 = vmatpush1.bf16.msra.mxu0 %v1904_v3  ;;  %1448 = vmatprep.subr.bf16.mxu1 %v1936_v14  ;;  %v1987_v3 = vld [vmem:[%s2592_s2 + $0xec] ss:$16 sps:$4 sm:$0xff]  }
 0x281   : > { %1405 = vmatprep.subr.bf16.mxu0 %v1909_v6  ;;  %v524_v6 = vpop.permute.xlu0 %523 }
 0x282   : > { %v528_v8 = vmul.f32 0.0, %v524_v6 }
 0x283   : > { %1449 = vmatpush1.bf16.msra.mxu1 %v1934_v16 }
 0x284   : > { %1406 = vmatpush1.bf16.msra.mxu0 %v1907_v9  ;;  %1450 = vmatprep.subr.bf16.mxu1 %v1942_v18 }
 0x285   : > { %1407 = vmatprep.subr.bf16.mxu0 %v1912_v11  ;;  %v529_v11 = vmul.f32 %v524_v6, %v520_v7  ;;  %v2041_v6 = vld [vmem:[%s2592_s2 + $0x1cc] ss:$16 sps:$4 sm:$0xff]  }
 0x286   : > { %v2044_v7 = vld [vmem:[%s2592_s2 + $0x34c] ss:$16 sps:$4 sm:$0xff]  }
 0x287   : > { %1451 = vmatpush1.bf16.msra.mxu1 %v1940_v21 }
 0x288   : > { %1408 = vmatpush1.bf16.msra.mxu0 %v1910_v13  ;;  %1452 = vmatprep.subr.bf16.mxu1 %v1948_v23 }
 0x289   : > { %1409 = vmatprep.subr.bf16.mxu0 %v1915_v15 }
 0x28b   : > { %1453 = vmatpush1.bf16.msra.mxu1 %v1946_v25 }
 0x28c   : > { %1410 = vmatpush1.bf16.msra.mxu0 %v1913_v17  ;;  %1454 = vmatprep.subr.bf16.mxu1 %v1954_v27 }
 0x28d   : > { %1411 = vmatprep.subr.bf16.mxu0 %v1921_v19 }
 0x28f   : > { %1455 = vmatpush1.bf16.msra.mxu1 %v1952_v32 }
 0x290   : > { %1412 = vmatpush1.bf16.msra.mxu0 %v1919_v22  ;;  %1456 = vmatprep.subr.bf16.mxu1 %v1960_v33  ;;  %v1985_v33 = vld [vmem:[%s2592_s2 + $0xe8] ss:$16 sps:$4 sm:$0xff]  }
 0x291   : > { %1413 = vmatprep.subr.bf16.mxu0 %v1927_v24 }
 0x293   : > { %1457 = vmatpush1.bf16.msra.mxu1 %v1958_v37  ;;  %v1996_v37 = vld [vmem:[%s2592_s2 + $0x2cc] ss:$16 sps:$4 sm:$0xff]  }
 0x294   : > { %1414 = vmatpush1.bf16.msra.mxu0 %v1925_v26  ;;  %1466 = vmatprep.subr.bf16.mxu1 %v1393_v40  ;;  %v1999_v40 = vld [vmem:[%s2592_s2 + $0xac] ss:$16 sps:$4 sm:$0xff]  }
 0x295   : > { %1415 = vmatprep.subr.bf16.mxu0 %v1933_v28 }
 0x297   : > { %1467 = vmatpush2.bf16.msra.mxu1 %v1390_v42  ;;  %v1997_v42 = vld [vmem:[%s2592_s2 + $0xa8] ss:$16 sps:$4 sm:$0xff]  }
 0x298   : > { %1416 = vmatpush1.bf16.msra.mxu0 %v1931_v31  ;;  %1468 = vmatprep.subr.bf16.mxu1 %v1972_v44  ;;  %v2005_v44 = vld [vmem:[%s2592_s2 + $0x8c] ss:$16 sps:$4 sm:$0xff]  }
 0x299   : > { %1417 = vmatprep.subr.bf16.mxu0 %v1939_v35  ;;  %v1993_v35 = vld [vmem:[%s2592_s2 + $0xcc] ss:$16 sps:$4 sm:$0xff]  }
 0x29b   : > { %1469 = vmatpush2.bf16.msra.mxu1 %v1970_v47  ;;  %v2003_v47 = vld [vmem:[%s2592_s2 + $0x88] ss:$16 sps:$4 sm:$0xff]  }
 0x29c   : > { %1418 = vmatpush2.bf16.msra.mxu0 %v1937_v39  ;;  %1470 = vmatprep.subr.bf16.mxu1 %v1978_v49  ;;  %v1994_v39 = vld [vmem:[%s2592_s2 + $0x2c8] ss:$16 sps:$4 sm:$0xff]   ;;  %v2011_v49 = vld [vmem:[%s2592_s2 + $0x6c] ss:$16 sps:$4 sm:$0xff]  }
 0x29d   : > { %1419 = vmatprep.subr.bf16.mxu0 %v1945_v41  ;;  %v2002_v41 = vld [vmem:[%s2592_s2 + $0x2ac] ss:$16 sps:$4 sm:$0xff]  }
 0x29f   : > { %1471 = vmatpush2.bf16.msra.mxu1 %v1976_v51  ;;  %v2009_v51 = vld [vmem:[%s2592_s2 + $0x68] ss:$16 sps:$4 sm:$0xff]  }
 0x2a0   : > { %1420 = vmatpush2.bf16.msra.mxu0 %v1943_v43  ;;  %1472 = vmatprep.subr.bf16.mxu1 %v1984_v1  ;;  %v2000_v43 = vld [vmem:[%s2592_s2 + $0x2a8] ss:$16 sps:$4 sm:$0xff]  }
 0x2a1   : > { %1421 = vmatprep.subr.bf16.mxu0 %v1951_v45  ;;  %v2008_v45 = vld [vmem:[%s2592_s2 + $0x28c] ss:$16 sps:$4 sm:$0xff]   ;;  %v2030_v1 = vld [vmem:[%s2592_s2 + $0x208] ss:$16 sps:$4 sm:$0xff]  }
 0x2a3   : > { %1473 = vmatpush2.bf16.msra.mxu1 %v1982_v46  ;;  %v2035_v46 = vld [vmem:[%s2592_s2 + $0x1ec] ss:$16 sps:$4 sm:$0xff]  }
 0x2a4   : > { %1422 = vmatpush2.bf16.msra.mxu0 %v1949_v48  ;;  %1483 = vmatprep.subr.bf16.mxu1 %v1987_v3  ;;  %v2006_v48 = vld [vmem:[%s2592_s2 + $0x288] ss:$16 sps:$4 sm:$0xff]  }
 0x2a5   : > { %1423 = vmatprep.subr.bf16.mxu0 %v1957_v50  ;;  %v2014_v50 = vld [vmem:[%s2592_s2 + $0x26c] ss:$16 sps:$4 sm:$0xff]  }
 0x2a8   : > { %1424 = vmatpush2.bf16.msra.mxu0 %v1955_v52  ;;  %v2012_v52 = vld [vmem:[%s2592_s2 + $0x268] ss:$16 sps:$4 sm:$0xff]  }
 0x2a9   : > { %1425 = vmatprep.subr.bf16.mxu0 %v1963_v53  ;;  %v2017_v53 = vld [vmem:[%s2592_s2 + $0x4c] ss:$16 sps:$4 sm:$0xff]  }
 0x2ac   : > { %1426 = vmatpush2.bf16.msra.mxu0 %v1961_v54  ;;  %v2020_v54 = vld [vmem:[%s2592_s2 + $0x24c] ss:$16 sps:$4 sm:$0xff]  }
 0x2ad   : > { %1427 = vmatprep.subr.bf16.mxu0 %v1969_v55  ;;  %v2015_v55 = vld [vmem:[%s2592_s2 + $0x48] ss:$16 sps:$4 sm:$0xff]  }
 0x2b0   : > { %1428 = vmatpush2.bf16.msra.mxu0 %v1967_v56  ;;  %v2018_v56 = vld [vmem:[%s2592_s2 + $0x248] ss:$16 sps:$4 sm:$0xff]  }
 0x2b1   : > { %1429 = vmatprep.subr.bf16.mxu0 %v1975_v57  ;;  %v2023_v57 = vld [vmem:[%s2592_s2 + $0x2c] ss:$16 sps:$4 sm:$0xff]  }
 0x2b4   : > { %1430 = vmatpush2.bf16.msra.mxu0 %v1973_v58  ;;  %v2026_v58 = vld [vmem:[%s2592_s2 + $0x22c] ss:$16 sps:$4 sm:$0xff]  }
 0x2b5   : > { %1431 = vmatprep.subr.bf16.mxu0 %v1981_v0  ;;  %v2027_v0 = vld [vmem:[%s2592_s2 + $0x8] ss:$16 sps:$4 sm:$0xff]  }
 0x2b8   : > { %1432 = vmatpush2.bf16.msra.mxu0 %v1979_v2  ;;  %v2036_v2 = vld [vmem:[%s2592_s2 + $0x368] ss:$16 sps:$4 sm:$0x1f]  }
 0x2b9   : > { %1524 = vmatprep.subr.bf16.mxu0 %v1990_v4  ;;  %v2033_v4 = vld [vmem:[%s2592_s2 + $0x1e8] ss:$16 sps:$4 sm:$0xff]  }
 0x2fe   : > { %v513_v61 = vpop.xlane.xlu1 %512 }
 0x2ff   : > { %v514_v62 = vadd.f32 %v513_v61, %v510_v60  ;;  %v2024_v60 = vld [vmem:[%s2592_s2 + $0x228] ss:$16 sps:$4 sm:$0xff]   ;;  %v2029_v61 = vld [vmem:[%s2592_s2 + $0xc] ss:$16 sps:$4 sm:$0xff]  }
 0x301   : > { %516 = vst.msk [vmem:[#allocation3] sm:$0xff] %vm341_vm2, %v514_v62  ;;  %v2032_v62 = vld [vmem:[%s2592_s2 + $0x20c] ss:$16 sps:$4 sm:$0xff]  }
 0x308   : > { %v812_v63 = vld [vmem:[#allocation3] sm:$0xff] }
 0x309   : > { %2073 = vrcp.f32 %v812_v63  ;;  %v2038_v63 = vld [vmem:[%s2592_s2 + $0x36c] ss:$16 sps:$4 sm:$0x1f]  }
 0x30a   : > { %v1399_v3 = vand.u32 %v2038_v63, %v2301_v36 }
 0x316   : > { %v2074_v5 = vpop.eup %2073 }
 0x317   : > { %816 = vperm.xlu1 %1888, %v2074_v5   ;;  %v1396_v5 = vand.u32 %v2036_v2, %v2301_v36  ;;  %v2042_v36 = vld [vmem:[%s2592_s2 + $0x348] ss:$16 sps:$4 sm:$0xff]  }
 0x336   : > { %v647_v9 = vpop.f32.mrf.mxu1 }
 0x337   : > { %v656_v10 = vadd.f32 %v647_v9, %v528_v8  ;;  %v2047_v9 = vld [vmem:[%s2592_s2 + $0x1ac] ss:$16 sps:$4 sm:$0xff]  }
 0x338   : > { %v649_v12 = vpop.f32.mrf.mxu1 }
 0x339   : > { %v657_v13 = vadd.f32 %v649_v12, %v529_v11  ;;  %v2045_v11 = vld [vmem:[%s2592_s2 + $0x1a8] ss:$16 sps:$4 sm:$0xff]  }
 0x33a   : > { %v651_v14 = vpop.f32.mrf.mxu1  ;;  %v2048_v12 = vld [vmem:[%s2592_s2 + $0x328] ss:$16 sps:$4 sm:$0xff]  }
 0x33b   : > { %661 = vst.msk [vmem:[#allocation4 + $0x18] sm:$0xff] %vm347_vm0, %v657_v13  ;;  %v606_v15 = vpop.f32.mrf.mxu0  ;;  %v2053_v13 = vld [vmem:[%s2592_s2 + $0x18c] ss:$16 sps:$4 sm:$0xff]  }
 0x33c   : > { %v654_v16 = vadd.f32 %v606_v15, %v528_v8  ;;  %v652_v17 = vpop.f32.mrf.mxu1  ;;  %v2056_v14 = vld [vmem:[%s2592_s2 + $0x30c] ss:$16 sps:$4 sm:$0xff]   ;;  %v2051_v15 = vld [vmem:[%s2592_s2 + $0x188] ss:$16 sps:$4 sm:$0xff]  }
 0x33d   : > { %v608_v18 = vpop.f32.mrf.mxu0  ;;  %v2059_v17 = vld [vmem:[%s2592_s2 + $0x16c] ss:$16 sps:$4 sm:$0xff]  }
 0x33e   : > { %v655_v19 = vadd.f32 %v608_v18, %v528_v8  ;;  %v2039_v8 = vld [vmem:[%s2592_s2 + $0x1c8] ss:$16 sps:$4 sm:$0xff]  }
 0x33f   : > { %v610_v21 = vpop.f32.mrf.mxu0  ;;  %v2057_v18 = vld [vmem:[%s2592_s2 + $0x168] ss:$16 sps:$4 sm:$0xff]  }
 0x340   : > { %v2060_v21 = vld [vmem:[%s2592_s2 + $0x148] ss:$16 sps:$4 sm:$0xff]  }
 0x341   : > { %v611_v22 = vpop.f32.mrf.mxu0 }
 0x342   : > { %v811_v23 = vld [vmem:[#allocation4 + $0x18] sm:$0xff] }
 0x343   : > { %v2065_v22 = vld [vmem:[%s2592_s2 + $0x12c] ss:$16 sps:$4 sm:$0xff]  }
 0x392   : > { %v817_v24 = vpop.permute.xlu1 %816 }
 0x393   : > { %v819_v25 = vmul.f32 %v817_v24, %v654_v16  ;;  %v820_v26 = vmul.f32 %v817_v24, %v655_v19  ;;  %v821_v27 = vmul.f32 %v817_v24, %v656_v10  ;;  %v822_v28 = vmul.f32 %v817_v24, %v811_v23  ;;  %v2050_v10 = vld [vmem:[%s2592_s2 + $0x32c] ss:$16 sps:$4 sm:$0xff]   ;;  %v2054_v16 = vld [vmem:[%s2592_s2 + $0x308] ss:$16 sps:$4 sm:$0xff]  }
 0x394   : > { %v2062_v19 = vld [vmem:[%s2592_s2 + $0x14c] ss:$16 sps:$4 sm:$0xff]   ;;  %v2063_v23 = vld [vmem:[%s2592_s2 + $0x128] ss:$16 sps:$4 sm:$0xff]  }
 0x395   : > { %v2383_v29 = vpack.c.bf16 %v819_v25, %v819_v25  ;;  %v2385_v30 = vpack.c.bf16 %v821_v27, %v821_v27  ;;  %v826_v31 = vpack.c.bf16 %v822_v28, %v822_v28  ;;  %v824_v32 = vpack.c.bf16 %v820_v26, %v820_v26  ;;  %v2068_v24 = vld [vmem:[%s2592_s2 + $0x10c] ss:$16 sps:$4 sm:$0xff]   ;;  %v2066_v25 = vld [vmem:[%s2592_s2 + $0x108] ss:$16 sps:$4 sm:$0xff]   ;;  %v778_v28 = vld [vmem:[%s2593_s3] sm:$0xf] }
 0x396   : > { %v785_v26 = vshrl.u32 %v357_v20, 7 }
 0x397   : > { %1433 = vmatprep.mubr.bf16.mxu0 %v824_v32  ;;  %1851 = vmatprep.mubr.msk.bf16.mxu1 %vm347_vm0, %v826_v31 }
 0x398   : > { %1434 = vmatmul.mubr.bf16.vlgmr.msra.gmra.mxu0 %v2383_v29  ;;  %1475 = vmatmul.mubr.bf16.vlgmr.msra.gmra.mxu1 %v2385_v30  ;;  %v786_v27 = vsub.s32 0, %v785_v26 }
 0x399   : > { %1484 = vmatpush1.bf16.msra.mxu1 %v1985_v33  ;;  %1525 = vmatpush1.bf16.msra.mxu0 %v1988_v34 }
 0x39a   : > { %1515 = vmatprep.mubr.bf16.mxu1 %v824_v32  ;;  %1852 = vmatprep.mubr.msk.bf16.mxu0 %vm347_vm0, %v826_v31  ;;  %v787_v31 = vrot.slane %v778_v28, %v786_v27  ;;  %v779_v32 = vld [vmem:[%s2565_s29] sm:$0xff] }
 0x39b   : > { %1485 = vmatprep.subr.bf16.mxu1 %v1993_v35  ;;  %1526 = vmatprep.subr.bf16.mxu0 %v1996_v37 }
 0x39c   : > { %v804_v34 = vadd.f32 %v787_v31, %v779_v32 }
 0x39d   : > { %1486 = vmatpush1.bf16.msra.mxu1 %v1991_v38  ;;  %1527 = vmatpush1.bf16.msra.mxu0 %v1994_v39 }
 0x39e   : > { %1487 = vmatprep.subr.bf16.mxu1 %v1999_v40  ;;  %1528 = vmatprep.subr.bf16.mxu0 %v2002_v41 }
 0x3a1   : > { %1488 = vmatpush1.bf16.msra.mxu1 %v1997_v42  ;;  %1529 = vmatpush1.bf16.msra.mxu0 %v2000_v43 }
 0x3a2   : > { %1489 = vmatprep.subr.bf16.mxu1 %v2005_v44  ;;  %1530 = vmatprep.subr.bf16.mxu0 %v2008_v45 }
 0x3a5   : > { %1490 = vmatpush1.bf16.msra.mxu1 %v2003_v47  ;;  %1531 = vmatpush1.bf16.msra.mxu0 %v2006_v48 }
 0x3a6   : > { %1491 = vmatprep.subr.bf16.mxu1 %v2011_v49  ;;  %1532 = vmatprep.subr.bf16.mxu0 %v2014_v50 }
 0x3a9   : > { %1492 = vmatpush1.bf16.msra.mxu1 %v2009_v51  ;;  %1533 = vmatpush1.bf16.msra.mxu0 %v2012_v52 }
 0x3aa   : > { %1493 = vmatprep.subr.bf16.mxu1 %v2017_v53  ;;  %1534 = vmatprep.subr.bf16.mxu0 %v2020_v54  ;;  %v794_v53 = vsub.s32 2, %v785_v26  ;;  %v798_v54 = vsub.s32 3, %v785_v26 }
 0x3ad   : > { %1494 = vmatpush1.bf16.msra.mxu1 %v2015_v55  ;;  %1535 = vmatpush1.bf16.msra.mxu0 %v2018_v56  ;;  %v795_v55 = vrot.slane %v778_v28, %v794_v53  ;;  %v781_v56 = vld [vmem:[%s2565_s29 + $0x10] sm:$0xff] }
 0x3ae   : > { %1495 = vmatprep.subr.bf16.mxu1 %v2023_v57  ;;  %1536 = vmatprep.subr.bf16.mxu0 %v2026_v58  ;;  %v799_v57 = vrot.slane %v778_v28, %v798_v54  ;;  %v782_v58 = vld [vmem:[%s2565_s29 + $0x18] sm:$0xff] }
 0x3b1   : > { %1496 = vmatpush1.bf16.msra.mxu1 %v2021_v59  ;;  %1537 = vmatpush1.bf16.msra.mxu0 %v2024_v60  ;;  %v806_v59 = vadd.f32 %v795_v55, %v781_v56 }
 0x3b2   : > { %1497 = vmatprep.subr.bf16.mxu1 %v2029_v61  ;;  %1538 = vmatprep.subr.bf16.mxu0 %v2032_v62  ;;  %v807_v62 = vadd.f32 %v799_v57, %v782_v58 }
 0x3b5   : > { %1498 = vmatpush1.bf16.msra.mxu1 %v2027_v0  ;;  %1539 = vmatpush1.bf16.msra.mxu0 %v2030_v1 }
 0x3b6   : > { %1499 = vmatprep.subr.bf16.mxu1 %v2035_v46  ;;  %1548 = vmatprep.subr.bf16.mxu0 %v1399_v3 }
 0x3b9   : > { %1500 = vmatpush2.bf16.msra.mxu1 %v2033_v4  ;;  %1549 = vmatpush2.bf16.msra.mxu0 %v1396_v5 }
 0x3ba   : > { %1501 = vmatprep.subr.bf16.mxu1 %v2041_v6  ;;  %1550 = vmatprep.subr.bf16.mxu0 %v2044_v7 }
 0x3bd   : > { %1502 = vmatpush2.bf16.msra.mxu1 %v2039_v8  ;;  %1551 = vmatpush2.bf16.msra.mxu0 %v2042_v36 }
 0x3be   : > { %1503 = vmatprep.subr.bf16.mxu1 %v2047_v9  ;;  %1552 = vmatprep.subr.bf16.mxu0 %v2050_v10 }
 0x3c1   : > { %1504 = vmatpush2.bf16.msra.mxu1 %v2045_v11  ;;  %1553 = vmatpush2.bf16.msra.mxu0 %v2048_v12 }
 0x3c2   : > { %1505 = vmatprep.subr.bf16.mxu1 %v2053_v13  ;;  %1554 = vmatprep.subr.bf16.mxu0 %v2056_v14 }
 0x3c5   : > { %1506 = vmatpush2.bf16.msra.mxu1 %v2051_v15  ;;  %1555 = vmatpush2.bf16.msra.mxu0 %v2054_v16 }
 0x3c6   : > { %1507 = vmatprep.subr.bf16.mxu1 %v2059_v17 }
 0x3c8   : > { %1557 = vmatmul.mubr.bf16.vlgmr.msra.gmra.mxu0 %v2385_v30  ;;  %v790_v30 = vsub.s32 1, %v785_v26 }
 0x3c9   : > { %1508 = vmatpush2.bf16.msra.mxu1 %v2057_v18 }
 0x3ca   : > { %1509 = vmatprep.subr.bf16.mxu1 %v2062_v19  ;;  %v791_v33 = vrot.slane %v778_v28, %v790_v30 }
 0x3cd   : > { %1510 = vmatpush2.bf16.msra.mxu1 %v2060_v21 }
 0x3ce   : > { %1511 = vmatprep.subr.bf16.mxu1 %v2065_v22 }
 0x3d1   : > { %1512 = vmatpush2.bf16.msra.mxu1 %v2063_v23 }
 0x3d2   : > { %1513 = vmatprep.subr.bf16.mxu1 %v2068_v24 }
 0x3d5   : > { %1514 = vmatpush2.bf16.msra.mxu1 %v2066_v25 }
 0x3d8   : > { %1516 = vmatmul.mubr.bf16.vlgmr.msra.gmra.mxu1 %v2383_v29  ;;  %v780_v29 = vld [vmem:[%s2565_s29 + $0x8] sm:$0xff] }
 0x3d9   : > { %v805_v38 = vadd.f32 %v791_v33, %v780_v29 }
 0x458   : > { %v1435_v20 = vpop.f32.mrf.mxu0  ;;  %v1476_v35 = vpop.f32.mrf.mxu1 }
 0x459   : > { %v1477_v37 = vadd.f32 %v1476_v35, %v1435_v20 }
 0x45a   : > { %v1437_v39 = vpop.f32.mrf.mxu0  ;;  %v1478_v40 = vpop.f32.mrf.mxu1 }
 0x45b   : > { %v1565_v41 = vadd.f32 %v1477_v37, %v804_v34  ;;  %v1479_v42 = vadd.f32 %v1478_v40, %v1437_v39 }
 0x45c   : > { %v1439_v43 = vpop.f32.mrf.mxu0  ;;  %v1480_v44 = vpop.f32.mrf.mxu1 }
 0x45d   : > { %1569 = vst [vmem:[%s2572_s6] sm:$0xff] %v1565_v41  ;;  %v1566_v45 = vadd.f32 %v1479_v42, %v805_v38 }
 0x45e   : > { %v1440_v47 = vpop.f32.mrf.mxu0  ;;  %v1481_v48 = vpop.f32.mrf.mxu1 }
 0x45f   : > { %1570 = vst [vmem:[%s2572_s6 + $0x8] sm:$0xff] %v1566_v45 }
 0x488   : > { %v1558_v49 = vpop.f32.mrf.mxu0 }
 0x48a   : > { %v1560_v50 = vpop.f32.mrf.mxu0 }
 0x48c   : > { %v1562_v51 = vpop.f32.mrf.mxu0 }
 0x48e   : > { %v1563_v52 = vpop.f32.mrf.mxu0 }
 0x498   : > { %v1517_v60 = vpop.f32.mrf.mxu1 }
 0x499   : > { %v1559_v61 = vadd.f32 %v1558_v49, %v1517_v60 }
 0x49a   : > { %v1519_v63 = vpop.f32.mrf.mxu1 }
 0x49b   : > { %v1567_v0 = vadd.f32 %v1559_v61, %v806_v59  ;;  %v1561_v1 = vadd.f32 %v1560_v50, %v1519_v63 }
 0x49c   : > { %v1521_v2 = vpop.f32.mrf.mxu1 }
 0x49d   : > { %1571 = vst [vmem:[%s2572_s6 + $0x10] sm:$0xff] %v1567_v0  ;;  %v1568_v46 = vadd.f32 %v1561_v1, %v807_v62 }
 0x49e   : > { %v1522_v3 = vpop.f32.mrf.mxu1 }
 0x49f   : > { %1572 = vst.msk [vmem:[%s2572_s6 + $0x18] sm:$0xff] %vm347_vm0, %v1568_v46 }
 0x4a0 PF: > { %s15_s20 = sadd.s32 1, %s2097_s20   ;;  %s2596_s18 = smov %s2093_s19 }
 0x4a1   : > { %p12_p5 = scmp.ge.s32.totalorder %s15_s20, 4   ;;  %s2597_s19 = smov %s2599_s21 }
 0x4a3   :  { %14 = sbr.rel (!%p12_p5) target bundleno = 2 (0x2), region = 84 }

// kernel: t2t_vit_forward.16
= control target key start
LH: loop header
LB: loop body
LE: loop exit
PB: predicated region body
PF: predicated region fallthrough
CT: control target
= control target key end

     0   :  { %vm33_vm0 = vcmask 465920   ;;  %vm810_vm1 = vcmask 1043456   ;;  %vm811_vm2 = vcmask 1044480   ;;  %s3350_s0 = inlined_call_operand.vmem [shape: f32[8,441], index: 0, kind: input, shape index: {}]   ;;  %s3351_s3 = inlined_call_operand.vmem [shape: bf16[441,441], index: 3, kind: input, shape index: {}]   ;;  %s3352_s5 = inlined_call_operand.vmem [shape: bf16[441,441], index: 5, kind: input, shape index: {}]   ;;  %s3353_s1 = inlined_call_operand.vmem [shape: f32[1,441], index: 1, kind: input, shape index: {}]   ;;  %s3354_s2 = inlined_call_operand.vmem [shape: f32[1,441], index: 2, kind: input, shape index: {}]   ;;  %s3355_s4 = inlined_call_operand.vmem [shape: f32[1,441], index: 4, kind: input, shape index: {}]   ;;  %s3356_s6 = inlined_call_operand.vmem [shape: f32[1,441], index: 6, kind: input, shape index: {}]   ;;  %s3357_s7 = inlined_call_operand.vmem [shape: f32[8,441], index: 7, kind: output, shape index: {}]  }
   0x1   :  { %v2534_v0 = vld [vmem:[%s3350_s0] sm:$0xff]  ;;  %v2539_v1 = vld [vmem:[%s3350_s0 + $0x8] sm:$0xff]  ;;  %v2544_v2 = vld [vmem:[%s3350_s0 + $0x10] sm:$0xff] }
   0x2   :  { %v2549_v3 = vld [vmem:[%s3350_s0 + $0x18] sm:$0xff]  ;;  %v31_v4 = vadd.f32 %v2539_v1, %v2534_v0  ;;  %v2140_v8 = vld [vmem:[%s3351_s3 + $0xe4] ss:$16 sps:$4 sm:$0xff]   ;;  %v2142_v9 = vld [vmem:[%s3351_s3 + $0xe0] ss:$16 sps:$4 sm:$0xff]  }
   0x3   :  { %v34_v5 = vsel %vm33_vm0, %v2549_v3, 0.0  ;;  %826 = vmatprep.subr.bf16.mxu0 %v2140_v8  ;;  %v2143_v10 = vld [vmem:[%s3351_s3 + $0xc4] ss:$16 sps:$4 sm:$0xff]   ;;  %v2145_v11 = vld [vmem:[%s3351_s3 + $0xc0] ss:$16 sps:$4 sm:$0xff]  }
   0x4   :  { %v32_v6 = vadd.f32 %v31_v4, %v2544_v2  ;;  %827 = vmatpush1.bf16.msra.mxu0 %v2142_v9  ;;  %v2146_v12 = vld [vmem:[%s3351_s3 + $0xa4] ss:$16 sps:$4 sm:$0xff]   ;;  %v2148_v13 = vld [vmem:[%s3351_s3 + $0xa0] ss:$16 sps:$4 sm:$0xff]  }
   0x5   :  { %828 = vmatprep.subr.bf16.mxu0 %v2143_v10  ;;  %v2154_v14 = vld [vmem:[%s3351_s3 + $0x2e4] ss:$16 sps:$4 sm:$0xff]   ;;  %v2157_v15 = vld [vmem:[%s3351_s3 + $0x2e0] ss:$16 sps:$4 sm:$0xff]  }
   0x6   :  { %v35_v7 = vadd.f32 %v34_v5, %v32_v6  ;;  %v2149_v16 = vld [vmem:[%s3351_s3 + $0x84] ss:$16 sps:$4 sm:$0xff]   ;;  %867 = vmatprep.subr.bf16.mxu1 %v2154_v14  ;;  %v2163_v18 = vld [vmem:[%s3351_s3 + $0x2c0] ss:$16 sps:$4 sm:$0xff]  }
   0x7   :  { %v2160_v17 = vld [vmem:[%s3351_s3 + $0x2c4] ss:$16 sps:$4 sm:$0xff]   ;;  %868 = vmatpush1.bf16.msra.mxu1 %v2157_v15  ;;  %v2151_v19 = vld [vmem:[%s3351_s3 + $0x80] ss:$16 sps:$4 sm:$0xff]  }
   0x8   :  { %36 = vadd.xlane.f32.xlu0 %v35_v7  ;;  %829 = vmatpush1.bf16.msra.mxu0 %v2145_v11  ;;  %v2152_v20 = vld [vmem:[%s3351_s3 + $0x64] ss:$16 sps:$4 sm:$0xff]   ;;  %v2169_v22 = vld [vmem:[%s3351_s3 + $0x2a0] ss:$16 sps:$4 sm:$0xff]  }
   0x9   :  { %830 = vmatprep.subr.bf16.mxu0 %v2146_v12  ;;  %869 = vmatprep.subr.bf16.mxu1 %v2160_v17  ;;  %v2166_v21 = vld [vmem:[%s3351_s3 + $0x2a4] ss:$16 sps:$4 sm:$0xff]   ;;  %v2156_v23 = vld [vmem:[%s3351_s3 + $0x60] ss:$16 sps:$4 sm:$0xff]  }
   0xa   :  { %v2172_v24 = vld [vmem:[%s3351_s3 + $0x284] ss:$16 sps:$4 sm:$0xff]   ;;  %v2162_v26 = vld [vmem:[%s3351_s3 + $0x40] ss:$16 sps:$4 sm:$0xff]  }
   0xb   :  { %870 = vmatpush1.bf16.msra.mxu1 %v2163_v18  ;;  %v2158_v25 = vld [vmem:[%s3351_s3 + $0x44] ss:$16 sps:$4 sm:$0xff]   ;;  %v2175_v27 = vld [vmem:[%s3351_s3 + $0x280] ss:$16 sps:$4 sm:$0xff]  }
   0xc   :  { %831 = vmatpush1.bf16.msra.mxu0 %v2148_v13  ;;  %871 = vmatprep.subr.bf16.mxu1 %v2166_v21  ;;  %v2178_v28 = vld [vmem:[%s3351_s3 + $0x264] ss:$16 sps:$4 sm:$0xff]   ;;  %v2181_v30 = vld [vmem:[%s3351_s3 + $0x260] ss:$16 sps:$4 sm:$0xff]  }
   0xd   :  { %832 = vmatprep.subr.bf16.mxu0 %v2149_v16  ;;  %v2164_v29 = vld [vmem:[%s3351_s3 + $0x24] ss:$16 sps:$4 sm:$0xff]   ;;  %v2168_v31 = vld [vmem:[%s3351_s3 + $0x20] ss:$16 sps:$4 sm:$0xff]  }
   0xe   :  { %v2184_v32 = vld [vmem:[%s3351_s3 + $0x244] ss:$16 sps:$4 sm:$0xff]   ;;  %v2187_v34 = vld [vmem:[%s3351_s3 + $0x240] ss:$16 sps:$4 sm:$0xff]  }
   0xf   :  { %872 = vmatpush1.bf16.msra.mxu1 %v2169_v22  ;;  %v2170_v33 = vld [vmem:[%s3351_s3 + $0x4] ss:$16 sps:$4 sm:$0xff]   ;;  %v2174_v35 = vld [vmem:[%s3351_s3] ss:$16 sps:$4 sm:$0xff]  }
  0x10   :  { %833 = vmatpush1.bf16.msra.mxu0 %v2151_v19  ;;  %873 = vmatprep.subr.bf16.mxu1 %v2172_v24  ;;  %v2176_v36 = vld [vmem:[%s3351_s3 + $0x1e4] ss:$16 sps:$4 sm:$0xff]   ;;  %v2180_v37 = vld [vmem:[%s3351_s3 + $0x1e0] ss:$16 sps:$4 sm:$0xff]   ;;  %v2226_v19 = vld [vmem:[%s3351_s3 + $0xec] ss:$16 sps:$4 sm:$0xff]   ;;  %v63_v24 = vlaneseq }
  0x11   :  { %834 = vmatprep.subr.bf16.mxu0 %v2152_v20  ;;  %v2182_v38 = vld [vmem:[%s3351_s3 + $0x1c4] ss:$16 sps:$4 sm:$0xff]   ;;  %v2186_v39 = vld [vmem:[%s3351_s3 + $0x1c0] ss:$16 sps:$4 sm:$0xff]   ;;  %v2229_v20 = vld [vmem:[%s3351_s3 + $0x2ec] ss:$16 sps:$4 sm:$0xff]  }
  0x12   :  { %v2188_v54 = vld [vmem:[%s3351_s3 + $0x1a4] ss:$16 sps:$4 sm:$0xff]   ;;  %v2192_v56 = vld [vmem:[%s3351_s3 + $0x1a0] ss:$16 sps:$4 sm:$0xff]  }
  0x13   :  { %874 = vmatpush1.bf16.msra.mxu1 %v2175_v27  ;;  %v2190_v55 = vld [vmem:[%s3351_s3 + $0x224] ss:$16 sps:$4 sm:$0xff]   ;;  %v2193_v57 = vld [vmem:[%s3351_s3 + $0x220] ss:$16 sps:$4 sm:$0xff]  }
  0x14   :  { %835 = vmatpush1.bf16.msra.mxu0 %v2156_v23  ;;  %875 = vmatprep.subr.bf16.mxu1 %v2178_v28  ;;  %v2194_v58 = vld [vmem:[%s3351_s3 + $0x184] ss:$16 sps:$4 sm:$0xff]   ;;  %v2198_v60 = vld [vmem:[%s3351_s3 + $0x180] ss:$16 sps:$4 sm:$0xff]  }
  0x15   :  { %836 = vmatprep.subr.bf16.mxu0 %v2158_v25  ;;  %v2196_v59 = vld [vmem:[%s3351_s3 + $0x204] ss:$16 sps:$4 sm:$0xff]   ;;  %v2199_v61 = vld [vmem:[%s3351_s3 + $0x200] ss:$16 sps:$4 sm:$0xff]   ;;  %v64_v25 = vshrl.u32 %v63_v24, 7 }
  0x16   :  { %v2200_v62 = vld [vmem:[%s3351_s3 + $0x164] ss:$16 sps:$4 sm:$0xff]   ;;  %v2210_v9 = vld [vmem:[%s3351_s3 + $0x140] ss:$16 sps:$4 sm:$0xff]   ;;  %v2269_v24 = vld [vmem:[%s3351_s3 + $0x208] ss:$16 sps:$4 sm:$0xff]  }
  0x17   :  { %876 = vmatpush1.bf16.msra.mxu1 %v2181_v30  ;;  %v2202_v63 = vld [vmem:[%s3351_s3 + $0x364] ss:$16 sps:$4 sm:$0x1f]   ;;  %v2211_v10 = vld [vmem:[%s3351_s3 + $0x340] ss:$16 sps:$4 sm:$0xff]   ;;  %v2757_v27 = vsub.s32 3, %v64_v25 }
  0x18   :  { %837 = vmatpush1.bf16.msra.mxu0 %v2162_v26  ;;  %877 = vmatprep.subr.bf16.mxu1 %v2184_v32  ;;  %v2206_v5 = vld [vmem:[%s3351_s3 + $0x144] ss:$16 sps:$4 sm:$0xff]   ;;  %v2216_v13 = vld [vmem:[%s3351_s3 + $0x120] ss:$16 sps:$4 sm:$0xff]   ;;  %v2755_v26 = vsub.s32 1, %v64_v25  ;;  %v2759_v28 = vsub.s32 0, %v64_v25 }
  0x19   :  { %838 = vmatprep.subr.bf16.mxu0 %v2164_v29  ;;  %v2208_v8 = vld [vmem:[%s3351_s3 + $0x344] ss:$16 sps:$4 sm:$0xff]   ;;  %v2217_v14 = vld [vmem:[%s3351_s3 + $0x320] ss:$16 sps:$4 sm:$0xff]   ;;  %v2761_v29 = vsub.s32 2, %v64_v25 }
  0x1a   :  { %v2212_v11 = vld [vmem:[%s3351_s3 + $0x124] ss:$16 sps:$4 sm:$0xff]   ;;  %v2222_v17 = vld [vmem:[%s3351_s3 + $0x100] ss:$16 sps:$4 sm:$0xff]  }
  0x1b   :  { %878 = vmatpush1.bf16.msra.mxu1 %v2187_v34  ;;  %v2214_v12 = vld [vmem:[%s3351_s3 + $0x324] ss:$16 sps:$4 sm:$0xff]   ;;  %v2223_v18 = vld [vmem:[%s3351_s3 + $0x300] ss:$16 sps:$4 sm:$0xff]  }
  0x1c   :  { %839 = vmatpush1.bf16.msra.mxu0 %v2168_v31  ;;  %879 = vmatprep.subr.bf16.mxu1 %v2190_v55  ;;  %v2218_v15 = vld [vmem:[%s3351_s3 + $0x104] ss:$16 sps:$4 sm:$0xff]   ;;  %v61_v30 = vld [vmem:[%s3353_s1] sm:$0xf] }
  0x1d   :  { %840 = vmatprep.subr.bf16.mxu0 %v2170_v33  ;;  %v2220_v16 = vld [vmem:[%s3351_s3 + $0x304] ss:$16 sps:$4 sm:$0xff]   ;;  %v87_v31 = vld [vmem:[%s3354_s2] sm:$0xf]  ;;  %v70_v32 = vrot.slane %v61_v30, %v2755_v26  ;;  %v78_v33 = vrot.slane %v61_v30, %v2757_v27  ;;  %v66_v34 = vrot.slane %v61_v30, %v2759_v28 }
  0x1e   :  { %v2275_v25 = vld [vmem:[%s3351_s3 + $0x368] ss:$16 sps:$4 sm:$0x1f]  }
  0x1f   :  { %880 = vmatpush1.bf16.msra.mxu1 %v2193_v57 }
  0x20   :  { %841 = vmatpush1.bf16.msra.mxu0 %v2174_v35  ;;  %881 = vmatprep.subr.bf16.mxu1 %v2196_v59  ;;  %v74_v35 = vrot.slane %v61_v30, %v2761_v29  ;;  %v2232_v59 = vld [vmem:[%s3351_s3 + $0xcc] ss:$16 sps:$4 sm:$0xff]  }
  0x21   :  { %842 = vmatprep.subr.bf16.mxu0 %v2176_v36  ;;  %v2274_v30 = vld [vmem:[%s3351_s3 + $0x1ec] ss:$16 sps:$4 sm:$0xff]  }
  0x23   :  { %882 = vmatpush1.bf16.msra.mxu1 %v2199_v61  ;;  %v2230_v61 = vld [vmem:[%s3351_s3 + $0xc8] ss:$16 sps:$4 sm:$0xff]  }
  0x24   :  { %843 = vmatpush2.bf16.msra.mxu0 %v2180_v37  ;;  %v96_v37 = vrot.slane %v87_v31, %v2755_v26 }
  0x25   :  { %844 = vmatprep.subr.bf16.mxu0 %v2182_v38  ;;  %v104_v38 = vrot.slane %v87_v31, %v2757_v27 }
  0x28   :  { %845 = vmatpush2.bf16.msra.mxu0 %v2186_v39  ;;  %v92_v39 = vrot.slane %v87_v31, %v2759_v28 }
  0x29   :  { %846 = vmatprep.subr.bf16.mxu0 %v2188_v54 }
  0x2c   :  { %847 = vmatpush2.bf16.msra.mxu0 %v2192_v56 }
  0x2d   :  { %848 = vmatprep.subr.bf16.mxu0 %v2194_v58 }
  0x30   :  { %849 = vmatpush2.bf16.msra.mxu0 %v2198_v60  ;;  %v2235_v60 = vld [vmem:[%s3351_s3 + $0x2cc] ss:$16 sps:$4 sm:$0xff]  }
  0x31   :  { %850 = vmatprep.subr.bf16.mxu0 %v2200_v62  ;;  %v2233_v62 = vld [vmem:[%s3351_s3 + $0x2c8] ss:$16 sps:$4 sm:$0xff]  }
  0x91   :  { %v37_v40 = vpop.xlane.xlu0 %36 }
  0x92   :  { %v39_v41 = vmul.f32 0.0022675737, %v37_v40  ;;  %v100_v40 = vrot.slane %v87_v31, %v2761_v29 }
  0x94   :  { %v2653_v42 = vsub.f32 %v2534_v0, %v39_v41  ;;  %v2656_v43 = vsub.f32 %v2539_v1, %v39_v41  ;;  %v2659_v44 = vsub.f32 %v2544_v2, %v39_v41  ;;  %v2662_v45 = vsub.f32 %v2549_v3, %v39_v41  ;;  %v2204_v2 = vld [vmem:[%s3351_s3 + $0x160] ss:$16 sps:$4 sm:$0xff]  }
  0x95   :  { %v2490_v0 = vmov 65535   ;;  %v2205_v3 = vld [vmem:[%s3351_s3 + $0x360] ss:$16 sps:$4 sm:$0x1f]   ;;  %851 = vmatpush2.bf16.msra.mxu0 %v2204_v2  ;;  %v2239_v2 = vld [vmem:[%s3351_s3 + $0x2a8] ss:$16 sps:$4 sm:$0xff]  }
  0x96   :  { %v44_v46 = vmul.f32 %v2653_v42, %v2653_v42  ;;  %v45_v47 = vmul.f32 %v2656_v43, %v2656_v43  ;;  %v47_v48 = vmul.f32 %v2662_v45, %v2662_v45  ;;  %v46_v49 = vmul.f32 %v2659_v44, %v2659_v44  ;;  %852 = vmatprep.subr.bf16.mxu0 %v2206_v5  ;;  %v2247_v5 = vld [vmem:[%s3351_s3 + $0x28c] ss:$16 sps:$4 sm:$0xff]  }
  0x97   :  { %v812_v1 = vsel %vm810_vm1, 4294967295, %v2490_v0  ;;  %v2241_v0 = vld [vmem:[%s3351_s3 + $0x2ac] ss:$16 sps:$4 sm:$0xff]  }
  0x98   :  { %v48_v50 = vadd.f32 %v45_v47, %v44_v46  ;;  %v50_v52 = vsel %vm33_vm0, %v47_v48, 0.0  ;;  %v2709_v4 = vsel %vm811_vm2, %v812_v1, 0  ;;  %v2236_v1 = vld [vmem:[%s3351_s3 + $0xa8] ss:$16 sps:$4 sm:$0xff]  }
  0x99   :  { %v818_v6 = vand.u32 %v2202_v63, %v2709_v4  ;;  %v815_v7 = vand.u32 %v2205_v3, %v2709_v4  ;;  %853 = vmatpush2.bf16.msra.mxu0 %v2210_v9  ;;  %v2238_v63 = vld [vmem:[%s3351_s3 + $0xac] ss:$16 sps:$4 sm:$0xff]  }
  0x9a   :  { %v49_v51 = vadd.f32 %v48_v50, %v46_v49  ;;  %854 = vmatprep.subr.bf16.mxu0 %v2212_v11  ;;  %v2244_v3 = vld [vmem:[%s3351_s3 + $0x8c] ss:$16 sps:$4 sm:$0xff]   ;;  %v2251_v11 = vld [vmem:[%s3351_s3 + $0x268] ss:$16 sps:$4 sm:$0xff]  }
  0x9b   :  { %891 = vmatprep.subr.bf16.mxu1 %v818_v6  ;;  %v2242_v6 = vld [vmem:[%s3351_s3 + $0x88] ss:$16 sps:$4 sm:$0xff]   ;;  %v2253_v9 = vld [vmem:[%s3351_s3 + $0x26c] ss:$16 sps:$4 sm:$0xff]  }
  0x9c   :  { %v51_v53 = vadd.f32 %v50_v52, %v49_v51  ;;  %892 = vmatpush2.bf16.msra.mxu1 %v815_v7  ;;  %v2245_v7 = vld [vmem:[%s3351_s3 + $0x288] ss:$16 sps:$4 sm:$0xff]  }
  0x9d   :  { %893 = vmatprep.subr.bf16.mxu1 %v2208_v8  ;;  %855 = vmatpush2.bf16.msra.mxu0 %v2216_v13  ;;  %v2250_v8 = vld [vmem:[%s3351_s3 + $0x6c] ss:$16 sps:$4 sm:$0xff]  }
  0x9e   :  { %52 = vadd.xlane.f32.xlu0 %v51_v53  ;;  %856 = vmatprep.subr.bf16.mxu0 %v2218_v15  ;;  %v2259_v13 = vld [vmem:[%s3351_s3 + $0x24c] ss:$16 sps:$4 sm:$0xff]   ;;  %v2257_v15 = vld [vmem:[%s3351_s3 + $0x248] ss:$16 sps:$4 sm:$0xff]  }
  0xa0   :  { %894 = vmatpush2.bf16.msra.mxu1 %v2211_v10  ;;  %v2248_v10 = vld [vmem:[%s3351_s3 + $0x68] ss:$16 sps:$4 sm:$0xff]  }
  0xa1   :  { %895 = vmatprep.subr.bf16.mxu1 %v2214_v12  ;;  %857 = vmatpush2.bf16.msra.mxu0 %v2222_v17  ;;  %v2256_v12 = vld [vmem:[%s3351_s3 + $0x4c] ss:$16 sps:$4 sm:$0xff]  }
  0xa2   :  { %949 = vmatprep.subr.bf16.mxu0 %v2229_v20  ;;  %v2265_v17 = vld [vmem:[%s3351_s3 + $0x22c] ss:$16 sps:$4 sm:$0xff]  }
  0xa3   :  { %v2268_v20 = vld [vmem:[%s3351_s3 + $0xc] ss:$16 sps:$4 sm:$0xff]  }
  0xa4   :  { %896 = vmatpush2.bf16.msra.mxu1 %v2217_v14  ;;  %v2254_v14 = vld [vmem:[%s3351_s3 + $0x48] ss:$16 sps:$4 sm:$0xff]  }
  0xa5   :  { %897 = vmatprep.subr.bf16.mxu1 %v2220_v16  ;;  %v2262_v16 = vld [vmem:[%s3351_s3 + $0x2c] ss:$16 sps:$4 sm:$0xff]  }
  0xa8   :  { %898 = vmatpush2.bf16.msra.mxu1 %v2223_v18  ;;  %v2260_v18 = vld [vmem:[%s3351_s3 + $0x28] ss:$16 sps:$4 sm:$0xff]  }
  0xa9   :  { %908 = vmatprep.subr.bf16.mxu1 %v2226_v19  ;;  %v2263_v19 = vld [vmem:[%s3351_s3 + $0x228] ss:$16 sps:$4 sm:$0xff]  }
 0x127   :  { %v53_v21 = vpop.xlane.xlu0 %52 }
 0x128   :  { %v54_v22 = vmul.f32 0.0022675737, %v53_v21  ;;  %v2271_v21 = vld [vmem:[%s3351_s3 + $0x20c] ss:$16 sps:$4 sm:$0xff]  }
 0x12a   :  { %v55_v23 = vadd.f32 1e-05, %v54_v22  ;;  %v2277_v22 = vld [vmem:[%s3351_s3 + $0x36c] ss:$16 sps:$4 sm:$0x1f]  }
 0x12b   :  { %v824_v31 = vand.u32 %v2277_v22, %v2709_v4  ;;  %v2353_v22 = vld [vmem:[%s3352_s5 + $0x100] ss:$16 sps:$4 sm:$0xff]  }
 0x12c   :  { %2476 = vrsqrt.f32 %v55_v23  ;;  %v2266_v23 = vld [vmem:[%s3351_s3 + $0x8] ss:$16 sps:$4 sm:$0xff]  }
 0x139   :  { %v2477_v36 = vpop.eup %2476 }
 0x13a   :  { %v58_v41 = vmul.f32 %v2477_v36, %v2656_v43  ;;  %v60_v46 = vmul.f32 %v2477_v36, %v2662_v45  ;;  %v57_v47 = vmul.f32 %v2477_v36, %v2653_v42  ;;  %v59_v48 = vmul.f32 %v2477_v36, %v2659_v44  ;;  %v2224_v43 = vld [vmem:[%s3351_s3 + $0xe8] ss:$16 sps:$4 sm:$0xff]  }
 0x13b   :  { %v2227_v42 = vld [vmem:[%s3351_s3 + $0x2e8] ss:$16 sps:$4 sm:$0xff]  }
 0x13c   :  { %v84_v49 = vmul.f32 %v70_v32, %v58_v41  ;;  %v86_v50 = vmul.f32 %v78_v33, %v60_v46  ;;  %v83_v51 = vmul.f32 %v66_v34, %v57_v47  ;;  %v85_v52 = vmul.f32 %v74_v35, %v59_v48  ;;  %v2272_v32 = vld [vmem:[%s3351_s3 + $0x1e8] ss:$16 sps:$4 sm:$0xff]   ;;  %v2280_v34 = vld [vmem:[%s3351_s3 + $0x1cc] ss:$16 sps:$4 sm:$0xff]  }
 0x13d   :  { %v821_v33 = vand.u32 %v2275_v25, %v2709_v4  ;;  %v2283_v35 = vld [vmem:[%s3351_s3 + $0x34c] ss:$16 sps:$4 sm:$0xff]   ;;  %v2278_v36 = vld [vmem:[%s3351_s3 + $0x1c8] ss:$16 sps:$4 sm:$0xff]  }
 0x13e   :  { %v110_v53 = vadd.f32 %v96_v37, %v84_v49  ;;  %v112_v54 = vadd.f32 %v104_v38, %v86_v50  ;;  %v109_v55 = vadd.f32 %v92_v39, %v83_v51  ;;  %v111_v56 = vadd.f32 %v100_v40, %v85_v52  ;;  %v2281_v37 = vld [vmem:[%s3351_s3 + $0x348] ss:$16 sps:$4 sm:$0xff]   ;;  %v2286_v38 = vld [vmem:[%s3351_s3 + $0x1ac] ss:$16 sps:$4 sm:$0xff]   ;;  %v2310_v51 = vld [vmem:[%s3352_s5 + $0xe4] ss:$16 sps:$4 sm:$0xff]  }
 0x13f   :  { %v2289_v39 = vld [vmem:[%s3351_s3 + $0x32c] ss:$16 sps:$4 sm:$0xff]   ;;  %v2284_v40 = vld [vmem:[%s3351_s3 + $0x1a8] ss:$16 sps:$4 sm:$0xff]  }
 0x140   :  { %v114_v57 = vpack.c.bf16 %v110_v53, %v110_v53  ;;  %v116_v58 = vpack.c.bf16 %v112_v54, %v112_v54  ;;  %v2787_v45 = vpack.c.bf16 %v109_v55, %v109_v55  ;;  %v2789_v44 = vpack.c.bf16 %v111_v56, %v111_v56  ;;  %v2287_v41 = vld [vmem:[%s3351_s3 + $0x328] ss:$16 sps:$4 sm:$0xff]   ;;  %v2292_v46 = vld [vmem:[%s3351_s3 + $0x18c] ss:$16 sps:$4 sm:$0xff]   ;;  %v2308_v53 = vld [vmem:[%s3352_s5 + $0xe0] ss:$16 sps:$4 sm:$0xff]  }
 0x141   :  { %v2295_v47 = vld [vmem:[%s3351_s3 + $0x30c] ss:$16 sps:$4 sm:$0xff]   ;;  %v2290_v48 = vld [vmem:[%s3351_s3 + $0x188] ss:$16 sps:$4 sm:$0xff]   ;;  %v2313_v55 = vld [vmem:[%s3352_s5 + $0xc4] ss:$16 sps:$4 sm:$0xff]  }
 0x142   :  { %858 = vmatprep.mubr.bf16.mxu0 %v114_v57  ;;  %2023 = vmatprep.mubr.msk.bf16.mxu1 %vm33_vm0, %v116_v58  ;;  %v2293_v49 = vld [vmem:[%s3351_s3 + $0x308] ss:$16 sps:$4 sm:$0xff]   ;;  %v2298_v50 = vld [vmem:[%s3351_s3 + $0x16c] ss:$16 sps:$4 sm:$0xff]  }
 0x143   :  { %859 = vmatmul.mubr.bf16.vlgmr.msra.gmra.mxu0 %v2787_v45  ;;  %900 = vmatmul.mubr.bf16.vlgmr.msra.gmra.mxu1 %v2789_v44  ;;  %v2296_v52 = vld [vmem:[%s3351_s3 + $0x168] ss:$16 sps:$4 sm:$0xff]   ;;  %v2301_v54 = vld [vmem:[%s3351_s3 + $0x14c] ss:$16 sps:$4 sm:$0xff]  }
 0x144   :  { %909 = vmatpush1.bf16.msra.mxu1 %v2224_v43  ;;  %950 = vmatpush1.bf16.msra.mxu0 %v2227_v42  ;;  %v2299_v56 = vld [vmem:[%s3351_s3 + $0x148] ss:$16 sps:$4 sm:$0xff]   ;;  %v2316_v43 = vld [vmem:[%s3352_s5 + $0xa4] ss:$16 sps:$4 sm:$0xff]   ;;  %v2361_v25 = vld [vmem:[%s3352_s5 + $0x2ec] ss:$16 sps:$4 sm:$0xff]  }
 0x145   :  { %940 = vmatprep.mubr.bf16.mxu1 %v114_v57  ;;  %2024 = vmatprep.mubr.msk.bf16.mxu0 %vm33_vm0, %v116_v58  ;;  %v2311_v57 = vld [vmem:[%s3352_s5 + $0xc0] ss:$16 sps:$4 sm:$0xff]   ;;  %v2304_v58 = vld [vmem:[%s3351_s3 + $0x12c] ss:$16 sps:$4 sm:$0xff]   ;;  %v2302_v42 = vld [vmem:[%s3351_s3 + $0x128] ss:$16 sps:$4 sm:$0xff]  }
 0x146   :  { %910 = vmatprep.subr.bf16.mxu1 %v2232_v59  ;;  %951 = vmatprep.subr.bf16.mxu0 %v2235_v60  ;;  %v2307_v59 = vld [vmem:[%s3351_s3 + $0x10c] ss:$16 sps:$4 sm:$0xff]   ;;  %v2319_v60 = vld [vmem:[%s3352_s5 + $0x84] ss:$16 sps:$4 sm:$0xff]  }
 0x148   :  { %911 = vmatpush1.bf16.msra.mxu1 %v2230_v61  ;;  %952 = vmatpush1.bf16.msra.mxu0 %v2233_v62  ;;  %v2305_v61 = vld [vmem:[%s3351_s3 + $0x108] ss:$16 sps:$4 sm:$0xff]   ;;  %v2317_v62 = vld [vmem:[%s3352_s5 + $0x80] ss:$16 sps:$4 sm:$0xff]  }
 0x149   :  { %912 = vmatprep.subr.bf16.mxu1 %v2238_v63  ;;  %953 = vmatprep.subr.bf16.mxu0 %v2241_v0  ;;  %v2322_v63 = vld [vmem:[%s3352_s5 + $0x64] ss:$16 sps:$4 sm:$0xff]   ;;  %v2320_v0 = vld [vmem:[%s3352_s5 + $0x60] ss:$16 sps:$4 sm:$0xff]  }
 0x14c   :  { %913 = vmatpush1.bf16.msra.mxu1 %v2236_v1  ;;  %954 = vmatpush1.bf16.msra.mxu0 %v2239_v2  ;;  %v2325_v1 = vld [vmem:[%s3352_s5 + $0x44] ss:$16 sps:$4 sm:$0xff]   ;;  %v2323_v2 = vld [vmem:[%s3352_s5 + $0x40] ss:$16 sps:$4 sm:$0xff]  }
 0x14d   :  { %914 = vmatprep.subr.bf16.mxu1 %v2244_v3  ;;  %955 = vmatprep.subr.bf16.mxu0 %v2247_v5  ;;  %v2328_v3 = vld [vmem:[%s3352_s5 + $0x24] ss:$16 sps:$4 sm:$0xff]   ;;  %v2326_v5 = vld [vmem:[%s3352_s5 + $0x20] ss:$16 sps:$4 sm:$0xff]  }
 0x150   :  { %915 = vmatpush1.bf16.msra.mxu1 %v2242_v6  ;;  %956 = vmatpush1.bf16.msra.mxu0 %v2245_v7  ;;  %v2329_v6 = vld [vmem:[%s3352_s5] ss:$16 sps:$4 sm:$0xff]   ;;  %v2334_v7 = vld [vmem:[%s3352_s5 + $0x1e4] ss:$16 sps:$4 sm:$0xff]  }
 0x151   :  { %916 = vmatprep.subr.bf16.mxu1 %v2250_v8  ;;  %957 = vmatprep.subr.bf16.mxu0 %v2253_v9  ;;  %v2332_v8 = vld [vmem:[%s3352_s5 + $0x1e0] ss:$16 sps:$4 sm:$0xff]   ;;  %v2337_v9 = vld [vmem:[%s3352_s5 + $0x1c4] ss:$16 sps:$4 sm:$0xff]  }
 0x154   :  { %917 = vmatpush1.bf16.msra.mxu1 %v2248_v10  ;;  %958 = vmatpush1.bf16.msra.mxu0 %v2251_v11  ;;  %v2335_v10 = vld [vmem:[%s3352_s5 + $0x1c0] ss:$16 sps:$4 sm:$0xff]   ;;  %v2340_v11 = vld [vmem:[%s3352_s5 + $0x1a4] ss:$16 sps:$4 sm:$0xff]  }
 0x155   :  { %918 = vmatprep.subr.bf16.mxu1 %v2256_v12  ;;  %959 = vmatprep.subr.bf16.mxu0 %v2259_v13  ;;  %v2338_v12 = vld [vmem:[%s3352_s5 + $0x1a0] ss:$16 sps:$4 sm:$0xff]   ;;  %v2343_v13 = vld [vmem:[%s3352_s5 + $0x184] ss:$16 sps:$4 sm:$0xff]  }
 0x158   :  { %919 = vmatpush1.bf16.msra.mxu1 %v2254_v14  ;;  %960 = vmatpush1.bf16.msra.mxu0 %v2257_v15  ;;  %v2341_v14 = vld [vmem:[%s3352_s5 + $0x180] ss:$16 sps:$4 sm:$0xff]   ;;  %v2346_v15 = vld [vmem:[%s3352_s5 + $0x164] ss:$16 sps:$4 sm:$0xff]  }
 0x159   :  { %920 = vmatprep.subr.bf16.mxu1 %v2262_v16  ;;  %961 = vmatprep.subr.bf16.mxu0 %v2265_v17  ;;  %v2344_v16 = vld [vmem:[%s3352_s5 + $0x160] ss:$16 sps:$4 sm:$0xff]   ;;  %v2349_v17 = vld [vmem:[%s3352_s5 + $0x144] ss:$16 sps:$4 sm:$0xff]  }
 0x15c   :  { %921 = vmatpush1.bf16.msra.mxu1 %v2260_v18  ;;  %962 = vmatpush1.bf16.msra.mxu0 %v2263_v19  ;;  %v2347_v18 = vld [vmem:[%s3352_s5 + $0x140] ss:$16 sps:$4 sm:$0xff]   ;;  %v2352_v19 = vld [vmem:[%s3352_s5 + $0x124] ss:$16 sps:$4 sm:$0xff]  }
 0x15d   :  { %922 = vmatprep.subr.bf16.mxu1 %v2268_v20  ;;  %963 = vmatprep.subr.bf16.mxu0 %v2271_v21  ;;  %v2350_v20 = vld [vmem:[%s3352_s5 + $0x120] ss:$16 sps:$4 sm:$0xff]   ;;  %v2355_v21 = vld [vmem:[%s3352_s5 + $0x104] ss:$16 sps:$4 sm:$0xff]  }
 0x160   :  { %923 = vmatpush1.bf16.msra.mxu1 %v2266_v23  ;;  %964 = vmatpush1.bf16.msra.mxu0 %v2269_v24  ;;  %v2358_v23 = vld [vmem:[%s3352_s5 + $0x2e4] ss:$16 sps:$4 sm:$0xff]   ;;  %v2356_v24 = vld [vmem:[%s3352_s5 + $0x2e0] ss:$16 sps:$4 sm:$0xff]  }
 0x161   :  { %924 = vmatprep.subr.bf16.mxu1 %v2274_v30  ;;  %973 = vmatprep.subr.bf16.mxu0 %v824_v31  ;;  %v2364_v30 = vld [vmem:[%s3352_s5 + $0x2c4] ss:$16 sps:$4 sm:$0xff]   ;;  %v2362_v31 = vld [vmem:[%s3352_s5 + $0x2c0] ss:$16 sps:$4 sm:$0xff]  }
 0x164   :  { %925 = vmatpush2.bf16.msra.mxu1 %v2272_v32  ;;  %974 = vmatpush2.bf16.msra.mxu0 %v821_v33  ;;  %v2370_v32 = vld [vmem:[%s3352_s5 + $0x2a4] ss:$16 sps:$4 sm:$0xff]   ;;  %v2368_v33 = vld [vmem:[%s3352_s5 + $0x2a0] ss:$16 sps:$4 sm:$0xff]  }
 0x165   :  { %926 = vmatprep.subr.bf16.mxu1 %v2280_v34  ;;  %975 = vmatprep.subr.bf16.mxu0 %v2283_v35  ;;  %v2376_v34 = vld [vmem:[%s3352_s5 + $0x284] ss:$16 sps:$4 sm:$0xff]   ;;  %v2374_v35 = vld [vmem:[%s3352_s5 + $0x280] ss:$16 sps:$4 sm:$0xff]  }
 0x168   :  { %927 = vmatpush2.bf16.msra.mxu1 %v2278_v36  ;;  %976 = vmatpush2.bf16.msra.mxu0 %v2281_v37  ;;  %v2382_v36 = vld [vmem:[%s3352_s5 + $0x264] ss:$16 sps:$4 sm:$0xff]   ;;  %v2380_v37 = vld [vmem:[%s3352_s5 + $0x260] ss:$16 sps:$4 sm:$0xff]  }
 0x169   :  { %928 = vmatprep.subr.bf16.mxu1 %v2286_v38  ;;  %977 = vmatprep.subr.bf16.mxu0 %v2289_v39  ;;  %v2388_v38 = vld [vmem:[%s3352_s5 + $0x244] ss:$16 sps:$4 sm:$0xff]   ;;  %v2386_v39 = vld [vmem:[%s3352_s5 + $0x240] ss:$16 sps:$4 sm:$0xff]  }
 0x16c   :  { %929 = vmatpush2.bf16.msra.mxu1 %v2284_v40  ;;  %978 = vmatpush2.bf16.msra.mxu0 %v2287_v41  ;;  %v2394_v40 = vld [vmem:[%s3352_s5 + $0x224] ss:$16 sps:$4 sm:$0xff]   ;;  %v2392_v41 = vld [vmem:[%s3352_s5 + $0x220] ss:$16 sps:$4 sm:$0xff]  }
 0x16d   :  { %930 = vmatprep.subr.bf16.mxu1 %v2292_v46  ;;  %979 = vmatprep.subr.bf16.mxu0 %v2295_v47  ;;  %v2398_v46 = vld [vmem:[%s3352_s5 + $0x200] ss:$16 sps:$4 sm:$0xff]   ;;  %v2400_v47 = vld [vmem:[%s3352_s5 + $0x204] ss:$16 sps:$4 sm:$0xff]  }
 0x170   :  { %931 = vmatpush2.bf16.msra.mxu1 %v2290_v48  ;;  %980 = vmatpush2.bf16.msra.mxu0 %v2293_v49  ;;  %v2404_v48 = vld [vmem:[%s3352_s5 + $0x360] ss:$16 sps:$4 sm:$0x1f]   ;;  %v2406_v49 = vld [vmem:[%s3352_s5 + $0x364] ss:$16 sps:$4 sm:$0x1f]  }
 0x171   :  { %932 = vmatprep.subr.bf16.mxu1 %v2298_v50  ;;  %1735 = vmatprep.subr.bf16.mxu0 %v2310_v51  ;;  %v1724_v50 = vand.u32 %v2404_v48, %v2709_v4  ;;  %v1727_v51 = vand.u32 %v2406_v49, %v2709_v4  ;;  %v2391_v48 = vld [vmem:[%s3352_s5 + $0x24c] ss:$16 sps:$4 sm:$0xff]   ;;  %v2389_v49 = vld [vmem:[%s3352_s5 + $0x248] ss:$16 sps:$4 sm:$0xff]  }
 0x173   :  { %982 = vmatmul.mubr.bf16.vlgmr.msra.gmra.mxu0 %v2789_v44  ;;  %v2314_v44 = vld [vmem:[%s3352_s5 + $0xa0] ss:$16 sps:$4 sm:$0xff]  }
 0x174   :  { %933 = vmatpush2.bf16.msra.mxu1 %v2296_v52  ;;  %1736 = vmatpush1.bf16.msra.mxu0 %v2308_v53  ;;  %v2412_v52 = vld [vmem:[%s3352_s5 + $0x344] ss:$16 sps:$4 sm:$0xff]   ;;  %v2410_v53 = vld [vmem:[%s3352_s5 + $0x340] ss:$16 sps:$4 sm:$0xff]  }
 0x175   :  { %934 = vmatprep.subr.bf16.mxu1 %v2301_v54  ;;  %1737 = vmatprep.subr.bf16.mxu0 %v2313_v55  ;;  %v2418_v54 = vld [vmem:[%s3352_s5 + $0x324] ss:$16 sps:$4 sm:$0xff]   ;;  %v2416_v55 = vld [vmem:[%s3352_s5 + $0x320] ss:$16 sps:$4 sm:$0xff]  }
 0x178   :  { %935 = vmatpush2.bf16.msra.mxu1 %v2299_v56  ;;  %1738 = vmatpush1.bf16.msra.mxu0 %v2311_v57  ;;  %v2424_v56 = vld [vmem:[%s3352_s5 + $0x304] ss:$16 sps:$4 sm:$0xff]   ;;  %v2422_v57 = vld [vmem:[%s3352_s5 + $0x300] ss:$16 sps:$4 sm:$0xff]  }
 0x179   :  { %936 = vmatprep.subr.bf16.mxu1 %v2304_v58  ;;  %1739 = vmatprep.subr.bf16.mxu0 %v2316_v43  ;;  %v2430_v58 = vld [vmem:[%s3352_s5 + $0xec] ss:$16 sps:$4 sm:$0xff]   ;;  %v3134_v43 = vld [vmem:[%s3355_s4] sm:$0xf] }
 0x17c   :  { %937 = vmatpush2.bf16.msra.mxu1 %v2302_v42  ;;  %1740 = vmatpush1.bf16.msra.mxu0 %v2314_v44  ;;  %v234_v42 = vrot.slane %v3134_v43, %v2759_v28  ;;  %v238_v44 = vrot.slane %v3134_v43, %v2755_v26 }
 0x17d   :  { %938 = vmatprep.subr.bf16.mxu1 %v2307_v59  ;;  %1741 = vmatprep.subr.bf16.mxu0 %v2319_v60 }
 0x180   :  { %939 = vmatpush2.bf16.msra.mxu1 %v2305_v61  ;;  %1742 = vmatpush1.bf16.msra.mxu0 %v2317_v62 }
 0x181   :  { %1743 = vmatprep.subr.bf16.mxu0 %v2322_v63  ;;  %1776 = vmatprep.subr.bf16.mxu1 %v2358_v23 }
 0x183   :  { %941 = vmatmul.mubr.bf16.vlgmr.msra.gmra.mxu1 %v2787_v45  ;;  %v2331_v45 = vld [vmem:[%s3352_s5 + $0x4] ss:$16 sps:$4 sm:$0xff]  }
 0x184   :  { %1744 = vmatpush1.bf16.msra.mxu0 %v2320_v0  ;;  %1777 = vmatpush1.bf16.msra.mxu1 %v2356_v24 }
 0x185   :  { %1745 = vmatprep.subr.bf16.mxu0 %v2325_v1  ;;  %1778 = vmatprep.subr.bf16.mxu1 %v2364_v30  ;;  %v2359_v30 = vld [vmem:[%s3352_s5 + $0x2e8] ss:$16 sps:$4 sm:$0xff]  }
 0x188   :  { %1746 = vmatpush1.bf16.msra.mxu0 %v2323_v2  ;;  %1779 = vmatpush1.bf16.msra.mxu1 %v2362_v31 }
 0x189   :  { %1747 = vmatprep.subr.bf16.mxu0 %v2328_v3  ;;  %1780 = vmatprep.subr.bf16.mxu1 %v2370_v32  ;;  %v2367_v32 = vld [vmem:[%s3352_s5 + $0x2cc] ss:$16 sps:$4 sm:$0xff]  }
 0x18c   :  { %1748 = vmatpush1.bf16.msra.mxu0 %v2326_v5  ;;  %1781 = vmatpush1.bf16.msra.mxu1 %v2368_v33  ;;  %v2365_v33 = vld [vmem:[%s3352_s5 + $0x2c8] ss:$16 sps:$4 sm:$0xff]  }
 0x18d   :  { %1749 = vmatprep.subr.bf16.mxu0 %v2331_v45  ;;  %1782 = vmatprep.subr.bf16.mxu1 %v2376_v34  ;;  %v2373_v34 = vld [vmem:[%s3352_s5 + $0x2ac] ss:$16 sps:$4 sm:$0xff]  }
 0x190   :  { %1750 = vmatpush1.bf16.msra.mxu0 %v2329_v6  ;;  %1783 = vmatpush1.bf16.msra.mxu1 %v2374_v35  ;;  %v2371_v35 = vld [vmem:[%s3352_s5 + $0x2a8] ss:$16 sps:$4 sm:$0xff]  }
 0x191   :  { %1751 = vmatprep.subr.bf16.mxu0 %v2334_v7  ;;  %1784 = vmatprep.subr.bf16.mxu1 %v2382_v36  ;;  %v2379_v36 = vld [vmem:[%s3352_s5 + $0x28c] ss:$16 sps:$4 sm:$0xff]  }
 0x194   :  { %1752 = vmatpush2.bf16.msra.mxu0 %v2332_v8  ;;  %1785 = vmatpush1.bf16.msra.mxu1 %v2380_v37 }
 0x195   :  { %1753 = vmatprep.subr.bf16.mxu0 %v2337_v9  ;;  %1786 = vmatprep.subr.bf16.mxu1 %v2388_v38  ;;  %v2377_v38 = vld [vmem:[%s3352_s5 + $0x288] ss:$16 sps:$4 sm:$0xff]  }
 0x198   :  { %1754 = vmatpush2.bf16.msra.mxu0 %v2335_v10  ;;  %1787 = vmatpush1.bf16.msra.mxu1 %v2386_v39 }
 0x199   :  { %1755 = vmatprep.subr.bf16.mxu0 %v2340_v11  ;;  %1788 = vmatprep.subr.bf16.mxu1 %v2394_v40  ;;  %v2385_v40 = vld [vmem:[%s3352_s5 + $0x26c] ss:$16 sps:$4 sm:$0xff]  }
 0x19c   :  { %1756 = vmatpush2.bf16.msra.mxu0 %v2338_v12  ;;  %1789 = vmatpush1.bf16.msra.mxu1 %v2392_v41 }
 0x19d   :  { %1757 = vmatprep.subr.bf16.mxu0 %v2343_v13  ;;  %1790 = vmatprep.subr.bf16.mxu1 %v2400_v47 }
 0x1a0   :  { %1758 = vmatpush2.bf16.msra.mxu0 %v2341_v14  ;;  %1791 = vmatpush1.bf16.msra.mxu1 %v2398_v46  ;;  %v2383_v46 = vld [vmem:[%s3352_s5 + $0x268] ss:$16 sps:$4 sm:$0xff]  }
 0x1a1   :  { %1759 = vmatprep.subr.bf16.mxu0 %v2346_v15  ;;  %1800 = vmatprep.subr.bf16.mxu1 %v1727_v51  ;;  %v242_v51 = vrot.slane %v3134_v43, %v2761_v29 }
 0x1a4   :  { %1760 = vmatpush2.bf16.msra.mxu0 %v2344_v16  ;;  %1801 = vmatpush2.bf16.msra.mxu1 %v1724_v50  ;;  %v2397_v50 = vld [vmem:[%s3352_s5 + $0x22c] ss:$16 sps:$4 sm:$0xff]  }
 0x1a5   :  { %1761 = vmatprep.subr.bf16.mxu0 %v2349_v17  ;;  %1802 = vmatprep.subr.bf16.mxu1 %v2412_v52  ;;  %v2395_v52 = vld [vmem:[%s3352_s5 + $0x228] ss:$16 sps:$4 sm:$0xff]  }
 0x1a8   :  { %1762 = vmatpush2.bf16.msra.mxu0 %v2347_v18  ;;  %1803 = vmatpush2.bf16.msra.mxu1 %v2410_v53  ;;  %v2403_v53 = vld [vmem:[%s3352_s5 + $0x20c] ss:$16 sps:$4 sm:$0xff]  }
 0x1a9   :  { %1763 = vmatprep.subr.bf16.mxu0 %v2352_v19  ;;  %1804 = vmatprep.subr.bf16.mxu1 %v2418_v54  ;;  %v2409_v54 = vld [vmem:[%s3352_s5 + $0x36c] ss:$16 sps:$4 sm:$0x1f]  }
 0x1ac   :  { %1764 = vmatpush2.bf16.msra.mxu0 %v2350_v20  ;;  %1805 = vmatpush2.bf16.msra.mxu1 %v2416_v55  ;;  %v246_v55 = vrot.slane %v3134_v43, %v2757_v27 }
 0x1ad   :  { %1765 = vmatprep.subr.bf16.mxu0 %v2355_v21  ;;  %1806 = vmatprep.subr.bf16.mxu1 %v2424_v56 }
 0x1b0   :  { %1766 = vmatpush2.bf16.msra.mxu0 %v2353_v22  ;;  %1807 = vmatpush2.bf16.msra.mxu1 %v2422_v57 }
 0x1b1   :  { %1858 = vmatprep.subr.bf16.mxu0 %v2361_v25  ;;  %1817 = vmatprep.subr.bf16.mxu1 %v2430_v58  ;;  %v2401_v58 = vld [vmem:[%s3352_s5 + $0x208] ss:$16 sps:$4 sm:$0xff]  }
 0x203   :  { %v860_v59 = vpop.f32.mrf.mxu0  ;;  %v901_v60 = vpop.f32.mrf.mxu1 }
 0x204   :  { %v861_v61 = vadd.f32 %v860_v59, %v234_v42  ;;  %v2407_v42 = vld [vmem:[%s3352_s5 + $0x368] ss:$16 sps:$4 sm:$0x1f]   ;;  %v1733_v59 = vand.u32 %v2409_v54, %v2709_v4  ;;  %v2460_v54 = vld [vmem:[%s3352_s5 + $0x1ac] ss:$16 sps:$4 sm:$0xff]  }
 0x205   :  { %v862_v62 = vpop.f32.mrf.mxu0  ;;  %v903_v63 = vpop.f32.mrf.mxu1 }
 0x206   :  { %v902_v0 = vadd.f32 %v901_v60, %v861_v61  ;;  %v863_v1 = vadd.f32 %v862_v62, %v238_v44 }
 0x207   :  { %v864_v2 = vpop.f32.mrf.mxu0  ;;  %v905_v3 = vpop.f32.mrf.mxu1 }
 0x208   :  { %v990_v5 = vmul.f32 %v902_v0, %v902_v0  ;;  %v904_v45 = vadd.f32 %v903_v63, %v863_v1  ;;  %v2415_v2 = vld [vmem:[%s3352_s5 + $0x34c] ss:$16 sps:$4 sm:$0xff]  }
 0x209   :  { %v865_v6 = vpop.f32.mrf.mxu0  ;;  %v906_v7 = vpop.f32.mrf.mxu1 }
 0x20a   :  { %v994_v8 = vmul.f32 %v990_v5, %v902_v0  ;;  %v991_v9 = vmul.f32 %v904_v45, %v904_v45  ;;  %v2413_v7 = vld [vmem:[%s3352_s5 + $0x348] ss:$16 sps:$4 sm:$0xff]  }
 0x20c   :  { %v998_v10 = vmul.f32 0.044715, %v994_v8  ;;  %v995_v11 = vmul.f32 %v991_v9, %v904_v45 }
 0x20e   :  { %v1002_v12 = vadd.f32 %v998_v10, %v902_v0  ;;  %v999_v13 = vmul.f32 0.044715, %v995_v11 }
 0x210   :  { %v1006_v14 = vmul.f32 0.7978846, %v1002_v12  ;;  %v1003_v15 = vadd.f32 %v999_v13, %v904_v45  ;;  %v2419_v12 = vld [vmem:[%s3352_s5 + $0x328] ss:$16 sps:$4 sm:$0xff]   ;;  %v2427_v13 = vld [vmem:[%s3352_s5 + $0x30c] ss:$16 sps:$4 sm:$0xff]  }
 0x212   :  { %2478 = vtanh.f32 %v1006_v14  ;;  %v1007_v16 = vmul.f32 0.7978846, %v1003_v15  ;;  %v2425_v15 = vld [vmem:[%s3352_s5 + $0x308] ss:$16 sps:$4 sm:$0xff]  }
 0x214   :  { %2480 = vtanh.f32 %v1007_v16 }
 0x21f   :  { %v2479_v17 = vpop.eup %2478 }
 0x220   :  { %v1014_v18 = vadd.f32 1.0, %v2479_v17 }
 0x221   :  { %v2481_v19 = vpop.eup %2480 }
 0x222   :  { %v1015_v20 = vadd.f32 1.0, %v2481_v19  ;;  %v1018_v21 = vmul.f32 0.5, %v1014_v18 }
 0x224   :  { %v1019_v22 = vmul.f32 0.5, %v1015_v20  ;;  %v1022_v23 = vmul.f32 %v1018_v21, %v902_v0  ;;  %v1730_v0 = vand.u32 %v2407_v42, %v2709_v4  ;;  %v2421_v4 = vld [vmem:[%s3352_s5 + $0x32c] ss:$16 sps:$4 sm:$0xff]   ;;  %v2464_v42 = vld [vmem:[%s3352_s5 + $0x168] ss:$16 sps:$4 sm:$0xff]  }
 0x226   :  { %v1023_v24 = vmul.f32 %v1019_v22, %v904_v45  ;;  %v3145_v31 = vpack.c.bf16 %v1022_v23, %v1022_v23 }
 0x228   :  { %v3140_v25 = vpack.c.bf16 %v1023_v24, %v1023_v24 }
 0x22a   :  { %1767 = vmatprep.mubr.bf16.mxu0 %v3140_v25 }
 0x22b   :  { %1768 = vmatmul.mubr.bf16.vlgmr.msra.gmra.mxu0 %v3145_v31 }
 0x22c   :  { %1859 = vmatpush1.bf16.msra.mxu0 %v2359_v30  ;;  %v2428_v30 = vld [vmem:[%s3352_s5 + $0xe8] ss:$16 sps:$4 sm:$0xff]  }
 0x22d   :  { %1860 = vmatprep.subr.bf16.mxu0 %v2367_v32 }
 0x230   :  { %1861 = vmatpush1.bf16.msra.mxu0 %v2365_v33  ;;  %v2433_v33 = vld [vmem:[%s3352_s5 + $0xcc] ss:$16 sps:$4 sm:$0xff]  }
 0x231   :  { %1862 = vmatprep.subr.bf16.mxu0 %v2373_v34  ;;  %v2431_v34 = vld [vmem:[%s3352_s5 + $0xc8] ss:$16 sps:$4 sm:$0xff]  }
 0x233   :  { %v983_v37 = vpop.f32.mrf.mxu0 }
 0x234   :  { %1863 = vmatpush1.bf16.msra.mxu0 %v2371_v35  ;;  %v2436_v35 = vld [vmem:[%s3352_s5 + $0xac] ss:$16 sps:$4 sm:$0xff]  }
 0x235   :  { %v985_v39 = vpop.f32.mrf.mxu0  ;;  %1864 = vmatprep.subr.bf16.mxu0 %v2379_v36  ;;  %v2434_v36 = vld [vmem:[%s3352_s5 + $0xa8] ss:$16 sps:$4 sm:$0xff]  }
 0x237   :  { %v987_v41 = vpop.f32.mrf.mxu0 }
 0x238   :  { %1865 = vmatpush1.bf16.msra.mxu0 %v2377_v38  ;;  %v2442_v38 = vld [vmem:[%s3352_s5 + $0x6c] ss:$16 sps:$4 sm:$0xff]   ;;  %v2443_v41 = vld [vmem:[%s3352_s5 + $0x48] ss:$16 sps:$4 sm:$0xff]  }
 0x239   :  { %v988_v47 = vpop.f32.mrf.mxu0  ;;  %1866 = vmatprep.subr.bf16.mxu0 %v2385_v40  ;;  %v2445_v40 = vld [vmem:[%s3352_s5 + $0x4c] ss:$16 sps:$4 sm:$0xff]  }
 0x23a   :  { %v2446_v47 = vld [vmem:[%s3352_s5 + $0x28] ss:$16 sps:$4 sm:$0xff]  }
 0x23c   :  { %1867 = vmatpush1.bf16.msra.mxu0 %v2383_v46  ;;  %v2448_v46 = vld [vmem:[%s3352_s5 + $0x2c] ss:$16 sps:$4 sm:$0xff]  }
 0x23d   :  { %1868 = vmatprep.subr.bf16.mxu0 %v2391_v48  ;;  %v2451_v48 = vld [vmem:[%s3352_s5 + $0xc] ss:$16 sps:$4 sm:$0xff]  }
 0x240   :  { %1869 = vmatpush1.bf16.msra.mxu0 %v2389_v49  ;;  %v2449_v49 = vld [vmem:[%s3352_s5 + $0x8] ss:$16 sps:$4 sm:$0xff]  }
 0x241   :  { %1870 = vmatprep.subr.bf16.mxu0 %v2397_v50  ;;  %v2454_v50 = vld [vmem:[%s3352_s5 + $0x1ec] ss:$16 sps:$4 sm:$0xff]  }
 0x243   :  { %v942_v56 = vpop.f32.mrf.mxu1 }
 0x244   :  { %v943_v57 = vadd.f32 %v942_v56, %v242_v51  ;;  %1871 = vmatpush1.bf16.msra.mxu0 %v2395_v52  ;;  %v2452_v51 = vld [vmem:[%s3352_s5 + $0x1e8] ss:$16 sps:$4 sm:$0xff]   ;;  %v2457_v52 = vld [vmem:[%s3352_s5 + $0x1cc] ss:$16 sps:$4 sm:$0xff]  }
 0x245   :  { %v944_v44 = vpop.f32.mrf.mxu1  ;;  %1872 = vmatprep.subr.bf16.mxu0 %v2403_v53  ;;  %v2455_v53 = vld [vmem:[%s3352_s5 + $0x1c8] ss:$16 sps:$4 sm:$0xff]   ;;  %v2463_v56 = vld [vmem:[%s3352_s5 + $0x18c] ss:$16 sps:$4 sm:$0xff]  }
 0x246   :  { %v984_v60 = vadd.f32 %v983_v37, %v943_v57  ;;  %v945_v61 = vadd.f32 %v944_v44, %v246_v55  ;;  %v2439_v37 = vld [vmem:[%s3352_s5 + $0x8c] ss:$16 sps:$4 sm:$0xff]   ;;  %v2458_v55 = vld [vmem:[%s3352_s5 + $0x1a8] ss:$16 sps:$4 sm:$0xff]  }
 0x247   :  { %v946_v62 = vpop.f32.mrf.mxu1  ;;  %v2461_v57 = vld [vmem:[%s3352_s5 + $0x188] ss:$16 sps:$4 sm:$0xff]   ;;  %v2469_v44 = vld [vmem:[%s3352_s5 + $0x14c] ss:$16 sps:$4 sm:$0xff]  }
 0x248   :  { %v992_v63 = vmul.f32 %v984_v60, %v984_v60  ;;  %v986_v43 = vadd.f32 %v985_v39, %v945_v61  ;;  %1873 = vmatpush1.bf16.msra.mxu0 %v2401_v58  ;;  %v2440_v39 = vld [vmem:[%s3352_s5 + $0x68] ss:$16 sps:$4 sm:$0xff]   ;;  %v2466_v58 = vld [vmem:[%s3352_s5 + $0x16c] ss:$16 sps:$4 sm:$0xff]  }
 0x249   :  { %v947_v1 = vpop.f32.mrf.mxu1  ;;  %1882 = vmatprep.subr.bf16.mxu0 %v1733_v59  ;;  %v2467_v59 = vld [vmem:[%s3352_s5 + $0x148] ss:$16 sps:$4 sm:$0xff]   ;;  %v2475_v62 = vld [vmem:[%s3352_s5 + $0x10c] ss:$16 sps:$4 sm:$0xff]  }
 0x24a   :  { %v996_v3 = vmul.f32 %v992_v63, %v984_v60  ;;  %v993_v5 = vmul.f32 %v986_v43, %v986_v43  ;;  %v2470_v61 = vld [vmem:[%s3352_s5 + $0x128] ss:$16 sps:$4 sm:$0xff]  }
 0x24b   :  { %v2473_v63 = vld [vmem:[%s3352_s5 + $0x108] ss:$16 sps:$4 sm:$0xff]  }
 0x24c   :  { %v1000_v45 = vmul.f32 0.044715, %v996_v3  ;;  %v997_v6 = vmul.f32 %v993_v5, %v986_v43  ;;  %1883 = vmatpush2.bf16.msra.mxu0 %v1730_v0  ;;  %v1142_v3 = vld [vmem:[%s3356_s6] sm:$0xf] }
 0x24d   :  { %1884 = vmatprep.subr.bf16.mxu0 %v2415_v2  ;;  %v1147_v5 = vrot.slane %v1142_v3, %v2759_v28 }
 0x24e   :  { %v1004_v8 = vadd.f32 %v1000_v45, %v984_v60  ;;  %v1001_v9 = vmul.f32 0.044715, %v997_v6  ;;  %v1151_v45 = vrot.slane %v1142_v3, %v2755_v26  ;;  %v2487_v26 = vld [vmem:[%s3350_s0 + $0x8] sm:$0xff] }
 0x250   :  { %v1008_v10 = vmul.f32 0.7978846, %v1004_v8  ;;  %v1005_v11 = vadd.f32 %v1001_v9, %v986_v43  ;;  %1885 = vmatpush2.bf16.msra.mxu0 %v2413_v7 }
 0x251   :  { %1886 = vmatprep.subr.bf16.mxu0 %v2421_v4 }
 0x252   :  { %2482 = vtanh.f32 %v1008_v10  ;;  %v1009_v14 = vmul.f32 0.7978846, %v1005_v11 }
 0x254   :  { %2484 = vtanh.f32 %v1009_v14  ;;  %1887 = vmatpush2.bf16.msra.mxu0 %v2419_v12 }
 0x255   :  { %1888 = vmatprep.subr.bf16.mxu0 %v2427_v13 }
 0x258   :  { %1889 = vmatpush2.bf16.msra.mxu0 %v2425_v15 }
 0x25f   :  { %v2483_v16 = vpop.eup %2482 }
 0x260   :  { %v1016_v17 = vadd.f32 1.0, %v2483_v16 }
 0x261   :  { %v2485_v18 = vpop.eup %2484 }
 0x262   :  { %v1017_v19 = vadd.f32 1.0, %v2485_v18  ;;  %v1020_v20 = vmul.f32 0.5, %v1016_v17  ;;  %v1155_v18 = vrot.slane %v1142_v3, %v2761_v29 }
 0x264   :  { %v1021_v21 = vmul.f32 0.5, %v1017_v19  ;;  %v1024_v22 = vmul.f32 %v1020_v20, %v984_v60  ;;  %v2472_v60 = vld [vmem:[%s3352_s5 + $0x12c] ss:$16 sps:$4 sm:$0xff]   ;;  %v1159_v19 = vrot.slane %v1142_v3, %v2757_v27 }
 0x265   :  { %v2489_v27 = vld [vmem:[%s3350_s0 + $0x18] sm:$0xff] }
 0x266   :  { %v1025_v23 = vmul.f32 %v1021_v21, %v986_v43  ;;  %v1028_v32 = vpack.c.bf16 %v1024_v22, %v1024_v22 }
 0x268   :  { %v1029_v24 = vpack.c.bf16 %v1025_v23, %v1025_v23 }
 0x26a   :  { %2137 = vmatprep.mubr.msk.bf16.mxu1 %vm33_vm0, %v1029_v24  ;;  %2138 = vmatprep.mubr.msk.bf16.mxu0 %vm33_vm0, %v1029_v24 }
 0x26b   :  { %1809 = vmatmul.mubr.bf16.vlgmr.msra.gmra.mxu1 %v1028_v32  ;;  %1891 = vmatmul.mubr.bf16.vlgmr.msra.gmra.mxu0 %v1028_v32  ;;  %v2488_v32 = vld [vmem:[%s3350_s0 + $0x10] sm:$0xff] }
 0x26c   :  { %1818 = vmatpush1.bf16.msra.mxu1 %v2428_v30  ;;  %1849 = vmatprep.mubr.bf16.mxu1 %v3140_v25  ;;  %v2437_v25 = vld [vmem:[%s3352_s5 + $0x88] ss:$16 sps:$4 sm:$0xff]  }
 0x26d   :  { %1819 = vmatprep.subr.bf16.mxu1 %v2433_v33 }
 0x270   :  { %1820 = vmatpush1.bf16.msra.mxu1 %v2431_v34 }
 0x271   :  { %1821 = vmatprep.subr.bf16.mxu1 %v2436_v35 }
 0x274   :  { %1822 = vmatpush1.bf16.msra.mxu1 %v2434_v36 }
 0x275   :  { %1823 = vmatprep.subr.bf16.mxu1 %v2439_v37 }
 0x278   :  { %1824 = vmatpush1.bf16.msra.mxu1 %v2437_v25 }
 0x279   :  { %1825 = vmatprep.subr.bf16.mxu1 %v2442_v38 }
 0x27c   :  { %1826 = vmatpush1.bf16.msra.mxu1 %v2440_v39 }
 0x27d   :  { %1827 = vmatprep.subr.bf16.mxu1 %v2445_v40 }
 0x280   :  { %1828 = vmatpush1.bf16.msra.mxu1 %v2443_v41 }
 0x281   :  { %1829 = vmatprep.subr.bf16.mxu1 %v2448_v46 }
 0x284   :  { %1830 = vmatpush1.bf16.msra.mxu1 %v2446_v47 }
 0x285   :  { %1831 = vmatprep.subr.bf16.mxu1 %v2451_v48 }
 0x288   :  { %1832 = vmatpush1.bf16.msra.mxu1 %v2449_v49 }
 0x289   :  { %1833 = vmatprep.subr.bf16.mxu1 %v2454_v50 }
 0x28c   :  { %1834 = vmatpush2.bf16.msra.mxu1 %v2452_v51 }
 0x28d   :  { %1835 = vmatprep.subr.bf16.mxu1 %v2457_v52 }
 0x290   :  { %1836 = vmatpush2.bf16.msra.mxu1 %v2455_v53 }
 0x291   :  { %1837 = vmatprep.subr.bf16.mxu1 %v2460_v54 }
 0x294   :  { %1838 = vmatpush2.bf16.msra.mxu1 %v2458_v55 }
 0x295   :  { %1839 = vmatprep.subr.bf16.mxu1 %v2463_v56 }
 0x298   :  { %1840 = vmatpush2.bf16.msra.mxu1 %v2461_v57 }
 0x299   :  { %1841 = vmatprep.subr.bf16.mxu1 %v2466_v58 }
 0x29c   :  { %1842 = vmatpush2.bf16.msra.mxu1 %v2464_v42 }
 0x29d   :  { %1843 = vmatprep.subr.bf16.mxu1 %v2469_v44 }
 0x2a0   :  { %1844 = vmatpush2.bf16.msra.mxu1 %v2467_v59 }
 0x2a1   :  { %1845 = vmatprep.subr.bf16.mxu1 %v2472_v60 }
 0x2a4   :  { %1846 = vmatpush2.bf16.msra.mxu1 %v2470_v61 }
 0x2a5   :  { %1847 = vmatprep.subr.bf16.mxu1 %v2475_v62 }
 0x2a8   :  { %1848 = vmatpush2.bf16.msra.mxu1 %v2473_v63 }
 0x2ab   :  { %1850 = vmatmul.mubr.bf16.vlgmr.msra.gmra.mxu1 %v3145_v31  ;;  %v2486_v31 = vld [vmem:[%s3350_s0] sm:$0xff] }
 0x2eb   :  { %v1769_v43 = vpop.f32.mrf.mxu0 }
 0x2ec   :  { %v1770_v6 = vadd.f32 %v1769_v43, %v1147_v5 }
 0x2ed   :  { %v1771_v0 = vpop.f32.mrf.mxu0 }
 0x2ee   :  { %v1772_v8 = vadd.f32 %v1771_v0, %v1151_v45 }
 0x2ef   :  { %v1773_v1 = vpop.f32.mrf.mxu0 }
 0x2f1   :  { %v1774_v2 = vpop.f32.mrf.mxu0 }
 0x32b   :  { %v1810_v7 = vpop.f32.mrf.mxu1  ;;  %v1892_v4 = vpop.f32.mrf.mxu0 }
 0x32c   :  { %v1811_v9 = vadd.f32 %v1810_v7, %v1770_v6 }
 0x32d   :  { %v1812_v10 = vpop.f32.mrf.mxu1  ;;  %v1894_v11 = vpop.f32.mrf.mxu0 }
 0x32e   :  { %v1899_v12 = vadd.f32 %v2486_v31, %v1811_v9  ;;  %v1813_v13 = vadd.f32 %v1812_v10, %v1772_v8 }
 0x32f   :  { %v1814_v14 = vpop.f32.mrf.mxu1  ;;  %v1896_v15 = vpop.f32.mrf.mxu0 }
 0x330   :  { %1903 = vst [vmem:[%s3357_s7] sm:$0xff] %v1899_v12  ;;  %v1900_v28 = vadd.f32 %v2487_v26, %v1813_v13 }
 0x331   :  { %v1815_v16 = vpop.f32.mrf.mxu1  ;;  %v1897_v17 = vpop.f32.mrf.mxu0 }
 0x332   :  { %1904 = vst [vmem:[%s3357_s7 + $0x8] sm:$0xff] %v1900_v28 }
 0x36b   :  { %v1851_v20 = vpop.f32.mrf.mxu1 }
 0x36c   :  { %v1852_v21 = vadd.f32 %v1851_v20, %v1155_v18 }
 0x36d   :  { %v1853_v22 = vpop.f32.mrf.mxu1 }
 0x36e   :  { %v1893_v23 = vadd.f32 %v1892_v4, %v1852_v21  ;;  %v1854_v24 = vadd.f32 %v1853_v22, %v1159_v19 }
 0x36f   :  { %v1855_v30 = vpop.f32.mrf.mxu1 }
 0x370   :  { %v1901_v33 = vadd.f32 %v2488_v32, %v1893_v23  ;;  %v1895_v34 = vadd.f32 %v1894_v11, %v1854_v24 }
 0x371   :  { %v1856_v35 = vpop.f32.mrf.mxu1 }
 0x372   :  { %1905 = vst [vmem:[%s3357_s7 + $0x10] sm:$0xff] %v1901_v33  ;;  %v1902_v29 = vadd.f32 %v2489_v27, %v1895_v34 }
 0x374   :  { %1906 = vst.msk [vmem:[%s3357_s7 + $0x18] sm:$0xff] %vm33_vm0, %v1902_v29 }

// kernel: t2t_vit_forward.17
= control target key start
LH: loop header
LB: loop body
LE: loop exit
PB: predicated region body
PF: predicated region fallthrough
CT: control target
= control target key end

     0   :  { %s926_s12 = smov 0   ;;  %s928_s13 = smov 0   ;;  %s1011_s0 = inlined_call_operand.vmem [shape: f32[8,4096], index: 0, kind: input, shape index: {}]   ;;  %s1012_s1 = inlined_call_operand.vmem [shape: bf16[4096,32], index: 1, kind: input, shape index: {}]   ;;  %s1013_s2 = inlined_call_operand.vmem [shape: f32[1,32], index: 2, kind: input, shape index: {}]   ;;  %s1014_s3 = inlined_call_operand.vmem [shape: f32[8,32], index: 3, kind: output, shape index: {}]  }
   0x1   :  { %s930_s14 = smov 0  }
   0x2 LB: > { %s25_s15 = sadd.s32 1, %s899_s13  ;;  %p737_p0 = scmp.ge.s32.totalorder %s903_s14, 1  ;;  %s903_s14 = sphi %s930_s14, %s13_s14   ;;  %s899_s13 = sphi %s928_s13, %s1016_s13   ;;  %s895_s12 = sphi %s926_s12, %s1015_s12  }
   0x3   : > { %p26_p1 = scmp.ge.s32.totalorder %s25_s15, 8  ;;  %p189_p2 = scmp.lt.s32.totalorder %s903_s14, 9 }
   0x5   : > { %s1018_s15 = smov (%p26_p1, %s25_s15), 0  ;;  %p190_p3 = pnand %p737_p0, %p189_p2 }
   0x6   : > { %s738_s16 = sshll.u32 (!%p190_p3), %s895_s12, 2  ;;  %s740_s17 = sshll.u32 (!%p190_p3), %s895_s12, 6 }
   0x7   : > { %193 = sbr.rel (%p190_p3) target bundleno = 269 (0x10d), region = 32  ;;  %p233_p4 = scmp.lt.s32.totalorder (!%p190_p3), %s738_s16, 31 }
   0x8   : > { %p241_p5 = scmp.lt.s32.totalorder (!%p190_p3), %s740_s17, 511  ;;  %p742_p6 = scmp.ne.s32.totalorder (!%p190_p3), %s895_s12, 0 }
   0xc   : > { %s1020_s16 = smov (!%p233_p4, %s738_s16), 31  ;;  %s1022_s17 = smov (!%p241_p5, %s740_s17), 511 }
   0xd   : > { %s739_s18 = sshll.u32 %s1020_s16, 3  ;;  %s741_s22 = sshll.u32 %s1022_s17, 2 }
   0xe   : > { %s951_s21 = scalar_lea.vmem %s1011_s0, %s739_s18  ;;  %s956_s25 = scalar_lea.vmem %s1012_s1, %s741_s22 }
   0xf   : > { %263 = sbr.rel (%p742_p6) target bundleno = 22 (0x16), region = 36 }
  0x14   : > { %vm264_vm0 = vcmask 261120   ;;  %v905_v0 = vmov 0.0  }
  0x15   : > { %265 = vst.msk [vmem:[#allocation2] sm:$0xff] %vm264_vm0, %v905_v0 }
  0x16 PF: > { %v849_v1 = vld [vmem:[%s956_s25 + $0x78] sm:$0xff]   ;;  %v853_v5 = vld [vmem:[%s956_s25 + $0x70] sm:$0xff]   ;;  %v857_v9 = vld [vmem:[%s956_s25 + $0x68] sm:$0xff]   ;;  %vm612_vm1 = vcmask 261120   ;;  %p775_p7 = scmp.ne.s32.totalorder %s895_s12, 7 }
  0x17   : > { %v850_v2 = vld [vmem:[%s956_s25 + $0xf8] sm:$0xff]   ;;  %780 = vmatprep.subr.bf16.mxu0 %v849_v1  ;;  %v854_v6 = vld [vmem:[%s956_s25 + $0xf0] sm:$0xff]   ;;  %v858_v10 = vld [vmem:[%s956_s25 + $0xe8] sm:$0xff]  }
  0x18   : > { %v851_v3 = vld [vmem:[%s956_s25 + $0x38] sm:$0xff]   ;;  %802 = vmatprep.subr.bf16.mxu1 %v850_v2  ;;  %v855_v7 = vld [vmem:[%s956_s25 + $0x30] sm:$0xff]   ;;  %v859_v11 = vld [vmem:[%s956_s25 + $0x28] sm:$0xff]  }
  0x19   : > { %v852_v4 = vld [vmem:[%s956_s25 + $0xb8] sm:$0xff]   ;;  %781 = vmatpush3.bf16.msra.mxu0 %v851_v3  ;;  %v856_v8 = vld [vmem:[%s956_s25 + $0xb0] sm:$0xff]   ;;  %v860_v12 = vld [vmem:[%s956_s25 + $0xa8] sm:$0xff]  }
  0x1a   : > { %803 = vmatpush3.bf16.msra.mxu1 %v852_v4  ;;  %782 = vmatprep.subr.bf16.mxu0 %v853_v5  ;;  %v861_v13 = vld [vmem:[%s956_s25 + $0x60] sm:$0xff]   ;;  %v865_v17 = vld [vmem:[%s956_s25 + $0x58] sm:$0xff]   ;;  %v869_v21 = vld [vmem:[%s956_s25 + $0x50] sm:$0xff]  }
  0x1b   : > { %804 = vmatprep.subr.bf16.mxu1 %v854_v6  ;;  %v862_v14 = vld [vmem:[%s956_s25 + $0xe0] sm:$0xff]   ;;  %v866_v18 = vld [vmem:[%s956_s25 + $0xd8] sm:$0xff]   ;;  %v870_v22 = vld [vmem:[%s956_s25 + $0xd0] sm:$0xff]  }
  0x1c   : > { %v863_v15 = vld [vmem:[%s956_s25 + $0x20] sm:$0xff]   ;;  %v867_v19 = vld [vmem:[%s956_s25 + $0x18] sm:$0xff]   ;;  %v871_v23 = vld [vmem:[%s956_s25 + $0x10] sm:$0xff]  }
  0x1d   : > { %783 = vmatpush3.bf16.msra.mxu0 %v855_v7  ;;  %v864_v16 = vld [vmem:[%s956_s25 + $0xa0] sm:$0xff]   ;;  %v868_v20 = vld [vmem:[%s956_s25 + $0x98] sm:$0xff]   ;;  %v872_v24 = vld [vmem:[%s956_s25 + $0x90] sm:$0xff]  }
  0x1e   : > { %805 = vmatpush3.bf16.msra.mxu1 %v856_v8  ;;  %784 = vmatprep.subr.bf16.mxu0 %v857_v9  ;;  %v873_v25 = vld [vmem:[%s956_s25 + $0x48] sm:$0xff]   ;;  %v877_v29 = vld [vmem:[%s956_s25 + $0x40] sm:$0xff]   ;;  %v270_v34 = vld [vmem:[%s951_s21 + $0x18] sm:$0xff] }
  0x1f   : > { %806 = vmatprep.subr.bf16.mxu1 %v858_v10  ;;  %v874_v26 = vld [vmem:[%s956_s25 + $0xc8] sm:$0xff]   ;;  %v878_v30 = vld [vmem:[%s956_s25 + $0xc0] sm:$0xff]   ;;  %v274_v37 = vpack.c.bf16 %v270_v34, %v270_v34  ;;  %v269_v39 = vld [vmem:[%s951_s21 + $0x10] sm:$0xff] }
  0x20   : > { %v875_v27 = vld [vmem:[%s956_s25 + $0x8] sm:$0xff]   ;;  %v879_v31 = vld [vmem:[%s956_s25] sm:$0xff]   ;;  %v273_v40 = vpack.c.bf16 %v269_v39, %v269_v39 }
  0x21   : > { %785 = vmatpush3.bf16.msra.mxu0 %v859_v11  ;;  %v876_v28 = vld [vmem:[%s956_s25 + $0x88] sm:$0xff]   ;;  %v880_v32 = vld [vmem:[%s956_s25 + $0x80] sm:$0xff]   ;;  %603 = vmatprep.mubr.bf16.mxu1 %v274_v37 }
  0x22   : > { %807 = vmatpush3.bf16.msra.mxu1 %v860_v12  ;;  %786 = vmatprep.subr.bf16.mxu0 %v861_v13  ;;  %v268_v33 = vld [vmem:[%s951_s21 + $0x8] sm:$0xff]  ;;  %v267_v35 = vld [vmem:[%s951_s21] sm:$0xff] }
  0x23   : > { %808 = vmatprep.subr.bf16.mxu1 %v862_v14  ;;  %v272_v36 = vpack.c.bf16 %v268_v33, %v268_v33  ;;  %v271_v38 = vpack.c.bf16 %v267_v35, %v267_v35  ;;  %v266_v47 = vld [vmem:[#allocation2] sm:$0xff] }
  0x25   : > { %787 = vmatpush3.bf16.msra.mxu0 %v863_v15  ;;  %563 = vmatprep.mubr.bf16.mxu0 %v272_v36 }
  0x26   : > { %809 = vmatpush3.bf16.msra.mxu1 %v864_v16  ;;  %788 = vmatprep.subr.bf16.mxu0 %v865_v17 }
  0x27   : > { %810 = vmatprep.subr.bf16.mxu1 %v866_v18 }
  0x29   : > { %789 = vmatpush3.bf16.msra.mxu0 %v867_v19 }
  0x2a   : > { %811 = vmatpush3.bf16.msra.mxu1 %v868_v20  ;;  %790 = vmatprep.subr.bf16.mxu0 %v869_v21 }
  0x2b   : > { %812 = vmatprep.subr.bf16.mxu1 %v870_v22 }
  0x2d   : > { %791 = vmatpush3.bf16.msra.mxu0 %v871_v23 }
  0x2e   : > { %813 = vmatpush3.bf16.msra.mxu1 %v872_v24  ;;  %792 = vmatprep.subr.bf16.mxu0 %v873_v25 }
  0x2f   : > { %814 = vmatprep.subr.bf16.mxu1 %v874_v26 }
  0x31   : > { %793 = vmatpush3.bf16.msra.mxu0 %v875_v27 }
  0x32   : > { %815 = vmatpush3.bf16.msra.mxu1 %v876_v28  ;;  %794 = vmatprep.subr.bf16.mxu0 %v877_v29 }
  0x33   : > { %816 = vmatprep.subr.bf16.mxu1 %v878_v30 }
  0x35   : > { %795 = vmatpush3.bf16.msra.mxu0 %v879_v31 }
  0x36   : > { %817 = vmatpush3.bf16.msra.mxu1 %v880_v32 }
  0x38   : > { %564 = vmatmul.mubr.bf16.vlgmr.msra.gmra.mxu0 %v271_v38 }
  0x39   : > { %604 = vmatmul.mubr.bf16.vlgmr.msra.gmra.mxu1 %v273_v40 }
  0xf8   : > { %v796_v41 = vpop.f32.mrf.mxu0 }
  0xf9   : > { %v818_v42 = vpop.f32.mrf.mxu1 }
  0xfa   : > { %v797_v43 = vpop.f32.mrf.mxu0 }
  0xfb   : > { %v819_v44 = vpop.f32.mrf.mxu1  ;;  %v798_v45 = vadd.f32 %v797_v43, %v796_v41 }
  0xfc   : > { %v820_v46 = vadd.f32 %v819_v44, %v818_v42  ;;  %v799_v48 = vpop.f32.mrf.mxu0 }
  0xfd   : > { %v821_v49 = vpop.f32.mrf.mxu1 }
  0xfe   : > { %v606_v50 = vadd.f32 %v820_v46, %v798_v45  ;;  %v800_v51 = vpop.f32.mrf.mxu0  ;;  %617 = sbr.rel (%p775_p7) target bundleno = 269 (0x10d), region = 40 }
  0xff   : > { %v822_v52 = vpop.f32.mrf.mxu1 }
 0x100   : > { %v611_v53 = vadd.f32 %v606_v50, %v266_v47 }
 0x102   : > { %613 = vst.msk [vmem:[#allocation2] sm:$0xff] %vm612_vm1, %v611_v53 }
 0x103   : > { %v776_v55 = vld [vmem:[%s1013_s2] ss:$0 sm:$0xff] }
 0x109   : > { %v618_v54 = vld [vmem:[#allocation2] sm:$0xff] }
 0x10a   : > { %v626_v56 = vadd.f32 %v776_v55, %v618_v54 }
 0x10c   : > { %627 = vst.msk [vmem:[%s1014_s3] sm:$0xff] %vm612_vm1, %v626_v56 }
 0x10d PF: > { %s13_s14 = sadd.s32 1, %s903_s14   ;;  %s1015_s12 = smov %s899_s13 }
 0x10e   : > { %p10_p8 = scmp.ge.s32.totalorder %s13_s14, 10   ;;  %s1016_s13 = smov %s1018_s15 }
 0x110   :  { %12 = sbr.rel (!%p10_p8) target bundleno = 2 (0x2), region = 76 }

// kernel: t2t_vit_forward.18
= control target key start
LH: loop header
LB: loop body
LE: loop exit
PB: predicated region body
PF: predicated region fallthrough
CT: control target
= control target key end

     0   :  { %vm22_vm0 = vcmask 261120   ;;  %v150_v7 = vmov 0.0   ;;  %vm151_vm1 = vmmov 0   ;;  %vm121_vm2 = vcmask 781312   ;;  %s206_s0 = inlined_call_operand.vmem [shape: f32[8,32], index: 0, kind: input, shape index: {}]   ;;  %s207_s1 = inlined_call_operand.vmem [shape: bf16[32,96], index: 1, kind: input, shape index: {}]   ;;  %s208_s3 = inlined_call_operand.vmem [shape: f32[1,32], index: 3, kind: input, shape index: {}]   ;;  %s209_s4 = inlined_call_operand.vmem [shape: f32[1,32], index: 4, kind: input, shape index: {}]   ;;  %s210_s2 = inlined_call_operand.vmem [shape: f32[1,96], index: 2, kind: input, shape index: {}]   ;;  %s211_s5 = inlined_call_operand.vmem [shape: bf16[8,96], index: 5, kind: output, shape index: {}]  }
   0x1   :  { %v21_v0 = vld [vmem:[%s206_s0] sm:$0xff]  ;;  %136 = vmatprep.subr.bf16.mxu0 %v150_v7  ;;  %v146_v8 = vld [vmem:[%s207_s1 + $0x8] sm:$0xff]   ;;  %140 = vmatprep.mubr.msk.bf16.mxu0 %vm151_vm1, %v150_v7 }
   0x2   :  { %v23_v1 = vsel %vm22_vm0, %v21_v0, 0.0  ;;  %137 = vmatpush3.bf16.msra.mxu0 %v146_v8  ;;  %v147_v9 = vld [vmem:[%s207_s1] sm:$0xff]  }
   0x3   :  { %24 = vadd.xlane.f32.xlu0 %v23_v1  ;;  %138 = vmatprep.subr.bf16.mxu0 %v150_v7  ;;  %v127_v14 = vld [vmem:[%s208_s3] ss:$0 sm:$0xff] }
   0x4   :  { %v128_v16 = vld [vmem:[%s209_s4] ss:$0 sm:$0xff] }
   0x5   :  { %v129_v20 = vld [vmem:[%s210_s2] ss:$0 sm:$0xff] }
   0x6   :  { %139 = vmatpush3.bf16.msra.mxu0 %v147_v9 }
  0x8c   :  { %v25_v2 = vpop.xlane.xlu0 %24 }
  0x8d   :  { %v27_v3 = vmul.f32 0.03125, %v25_v2 }
  0x8f   :  { %v28_v4 = vsub.f32 %v21_v0, %v27_v3 }
  0x91   :  { %v29_v5 = vmul.f32 %v28_v4, %v28_v4 }
  0x93   :  { %v30_v6 = vsel %vm22_vm0, %v29_v5, 0.0 }
  0x94   :  { %31 = vadd.xlane.f32.xlu0 %v30_v6 }
 0x11d   :  { %v32_v10 = vpop.xlane.xlu0 %31 }
 0x11e   :  { %v33_v11 = vmul.f32 0.03125, %v32_v10 }
 0x120   :  { %v34_v12 = vadd.f32 1e-05, %v33_v11 }
 0x122   :  { %148 = vrsqrt.f32 %v34_v12 }
 0x12f   :  { %v149_v13 = vpop.eup %148 }
 0x130   :  { %v36_v15 = vmul.f32 %v149_v13, %v28_v4 }
 0x132   :  { %v44_v17 = vmul.f32 %v127_v14, %v36_v15 }
 0x134   :  { %v52_v18 = vadd.f32 %v128_v16, %v44_v17 }
 0x136   :  { %v53_v19 = vpack.c.bf16 %v52_v18, %v52_v18 }
 0x138   :  { %141 = vmatmul.mubr.msk.bf16.vlgmr.msra.gmra.mxu0 %vm22_vm0, %v53_v19 }
 0x1f8   :  { %v114_v21 = vpop.f32.mrf.mxu0 }
 0x1f9   :  { %v115_v22 = vadd.f32 %v129_v20, %v114_v21 }
 0x1fa   :  { %v142_v23 = vpop.f32.mrf.mxu0 }
 0x1fb   :  { %v120_v24 = vpack.c.bf16 %v115_v22, %v115_v22 }
 0x1fc   :  { %v117_v25 = vpop.f32.mrf.mxu0 }
 0x1fd   :  { %122 = vst.msk [vmem:[%s211_s5] sm:$0xf] %vm121_vm2, %v120_v24 }
 0x1fe   :  { %v143_v26 = vpop.f32.mrf.mxu0 }

// kernel: t2t_vit_forward.20
= control target key start
LH: loop header
LB: loop body
LE: loop exit
PB: predicated region body
PF: predicated region fallthrough
CT: control target
= control target key end

     0   :  { %vm28_vm0 = vcmask 261120   ;;  %v277_v7 = vmov 0.0   ;;  %vm278_vm1 = vmmov 0   ;;  %vm175_vm2 = vcmask 523264   ;;  %s364_s0 = inlined_call_operand.vmem [shape: f32[8,32], index: 0, kind: input, shape index: {}]   ;;  %s365_s3 = inlined_call_operand.vmem [shape: bf16[32,64], index: 3, kind: input, shape index: {}]   ;;  %s366_s1 = inlined_call_operand.vmem [shape: f32[1,32], index: 1, kind: input, shape index: {}]   ;;  %s367_s2 = inlined_call_operand.vmem [shape: f32[1,32], index: 2, kind: input, shape index: {}]   ;;  %s368_s5 = inlined_call_operand.vmem [shape: bf16[64,32], index: 5, kind: input, shape index: {}]   ;;  %s369_s4 = inlined_call_operand.vmem [shape: f32[1,64], index: 4, kind: input, shape index: {}]   ;;  %s370_s6 = inlined_call_operand.vmem [shape: f32[1,32], index: 6, kind: input, shape index: {}]   ;;  %s371_s7 = inlined_call_operand.vmem [shape: f32[8,32], index: 7, kind: output, shape index: {}]  }
   0x1   :  { %v322_v0 = vld [vmem:[%s364_s0] sm:$0xff]  ;;  %245 = vmatprep.subr.bf16.mxu0 %v277_v7  ;;  %v267_v8 = vld [vmem:[%s365_s3 + $0x8] sm:$0xff]   ;;  %249 = vmatprep.mubr.msk.bf16.mxu0 %vm278_vm1, %v277_v7  ;;  %v269_v20 = vld [vmem:[%s368_s5 + $0x18] sm:$0xff]  }
   0x2   :  { %v29_v1 = vsel %vm28_vm0, %v322_v0, 0.0  ;;  %253 = vmatprep.subr.bf16.mxu1 %v277_v7  ;;  %261 = vmatprep.mubr.msk.bf16.mxu1 %vm278_vm1, %v277_v7  ;;  %v268_v9 = vld [vmem:[%s365_s3] sm:$0xff]   ;;  %v270_v21 = vld [vmem:[%s368_s5 + $0x10] sm:$0xff]   ;;  %v271_v22 = vld [vmem:[%s368_s5 + $0x8] sm:$0xff]  }
   0x3   :  { %30 = vadd.xlane.f32.xlu0 %v29_v1  ;;  %246 = vmatpush3.bf16.msra.mxu0 %v267_v8  ;;  %v225_v14 = vld [vmem:[%s366_s1] ss:$0 sm:$0xff] }
   0x4   :  { %247 = vmatprep.subr.bf16.mxu0 %v277_v7  ;;  %v226_v16 = vld [vmem:[%s367_s2] ss:$0 sm:$0xff]  ;;  %254 = vmatpush3.bf16.msra.mxu1 %v269_v20 }
   0x5   :  { %255 = vmatprep.subr.bf16.mxu1 %v277_v7  ;;  %v272_v23 = vld [vmem:[%s368_s5] sm:$0xff]  }
   0x6   :  { %v227_v24 = vld [vmem:[%s369_s4] ss:$0 sm:$0xff] }
   0x7   :  { %248 = vmatpush3.bf16.msra.mxu0 %v268_v9  ;;  %v231_v40 = vld [vmem:[%s370_s6] ss:$0 sm:$0xff] }
   0x8   :  { %256 = vmatpush3.bf16.msra.mxu1 %v270_v21 }
   0x9   :  { %257 = vmatprep.subr.bf16.mxu1 %v277_v7 }
   0xc   :  { %258 = vmatpush3.bf16.msra.mxu1 %v271_v22 }
   0xd   :  { %259 = vmatprep.subr.bf16.mxu1 %v277_v7 }
  0x10   :  { %260 = vmatpush3.bf16.msra.mxu1 %v272_v23 }
  0x8c   :  { %v31_v2 = vpop.xlane.xlu0 %30 }
  0x8d   :  { %v33_v3 = vmul.f32 0.03125, %v31_v2 }
  0x8f   :  { %v34_v4 = vsub.f32 %v322_v0, %v33_v3 }
  0x91   :  { %v35_v5 = vmul.f32 %v34_v4, %v34_v4 }
  0x93   :  { %v36_v6 = vsel %vm28_vm0, %v35_v5, 0.0 }
  0x94   :  { %37 = vadd.xlane.f32.xlu0 %v36_v6 }
 0x11d   :  { %v38_v10 = vpop.xlane.xlu0 %37 }
 0x11e   :  { %v39_v11 = vmul.f32 0.03125, %v38_v10 }
 0x120   :  { %v40_v12 = vadd.f32 1e-05, %v39_v11 }
 0x122   :  { %273 = vrsqrt.f32 %v40_v12 }
 0x12f   :  { %v274_v13 = vpop.eup %273 }
 0x130   :  { %v42_v15 = vmul.f32 %v274_v13, %v34_v4 }
 0x132   :  { %v50_v17 = vmul.f32 %v225_v14, %v42_v15 }
 0x134   :  { %v58_v18 = vadd.f32 %v226_v16, %v50_v17 }
 0x136   :  { %v59_v19 = vpack.c.bf16 %v58_v18, %v58_v18 }
 0x138   :  { %250 = vmatmul.mubr.msk.bf16.vlgmr.msra.gmra.mxu0 %vm28_vm0, %v59_v19 }
 0x1f8   :  { %v120_v25 = vpop.f32.mrf.mxu0 }
 0x1f9   :  { %v121_v26 = vadd.f32 %v227_v24, %v120_v25 }
 0x1fa   :  { %v251_v27 = vpop.f32.mrf.mxu0 }
 0x1fb   :  { %v126_v28 = vmul.f32 %v121_v26, %v121_v26 }
 0x1fc   :  { %v123_v29 = vpop.f32.mrf.mxu0 }
 0x1fd   :  { %v127_v30 = vmul.f32 %v126_v28, %v121_v26 }
 0x1fe   :  { %v252_v31 = vpop.f32.mrf.mxu0 }
 0x1ff   :  { %v128_v32 = vmul.f32 0.044715, %v127_v30 }
 0x201   :  { %v129_v33 = vadd.f32 %v128_v32, %v121_v26 }
 0x203   :  { %v130_v34 = vmul.f32 0.7978846, %v129_v33 }
 0x205   :  { %275 = vtanh.f32 %v130_v34 }
 0x212   :  { %v276_v35 = vpop.eup %275 }
 0x213   :  { %v132_v36 = vadd.f32 1.0, %v276_v35 }
 0x215   :  { %v133_v37 = vmul.f32 0.5, %v132_v36 }
 0x217   :  { %v134_v38 = vmul.f32 %v133_v37, %v121_v26 }
 0x219   :  { %v135_v39 = vpack.c.bf16 %v134_v38, %v134_v38 }
 0x21b   :  { %262 = vmatmul.mubr.msk.bf16.vlgmr.msra.gmra.mxu1 %vm175_vm2, %v135_v39 }
 0x2db   :  { %v213_v41 = vpop.f32.mrf.mxu1 }
 0x2dc   :  { %v214_v42 = vadd.f32 %v231_v40, %v213_v41 }
 0x2dd   :  { %v263_v43 = vpop.f32.mrf.mxu1 }
 0x2de   :  { %v219_v44 = vadd.f32 %v214_v42, %v322_v0 }
 0x2df   :  { %v216_v45 = vpop.f32.mrf.mxu1 }
 0x2e0   :  { %220 = vst.msk [vmem:[%s371_s7] sm:$0xff] %vm28_vm0, %v219_v44 }
 0x2e1   :  { %v264_v46 = vpop.f32.mrf.mxu1 }

// kernel: t2t_vit_forward.19
= control target key start
LH: loop header
LB: loop body
LE: loop exit
PB: predicated region body
PF: predicated region fallthrough
CT: control target
= control target key end

     0   :  { %s1044_s18 = smov 0   ;;  %s1046_s19 = smov 0   ;;  %s1152_s0 = inlined_call_operand.vmem [shape: bf16[2,8,96], index: 0, kind: input, shape index: {}, may-alias: {0,1}]   ;;  %s1153_s1 = inlined_call_operand.vmem [shape: bf16[2,8,96], index: 1, kind: input, shape index: {}, may-alias: {0,1}]   ;;  %s1154_s2 = inlined_call_operand.vmem [shape: bf16[32,32], index: 2, kind: input, shape index: {}]   ;;  %s1155_s3 = inlined_call_operand.vmem [shape: f32[1,32], index: 3, kind: input, shape index: {}]   ;;  %s1156_s4 = inlined_call_operand.vmem [shape: f32[2,8,32], index: 4, kind: input, shape index: {}]   ;;  %s1157_s5 = inlined_call_operand.vmem [shape: f32[2,8,32], index: 5, kind: output, shape index: {}]  }
   0x1   :  { %s1048_s20 = smov 0  }
   0x2 LB: > { %s34_s21 = sadd.s32 1, %s999_s19  ;;  %p865_p0 = scmp.ge.s32.totalorder %s1003_s20, 1  ;;  %s1003_s20 = sphi %s1048_s20, %s15_s20   ;;  %s999_s19 = sphi %s1046_s19, %s1159_s19   ;;  %s995_s18 = sphi %s1044_s18, %s1158_s18  }
   0x3   : > { %p36_p1 = scmp.ge.s32.totalorder %s34_s21, 2  ;;  %p240_p2 = scmp.lt.s32.totalorder %s1003_s20, 3 }
   0x5   : > { %s1161_s21 = smov (%p36_p1, %s34_s21), 0  ;;  %p241_p3 = pnand %p865_p0, %p240_p2 }
   0x6   : > { %p286_p4 = scmp.lt.s32.totalorder (!%p241_p3), %s995_s18, 1  ;;  %s1007_s26 = smov (!%p241_p3), 96  }
   0x7   : > { %244 = sbr.rel (%p241_p3) target bundleno = 1597 (0x63d), region = 40  ;;  %s1010_s30 = smov (!%p241_p3), 64  }
   0x8   : > { %s1011_s6 = smov (!%p241_p3), 80   ;;  %s1012_s7 = smov (!%p241_p3), 112  }
   0x9   : > { %s1013_s8 = smov (!%p241_p3), 48  }
   0xc   : > { %vm324_vm0 = vcmask 130048   ;;  %v1005_v0 = vmov 0.0   ;;  %vm1006_vm1 = vmmov 0   ;;  %s1163_s18 = smov (!%p286_p4, %s995_s18), 1  ;;  %vm319_vm2 = vcmask 7168   ;;  %v967_v60 = vld [vmem:[%s1154_s2] sm:$0xff]  }
   0xd   : > { %895 = vmatprep.subr.bf16.mxu0 %v1005_v0  ;;  %325 = vst.msk [vmem:[#allocation4] sm:$0xff] %vm324_vm0, %v1005_v0  ;;  %326 = vst.msk [vmem:[#allocation4 + $0x8] sm:$0xff] %vm324_vm0, %v1005_v0  ;;  %897 = vmatprep.mubr.msk.bf16.mxu0 %vm1006_vm1, %v1005_v0  ;;  %s866_s22 = sshll.u32 %s1163_s18, 2  ;;  %v1008_v5 = vmov -1e+30   ;;  %v330_v6 = vlaneseq  ;;  %vm392_vm4 = vcmask 64512  }
   0xe   : > { %901 = vmatprep.subr.bf16.mxu1 %v1005_v0  ;;  %903 = vmatprep.mubr.msk.bf16.mxu1 %vm1006_vm1, %v1005_v0  ;;  %s299_s25 = scalar_lea.vmem %s1153_s1, %s866_s22  ;;  %s292_s29 = scalar_lea.vmem %s1152_s0, %s866_s22  ;;  %320 = vst.msk [vmem:[#allocation2] sm:$0xff] %vm319_vm2, %v1008_v5  ;;  %321 = vst.msk [vmem:[#allocation2 + $0x8] sm:$0xff] %vm319_vm2, %v1008_v5  ;;  %v1009_v15 = vmov 0   ;;  %vm429_vm5 = vcmask 1043456   ;;  %vm752_vm6 = vcmask 261120  }
   0xf   : > { %v1078_v1 = vld [vmem:[%s299_s25] ss:$0 sps:$4 sm:$0xff]   ;;  %322 = vst.msk [vmem:[#allocation3] sm:$0xff] %vm319_vm2, %v1005_v0  ;;  %323 = vst.msk [vmem:[#allocation3 + $0x8] sm:$0xff] %vm319_vm2, %v1005_v0  ;;  %v331_v7 = vand.u32 127, %v330_v6  ;;  %964 = vset.pattern.permute.xlu1 %v1009_v15  ;;  %965 = vset.pattern.permute.xlu0 %v1009_v15  ;;  %s868_s13 = sshll.u32 %s1163_s18, 3 }
  0x10   : > { %338 = vrot.lane.b32.xlu0 %v1078_v1, %s1007_s26  ;;  %v327_v4 = vld [vmem:[%s292_s29] sm:$0xf]  ;;  %s306_s16 = scalar_lea.vmem %s1156_s4, %s868_s13  ;;  %s313_s25 = scalar_lea.vmem %s1157_s5, %s868_s13 }
  0x11   : > { %vm334_vm3 = vcmp.lt.s32.totalorder %v331_v7, 2  ;;  %v873_v20 = vcombine.low %v327_v4, %v327_v4 }
  0x14   : > { %v416_v55 = vld [vmem:[#allocation4] sm:$0xff] }
  0x15   : > { %v391_v16 = vld [vmem:[#allocation2] sm:$0xff]  ;;  %v532_v45 = vld [vmem:[#allocation2 + $0x8] sm:$0xff] }
  0x16   : > { %v408_v51 = vld [vmem:[#allocation3] sm:$0xff] }
  0x82   : > { %v339_v2 = vpop.permute.xlu0 %338 }
  0x83   : > { %v345_v3 = vsel %vm324_vm0, %v339_v2, 0 }
  0x84   : > { %896 = vmatpush3.bf16.xpose.msra.mxu0 %v345_v3 }
  0x85   : > { %913 = vmatprep.subr.bf16.mxu0 %v1005_v0 }
  0x8b   : > { %898 = vmatmul.mubr.msk.bf16.vlgmr.msra.gmra.mxu0 %vm324_vm0, %v327_v4 }
  0x8c   : > { %915 = vmatprep.mubr.msk.bf16.mxu0 %vm1006_vm1, %v1005_v0 }
 0x14b   : > { %v381_v8 = vpop.f32.mrf.mxu0 }
 0x14c   : > { %v387_v9 = vmul.f32 0.25, %v381_v8 }
 0x14d   : > { %v899_v10 = vpop.f32.mrf.mxu0 }
 0x14e   : > { %v390_v11 = vsel %vm334_vm3, %v387_v9, -1e+30 }
 0x14f   : > { %v384_v12 = vpop.f32.mrf.mxu0  ;;  %v393_v13 = vsel %vm392_vm4, %v390_v11, -inf }
 0x150   : > { %394 = vmax.xlane.f32.xlu0 %v393_v13  ;;  %v549_v12 = vld [vmem:[#allocation3 + $0x8] sm:$0xff] }
 0x151   : > { %v900_v14 = vpop.f32.mrf.mxu0 }
 0x1d9   : > { %v395_v17 = vpop.xlane.xlu0 %394 }
 0x1da   : > { %v396_v18 = vmax.f32 %v391_v16, %v395_v17  ;;  %v557_v17 = vld [vmem:[#allocation4 + $0x8] sm:$0xff] }
 0x1dc   : > { %v397_v19 = vsub.f32 %v391_v16, %v396_v18  ;;  %475 = vst.msk [vmem:[#allocation2] sm:$0xff] %vm319_vm2, %v396_v18  ;;  %402 = vperm.xlu1 %964, %v396_v18  }
 0x1de   : > { %v398_v42 = vmul.f32 1.442695, %v397_v19 }
 0x1e0   : > { %424 = vrot.lane.b32.xlu1 %v1078_v1, %s1010_s30 }
 0x1e4   : > { %481 = vrot.lane.b32.xlu1 %v1078_v1, %s1011_s6 }
 0x1e8   : > { %479 = vrot.lane.b32.xlu1 %v873_v20, %s1012_s7 }
 0x257   : > { %v403_v21 = vpop.permute.xlu1 %402 }
 0x258   : > { %v405_v22 = vsub.f32 %v390_v11, %v403_v21  ;;  %v968_v11 = vld [vmem:[%s1154_s2 + $0x8] sm:$0xff]  }
 0x25a   : > { %v406_v23 = vmul.f32 1.442695, %v405_v22 }
 0x25b   : > { %v425_v24 = vpop.permute.xlu1 %424 }
 0x25c   : > { %969 = vpow2.f32 %v406_v23  ;;  %v431_v25 = vsel %vm429_vm5, %v425_v24, 0 }
 0x25d   : > { %902 = vmatpush3.bf16.msra.mxu1 %v431_v25  ;;  %971 = vpow2.f32 %v398_v42 }
 0x25e   : > { %907 = vmatprep.subr.bf16.mxu1 %v1005_v0 }
 0x25f   : > { %v482_v26 = vpop.permute.xlu1 %481 }
 0x260   : > { %v487_v28 = vsel %vm324_vm0, %v482_v26, 0 }
 0x263   : > { %v480_v30 = vpop.permute.xlu1 %479 }
 0x269   : > { %v970_v27 = vpop.eup %969 }
 0x26a   : > { %v423_v29 = vpack.c.bf16 %v970_v27, %v970_v27  ;;  %v410_v43 = vsel %vm392_vm4, %v970_v27, 0.0  ;;  %v972_v44 = vpop.eup %971 }
 0x26b   : > { %v409_v52 = vmul.f32 %v972_v44, %v408_v51 }
 0x26c   : > { %904 = vmatmul.mubr.msk.bf16.vlgmr.msra.gmra.mxu1 %vm392_vm4, %v423_v29 }
 0x26d   : > { %908 = vmatpush3.bf16.xpose.msra.mxu1 %v487_v28  ;;  %909 = vmatprep.mubr.msk.bf16.mxu1 %vm1006_vm1, %v1005_v0 }
 0x26e   : > { %919 = vmatprep.subr.bf16.mxu1 %v1005_v0 }
 0x274   : > { %910 = vmatmul.mubr.msk.bf16.vlgmr.msra.gmra.mxu1 %vm324_vm0, %v480_v30 }
 0x275   : > { %921 = vmatprep.mubr.msk.bf16.mxu1 %vm1006_vm1, %v1005_v0  ;;  %920 = vmatpush3.bf16.msra.mxu1 %v967_v60 }
 0x32c   : > { %v467_v31 = vpop.f32.mrf.mxu1 }
 0x32e   : > { %v905_v32 = vpop.f32.mrf.mxu1 }
 0x330   : > { %v470_v33 = vpop.f32.mrf.mxu1 }
 0x331   : > { %v876_v33 = vld [vmem:[%s1155_s3] ss:$0 sm:$0xff] }
 0x332   : > { %v906_v34 = vpop.f32.mrf.mxu1 }
 0x333   : > { %v624_v34 = vld [vmem:[%s306_s16] sm:$0xff] }
 0x334   : > { %v523_v35 = vpop.f32.mrf.mxu1 }
 0x335   : > { %v529_v36 = vmul.f32 0.25, %v523_v35  ;;  %v631_v35 = vadd.f32 %v876_v33, %v624_v34 }
 0x336   : > { %v911_v37 = vpop.f32.mrf.mxu1 }
 0x337   : > { %v530_v38 = vsel %vm334_vm3, %v529_v36, -1e+30 }
 0x338   : > { %v526_v39 = vpop.f32.mrf.mxu1  ;;  %v533_v40 = vsel %vm392_vm4, %v530_v38, -inf }
 0x339   : > { %534 = vmax.xlane.f32.xlu1 %v533_v40 }
 0x33a   : > { %v912_v41 = vpop.f32.mrf.mxu1 }
 0x34a   : > { %565 = vrot.lane.b32.xlu1 %v1078_v1, %s1013_s8 }
 0x36e   : > { %411 = vadd.xlane.f32.xlu1 %v410_v43 }
 0x37f   : > { %419 = vperm.xlu1 %964, %v972_v44  }
 0x3c2   : > { %v535_v46 = vpop.xlane.xlu1 %534 }
 0x3c3   : > { %v536_v47 = vmax.f32 %v532_v45, %v535_v46 }
 0x3c5   : > { %v537_v48 = vsub.f32 %v532_v45, %v536_v47  ;;  %615 = vst.msk [vmem:[#allocation2 + $0x8] sm:$0xff] %vm319_vm2, %v536_v47  ;;  %542 = vperm.xlu0 %965, %v536_v47  }
 0x3c6   : > { %v566_v49 = vpop.permute.xlu1 %565 }
 0x3c7   : > { %v571_v50 = vsel %vm429_vm5, %v566_v49, 0  ;;  %v538_v5 = vmul.f32 1.442695, %v537_v48 }
 0x3c8   : > { %914 = vmatpush3.bf16.msra.mxu0 %v571_v50 }
 0x3c9   : > { %925 = vmatprep.subr.bf16.mxu0 %v1005_v0 }
 0x3f7   : > { %v412_v53 = vpop.xlane.xlu1 %411 }
 0x3f8   : > { %v413_v54 = vadd.f32 %v412_v53, %v409_v52 }
 0x3fa   : > { %415 = vst.msk [vmem:[#allocation3] sm:$0xff] %vm319_vm2, %v413_v54 }
 0x3fb   : > { %v420_v56 = vpop.permute.xlu1 %419 }
 0x3fc   : > { %v422_v57 = vmul.f32 %v420_v56, %v416_v55 }
 0x3fe   : > { %v473_v58 = vadd.f32 %v467_v31, %v422_v57 }
 0x400   : > { %474 = vst.msk [vmem:[#allocation4] sm:$0xff] %vm324_vm0, %v473_v58 }
 0x401   : > { %v633_v59 = vld [vmem:[#allocation3] sm:$0xff] }
 0x402   : > { %973 = vrcp.f32 %v633_v59 }
 0x407   : > { %v632_v7 = vld [vmem:[#allocation4] sm:$0xff] }
 0x40f   : > { %v974_v61 = vpop.eup %973 }
 0x410   : > { %637 = vperm.xlu1 %964, %v974_v61  }
 0x440   : > { %v543_v62 = vpop.permute.xlu0 %542 }
 0x441   : > { %v545_v63 = vsub.f32 %v530_v38, %v543_v62 }
 0x443   : > { %v546_v1 = vmul.f32 1.442695, %v545_v63 }
 0x445   : > { %975 = vpow2.f32 %v546_v1 }
 0x446   : > { %977 = vpow2.f32 %v538_v5 }
 0x452   : > { %v976_v2 = vpop.eup %975 }
 0x453   : > { %v551_v3 = vsel %vm392_vm4, %v976_v2, 0.0  ;;  %v564_v4 = vpack.c.bf16 %v976_v2, %v976_v2  ;;  %v978_v6 = vpop.eup %977 }
 0x454   : > { %552 = vadd.xlane.f32.xlu0 %v551_v3  ;;  %v550_v13 = vmul.f32 %v978_v6, %v549_v12 }
 0x455   : > { %916 = vmatmul.mubr.msk.bf16.vlgmr.msra.gmra.mxu0 %vm392_vm4, %v564_v4 }
 0x456   : > { %927 = vmatprep.mubr.msk.bf16.mxu0 %vm1006_vm1, %v1005_v0  ;;  %926 = vmatpush3.bf16.msra.mxu0 %v968_v11 }
 0x46a   : > { %560 = vperm.xlu0 %965, %v978_v6  }
 0x48b   : > { %v638_v8 = vpop.permute.xlu1 %637 }
 0x48c   : > { %v640_v9 = vmul.f32 %v638_v8, %v632_v7 }
 0x48e   : > { %v641_v10 = vpack.c.bf16 %v640_v9, %v640_v9 }
 0x490   : > { %922 = vmatmul.mubr.msk.bf16.vlgmr.msra.gmra.mxu1 %vm324_vm0, %v641_v10 }
 0x4dd   : > { %v553_v14 = vpop.xlane.xlu0 %552 }
 0x4de   : > { %v554_v15 = vadd.f32 %v553_v14, %v550_v13 }
 0x4e0   : > { %555 = vst.msk [vmem:[#allocation3 + $0x8] sm:$0xff] %vm319_vm2, %v554_v15 }
 0x4e5   : > { %v561_v18 = vpop.permute.xlu0 %560 }
 0x4e6   : > { %v563_v19 = vmul.f32 %v561_v18, %v557_v17 }
 0x4e7   : > { %v693_v0 = vld [vmem:[#allocation3 + $0x8] sm:$0xff] }
 0x4e8   : > { %979 = vrcp.f32 %v693_v0 }
 0x4f5   : > { %v980_v16 = vpop.eup %979 }
 0x4f6   : > { %697 = vperm.xlu1 %964, %v980_v16  }
 0x515   : > { %v607_v20 = vpop.f32.mrf.mxu0 }
 0x516   : > { %v613_v21 = vadd.f32 %v607_v20, %v563_v19 }
 0x517   : > { %v917_v22 = vpop.f32.mrf.mxu0 }
 0x518   : > { %614 = vst.msk [vmem:[#allocation4 + $0x8] sm:$0xff] %vm324_vm0, %v613_v21 }
 0x519   : > { %v610_v23 = vpop.f32.mrf.mxu0 }
 0x51b   : > { %v918_v24 = vpop.f32.mrf.mxu0 }
 0x51f   : > { %v692_v30 = vld [vmem:[#allocation4 + $0x8] sm:$0xff] }
 0x550   : > { %v685_v25 = vpop.f32.mrf.mxu1 }
 0x551   : > { %v691_v36 = vadd.f32 %v685_v25, %v631_v35 }
 0x552   : > { %v923_v26 = vpop.f32.mrf.mxu1 }
 0x554   : > { %v688_v27 = vpop.f32.mrf.mxu1 }
 0x556   : > { %v924_v28 = vpop.f32.mrf.mxu1 }
 0x571   : > { %v698_v29 = vpop.permute.xlu1 %697 }
 0x572   : > { %v700_v31 = vmul.f32 %v698_v29, %v692_v30 }
 0x574   : > { %v701_v32 = vpack.c.bf16 %v700_v31, %v700_v31 }
 0x576   : > { %928 = vmatmul.mubr.msk.bf16.vlgmr.msra.gmra.mxu0 %vm324_vm0, %v701_v32 }
 0x636   : > { %v745_v37 = vpop.f32.mrf.mxu0 }
 0x637   : > { %v751_v38 = vadd.f32 %v745_v37, %v691_v36 }
 0x638   : > { %v929_v39 = vpop.f32.mrf.mxu0 }
 0x639   : > { %753 = vst.msk [vmem:[%s313_s25] sm:$0xff] %vm752_vm6, %v751_v38 }
 0x63a   : > { %v748_v40 = vpop.f32.mrf.mxu0 }
 0x63c   : > { %v930_v41 = vpop.f32.mrf.mxu0 }
 0x63d PF: > { %s15_s20 = sadd.s32 1, %s1003_s20   ;;  %s1158_s18 = smov %s999_s19 }
 0x63e   : > { %p12_p5 = scmp.ge.s32.totalorder %s15_s20, 4   ;;  %s1159_s19 = smov %s1161_s21 }
 0x640   :  { %14 = sbr.rel (!%p12_p5) target bundleno = 2 (0x2), region = 87 }

// kernel: t2t_vit_forward.21
= control target key start
LH: loop header
LB: loop body
LE: loop exit
PB: predicated region body
PF: predicated region fallthrough
CT: control target
= control target key end

     0   :  { %vm22_vm0 = vcmask 261120   ;;  %v149_v7 = vmov 0.0   ;;  %vm150_vm1 = vmmov 0   ;;  %vm120_vm2 = vcmask 80896   ;;  %s205_s0 = inlined_call_operand.vmem [shape: f32[8,32], index: 0, kind: input, shape index: {}]   ;;  %s206_s1 = inlined_call_operand.vmem [shape: bf16[32,10], index: 1, kind: input, shape index: {}]   ;;  %s207_s3 = inlined_call_operand.vmem [shape: f32[1,32], index: 3, kind: input, shape index: {}]   ;;  %s208_s4 = inlined_call_operand.vmem [shape: f32[1,32], index: 4, kind: input, shape index: {}]   ;;  %s209_s2 = inlined_call_operand.vmem [shape: f32[1,10], index: 2, kind: input, shape index: {}]   ;;  %s210_s5 = inlined_call_operand.vmem [shape: f32[8,10], index: 5, kind: output, shape index: {}]  }
   0x1   :  { %v21_v0 = vld [vmem:[%s205_s0] sm:$0xff]  ;;  %135 = vmatprep.subr.bf16.mxu0 %v149_v7  ;;  %v145_v8 = vld [vmem:[%s206_s1 + $0x8] sm:$0xff]   ;;  %139 = vmatprep.mubr.msk.bf16.mxu0 %vm150_vm1, %v149_v7 }
   0x2   :  { %v23_v1 = vsel %vm22_vm0, %v21_v0, 0.0  ;;  %136 = vmatpush3.bf16.msra.mxu0 %v145_v8  ;;  %v146_v9 = vld [vmem:[%s206_s1] sm:$0xff]  }
   0x3   :  { %24 = vadd.xlane.f32.xlu0 %v23_v1  ;;  %137 = vmatprep.subr.bf16.mxu0 %v149_v7  ;;  %v126_v14 = vld [vmem:[%s207_s3] ss:$0 sm:$0xff] }
   0x4   :  { %v127_v16 = vld [vmem:[%s208_s4] ss:$0 sm:$0xff] }
   0x5   :  { %v128_v20 = vld [vmem:[%s209_s2] ss:$0 sm:$0xff] }
   0x6   :  { %138 = vmatpush3.bf16.msra.mxu0 %v146_v9 }
  0x8c   :  { %v25_v2 = vpop.xlane.xlu0 %24 }
  0x8d   :  { %v27_v3 = vmul.f32 0.03125, %v25_v2 }
  0x8f   :  { %v28_v4 = vsub.f32 %v21_v0, %v27_v3 }
  0x91   :  { %v29_v5 = vmul.f32 %v28_v4, %v28_v4 }
  0x93   :  { %v30_v6 = vsel %vm22_vm0, %v29_v5, 0.0 }
  0x94   :  { %31 = vadd.xlane.f32.xlu0 %v30_v6 }
 0x11d   :  { %v32_v10 = vpop.xlane.xlu0 %31 }
 0x11e   :  { %v33_v11 = vmul.f32 0.03125, %v32_v10 }
 0x120   :  { %v34_v12 = vadd.f32 1e-05, %v33_v11 }
 0x122   :  { %147 = vrsqrt.f32 %v34_v12 }
 0x12f   :  { %v148_v13 = vpop.eup %147 }
 0x130   :  { %v36_v15 = vmul.f32 %v148_v13, %v28_v4 }
 0x132   :  { %v44_v17 = vmul.f32 %v126_v14, %v36_v15 }
 0x134   :  { %v52_v18 = vadd.f32 %v127_v16, %v44_v17 }
 0x136   :  { %v53_v19 = vpack.c.bf16 %v52_v18, %v52_v18 }
 0x138   :  { %140 = vmatmul.mubr.msk.bf16.vlgmr.msra.gmra.mxu0 %vm22_vm0, %v53_v19 }
 0x1f8   :  { %v114_v21 = vpop.f32.mrf.mxu0 }
 0x1f9   :  { %v115_v22 = vadd.f32 %v128_v20, %v114_v21 }
 0x1fa   :  { %v141_v23 = vpop.f32.mrf.mxu0 }
 0x1fb   :  { %121 = vst.msk [vmem:[%s210_s5] sm:$0xff] %vm120_vm2, %v115_v22 }
 0x1fc   :  { %v117_v24 = vpop.f32.mrf.mxu0 }
 0x1fe   :  { %v142_v25 = vpop.f32.mrf.mxu0 }

</bundles_post_ra>
